<compile_context>
chip_gen: v6e
topology: v6e:2x2x1
jax: 0.10.0
libtpu: 0.0.40
codegen_flags: <defaults>
</compile_context>

<pallas_src>
import math
import numpy as np
import jax
import jax.numpy as jnp
from jax import lax
from jax.experimental import pallas as pl
from jax.experimental.pallas import tpu as pltpu


# ----------------------------------------------------------------------------
# Host-side (glue): 1-D linear operators for zoom / flip / gaussian blur
# ----------------------------------------------------------------------------
def _linear_resize_pad_matrix(size: int, zoom: float) -> np.ndarray:
    """Linear-per-axis resize to floor(size*zoom), then center zero-pad back."""
    zoomed = max(1, int(math.floor(size * zoom)))
    R = np.zeros((zoomed, size), np.float32)
    scale = size / zoomed
    for i in range(zoomed):
        src = (i + 0.5) * scale - 0.5
        src = min(max(src, 0.0), size - 1.0)
        lo = int(math.floor(src))
        hi = min(lo + 1, size - 1)
        w = src - lo
        R[i, lo] += 1.0 - w
        R[i, hi] += w
    Z = np.zeros((size, size), np.float32)
    pad = (size - zoomed) // 2
    Z[pad:pad + zoomed, :] = R
    return Z


def _nearest_resize_pad_matrix(size: int, zoom: float) -> np.ndarray:
    zoomed = max(1, int(math.floor(size * zoom)))
    R = np.zeros((zoomed, size), np.float32)
    for i in range(zoomed):
        src = min(int(math.floor(i * size / zoomed)), size - 1)
        R[i, src] = 1.0
    Z = np.zeros((size, size), np.float32)
    pad = (size - zoomed) // 2
    Z[pad:pad + zoomed, :] = R
    return Z


def _gaussian_band_matrix(size: int, sigma: float) -> np.ndarray:
    """1-D gaussian conv (truncated at 4*sigma, zero padding); symmetric."""
    tail = int(4.0 * sigma + 0.5)
    xs = np.arange(-tail, tail + 1, dtype=np.float64)
    k = np.exp(-0.5 * (xs / sigma) ** 2)
    k = (k / k.sum()).astype(np.float32)
    G = np.zeros((size, size), np.float32)
    for o in range(size):
        for j, off in enumerate(range(-tail, tail + 1)):
            i = o + off
            if 0 <= i < size:
                G[o, i] += k[j]
    return G


# ----------------------------------------------------------------------------
# Pallas kernel
# ----------------------------------------------------------------------------
def _augment_kernel(img_ref, lbl_ref, noise_ref,
                    mdI_ref, mhTI_ref, mwTI_ref,
                    mdL_ref, mhTL_ref, mwTL_ref,
                    g1_ref, g2_ref,
                    u_ref, ut_ref, v_ref, vt_ref,
                    iparams_ref, fparams_ref,
                    oimg_ref, olbl_ref,
                    work_ref):
    b = pl.program_id(0)
    C, S, SS = img_ref.shape      # (C, D, H*W) — lane-dense last dim
    CL = lbl_ref.shape[0]
    f32 = jnp.float32

    def kron_t(a_t, b_t):
        # kron(a_t, b_t)[h*S+w, h'*S+w'] = a_t[h,h'] * b_t[w,w'].
        # Built as (U a Uᵀ) ⊙ (V b Vᵀ): (U a Uᵀ)[r,c]=a[r//S,c//S],
        # (V b Vᵀ)[r,c]=b[r%S,c%S] — 4 small MXU dots + 1 multiply, no
        # 4-D intermediates / minor-dim reshapes.
        ea = jnp.dot(jnp.dot(u_ref[...], a_t, preferred_element_type=f32),
                     ut_ref[...], preferred_element_type=f32)
        tb = jnp.dot(jnp.dot(v_ref[...], b_t, preferred_element_type=f32),
                     vt_ref[...], preferred_element_type=f32)
        return ea * tb

    def apply_sep(x, nch, md, mhT, mwT):
        # D axis: channel-batched dot with the (S,S) operator (no block-diag).
        mdb = jnp.broadcast_to(md, (nch, S, S))
        y = lax.dot_general(mdb, x, (((2,), (1,)), ((0,), (0,))),
                            preferred_element_type=f32)            # (nch,S,SS)
        # Fused H,W axes: right-dot with kron(MHᵀ, MWᵀ) built in-kernel.
        khwT = kron_t(mhT, mwT)                                     # (SS,SS)
        y = jnp.dot(y.reshape(nch * S, SS), khwT,
                    preferred_element_type=f32)                     # (nch*S,SS)
        return y.reshape(nch, S, SS)

    # ---- 1) zoom (trilinear / nearest, center pad) + flips -----------------
    olbl_ref[...] = apply_sep(lbl_ref[...].astype(f32), CL,
                              mdL_ref[...], mhTL_ref[...], mwTL_ref[...])
    work_ref[...] = apply_sep(img_ref[...].astype(f32), C,
                              mdI_ref[...], mhTI_ref[...], mwTI_ref[...])

    # ---- 2) RandGaussianNoise (p=0.15): host bf16 normal, scaled in-kernel --
    @pl.when(iparams_ref[b, 0] != 0)
    def _():
        std = fparams_ref[b, 2]
        work_ref[...] = work_ref[...] + std * noise_ref[...].astype(f32)

    # ---- 3) GaussianSharpen (p=0.15): b1=G1*x, b2=G2*b1, b1+alpha*(b1-b2) ---
    @pl.when(iparams_ref[b, 1] != 0)
    def _():
        alpha = fparams_ref[b, 1]
        g1 = g1_ref[...]          # symmetric -> G.T == G
        g2 = g2_ref[...]
        x = work_ref[...]
        b1 = apply_sep(x, C, g1, g1, g1)
        b2 = apply_sep(b1, C, g2, g2, g2)
        work_ref[...] = b1 + alpha * (b1 - b2)

    # ---- 4) AdjustContrast: ((x-min)/(range+eps))**gamma * range + min ------
    @pl.when(iparams_ref[b, 2] != 0)
    def _():
        gamma = fparams_ref[b, 0]
        x2 = work_ref[...].reshape(C * S, SS)    # clean (8,128)-aligned reduce
        mn = jnp.min(x2)
        mx = jnp.max(x2)
        rng = mx - mn
        norm = (x2 - mn) / (rng + 1e-7)
        powed = jnp.where(norm > 0.0,
                          jnp.exp(gamma * jnp.log(jnp.maximum(norm, 1e-30))),
                          0.0)
        work_ref[...] = (powed * rng + mn).reshape(C, S, SS)

    # ---- single lane-dense output store -------------------------------------
    oimg_ref[...] = work_ref[...]


# ----------------------------------------------------------------------------
# Wrapper
# ----------------------------------------------------------------------------
def data_augmenter(images, labels, seed=0):
    B, C, D, H, W = images.shape
    CL = labels.shape[1]
    assert D == H == W, "demo assumes cubic volumes"
    S, SS = D, H * W

    # --- deterministic "random" module parameters (DataAugmenter.__init__) ---
    key = jax.random.PRNGKey(seed)
    k_mod, k_gate, k_noise = jax.random.split(key, 3)
    u = np.asarray(jax.random.uniform(k_mod, (5,)), np.float64)
    zoom_rate = 0.70 + 0.30 * u[0]          # uniform(0.7, 1.0)
    sigma1 = 0.50 + 1.00 * u[1]             # uniform(0.5, 1.5)
    sigma2 = 0.50 + 1.00 * u[2]             # uniform(0.5, 1.5)
    noise_std = 0.33 * u[3]                 # uniform(0, 0.33)
    gamma = 0.65 + 0.85 * u[4]              # uniform(0.65, 1.5)
    alpha = 30.0                            # GaussianSharpen default

    # --- deterministic per-batch gates (the `random() < p` branches) ---------
    gates = np.asarray(jax.random.uniform(k_gate, (B, 7)), np.float64)

    I = np.eye(S, dtype=np.float32)
    F = np.ascontiguousarray(I[::-1])
    Z_img = _linear_resize_pad_matrix(S, float(zoom_rate))
    Z_lbl = _nearest_resize_pad_matrix(S, float(zoom_rate))

    # per-batch (S,S) per-axis factors only — no (SS,SS), no block-diagonals
    md_img = np.zeros((B, S, S), np.float32)
    mhT_img = np.zeros_like(md_img)
    mwT_img = np.zeros_like(md_img)
    md_lbl = np.zeros((B, S, S), np.float32)
    mhT_lbl = np.zeros_like(md_lbl)
    mwT_lbl = np.zeros_like(md_lbl)
    for b in range(B):
        zoom_on = gates[b, 0] < 0.15
        Zi = Z_img if zoom_on else I
        Zl = Z_lbl if zoom_on else I
        fm = [F if gates[b, 1 + ax] < 0.5 else I for ax in range(3)]
        mi = [fm[ax] @ Zi for ax in range(3)]     # flip after zoom, per axis
        ml = [fm[ax] @ Zl for ax in range(3)]
        md_img[b], mhT_img[b], mwT_img[b] = mi[0], mi[1].T, mi[2].T
        md_lbl[b], mhT_lbl[b], mwT_lbl[b] = ml[0], ml[1].T, ml[2].T

    G1 = _gaussian_band_matrix(S, float(sigma1))
    G2 = _gaussian_band_matrix(S, float(sigma2))

    # shared 0/1 "expand" matrices used to build kron(A,B) in-kernel
    Umat = np.kron(np.eye(S, dtype=np.float32), np.ones((S, 1), np.float32))
    Vmat = np.kron(np.ones((S, 1), np.float32), np.eye(S, dtype=np.float32))

    # SMEM flags + float params
    iparams = np.zeros((B, 4), np.int32)
    iparams[:, 0] = (gates[:, 4] < 0.15).astype(np.int32)   # noise gate
    iparams[:, 1] = (gates[:, 5] < 0.15).astype(np.int32)   # sharpen gate
    iparams[:, 2] = (gates[:, 6] < 0.15).astype(np.int32)   # contrast gate
    fparams = np.zeros((B, 4), np.float32)
    fparams[:, 0] = gamma
    fparams[:, 1] = alpha
    fparams[:, 2] = noise_std

    # host-generated standard normal field (bf16 halves the DMA bytes)
    noise = jax.random.normal(k_noise, (B, C, S, SS), dtype=jnp.bfloat16)

    # lane-dense layout: [B, C, D, H*W] (last dim = 256 for S=16)
    img_r = images.astype(jnp.float32).reshape(B, C, S, SS)
    lbl_r = labels.astype(jnp.float32).reshape(B, CL, S, SS)

    vol_img_spec = pl.BlockSpec((None, C, S, SS), lambda b: (b, 0, 0, 0))
    vol_lbl_spec = pl.BlockSpec((None, CL, S, SS), lambda b: (b, 0, 0, 0))
    fac_spec = pl.BlockSpec((None, S, S), lambda b: (b, 0, 0))
    ss_spec = pl.BlockSpec((S, S), lambda b: (0, 0))
    exp_spec = pl.BlockSpec((SS, S), lambda b: (0, 0))
    expT_spec = pl.BlockSpec((S, SS), lambda b: (0, 0))
    smem_spec = pl.BlockSpec(memory_space=pltpu.MemorySpace.SMEM)

    out_shape = (jax.ShapeDtypeStruct((B, C, S, SS), jnp.float32),
                 jax.ShapeDtypeStruct((B, CL, S, SS), jnp.float32))

    out_img, out_lbl = pl.pallas_call(
        _augment_kernel,
        grid=(B,),
        in_specs=[vol_img_spec, vol_lbl_spec, vol_img_spec,
                  fac_spec, fac_spec, fac_spec,
                  fac_spec, fac_spec, fac_spec,
                  ss_spec, ss_spec,
                  exp_spec, expT_spec, exp_spec, expT_spec,
                  smem_spec, smem_spec],
        out_specs=(vol_img_spec, vol_lbl_spec),
        out_shape=out_shape,
        scratch_shapes=[pltpu.VMEM((C, S, SS), jnp.float32)],
        compiler_params=pltpu.CompilerParams(
            dimension_semantics=("parallel",)),
    )(img_r, lbl_r, noise,
      jnp.asarray(md_img), jnp.asarray(mhT_img), jnp.asarray(mwT_img),
      jnp.asarray(md_lbl), jnp.asarray(mhT_lbl), jnp.asarray(mwT_lbl),
      jnp.asarray(G1), jnp.asarray(G2),
      jnp.asarray(Umat), jnp.asarray(Umat.T),
      jnp.asarray(Vmat), jnp.asarray(Vmat.T),
      jnp.asarray(iparams), jnp.asarray(fparams))

    return (out_img.reshape(B, C, D, H, W),
            out_lbl.reshape(B, CL, D, H, W))


if __name__ == "__main__":
    B, C, CL, S = 2, 4, 3, 16
    key = jax.random.PRNGKey(0)
    k_img, k_lbl = jax.random.split(key)
    images = jax.random.normal(k_img, (B, C, S, S, S), dtype=jnp.float32)
    labels = (jax.random.uniform(k_lbl, (B, CL, S, S, S)) > 0.5).astype(jnp.float32)

    out_images, out_labels = data_augmenter(images, labels, seed=0)
    jax.block_until_ready((out_images, out_labels))

    assert out_images.shape == (B, C, S, S, S)
    assert out_labels.shape == (B, CL, S, S, S)
    assert bool(jnp.all(jnp.isfinite(out_images)))
    assert bool(jnp.all(jnp.isfinite(out_labels)))
    print("KERNEL_OK")
</pallas_src>

<mosaic_0001>
module attributes {stable_mosaic.version = 11 : i64} {
  func.func @_augment_kernel(%arg0: i32, %arg1: memref<1x4x16x256xf32, #tpu.memory_space<vmem>>, %arg2: memref<1x3x16x256xf32, #tpu.memory_space<vmem>>, %arg3: memref<1x4x16x256xbf16, #tpu.memory_space<vmem>>, %arg4: memref<1x16x16xf32, #tpu.memory_space<vmem>>, %arg5: memref<1x16x16xf32, #tpu.memory_space<vmem>>, %arg6: memref<1x16x16xf32, #tpu.memory_space<vmem>>, %arg7: memref<1x16x16xf32, #tpu.memory_space<vmem>>, %arg8: memref<1x16x16xf32, #tpu.memory_space<vmem>>, %arg9: memref<1x16x16xf32, #tpu.memory_space<vmem>>, %arg10: memref<16x16xf32, #tpu.memory_space<vmem>>, %arg11: memref<16x16xf32, #tpu.memory_space<vmem>>, %arg12: memref<256x16xf32, #tpu.memory_space<vmem>>, %arg13: memref<16x256xf32, #tpu.memory_space<vmem>>, %arg14: memref<256x16xf32, #tpu.memory_space<vmem>>, %arg15: memref<16x256xf32, #tpu.memory_space<vmem>>, %arg16: memref<2x4xi32, #tpu.memory_space<smem>>, %arg17: memref<2x4xf32, #tpu.memory_space<smem>>, %arg18: memref<1x4x16x256xf32, #tpu.memory_space<vmem>>, %arg19: memref<1x3x16x256xf32, #tpu.memory_space<vmem>>, %arg20: memref<4x16x256xf32, #tpu.memory_space<vmem>>) attributes {dimension_semantics = [#tpu.dimension_semantics<parallel>], iteration_bounds = array<i64: 2>, scalar_prefetch = 0 : i64, scratch_operands = 1 : i64, tpu.core_type = #tpu.core_type<tc>, window_params = [{transform_indices = @transform_0, window_bounds = array<i64: 1, 4, 16, 256>}, {transform_indices = @transform_1, window_bounds = array<i64: 1, 3, 16, 256>}, {transform_indices = @transform_2, window_bounds = array<i64: 1, 4, 16, 256>}, {transform_indices = @transform_3, window_bounds = array<i64: 1, 16, 16>}, {transform_indices = @transform_4, window_bounds = array<i64: 1, 16, 16>}, {transform_indices = @transform_5, window_bounds = array<i64: 1, 16, 16>}, {transform_indices = @transform_6, window_bounds = array<i64: 1, 16, 16>}, {transform_indices = @transform_7, window_bounds = array<i64: 1, 16, 16>}, {transform_indices = @transform_8, window_bounds = array<i64: 1, 16, 16>}, {pipeline_mode = #tpu.pipeline_mode<synchronous>, transform_indices = @transform_9, window_bounds = array<i64: 16, 16>}, {pipeline_mode = #tpu.pipeline_mode<synchronous>, transform_indices = @transform_10, window_bounds = array<i64: 16, 16>}, {pipeline_mode = #tpu.pipeline_mode<synchronous>, transform_indices = @transform_11, window_bounds = array<i64: 256, 16>}, {pipeline_mode = #tpu.pipeline_mode<synchronous>, transform_indices = @transform_12, window_bounds = array<i64: 16, 256>}, {pipeline_mode = #tpu.pipeline_mode<synchronous>, transform_indices = @transform_13, window_bounds = array<i64: 256, 16>}, {pipeline_mode = #tpu.pipeline_mode<synchronous>, transform_indices = @transform_14, window_bounds = array<i64: 16, 256>}, {transform_indices = @transform_15, window_bounds = array<i64: 2, 4>}, {transform_indices = @transform_16, window_bounds = array<i64: 2, 4>}, {transform_indices = @transform_17, window_bounds = array<i64: 1, 4, 16, 256>}, {transform_indices = @transform_18, window_bounds = array<i64: 1, 3, 16, 256>}]} {
    %c0 = arith.constant 0 : index
    %c0_0 = arith.constant 0 : index
    %c0_1 = arith.constant 0 : index
    %c0_2 = arith.constant 0 : index
    %0 = vector.load %arg2[%c0, %c0_0, %c0_1, %c0_2] : memref<1x3x16x256xf32, #tpu.memory_space<vmem>>, vector<1x3x16x256xf32>
    %1 = vector.shape_cast %0 : vector<1x3x16x256xf32> to vector<3x16x256xf32>
    %c0_3 = arith.constant 0 : index
    %c0_4 = arith.constant 0 : index
    %c0_5 = arith.constant 0 : index
    %2 = vector.load %arg7[%c0_3, %c0_4, %c0_5] : memref<1x16x16xf32, #tpu.memory_space<vmem>>, vector<1x16x16xf32>
    %3 = vector.shape_cast %2 : vector<1x16x16xf32> to vector<16x16xf32>
    %c0_6 = arith.constant 0 : index
    %c0_7 = arith.constant 0 : index
    %c0_8 = arith.constant 0 : index
    %4 = vector.load %arg8[%c0_6, %c0_7, %c0_8] : memref<1x16x16xf32, #tpu.memory_space<vmem>>, vector<1x16x16xf32>
    %5 = vector.shape_cast %4 : vector<1x16x16xf32> to vector<16x16xf32>
    %c0_9 = arith.constant 0 : index
    %c0_10 = arith.constant 0 : index
    %c0_11 = arith.constant 0 : index
    %6 = vector.load %arg9[%c0_9, %c0_10, %c0_11] : memref<1x16x16xf32, #tpu.memory_space<vmem>>, vector<1x16x16xf32>
    %7 = vector.shape_cast %6 : vector<1x16x16xf32> to vector<16x16xf32>
    %8 = vector.shape_cast %3 : vector<16x16xf32> to vector<1x16x16xf32>
    %9 = vector.broadcast %8 : vector<1x16x16xf32> to vector<3x16x16xf32>
    %cst = arith.constant dense<0.000000e+00> : vector<3x16x256xf32>
    %10 = tpu.matmul %9, %1, %cst {dimension_numbers = #tpu.dot_dimension_numbers<[2], [1], [1], [2], [0, 0, 0, 1, 1, 2], [0], [0]>} : vector<3x16x16xf32>, vector<3x16x256xf32>, vector<3x16x256xf32> -> vector<3x16x256xf32>
    %c0_12 = arith.constant 0 : index
    %c0_13 = arith.constant 0 : index
    %11 = vector.load %arg12[%c0_12, %c0_13] : memref<256x16xf32, #tpu.memory_space<vmem>>, vector<256x16xf32>
    %cst_14 = arith.constant dense<0.000000e+00> : vector<256x16xf32>
    %12 = tpu.matmul %11, %5, %cst_14 {dimension_numbers = #tpu.dot_dimension_numbers<[1], [0], [0], [1], [0, 0, 1, 1], [], []>} : vector<256x16xf32>, vector<16x16xf32>, vector<256x16xf32> -> vector<256x16xf32>
    %c0_15 = arith.constant 0 : index
    %c0_16 = arith.constant 0 : index
    %13 = vector.load %arg13[%c0_15, %c0_16] : memref<16x256xf32, #tpu.memory_space<vmem>>, vector<16x256xf32>
    %cst_17 = arith.constant dense<0.000000e+00> : vector<256x256xf32>
    %14 = tpu.matmul %12, %13, %cst_17 {dimension_numbers = #tpu.dot_dimension_numbers<[1], [0], [0], [1], [0, 0, 1, 1], [], []>} : vector<256x16xf32>, vector<16x256xf32>, vector<256x256xf32> -> vector<256x256xf32>
    %c0_18 = arith.constant 0 : index
    %c0_19 = arith.constant 0 : index
    %15 = vector.load %arg14[%c0_18, %c0_19] : memref<256x16xf32, #tpu.memory_space<vmem>>, vector<256x16xf32>
    %cst_20 = arith.constant dense<0.000000e+00> : vector<256x16xf32>
    %16 = tpu.matmul %15, %7, %cst_20 {dimension_numbers = #tpu.dot_dimension_numbers<[1], [0], [0], [1], [0, 0, 1, 1], [], []>} : vector<256x16xf32>, vector<16x16xf32>, vector<256x16xf32> -> vector<256x16xf32>
    %c0_21 = arith.constant 0 : index
    %c0_22 = arith.constant 0 : index
    %17 = vector.load %arg15[%c0_21, %c0_22] : memref<16x256xf32, #tpu.memory_space<vmem>>, vector<16x256xf32>
    %cst_23 = arith.constant dense<0.000000e+00> : vector<256x256xf32>
    %18 = tpu.matmul %16, %17, %cst_23 {dimension_numbers = #tpu.dot_dimension_numbers<[1], [0], [0], [1], [0, 0, 1, 1], [], []>} : vector<256x16xf32>, vector<16x256xf32>, vector<256x256xf32> -> vector<256x256xf32>
    %19 = arith.mulf %14, %18 : vector<256x256xf32>
    %20 = vector.shape_cast %10 : vector<3x16x256xf32> to vector<48x256xf32>
    %cst_24 = arith.constant dense<0.000000e+00> : vector<48x256xf32>
    %21 = tpu.matmul %20, %19, %cst_24 {dimension_numbers = #tpu.dot_dimension_numbers<[1], [0], [0], [1], [0, 0, 1, 1], [], []>} : vector<48x256xf32>, vector<256x256xf32>, vector<48x256xf32> -> vector<48x256xf32>
    %22 = vector.shape_cast %21 : vector<48x256xf32> to vector<3x16x256xf32>
    %c0_25 = arith.constant 0 : index
    %c0_26 = arith.constant 0 : index
    %c0_27 = arith.constant 0 : index
    %c0_28 = arith.constant 0 : index
    %23 = vector.load %arg19[%c0_25, %c0_26, %c0_27, %c0_28] : memref<1x3x16x256xf32, #tpu.memory_space<vmem>>, vector<1x3x16x256xf32>
    %24 = vector.shape_cast %23 : vector<1x3x16x256xf32> to vector<3x16x256xf32>
    %25 = vector.shape_cast %22 : vector<3x16x256xf32> to vector<1x3x16x256xf32>
    tpu.vector_store %arg19[%c0_25, %c0_26, %c0_27, %c0_28], %25 {strides = array<i32>} : memref<1x3x16x256xf32, #tpu.memory_space<vmem>>, vector<1x3x16x256xf32>,
    %c0_29 = arith.constant 0 : index
    %c0_30 = arith.constant 0 : index
    %c0_31 = arith.constant 0 : index
    %c0_32 = arith.constant 0 : index
    %26 = vector.load %arg1[%c0_29, %c0_30, %c0_31, %c0_32] : memref<1x4x16x256xf32, #tpu.memory_space<vmem>>, vector<1x4x16x256xf32>
    %27 = vector.shape_cast %26 : vector<1x4x16x256xf32> to vector<4x16x256xf32>
    %c0_33 = arith.constant 0 : index
    %c0_34 = arith.constant 0 : index
    %c0_35 = arith.constant 0 : index
    %28 = vector.load %arg4[%c0_33, %c0_34, %c0_35] : memref<1x16x16xf32, #tpu.memory_space<vmem>>, vector<1x16x16xf32>
    %29 = vector.shape_cast %28 : vector<1x16x16xf32> to vector<16x16xf32>
    %c0_36 = arith.constant 0 : index
    %c0_37 = arith.constant 0 : index
    %c0_38 = arith.constant 0 : index
    %30 = vector.load %arg5[%c0_36, %c0_37, %c0_38] : memref<1x16x16xf32, #tpu.memory_space<vmem>>, vector<1x16x16xf32>
    %31 = vector.shape_cast %30 : vector<1x16x16xf32> to vector<16x16xf32>
    %c0_39 = arith.constant 0 : index
    %c0_40 = arith.constant 0 : index
    %c0_41 = arith.constant 0 : index
    %32 = vector.load %arg6[%c0_39, %c0_40, %c0_41] : memref<1x16x16xf32, #tpu.memory_space<vmem>>, vector<1x16x16xf32>
    %33 = vector.shape_cast %32 : vector<1x16x16xf32> to vector<16x16xf32>
    %34 = vector.shape_cast %29 : vector<16x16xf32> to vector<1x16x16xf32>
    %35 = vector.broadcast %34 : vector<1x16x16xf32> to vector<4x16x16xf32>
    %cst_42 = arith.constant dense<0.000000e+00> : vector<4x16x256xf32>
    %36 = tpu.matmul %35, %27, %cst_42 {dimension_numbers = #tpu.dot_dimension_numbers<[2], [1], [1], [2], [0, 0, 0, 1, 1, 2], [0], [0]>} : vector<4x16x16xf32>, vector<4x16x256xf32>, vector<4x16x256xf32> -> vector<4x16x256xf32>
    %c0_43 = arith.constant 0 : index
    %c0_44 = arith.constant 0 : index
    %37 = vector.load %arg12[%c0_43, %c0_44] : memref<256x16xf32, #tpu.memory_space<vmem>>, vector<256x16xf32>
    %cst_45 = arith.constant dense<0.000000e+00> : vector<256x16xf32>
    %38 = tpu.matmul %37, %31, %cst_45 {dimension_numbers = #tpu.dot_dimension_numbers<[1], [0], [0], [1], [0, 0, 1, 1], [], []>} : vector<256x16xf32>, vector<16x16xf32>, vector<256x16xf32> -> vector<256x16xf32>
    %c0_46 = arith.constant 0 : index
    %c0_47 = arith.constant 0 : index
    %39 = vector.load %arg13[%c0_46, %c0_47] : memref<16x256xf32, #tpu.memory_space<vmem>>, vector<16x256xf32>
    %cst_48 = arith.constant dense<0.000000e+00> : vector<256x256xf32>
    %40 = tpu.matmul %38, %39, %cst_48 {dimension_numbers = #tpu.dot_dimension_numbers<[1], [0], [0], [1], [0, 0, 1, 1], [], []>} : vector<256x16xf32>, vector<16x256xf32>, vector<256x256xf32> -> vector<256x256xf32>
    %c0_49 = arith.constant 0 : index
    %c0_50 = arith.constant 0 : index
    %41 = vector.load %arg14[%c0_49, %c0_50] : memref<256x16xf32, #tpu.memory_space<vmem>>, vector<256x16xf32>
    %cst_51 = arith.constant dense<0.000000e+00> : vector<256x16xf32>
    %42 = tpu.matmul %41, %33, %cst_51 {dimension_numbers = #tpu.dot_dimension_numbers<[1], [0], [0], [1], [0, 0, 1, 1], [], []>} : vector<256x16xf32>, vector<16x16xf32>, vector<256x16xf32> -> vector<256x16xf32>
    %c0_52 = arith.constant 0 : index
    %c0_53 = arith.constant 0 : index
    %43 = vector.load %arg15[%c0_52, %c0_53] : memref<16x256xf32, #tpu.memory_space<vmem>>, vector<16x256xf32>
    %cst_54 = arith.constant dense<0.000000e+00> : vector<256x256xf32>
    %44 = tpu.matmul %42, %43, %cst_54 {dimension_numbers = #tpu.dot_dimension_numbers<[1], [0], [0], [1], [0, 0, 1, 1], [], []>} : vector<256x16xf32>, vector<16x256xf32>, vector<256x256xf32> -> vector<256x256xf32>
    %45 = arith.mulf %40, %44 : vector<256x256xf32>
    %46 = vector.shape_cast %36 : vector<4x16x256xf32> to vector<64x256xf32>
    %cst_55 = arith.constant dense<0.000000e+00> : vector<64x256xf32>
    %47 = tpu.matmul %46, %45, %cst_55 {dimension_numbers = #tpu.dot_dimension_numbers<[1], [0], [0], [1], [0, 0, 1, 1], [], []>} : vector<64x256xf32>, vector<256x256xf32>, vector<64x256xf32> -> vector<64x256xf32>
    %48 = vector.shape_cast %47 : vector<64x256xf32> to vector<4x16x256xf32>
    %c0_56 = arith.constant 0 : index
    %c0_57 = arith.constant 0 : index
    %c0_58 = arith.constant 0 : index
    %49 = vector.load %arg20[%c0_56, %c0_57, %c0_58] : memref<4x16x256xf32, #tpu.memory_space<vmem>>, vector<4x16x256xf32>
    tpu.vector_store %arg20[%c0_56, %c0_57, %c0_58], %48 {strides = array<i32>} : memref<4x16x256xf32, #tpu.memory_space<vmem>>, vector<4x16x256xf32>,
    %50 = arith.index_cast %arg0 : i32 to index
    %c0_59 = arith.constant 0 : index
    %51 = memref.load %arg16[%50, %c0_59] : memref<2x4xi32, #tpu.memory_space<smem>>
    %c0_i32 = arith.constant 0 : i32
    %52 = arith.cmpi ne, %51, %c0_i32 : i32
    %53 = arith.extui %52 : i1 to i32
    %c0_i32_60 = arith.constant 0 : i32
    %54 = arith.cmpi ne, %53, %c0_i32_60 : i32
    scf.if %54 {
      %69 = arith.index_cast %arg0 : i32 to index
      %c2_72 = arith.constant 2 : index
      %70 = memref.load %arg17[%69, %c2_72] : memref<2x4xf32, #tpu.memory_space<smem>>
      %c0_73 = arith.constant 0 : index
      %c0_74 = arith.constant 0 : index
      %c0_75 = arith.constant 0 : index
      %71 = vector.load %arg20[%c0_73, %c0_74, %c0_75] : memref<4x16x256xf32, #tpu.memory_space<vmem>>, vector<4x16x256xf32>
      %c0_76 = arith.constant 0 : index
      %c0_77 = arith.constant 0 : index
      %c0_78 = arith.constant 0 : index
      %c0_79 = arith.constant 0 : index
      %72 = vector.load %arg3[%c0_76, %c0_77, %c0_78, %c0_79] : memref<1x4x16x256xbf16, #tpu.memory_space<vmem>>, vector<1x4x16x256xbf16>
      %73 = vector.shape_cast %72 : vector<1x4x16x256xbf16> to vector<4x16x256xbf16>
      %74 = arith.extf %73 : vector<4x16x256xbf16> to vector<4x16x256xf32>
      %75 = vector.broadcast %70 : f32 to vector<4x16x256xf32>
      %76 = arith.mulf %75, %74 : vector<4x16x256xf32>
      %77 = arith.addf %71, %76 : vector<4x16x256xf32>
      %c0_80 = arith.constant 0 : index
      %c0_81 = arith.constant 0 : index
      %c0_82 = arith.constant 0 : index
      %78 = vector.load %arg20[%c0_80, %c0_81, %c0_82] : memref<4x16x256xf32, #tpu.memory_space<vmem>>, vector<4x16x256xf32>
      tpu.vector_store %arg20[%c0_80, %c0_81, %c0_82], %77 {strides = array<i32>} : memref<4x16x256xf32, #tpu.memory_space<vmem>>, vector<4x16x256xf32>,
    } else {
    }
    %55 = arith.index_cast %arg0 : i32 to index
    %c1 = arith.constant 1 : index
    %56 = memref.load %arg16[%55, %c1] : memref<2x4xi32, #tpu.memory_space<smem>>
    %c0_i32_61 = arith.constant 0 : i32
    %57 = arith.cmpi ne, %56, %c0_i32_61 : i32
    %58 = arith.extui %57 : i1 to i32
    %c0_i32_62 = arith.constant 0 : i32
    %59 = arith.cmpi ne, %58, %c0_i32_62 : i32
    scf.if %59 {
      %69 = arith.index_cast %arg0 : i32 to index
      %c1_72 = arith.constant 1 : index
      %70 = memref.load %arg17[%69, %c1_72] : memref<2x4xf32, #tpu.memory_space<smem>>
      %c0_73 = arith.constant 0 : index
      %c0_74 = arith.constant 0 : index
      %71 = vector.load %arg10[%c0_73, %c0_74] : memref<16x16xf32, #tpu.memory_space<vmem>>, vector<16x16xf32>
      %c0_75 = arith.constant 0 : index
      %c0_76 = arith.constant 0 : index
      %72 = vector.load %arg11[%c0_75, %c0_76] : memref<16x16xf32, #tpu.memory_space<vmem>>, vector<16x16xf32>
      %c0_77 = arith.constant 0 : index
      %c0_78 = arith.constant 0 : index
      %c0_79 = arith.constant 0 : index
      %73 = vector.load %arg20[%c0_77, %c0_78, %c0_79] : memref<4x16x256xf32, #tpu.memory_space<vmem>>, vector<4x16x256xf32>
      %74 = vector.shape_cast %71 : vector<16x16xf32> to vector<1x16x16xf32>
      %75 = vector.broadcast %74 : vector<1x16x16xf32> to vector<4x16x16xf32>
      %cst_80 = arith.constant dense<0.000000e+00> : vector<4x16x256xf32>
      %76 = tpu.matmul %75, %73, %cst_80 {dimension_numbers = #tpu.dot_dimension_numbers<[2], [1], [1], [2], [0, 0, 0, 1, 1, 2], [0], [0]>} : vector<4x16x16xf32>, vector<4x16x256xf32>, vector<4x16x256xf32> -> vector<4x16x256xf32>
      %c0_81 = arith.constant 0 : index
      %c0_82 = arith.constant 0 : index
      %77 = vector.load %arg12[%c0_81, %c0_82] : memref<256x16xf32, #tpu.memory_space<vmem>>, vector<256x16xf32>
      %cst_83 = arith.constant dense<0.000000e+00> : vector<256x16xf32>
      %78 = tpu.matmul %77, %71, %cst_83 {dimension_numbers = #tpu.dot_dimension_numbers<[1], [0], [0], [1], [0, 0, 1, 1], [], []>} : vector<256x16xf32>, vector<16x16xf32>, vector<256x16xf32> -> vector<256x16xf32>
      %c0_84 = arith.constant 0 : index
      %c0_85 = arith.constant 0 : index
      %79 = vector.load %arg13[%c0_84, %c0_85] : memref<16x256xf32, #tpu.memory_space<vmem>>, vector<16x256xf32>
      %cst_86 = arith.constant dense<0.000000e+00> : vector<256x256xf32>
      %80 = tpu.matmul %78, %79, %cst_86 {dimension_numbers = #tpu.dot_dimension_numbers<[1], [0], [0], [1], [0, 0, 1, 1], [], []>} : vector<256x16xf32>, vector<16x256xf32>, vector<256x256xf32> -> vector<256x256xf32>
      %c0_87 = arith.constant 0 : index
      %c0_88 = arith.constant 0 : index
      %81 = vector.load %arg14[%c0_87, %c0_88] : memref<256x16xf32, #tpu.memory_space<vmem>>, vector<256x16xf32>
      %cst_89 = arith.constant dense<0.000000e+00> : vector<256x16xf32>
      %82 = tpu.matmul %81, %71, %cst_89 {dimension_numbers = #tpu.dot_dimension_numbers<[1], [0], [0], [1], [0, 0, 1, 1], [], []>} : vector<256x16xf32>, vector<16x16xf32>, vector<256x16xf32> -> vector<256x16xf32>
      %c0_90 = arith.constant 0 : index
      %c0_91 = arith.constant 0 : index
      %83 = vector.load %arg15[%c0_90, %c0_91] : memref<16x256xf32, #tpu.memory_space<vmem>>, vector<16x256xf32>
      %cst_92 = arith.constant dense<0.000000e+00> : vector<256x256xf32>
      %84 = tpu.matmul %82, %83, %cst_92 {dimension_numbers = #tpu.dot_dimension_numbers<[1], [0], [0], [1], [0, 0, 1, 1], [], []>} : vector<256x16xf32>, vector<16x256xf32>, vector<256x256xf32> -> vector<256x256xf32>
      %85 = arith.mulf %80, %84 : vector<256x256xf32>
      %86 = vector.shape_cast %76 : vector<4x16x256xf32> to vector<64x256xf32>
      %cst_93 = arith.constant dense<0.000000e+00> : vector<64x256xf32>
      %87 = tpu.matmul %86, %85, %cst_93 {dimension_numbers = #tpu.dot_dimension_numbers<[1], [0], [0], [1], [0, 0, 1, 1], [], []>} : vector<64x256xf32>, vector<256x256xf32>, vector<64x256xf32> -> vector<64x256xf32>
      %88 = vector.shape_cast %87 : vector<64x256xf32> to vector<4x16x256xf32>
      %89 = vector.shape_cast %72 : vector<16x16xf32> to vector<1x16x16xf32>
      %90 = vector.broadcast %89 : vector<1x16x16xf32> to vector<4x16x16xf32>
      %cst_94 = arith.constant dense<0.000000e+00> : vector<4x16x256xf32>
      %91 = tpu.matmul %90, %88, %cst_94 {dimension_numbers = #tpu.dot_dimension_numbers<[2], [1], [1], [2], [0, 0, 0, 1, 1, 2], [0], [0]>} : vector<4x16x16xf32>, vector<4x16x256xf32>, vector<4x16x256xf32> -> vector<4x16x256xf32>
      %c0_95 = arith.constant 0 : index
      %c0_96 = arith.constant 0 : index
      %92 = vector.load %arg12[%c0_95, %c0_96] : memref<256x16xf32, #tpu.memory_space<vmem>>, vector<256x16xf32>
      %cst_97 = arith.constant dense<0.000000e+00> : vector<256x16xf32>
      %93 = tpu.matmul %92, %72, %cst_97 {dimension_numbers = #tpu.dot_dimension_numbers<[1], [0], [0], [1], [0, 0, 1, 1], [], []>} : vector<256x16xf32>, vector<16x16xf32>, vector<256x16xf32> -> vector<256x16xf32>
      %c0_98 = arith.constant 0 : index
      %c0_99 = arith.constant 0 : index
      %94 = vector.load %arg13[%c0_98, %c0_99] : memref<16x256xf32, #tpu.memory_space<vmem>>, vector<16x256xf32>
      %cst_100 = arith.constant dense<0.000000e+00> : vector<256x256xf32>
      %95 = tpu.matmul %93, %94, %cst_100 {dimension_numbers = #tpu.dot_dimension_numbers<[1], [0], [0], [1], [0, 0, 1, 1], [], []>} : vector<256x16xf32>, vector<16x256xf32>, vector<256x256xf32> -> vector<256x256xf32>
      %c0_101 = arith.constant 0 : index
      %c0_102 = arith.constant 0 : index
      %96 = vector.load %arg14[%c0_101, %c0_102] : memref<256x16xf32, #tpu.memory_space<vmem>>, vector<256x16xf32>
      %cst_103 = arith.constant dense<0.000000e+00> : vector<256x16xf32>
      %97 = tpu.matmul %96, %72, %cst_103 {dimension_numbers = #tpu.dot_dimension_numbers<[1], [0], [0], [1], [0, 0, 1, 1], [], []>} : vector<256x16xf32>, vector<16x16xf32>, vector<256x16xf32> -> vector<256x16xf32>
      %c0_104 = arith.constant 0 : index
      %c0_105 = arith.constant 0 : index
      %98 = vector.load %arg15[%c0_104, %c0_105] : memref<16x256xf32, #tpu.memory_space<vmem>>, vector<16x256xf32>
      %cst_106 = arith.constant dense<0.000000e+00> : vector<256x256xf32>
      %99 = tpu.matmul %97, %98, %cst_106 {dimension_numbers = #tpu.dot_dimension_numbers<[1], [0], [0], [1], [0, 0, 1, 1], [], []>} : vector<256x16xf32>, vector<16x256xf32>, vector<256x256xf32> -> vector<256x256xf32>
      %100 = arith.mulf %95, %99 : vector<256x256xf32>
      %101 = vector.shape_cast %91 : vector<4x16x256xf32> to vector<64x256xf32>
      %cst_107 = arith.constant dense<0.000000e+00> : vector<64x256xf32>
      %102 = tpu.matmul %101, %100, %cst_107 {dimension_numbers = #tpu.dot_dimension_numbers<[1], [0], [0], [1], [0, 0, 1, 1], [], []>} : vector<64x256xf32>, vector<256x256xf32>, vector<64x256xf32> -> vector<64x256xf32>
      %103 = vector.shape_cast %102 : vector<64x256xf32> to vector<4x16x256xf32>
      %104 = arith.subf %88, %103 : vector<4x16x256xf32>
      %105 = vector.broadcast %70 : f32 to vector<4x16x256xf32>
      %106 = arith.mulf %105, %104 : vector<4x16x256xf32>
      %107 = arith.addf %88, %106 : vector<4x16x256xf32>
      %c0_108 = arith.constant 0 : index
      %c0_109 = arith.constant 0 : index
      %c0_110 = arith.constant 0 : index
      %108 = vector.load %arg20[%c0_108, %c0_109, %c0_110] : memref<4x16x256xf32, #tpu.memory_space<vmem>>, vector<4x16x256xf32>
      tpu.vector_store %arg20[%c0_108, %c0_109, %c0_110], %107 {strides = array<i32>} : memref<4x16x256xf32, #tpu.memory_space<vmem>>, vector<4x16x256xf32>,
    } else {
    }
    %60 = arith.index_cast %arg0 : i32 to index
    %c2 = arith.constant 2 : index
    %61 = memref.load %arg16[%60, %c2] : memref<2x4xi32, #tpu.memory_space<smem>>
    %c0_i32_63 = arith.constant 0 : i32
    %62 = arith.cmpi ne, %61, %c0_i32_63 : i32
    %63 = arith.extui %62 : i1 to i32
    %c0_i32_64 = arith.constant 0 : i32
    %64 = arith.cmpi ne, %63, %c0_i32_64 : i32
    scf.if %64 {
      %69 = arith.index_cast %arg0 : i32 to index
      %c0_72 = arith.constant 0 : index
      %70 = memref.load %arg17[%69, %c0_72] : memref<2x4xf32, #tpu.memory_space<smem>>
      %c0_73 = arith.constant 0 : index
      %c0_74 = arith.constant 0 : index
      %c0_75 = arith.constant 0 : index
      %71 = vector.load %arg20[%c0_73, %c0_74, %c0_75] : memref<4x16x256xf32, #tpu.memory_space<vmem>>, vector<4x16x256xf32>
      %72 = vector.shape_cast %71 : vector<4x16x256xf32> to vector<64x256xf32>
      %73 = vector.shape_cast %72 : vector<64x256xf32> to vector<1x64x256xf32>
      %cst_76 = arith.constant dense<0x7F800000> : vector<1xf32>
      %74 = vector.multi_reduction <minimumf>, %73, %cst_76 [1, 2] : vector<1x64x256xf32> to vector<1xf32>
      %75 = vector.shape_cast %74 : vector<1xf32> to vector<1x1x1xf32>
      %76 = vector.extract %75[0, 0, 0] : f32 from vector<1x1x1xf32>
      %77 = vector.shape_cast %72 : vector<64x256xf32> to vector<1x64x256xf32>
      %cst_77 = arith.constant dense<0xFF800000> : vector<1xf32>
      %78 = vector.multi_reduction <maximumf>, %77, %cst_77 [1, 2] : vector<1x64x256xf32> to vector<1xf32>
      %79 = vector.shape_cast %78 : vector<1xf32> to vector<1x1x1xf32>
      %80 = vector.extract %79[0, 0, 0] : f32 from vector<1x1x1xf32>
      %81 = arith.subf %80, %76 : f32
      %82 = vector.broadcast %76 : f32 to vector<64x256xf32>
      %83 = arith.subf %72, %82 : vector<64x256xf32>
      %cst_78 = arith.constant 1.000000e-07 : f32
      %84 = arith.addf %81, %cst_78 : f32
      %85 = vector.broadcast %84 : f32 to vector<64x256xf32>
      %86 = arith.divf %83, %85 : vector<64x256xf32>
      %cst_79 = arith.constant 0.000000e+00 : f32
      %87 = vector.broadcast %cst_79 : f32 to vector<64x256xf32>
      %88 = arith.cmpf ogt, %86, %87 : vector<64x256xf32>
      %cst_80 = arith.constant 1.000000e-30 : f32
      %89 = vector.broadcast %cst_80 : f32 to vector<64x256xf32>
      %90 = arith.maximumf %86, %89 : vector<64x256xf32>
      %91 = math.log %90 : vector<64x256xf32>
      %92 = vector.broadcast %70 : f32 to vector<64x256xf32>
      %93 = arith.mulf %92, %91 : vector<64x256xf32>
      %94 = math.exp %93 : vector<64x256xf32>
      %cst_81 = arith.constant 0.000000e+00 : f32
      %95 = vector.broadcast %cst_81 : f32 to vector<64x256xf32>
      %96 = arith.select %88, %94, %95 : vector<64x256xi1>, vector<64x256xf32>
      %97 = vector.broadcast %81 : f32 to vector<64x256xf32>
      %98 = arith.mulf %96, %97 : vector<64x256xf32>
      %99 = vector.broadcast %76 : f32 to vector<64x256xf32>
      %100 = arith.addf %98, %99 : vector<64x256xf32>
      %101 = vector.shape_cast %100 : vector<64x256xf32> to vector<4x16x256xf32>
      %c0_82 = arith.constant 0 : index
      %c0_83 = arith.constant 0 : index
      %c0_84 = arith.constant 0 : index
      %102 = vector.load %arg20[%c0_82, %c0_83, %c0_84] : memref<4x16x256xf32, #tpu.memory_space<vmem>>, vector<4x16x256xf32>
      tpu.vector_store %arg20[%c0_82, %c0_83, %c0_84], %101 {strides = array<i32>} : memref<4x16x256xf32, #tpu.memory_space<vmem>>, vector<4x16x256xf32>,
    } else {
    }
    %c0_65 = arith.constant 0 : index
    %c0_66 = arith.constant 0 : index
    %c0_67 = arith.constant 0 : index
    %65 = vector.load %arg20[%c0_65, %c0_66, %c0_67] : memref<4x16x256xf32, #tpu.memory_space<vmem>>, vector<4x16x256xf32>
    %c0_68 = arith.constant 0 : index
    %c0_69 = arith.constant 0 : index
    %c0_70 = arith.constant 0 : index
    %c0_71 = arith.constant 0 : index
    %66 = vector.load %arg18[%c0_68, %c0_69, %c0_70, %c0_71] : memref<1x4x16x256xf32, #tpu.memory_space<vmem>>, vector<1x4x16x256xf32>
    %67 = vector.shape_cast %66 : vector<1x4x16x256xf32> to vector<4x16x256xf32>
    %68 = vector.shape_cast %65 : vector<4x16x256xf32> to vector<1x4x16x256xf32>
    tpu.vector_store %arg18[%c0_68, %c0_69, %c0_70, %c0_71], %68 {strides = array<i32>} : memref<1x4x16x256xf32, #tpu.memory_space<vmem>>, vector<1x4x16x256xf32>,
    return
  }
  func.func @transform_0(%arg0: i32) -> (i32, i32, i32, i32) {
    %c0_i32 = arith.constant 0 : i32
    %c0_i32_0 = arith.constant 0 : i32
    %c0_i32_1 = arith.constant 0 : i32
    %c0_i32_2 = arith.constant 0 : i32
    return %arg0, %c0_i32, %c0_i32_0, %c0_i32_1 : i32, i32, i32, i32
  }
  func.func @transform_1(%arg0: i32) -> (i32, i32, i32, i32) {
    %c0_i32 = arith.constant 0 : i32
    %c0_i32_0 = arith.constant 0 : i32
    %c0_i32_1 = arith.constant 0 : i32
    %c0_i32_2 = arith.constant 0 : i32
    return %arg0, %c0_i32, %c0_i32_0, %c0_i32_1 : i32, i32, i32, i32
  }
  func.func @transform_2(%arg0: i32) -> (i32, i32, i32, i32) {
    %c0_i32 = arith.constant 0 : i32
    %c0_i32_0 = arith.constant 0 : i32
    %c0_i32_1 = arith.constant 0 : i32
    %c0_i32_2 = arith.constant 0 : i32
    return %arg0, %c0_i32, %c0_i32_0, %c0_i32_1 : i32, i32, i32, i32
  }
  func.func @transform_3(%arg0: i32) -> (i32, i32, i32) {
    %c0_i32 = arith.constant 0 : i32
    %c0_i32_0 = arith.constant 0 : i32
    %c0_i32_1 = arith.constant 0 : i32
    return %arg0, %c0_i32, %c0_i32_0 : i32, i32, i32
  }
  func.func @transform_4(%arg0: i32) -> (i32, i32, i32) {
    %c0_i32 = arith.constant 0 : i32
    %c0_i32_0 = arith.constant 0 : i32
    %c0_i32_1 = arith.constant 0 : i32
    return %arg0, %c0_i32, %c0_i32_0 : i32, i32, i32
  }
  func.func @transform_5(%arg0: i32) -> (i32, i32, i32) {
    %c0_i32 = arith.constant 0 : i32
    %c0_i32_0 = arith.constant 0 : i32
    %c0_i32_1 = arith.constant 0 : i32
    return %arg0, %c0_i32, %c0_i32_0 : i32, i32, i32
  }
  func.func @transform_6(%arg0: i32) -> (i32, i32, i32) {
    %c0_i32 = arith.constant 0 : i32
    %c0_i32_0 = arith.constant 0 : i32
    %c0_i32_1 = arith.constant 0 : i32
    return %arg0, %c0_i32, %c0_i32_0 : i32, i32, i32
  }
  func.func @transform_7(%arg0: i32) -> (i32, i32, i32) {
    %c0_i32 = arith.constant 0 : i32
    %c0_i32_0 = arith.constant 0 : i32
    %c0_i32_1 = arith.constant 0 : i32
    return %arg0, %c0_i32, %c0_i32_0 : i32, i32, i32
  }
  func.func @transform_8(%arg0: i32) -> (i32, i32, i32) {
    %c0_i32 = arith.constant 0 : i32
    %c0_i32_0 = arith.constant 0 : i32
    %c0_i32_1 = arith.constant 0 : i32
    return %arg0, %c0_i32, %c0_i32_0 : i32, i32, i32
  }
  func.func @transform_9(%arg0: i32) -> (i32, i32) {
    %c0_i32 = arith.constant 0 : i32
    %c0_i32_0 = arith.constant 0 : i32
    %c0_i32_1 = arith.constant 0 : i32
    return %c0_i32, %c0_i32_0 : i32, i32
  }
  func.func @transform_10(%arg0: i32) -> (i32, i32) {
    %c0_i32 = arith.constant 0 : i32
    %c0_i32_0 = arith.constant 0 : i32
    %c0_i32_1 = arith.constant 0 : i32
    return %c0_i32, %c0_i32_0 : i32, i32
  }
  func.func @transform_11(%arg0: i32) -> (i32, i32) {
    %c0_i32 = arith.constant 0 : i32
    %c0_i32_0 = arith.constant 0 : i32
    %c0_i32_1 = arith.constant 0 : i32
    return %c0_i32, %c0_i32_0 : i32, i32
  }
  func.func @transform_12(%arg0: i32) -> (i32, i32) {
    %c0_i32 = arith.constant 0 : i32
    %c0_i32_0 = arith.constant 0 : i32
    %c0_i32_1 = arith.constant 0 : i32
    return %c0_i32, %c0_i32_0 : i32, i32
  }
  func.func @transform_13(%arg0: i32) -> (i32, i32) {
    %c0_i32 = arith.constant 0 : i32
    %c0_i32_0 = arith.constant 0 : i32
    %c0_i32_1 = arith.constant 0 : i32
    return %c0_i32, %c0_i32_0 : i32, i32
  }
  func.func @transform_14(%arg0: i32) -> (i32, i32) {
    %c0_i32 = arith.constant 0 : i32
    %c0_i32_0 = arith.constant 0 : i32
    %c0_i32_1 = arith.constant 0 : i32
    return %c0_i32, %c0_i32_0 : i32, i32
  }
  func.func @transform_15(%arg0: i32) -> (i32, i32) {
    %c0_i32 = arith.constant 0 : i32
    %c0_i32_0 = arith.constant 0 : i32
    %c0_i32_1 = arith.constant 0 : i32
    return %c0_i32, %c0_i32_0 : i32, i32
  }
  func.func @transform_16(%arg0: i32) -> (i32, i32) {
    %c0_i32 = arith.constant 0 : i32
    %c0_i32_0 = arith.constant 0 : i32
    %c0_i32_1 = arith.constant 0 : i32
    return %c0_i32, %c0_i32_0 : i32, i32
  }
  func.func @transform_17(%arg0: i32) -> (i32, i32, i32, i32) {
    %c0_i32 = arith.constant 0 : i32
    %c0_i32_0 = arith.constant 0 : i32
    %c0_i32_1 = arith.constant 0 : i32
    %c0_i32_2 = arith.constant 0 : i32
    return %arg0, %c0_i32, %c0_i32_0, %c0_i32_1 : i32, i32, i32, i32
  }
  func.func @transform_18(%arg0: i32) -> (i32, i32, i32, i32) {
    %c0_i32 = arith.constant 0 : i32
    %c0_i32_0 = arith.constant 0 : i32
    %c0_i32_1 = arith.constant 0 : i32
    %c0_i32_2 = arith.constant 0 : i32
    return %arg0, %c0_i32, %c0_i32_0, %c0_i32_1 : i32, i32, i32, i32
  }
}

</mosaic_0001>

<bundles_post_ra>
// kernel: tpu_custom_call.1
= control target key start
LH: loop header
LB: loop body
LE: loop exit
PB: predicated region body
PF: predicated region fallthrough
CT: control target
= control target key end

     0   :  { %s15073_s0 = inlined_call_operand.vmem [shape: f32[2,4,16,256], index: 0, kind: input, shape index: {}]   ;;  %s15074_s1 = inlined_call_operand.vmem [shape: f32[2,3,16,256], index: 1, kind: input, shape index: {}]   ;;  %s15075_s2 = inlined_call_operand.vmem [shape: bf16[2,4,16,256], index: 2, kind: input, shape index: {}]   ;;  %s15076_s3 = inlined_call_operand.hbm [shape: f32[2,16,16], index: 3, kind: input, shape index: {}]   ;;  %s15077_s4 = inlined_call_operand.hbm [shape: f32[2,16,16], index: 4, kind: input, shape index: {}]   ;;  %s15078_s5 = inlined_call_operand.hbm [shape: f32[2,16,16], index: 5, kind: input, shape index: {}]   ;;  %s15079_s6 = inlined_call_operand.hbm [shape: f32[2,16,16], index: 6, kind: input, shape index: {}]   ;;  %s15080_s7 = inlined_call_operand.hbm [shape: f32[2,16,16], index: 7, kind: input, shape index: {}]   ;;  %s15081_s8 = inlined_call_operand.hbm [shape: f32[2,16,16], index: 8, kind: input, shape index: {}]   ;;  %s15082_s9 = inlined_call_operand.hbm [shape: f32[16,16], index: 9, kind: input, shape index: {}]   ;;  %s15083_s10 = inlined_call_operand.hbm [shape: f32[16,16], index: 10, kind: input, shape index: {}]   ;;  %s15084_s11 = inlined_call_operand.vmem [shape: f32[256,16], index: 11, kind: input, shape index: {}]   ;;  %s15085_s12 = inlined_call_operand.hbm [shape: f32[16,256], index: 12, kind: input, shape index: {}]   ;;  %s15086_s13 = inlined_call_operand.vmem [shape: f32[256,16], index: 13, kind: input, shape index: {}]   ;;  %s15087_s14 = inlined_call_operand.hbm [shape: f32[16,256], index: 14, kind: input, shape index: {}]   ;;  %s15088_s15 = inlined_call_operand.vmem [shape: s32[2,4], index: 15, kind: input, shape index: {}]   ;;  %s15089_s16 = inlined_call_operand.vmem [shape: f32[2,4], index: 16, kind: input, shape index: {}]   ;;  %s15090_s17 = inlined_call_operand.hbm [shape: f32[2,4,16,256], index: 17, kind: output, shape index: {0}]   ;;  %s15091_s18 = inlined_call_operand.hbm [shape: f32[2,3,16,256], index: 18, kind: output, shape index: {1}]  }
   0x1   :  { %15167 = sst [smem:[#allocation135_spill]] %s15073_s0 }
   0x2   :  { %15168 = sst [smem:[#allocation136_spill]] %s15074_s1 }
   0x3   :  { %15169 = sst [smem:[#allocation137_spill]] %s15075_s2 }
   0x4   :  { %15170 = sst [smem:[#allocation138_spill]] %s15076_s3 }
   0x5   :  { %15171 = sst [smem:[#allocation139_spill]] %s15077_s4 }
   0x6   :  { %15172 = sst [smem:[#allocation140_spill]] %s15082_s9 }
   0x7   :  { %15173 = sst [smem:[#allocation141_spill]] %s15083_s10 }
   0x8   :  { %15174 = sst [smem:[#allocation142_spill]] %s15084_s11 }
   0x9   :  { %15175 = sst [smem:[#allocation143_spill]] %s15086_s13 }
   0xa   :  { %15176 = sst [smem:[#allocation144_spill]] %s15090_s17 }
   0xb   :  { %15177 = sst [smem:[#allocation145_spill]] %s15091_s18 }
   0xc   :  { %24 = vsyncpa [#allocation4], 0 }
   0xd   :  { %26 = vsyncpa [#allocation4 + $0x1], 0 }
   0xe   :  { %27 = vsyncpa [#allocation8], 0 }
   0xf   :  { %29 = vsyncpa [#allocation8 + $0x1], 0 }
  0x10   :  { %30 = vsyncpa [#allocation11], 0 }
  0x11   :  { %32 = vsyncpa [#allocation11 + $0x1], 0 }
  0x12   :  { %33 = vsyncpa [#allocation14], 0 }
  0x13   :  { %35 = vsyncpa [#allocation14 + $0x1], 0 }
  0x14   :  { %36 = vsyncpa [#allocation17], 0 }
  0x15   :  { %37 = vsyncpa [#allocation20], 0 }
  0x16   :  { %38 = vsyncpa [#allocation6], 0 }
  0x17   :  { %39 = vsyncpa [#allocation23], 0 }
  0x18   :  { %40 = vsyncpa [#allocation5], 0 }
  0x19   :  { %42 = vsyncpa [#allocation5 + $0x1], 0 }
  0x1a   :  { %43 = vsyncpa [#allocation26], 0 }
  0x1b   :  { %45 = vsyncpa [#allocation26 + $0x1], 0  ;;  %s11290_s27 = smov 0   ;;  %s11292_s28 = smov 0  }
  0x1c   :  { %s11294_s29 = smov 0   ;;  %s11296_s30 = smov 0  }
  0x1d LB: > { %15178 = sst [smem:[#allocation38_spill]] %s11159_s27  ;;  %s11311_s0 = sadd.s32 4294967295, %s11171_s30   ;;  %s11171_s30 = sphi %s11296_s30, %s15572_s30   ;;  %s11167_s29 = sphi %s11294_s29, %s15576_s29   ;;  %s11163_s28 = sphi %s11292_s28, %s15575_s28   ;;  %s11159_s27 = sphi %s11290_s27, %s15573_s27  }
  0x1e   : > { %15179 = sst [smem:[#allocation39_spill]] %s11163_s28  ;;  %s9156_s19 = sadd.s32 4294967294, %s11171_s30  }
  0x1f   : > { %15180 = sst [smem:[#allocation40_spill]] %s11171_s30  ;;  %p149_p0 = scmp.ne.s32.totalorder %s11163_s28, %s11159_s27 }
  0x20   : > { %15181 = sst [smem:[#allocation41_spill]] %s11311_s0  ;;  %p15095_p1 = scmp.eq.s32.totalorder %s11311_s0, 0 }
  0x21   : > { %p471_p2 = scmp.eq.s32.totalorder %s11311_s0, 1  ;;  %p477_p3 = scmp.eq.s32.totalorder %s9156_s19, 1 }
  0x22   : > { %p11320_p4 = por %p15095_p1, %p149_p0  ;;  %p9157_p5 = scmp.ge.s32.totalorder %s11171_s30, 1 }
  0x23   : > { %p11325_p6 = por %p477_p3, %p149_p0  ;;  %p510_p7 = scmp.lt.s32.totalorder %s11171_s30, 3 }
  0x24   : > { %s15182_s1 = scalar_select %p11320_p4, 1, 0 }
  0x25   : > { %s15184_s20 = scalar_select %p11325_p6, 1, 0 }
  0x26   : > { %15183 = sst [smem:[#allocation42_spill]] %s15182_s1  ;;  %p11330_p8 = pnand %p9157_p5, %p510_p7 }
  0x27   : > { %15185 = sst [smem:[#allocation43_spill]] %s15184_s20  ;;  %s11173_s22 = smov [#allocation15]  }
  0x28   : > { %s15186_s21 = scalar_select %p11330_p8, 1, 0 }
  0x29   : > { %s522_s2 = sshll.u32 %s11173_s22, 4  ;;  %p10506_p9 = pneg %p11330_p8  ;;  %s523_s2 = int_to_ptr.vmem [resolvable:$true] %s522_s2 }
  0x2a   : > { %s11174_s24 = smov [#allocation16]   ;;  %s10754_s19 = scalar_lea.vmem %s523_s2, 256 }
  0x2b   : > { %p11339_p11 = pnand %p10506_p9, %p15095_p1  ;;  %s535_s25 = sshll.u32 %s11174_s24, 4  ;;  %s536_s25 = int_to_ptr.vmem [resolvable:$true] %s535_s25 }
  0x2c   : > { %p10755_p13 = scmp.ne.s32.totalorder %s523_s2, %s10754_s19  ;;  %p10762_p5 = scmp.lt.s32.totalorder %s523_s2, %s523_s2 }
  0x2d   : > { %s15187_s23 = scalar_select %p11339_p11, 1, 0 }
  0x2e   : > { %p11345_p12 = pneg %p11339_p11  ;;  %p10763_p7 = scmp.lt.s32.totalorder %s10754_s19, %s10754_s19 }
  0x30   : > { %s15188_s26 = scalar_select %p11345_p12, 1, 0 }
  0x31   : > { %p10757_p0 = pnand %p10755_p13, %p11345_p12  ;;  %p10764_p9 = por %p10763_p7, %p10762_p5 }
  0x33   : > { %p10758_p3 = pneg %p10757_p0 }
  0x35   : > { %p10765_p10 = pnand %p10764_p9, %p10758_p3 }
  0x37   : > { %10768 = shalt.err (!%p10765_p10)
}
  0x38   : > { %s15097_s22 = smov 128   ;;  %s15099_s24 = smov 8  }
  0x39   : > { %s15189_s9 = sld [smem:[#allocation140_spill]]  ;;  %s10780_s18 = scalar_lea.vmem %s536_s25, 256 }
  0x3a   : > { %p10781_p13 = scmp.ne.s32.totalorder %s536_s25, %s10780_s18  ;;  %p10788_p5 = scmp.lt.s32.totalorder %s536_s25, %s536_s25 }
  0x3b   : > { %p10789_p3 = scmp.lt.s32.totalorder %s10780_s18, %s10780_s18 }
  0x3c   : > { %p10783_p0 = pnand %p10781_p13, %p11345_p12 }
  0x3d   : > { %p10790_p10 = por %p10789_p3, %p10788_p5 }
  0x3e   : > { %p10784_p1 = pneg %p10783_p0 }
  0x3f   : > { %10509 = dma.hbm_to_vmem [thread:$0]  (!%p11339_p11), %s15189_s9, 256, %s523_s2, [#allocation14], %s15097_s22, %s15097_s22, %s15099_s24  }
  0x40   : > { %p10791_p7 = pnand %p10790_p10, %p10784_p1 }
  0x42   : > { %10794 = shalt.err (!%p10791_p7)
}
  0x43   : > { %s15190_s10 = sld [smem:[#allocation141_spill]]  ;;  %s11370_s18 = sadd.s32 1, %s11171_s30  }
  0x44   : > { %15191 = sst [smem:[#allocation44_spill]] %s11370_s18  ;;  %s136_s27 = sadd.s32 1, %s11167_s29 }
  0x45   : > { %s133_s20 = ssub.s32 %s11171_s30, %s11370_s18  ;;  %p143_p1 = scmp.ne.s32.totalorder %s11167_s29, %s11163_s28 }
  0x46   : > { %p134_p9 = scmp.eq.s32.totalorder %s133_s20, 0  ;;  %p144_p13 = scmp.eq.s32.totalorder %s11171_s30, 0 }
  0x47   : > { %p11380_p0 = por %p471_p2, %p143_p1  ;;  %p10557_p5 = scmp.lt.s32.totalorder %s11171_s30, 2 }
  0x48   : > { %s11386_s2 = scalar_select %p134_p9, %s11167_s29, %s136_s27  }
  0x49   : > { %10512 = dma.hbm_to_vmem [thread:$0]  (!%p11339_p11), %s15190_s10, 256, %s536_s25, [#allocation17], %s15097_s22, %s15097_s22, %s15099_s24  }
  0x4a   : > { %s15192_s17 = scalar_select %p11380_p0, 1, 0 }
  0x4b   : > { %15194 = sst [smem:[#allocation46_spill]] %s11386_s2  ;;  %p145_p3 = por %p144_p13, %p143_p1 }
  0x4c   : > { %15193 = sst [smem:[#allocation45_spill]] %s15192_s17  ;;  %s15101_s19 = sand.u32 1, %s11167_s29  }
  0x4d   : > { %s11391_s25 = sshll.u32 %s15101_s19, 4  ;;  %s11394_s22 = sshll.u32 %s11171_s30, 8 }
  0x4e   : > { %p11396_p10 = pnand %p10557_p5, %p145_p3  ;;  %s11401_s24 = sand.u32 1, %s11171_s30  }
  0x4f   : > { %s15196_s4 = sld [smem:[#allocation139_spill]]  ;;  %s652_s19 = scalar_lea.vmem [#allocation7], %s11391_s25 }
  0x50   : > { %s15195_s20 = scalar_select %p11396_p10, 1, 0 }
  0x51   : > { %s659_s2 = sshll.u32 %s652_s19, 4  ;;  %p11417_p7 = pneg %p11396_p10  ;;  %s11410_s2 = int_to_ptr.vmem [resolvable:$true] %s659_s2 }
  0x53   : > { %s15197_s30 = scalar_select %p11417_p7, 1, 0 }
  0x55   : > { %s11407_s27 = scalar_lea.hbm %s15196_s4, %s11394_s22  ;;  %s10800_s13 = scalar_lea.hbm %s15196_s4, 512 }
  0x56   : > { %s10795_s17 = scalar_lea.hbm %s11407_s27, 256  ;;  %p10801_p13 = scmp.lt.s32.totalorder %s11407_s27, %s15196_s4 }
  0x57   : > { %p10796_p2 = scmp.ne.s32.totalorder %s11407_s27, %s10795_s17  ;;  %p10802_p5 = scmp.lt.s32.totalorder %s10800_s13, %s10795_s17 }
  0x59   : > { %p10798_p1 = pnand %p11417_p7, %p10796_p2  ;;  %p10803_p3 = por %p10802_p5, %p10801_p13 }
  0x5b   : > { %p10799_p9 = pneg %p10798_p1 }
  0x5d   : > { %p10804_p6 = pnand %p10803_p3, %p10799_p9 }
  0x5f   : > { %10807 = shalt.err (!%p10804_p6)
}
  0x60   : > { %s10808_s18 = scalar_lea.vmem %s11410_s2, 256  ;;  %s11177_s0 = smov [#allocation7]  }
  0x61   : > { %p10809_p0 = scmp.ne.s32.totalorder %s11410_s2, %s10808_s18  ;;  %s10813_s9 = sshll.u32 %s11177_s0, 4  ;;  %s10814_s9 = int_to_ptr.vmem [resolvable:$false] %s10813_s9 }
  0x62   : > { %s10815_s10 = scalar_lea.vmem %s10814_s9, 512  ;;  %p10816_p4 = scmp.lt.s32.totalorder %s11410_s2, %s10814_s9 }
  0x63   : > { %p10811_p2 = pnand %p10809_p0, %p11417_p7  ;;  %p10817_p8 = scmp.lt.s32.totalorder %s10815_s10, %s10808_s18 }
  0x65   : > { %p10812_p1 = pneg %p10811_p2  ;;  %p10818_p11 = por %p10817_p8, %p10816_p4 }
  0x67   : > { %p10819_p12 = pnand %p10818_p11, %p10812_p1 }
  0x69   : > { %10822 = shalt.err (!%p10819_p12)
}
  0x6a   : > { %s15198_s11 = smov 8   ;;  %s15199_s13 = smov 128  }
  0x6b   : > { %s15200_s17 = scalar_lea.sflag [#allocation8], %s11401_s24  ;;  %s11448_s18 = scalar_lea.hbm %s15079_s6, %s11394_s22 }
  0x6c   : > { %10531 = dma.hbm_to_vmem [thread:$0]  (!%p11396_p10), %s11407_s27, 256, %s11410_s2, %s15200_s17, %s15199_s13, %s15199_s13, %s15198_s11  }
  0x6d   : > { %s694_s9 = scalar_lea.vmem [#allocation10], %s11391_s25  ;;  %s15124_s4 = scalar_lea.sflag [#allocation11], %s11401_s24 }
  0x6e   : > { %s701_s10 = sshll.u32 %s694_s9, 4  ;;  %s10823_s1 = scalar_lea.hbm %s11448_s18, 256  ;;  %s11451_s10 = int_to_ptr.vmem [resolvable:$true] %s701_s10 }
  0x6f   : > { %p10824_p4 = scmp.ne.s32.totalorder %s11448_s18, %s10823_s1  ;;  %s10828_s27 = scalar_lea.hbm %s15079_s6, 512 }
  0x70   : > { %p10829_p11 = scmp.lt.s32.totalorder %s11448_s18, %s15079_s6  ;;  %p10830_p12 = scmp.lt.s32.totalorder %s10828_s27, %s10823_s1 }
  0x71   : > { %p10826_p6 = pnand %p10824_p4, %p11417_p7 }
  0x72   : > { %p10831_p0 = por %p10830_p12, %p10829_p11 }
  0x73   : > { %p10827_p8 = pneg %p10826_p6 }
  0x75   : > { %p10832_p9 = pnand %p10831_p0, %p10827_p8 }
  0x77   : > { %10835 = shalt.err (!%p10832_p9)
}
  0x78   : > { %s10836_s19 = scalar_lea.vmem %s11451_s10, 256  ;;  %s11178_s9 = smov [#allocation10]  }
  0x79   : > { %p10837_p13 = scmp.ne.s32.totalorder %s11451_s10, %s10836_s19  ;;  %s10841_s28 = sshll.u32 %s11178_s9, 4  ;;  %s10842_s28 = int_to_ptr.vmem [resolvable:$false] %s10841_s28 }
  0x7a   : > { %s10843_s2 = scalar_lea.vmem %s10842_s28, 512  ;;  %p10844_p2 = scmp.lt.s32.totalorder %s11451_s10, %s10842_s28 }
  0x7b   : > { %p10839_p5 = pnand %p10837_p13, %p11417_p7  ;;  %p10845_p1 = scmp.lt.s32.totalorder %s10843_s2, %s10836_s19 }
  0x7d   : > { %p10840_p3 = pneg %p10839_p5  ;;  %p10846_p4 = por %p10845_p1, %p10844_p2 }
  0x7f   : > { %p10847_p6 = pnand %p10846_p4, %p10840_p3 }
  0x81   : > { %10850 = shalt.err (!%p10847_p6)
}
  0x82   : > { %10537 = dma.hbm_to_vmem [thread:$0]  (!%p11396_p10), %s11448_s18, 256, %s11451_s10, %s15124_s4, %s15199_s13, %s15199_s13, %s15198_s11  }
  0x83   : > { %s11179_s1 = smov [#allocation18]   ;;  %p15201_p11 = scmp.ne.s32.totalorder %s15188_s26, 0 }
  0x84   : > { %s551_s27 = sshll.u32 %s11179_s1, 4  ;;  %s552_s27 = int_to_ptr.vmem [resolvable:$true] %s551_s27 }
  0x85   : > { %s10862_s17 = scalar_lea.vmem %s552_s27, 512  ;;  %p10870_p9 = scmp.lt.s32.totalorder %s552_s27, %s552_s27 }
  0x86   : > { %p10863_p8 = scmp.ne.s32.totalorder %s552_s27, %s10862_s17  ;;  %p10871_p13 = scmp.lt.s32.totalorder %s10862_s17, %s10862_s17 }
  0x88   : > { %p10865_p12 = pnand %p10863_p8, %p15201_p11  ;;  %p10872_p5 = por %p10871_p13, %p10870_p9 }
  0x8a   : > { %p10866_p0 = pneg %p10865_p12 }
  0x8c   : > { %p10873_p3 = pnand %p10872_p5, %p10866_p0 }
  0x8e   : > { %10876 = shalt.err (!%p10873_p3)
}
  0x8f   : > { %s11180_s0 = smov 256   ;;  %s11181_s19 = smov 16  }
  0x90   : > { %p15202_p2 = scmp.ne.s32.totalorder %s15187_s23, 0  ;;  %s581_s2 = sshll.u32 %s15088_s15, 4  ;;  %s582_s2 = int_to_ptr.vmem [resolvable:$true] %s581_s2 }
  0x91   : > { %s11182_s1 = smov [#allocation19]  }
  0x92   : > { %10515 = dma.hbm_to_vmem [thread:$0]  (!%p15202_p2), %s15085_s12, 512, %s552_s27, [#allocation17], %s11180_s0, %s11180_s0, %s11181_s19  }
  0x93   : > { %s567_s4 = sshll.u32 %s11182_s1, 4  ;;  %s568_s4 = int_to_ptr.vmem [resolvable:$true] %s567_s4 }
  0x94   : > { %s10888_s17 = scalar_lea.vmem %s568_s4, 512  ;;  %p10896_p8 = scmp.lt.s32.totalorder %s568_s4, %s568_s4 }
  0x95   : > { %p10889_p1 = scmp.ne.s32.totalorder %s568_s4, %s10888_s17  ;;  %p10897_p12 = scmp.lt.s32.totalorder %s10888_s17, %s10888_s17 }
  0x97   : > { %p10891_p4 = pnand %p10889_p1, %p15201_p11  ;;  %p10898_p0 = por %p10897_p12, %p10896_p8 }
  0x99   : > { %p10892_p6 = pneg %p10891_p4 }
  0x9b   : > { %p10899_p9 = pnand %p10898_p0, %p10892_p6 }
  0x9d   : > { %10902 = shalt.err (!%p10899_p9)
}
  0x9e   : > { %10518 = dma.hbm_to_vmem [thread:$0]  (!%p15202_p2), %s15087_s14, 512, %s568_s4, [#allocation20], %s11180_s0, %s11180_s0, %s11181_s19  }
  0x9f   : > { %s10903_s18 = scalar_lea.vmem %s582_s2, 32  ;;  %p10911_p10 = scmp.lt.s32.totalorder %s582_s2, %s582_s2 }
  0xa0   : > { %p10904_p13 = scmp.ne.s32.totalorder %s582_s2, %s10903_s18  ;;  %p10912_p1 = scmp.lt.s32.totalorder %s10903_s18, %s10903_s18 }
  0xa2   : > { %p10906_p5 = pnand %p10904_p13, %p15201_p11  ;;  %p10913_p4 = por %p10912_p1, %p10911_p10 }
  0xa4   : > { %p10907_p3 = pneg %p10906_p5 }
  0xa6   : > { %p10914_p7 = pnand %p10913_p4, %p10907_p3 }
  0xa8   : > { %10917 = shalt.err (!%p10914_p7)
}
  0xa9   : > { %s11183_s10 = smov [#allocation21]   ;;  %s592_s17 = sshll.u32 %s15089_s16, 4  ;;  %s593_s17 = int_to_ptr.vmem [resolvable:$true] %s592_s17 }
  0xaa   : > { %10521 = dma.vmem_to_smem (!%p15202_p2), %s582_s2, 32, %s11183_s10, [#allocation6]  }
  0xab   : > { %s10918_s4 = scalar_lea.vmem %s593_s17, 32  ;;  %p10926_p0 = scmp.lt.s32.totalorder %s593_s17, %s593_s17 }
  0xac   : > { %p10919_p6 = scmp.ne.s32.totalorder %s593_s17, %s10918_s4  ;;  %p10927_p9 = scmp.lt.s32.totalorder %s10918_s4, %s10918_s4 }
  0xae   : > { %p10921_p8 = pnand %p10919_p6, %p15201_p11  ;;  %p10928_p10 = por %p10927_p9, %p10926_p0 }
  0xb0   : > { %p10922_p12 = pneg %p10921_p8 }
  0xb2   : > { %p10929_p13 = pnand %p10928_p10, %p10922_p12 }
  0xb4   : > { %10932 = shalt.err (!%p10929_p13)
}
  0xb5   : > { %s11184_s0 = smov [#allocation22]   ;;  %s15203_s3 = sld [smem:[#allocation138_spill]] }
  0xb6   : > { %10524 = dma.vmem_to_smem (!%p15202_p2), %s593_s17, 32, %s11184_s0, [#allocation23]  }
  0xb7   : > { %s631_s27 = scalar_lea.vmem [#allocation3], %s11391_s25  ;;  %s11520_s10 = scalar_lea.hbm %s15078_s5, %s11394_s22 }
  0xb8   : > { %s638_s9 = sshll.u32 %s631_s27, 4  ;;  %s15204_s28 = sand.u32 1, %s11167_s29   ;;  %s11514_s9 = int_to_ptr.vmem [resolvable:$true] %s638_s9 }
  0xb9   : > { %s628_s1 = scalar_lea.sflag [#allocation4], %s15204_s28  ;;  %p15205_p11 = scmp.ne.s32.totalorder %s15197_s30, 0 }
  0xbb   : > { %s11511_s26 = scalar_lea.hbm %s15203_s3, %s11394_s22  ;;  %s10938_s19 = scalar_lea.hbm %s15203_s3, 512 }
  0xbc   : > { %s10933_s17 = scalar_lea.hbm %s11511_s26, 256  ;;  %p10939_p3 = scmp.lt.s32.totalorder %s11511_s26, %s15203_s3 }
  0xbd   : > { %p10934_p7 = scmp.ne.s32.totalorder %s11511_s26, %s10933_s17  ;;  %p10940_p1 = scmp.lt.s32.totalorder %s10938_s19, %s10933_s17 }
  0xbf   : > { %p10936_p2 = pnand %p10934_p7, %p15205_p11  ;;  %p10941_p4 = por %p10940_p1, %p10939_p3 }
  0xc1   : > { %p10937_p5 = pneg %p10936_p2 }
  0xc3   : > { %p10942_p6 = pnand %p10941_p4, %p10937_p5 }
  0xc5   : > { %10945 = shalt.err (!%p10942_p6)
}
  0xc6   : > { %s10946_s18 = scalar_lea.vmem %s11514_s9, 256  ;;  %s11185_s23 = smov [#allocation3]  }
  0xc7   : > { %p10947_p8 = scmp.ne.s32.totalorder %s11514_s9, %s10946_s18  ;;  %s10951_s28 = sshll.u32 %s11185_s23, 4  ;;  %s10952_s28 = int_to_ptr.vmem [resolvable:$false] %s10951_s28 }
  0xc8   : > { %s10953_s4 = scalar_lea.vmem %s10952_s28, 512  ;;  %p10954_p9 = scmp.lt.s32.totalorder %s11514_s9, %s10952_s28 }
  0xc9   : > { %p10949_p12 = pnand %p10947_p8, %p15205_p11  ;;  %p10955_p10 = scmp.lt.s32.totalorder %s10953_s4, %s10946_s18 }
  0xcb   : > { %p10950_p0 = pneg %p10949_p12  ;;  %p10956_p13 = por %p10955_p10, %p10954_p9 }
  0xcd   : > { %p10957_p7 = pnand %p10956_p13, %p10950_p0 }
  0xcf   : > { %10960 = shalt.err (!%p10957_p7)
}
  0xd0   : > { %p15206_p2 = scmp.ne.s32.totalorder %s15195_s20, 0  ;;  %s673_s17 = scalar_lea.vmem [#allocation9], %s11391_s25 }
  0xd1   : > { %s680_s0 = sshll.u32 %s673_s17, 4  ;;  %s11554_s27 = scalar_lea.hbm %s15080_s7, %s11394_s22  ;;  %s11548_s0 = int_to_ptr.vmem [resolvable:$true] %s680_s0 }
  0xd2   : > { %10528 = dma.hbm_to_vmem [thread:$0]  (!%p15206_p2), %s11511_s26, 256, %s11514_s9, %s628_s1, %s15199_s13, %s15199_s13, %s15198_s11  }
  0xd3   : > { %s10961_s18 = scalar_lea.hbm %s11520_s10, 256  ;;  %s10966_s4 = scalar_lea.hbm %s15078_s5, 512 }
  0xd4   : > { %p10962_p5 = scmp.ne.s32.totalorder %s11520_s10, %s10961_s18  ;;  %p10967_p4 = scmp.lt.s32.totalorder %s11520_s10, %s15078_s5 }
  0xd5   : > { %p10968_p6 = scmp.lt.s32.totalorder %s10966_s4, %s10961_s18 }
  0xd6   : > { %p10964_p3 = pnand %p10962_p5, %p15205_p11 }
  0xd7   : > { %p10969_p8 = por %p10968_p6, %p10967_p4 }
  0xd8   : > { %p10965_p1 = pneg %p10964_p3 }
  0xda   : > { %p10970_p12 = pnand %p10969_p8, %p10965_p1 }
  0xdc   : > { %10973 = shalt.err (!%p10970_p12)
}
  0xdd   : > { %s10974_s9 = scalar_lea.vmem %s11548_s0, 256  ;;  %s11186_s1 = smov [#allocation9]  }
  0xde   : > { %p10975_p0 = scmp.ne.s32.totalorder %s11548_s0, %s10974_s9  ;;  %s10979_s17 = sshll.u32 %s11186_s1, 4  ;;  %s10980_s17 = int_to_ptr.vmem [resolvable:$false] %s10979_s17 }
  0xdf   : > { %s10981_s19 = scalar_lea.vmem %s10980_s17, 512  ;;  %p10982_p13 = scmp.lt.s32.totalorder %s11548_s0, %s10980_s17 }
  0xe0   : > { %p10977_p9 = pnand %p10975_p0, %p15205_p11  ;;  %p10983_p7 = scmp.lt.s32.totalorder %s10981_s19, %s10974_s9 }
  0xe2   : > { %p10978_p10 = pneg %p10977_p9  ;;  %p10984_p5 = por %p10983_p7, %p10982_p13 }
  0xe4   : > { %p10985_p3 = pnand %p10984_p5, %p10978_p10 }
  0xe6   : > { %10988 = shalt.err (!%p10985_p3)
}
  0xe7   : > { %s15207_s3 = scalar_lea.sflag [#allocation8], %s11401_s24  ;;  %s715_s2 = scalar_lea.vmem [#allocation12], %s11391_s25 }
  0xe8   : > { %10534 = dma.hbm_to_vmem [thread:$0]  (!%p15206_p2), %s11520_s10, 256, %s11548_s0, %s15207_s3, %s15199_s13, %s15199_s13, %s15198_s11  }
  0xe9   : > { %s722_s18 = sshll.u32 %s715_s2, 4  ;;  %s10989_s23 = scalar_lea.hbm %s11554_s27, 256  ;;  %s723_s18 = int_to_ptr.vmem [resolvable:$true] %s722_s18 }
  0xea   : > { %p10990_p1 = scmp.ne.s32.totalorder %s11554_s27, %s10989_s23  ;;  %s10994_s26 = scalar_lea.hbm %s15080_s7, 512 }
  0xeb   : > { %p10995_p8 = scmp.lt.s32.totalorder %s11554_s27, %s15080_s7  ;;  %p10996_p12 = scmp.lt.s32.totalorder %s10994_s26, %s10989_s23 }
  0xec   : > { %p10992_p4 = pnand %p10990_p1, %p15205_p11 }
  0xed   : > { %p10997_p0 = por %p10996_p12, %p10995_p8 }
  0xee   : > { %p10993_p6 = pneg %p10992_p4 }
  0xf0   : > { %p10998_p9 = pnand %p10997_p0, %p10993_p6 }
  0xf2   : > { %11001 = shalt.err (!%p10998_p9)
}
  0xf3   : > { %s11002_s10 = scalar_lea.vmem %s723_s18, 256  ;;  %s11187_s0 = smov [#allocation12]  }
  0xf4   : > { %p11003_p10 = scmp.ne.s32.totalorder %s723_s18, %s11002_s10  ;;  %s11007_s17 = sshll.u32 %s11187_s0, 4  ;;  %s11008_s17 = int_to_ptr.vmem [resolvable:$false] %s11007_s17 }
  0xf5   : > { %s11009_s19 = scalar_lea.vmem %s11008_s17, 512  ;;  %p11010_p5 = scmp.lt.s32.totalorder %s723_s18, %s11008_s17 }
  0xf6   : > { %p11005_p13 = pnand %p11003_p10, %p15205_p11  ;;  %p11011_p3 = scmp.lt.s32.totalorder %s11009_s19, %s11002_s10 }
  0xf8   : > { %p11006_p7 = pneg %p11005_p13  ;;  %p11012_p1 = por %p11011_p3, %p11010_p5 }
  0xfa   : > { %p11013_p4 = pnand %p11012_p1, %p11006_p7 }
  0xfc   : > { %11016 = shalt.err (!%p11013_p4)
}
  0xfd   : > { %s15208_s3 = scalar_lea.sflag [#allocation11], %s11401_s24  ;;  %s11607_s28 = scalar_lea.hbm %s15081_s8, %s11394_s22 }
  0xfe   : > { %10540 = dma.hbm_to_vmem [thread:$0]  (!%p15206_p2), %s11554_s27, 256, %s723_s18, %s15208_s3, %s15199_s13, %s15199_s13, %s15198_s11  }
  0xff   : > { %s736_s4 = scalar_lea.vmem [#allocation13], %s11391_s25  ;;  %s733_s9 = scalar_lea.sflag [#allocation14], %s11401_s24 }
 0x100   : > { %s743_s26 = sshll.u32 %s736_s4, 4  ;;  %s11017_s1 = scalar_lea.hbm %s11607_s28, 256  ;;  %s11610_s26 = int_to_ptr.vmem [resolvable:$true] %s743_s26 }
 0x101   : > { %p11018_p6 = scmp.ne.s32.totalorder %s11607_s28, %s11017_s1  ;;  %s11022_s18 = scalar_lea.hbm %s15081_s8, 512 }
 0x102   : > { %p11023_p0 = scmp.lt.s32.totalorder %s11607_s28, %s15081_s8  ;;  %p11024_p9 = scmp.lt.s32.totalorder %s11022_s18, %s11017_s1 }
 0x103   : > { %p11020_p8 = pnand %p11018_p6, %p15205_p11 }
 0x104   : > { %p11025_p10 = por %p11024_p9, %p11023_p0 }
 0x105   : > { %p11021_p12 = pneg %p11020_p8 }
 0x107   : > { %p11026_p13 = pnand %p11025_p10, %p11021_p12 }
 0x109   : > { %11029 = shalt.err (!%p11026_p13)
}
 0x10a   : > { %s11030_s24 = scalar_lea.vmem %s11610_s26, 256  ;;  %s11188_s25 = smov [#allocation13]  }
 0x10b   : > { %p11031_p7 = scmp.ne.s32.totalorder %s11610_s26, %s11030_s24  ;;  %s11035_s17 = sshll.u32 %s11188_s25, 4  ;;  %s11036_s17 = int_to_ptr.vmem [resolvable:$false] %s11035_s17 }
 0x10c   : > { %s11037_s19 = scalar_lea.vmem %s11036_s17, 512  ;;  %p11038_p1 = scmp.lt.s32.totalorder %s11610_s26, %s11036_s17 }
 0x10d   : > { %p11033_p5 = pnand %p11031_p7, %p15205_p11  ;;  %p11039_p4 = scmp.lt.s32.totalorder %s11037_s19, %s11030_s24 }
 0x10f   : > { %p11034_p3 = pneg %p11033_p5  ;;  %p11040_p6 = por %p11039_p4, %p11038_p1 }
 0x111   : > { %p11041_p8 = pnand %p11040_p6, %p11034_p3 }
 0x113   : > { %11044 = shalt.err (!%p11041_p8)
}
 0x114   : > { %10543 = dma.hbm_to_vmem [thread:$0]  (!%p15206_p2), %s11607_s28, 256, %s11610_s26, %s733_s9, %s15199_s13, %s15199_s13, %s15198_s11  }
 0x115   : > { %p15209_p11 = scmp.ne.s32.totalorder %s15186_s21, 0 }
 0x117   : > { %755 = sbr.rel (%p15209_p11) target bundleno = 4023 (0xfb7), region = 88 }
 0x11c   : > { %s15210_s30 = sld [smem:[#allocation39_spill]] }
 0x11d   : > { %s15211_s3 = sld [smem:[#allocation42_spill]] }
 0x122   : > { %s11639_s2 = sand.u32 1, %s15210_s30  }
 0x123   : > { %s11642_s23 = sshll.u32 %s11639_s2, 4  ;;  %s758_s4 = scalar_lea.sflag [#allocation4], %s11639_s2 }
 0x124   : > { %s761_s20 = scalar_lea.vmem [#allocation3], %s11642_s23  ;;  %p15212_p12 = scmp.ne.s32.totalorder %s15211_s3, 0 }
 0x126   : > { %11114 = dma.done.wait (%p15212_p12), %s758_s4, 256  }
 0x127   : > { %11116 = vsyncadd (%p15212_p12), %s758_s4, 4294967040  ;;  %s15213_s11 = sld [smem:[#allocation41_spill]]  ;;  %s770_s28 = scalar_lea.vmem [#allocation7], %s11642_s23 }
 0x12d   : > { %s766_s21 = sand.u32 1, %s15213_s11  }
 0x12e   : > { %s767_s13 = scalar_lea.sflag [#allocation8], %s766_s21 }
 0x12f   : > { %11118 = dma.done.wait (%p15212_p12), %s767_s13, 512  }
 0x130   : > { %11120 = vsyncadd (%p15212_p12), %s767_s13, 4294966784  ;;  %s779_s26 = scalar_lea.vmem [#allocation9], %s11642_s23  ;;  %s785_s9 = scalar_lea.sflag [#allocation11], %s766_s21 }
 0x131   : > { %s788_s1 = scalar_lea.vmem [#allocation10], %s11642_s23 }
 0x132   : > { %11122 = dma.done.wait (%p15212_p12), %s785_s9, 512  }
 0x133   : > { %11124 = vsyncadd (%p15212_p12), %s785_s9, 4294966784  ;;  %s797_s10 = scalar_lea.vmem [#allocation12], %s11642_s23  ;;  %s803_s27 = scalar_lea.sflag [#allocation14], %s766_s21 }
 0x134   : > { %s806_s18 = scalar_lea.vmem [#allocation13], %s11642_s23 }
 0x135   : > { %11126 = dma.done.wait (%p15212_p12), %s803_s27, 256  }
 0x136   : > { %11128 = vsyncadd (%p15212_p12), %s803_s27, 4294967040  ;;  %p15214_p2 = scmp.eq.s32.totalorder %s15213_s11, 0 }
 0x138   : > { %11130 = dma.done.wait (%p15214_p2), [#allocation14], 256   ;;  %p15215_p0 = pmov %p15214_p2 }
 0x13a   : > { %11132 = vsyncadd (%p15215_p0), [#allocation14], 4294967040  ;;  %p15216_p9 = pmov %p15215_p0 }
 0x13b   : > { %p15217_p10 = pmov %p15215_p0 }
 0x13c   : > { %11134 = dma.done.wait (%p15216_p9), [#allocation17], 768  }
 0x13d   : > { %11136 = vsyncadd (%p15217_p10), [#allocation17], 4294966528  ;;  %p15218_p13 = pmov %p15215_p0 }
 0x13e   : > { %p15219_p7 = pmov %p15215_p0 }
 0x13f   : > { %11138 = dma.done.wait (%p15218_p13), [#allocation20], 512  }
 0x140   : > { %11140 = vsyncadd (%p15219_p7), [#allocation20], 4294966784  ;;  %p15220_p5 = pmov %p15215_p0 }
 0x141   : > { %p15221_p3 = pmov %p15215_p0 }
 0x142   : > { %11142 = dma.done.wait (%p15220_p5), [#allocation6], 32  }
 0x143   : > { %11144 = vsyncadd (%p15221_p3), [#allocation6], 4294967264  ;;  %p15222_p1 = pmov %p15215_p0 }
 0x144   : > { %p15223_p4 = pmov %p15215_p0 }
 0x145   : > { %11146 = dma.done.wait (%p15222_p1), [#allocation23], 32  }
 0x146   : > { %11148 = vsyncadd (%p15223_p4), [#allocation23], 4294967264 }
 0x147   : > { %835 = sfence }
 0x148   : > { %s9196_s0 = sshll.u32 %s11639_s2, 7  ;;  %p929_p6 = scmp.lt.s32.totalorder %s15213_s11, 1  ;;  %v15129_v0 = vmov 0.0   ;;  %v956_v9 = vld [vmem:[%s788_s1] sm:$0xff]  ;;  %vm962_vm0 = vcmask 130048   ;;  %v959_v11 = vld [vmem:[%s797_s10 + $0x8] sm:$0xff] }
 0x149   : > { %1033 = vmatprep.mubr.f32.mxu0 %v15129_v0  ;;  %1110 = vmatprep.mubr.f32.mxu1 %v15129_v0  ;;  %s15224_s30 = sld [smem:[#allocation136_spill]]  ;;  %v957_v13 = vld [vmem:[%s788_s1 + $0x8] sm:$0xff]  ;;  %v958_v15 = vld [vmem:[%s797_s10] sm:$0xff] }
 0x14a   : > { %s11693_s22 = scalar_select %p929_p6, %s15213_s11, 1  ;;  %v961_v20 = vld [vmem:[%s806_s18 + $0x8] sm:$0xff]  ;;  %v960_v24 = vld [vmem:[%s806_s18] sm:$0xff] }
 0x14b   : > { %s15225_s13 = sld [smem:[#allocation137_spill]]  ;;  %s13205_s18 = sshll.u32 %s15213_s11, 7 }
 0x14c   : > { %s10460_s24 = smul.u32 96, %s11693_s22  ;;  %s9761_s25 = sshll.u32 %s11693_s22, 6 }
 0x14d   : > { %s15282_s4 = sld [smem:[#allocation135_spill]]  ;;  %s13212_s11 = scalar_lea.vmem [#allocation24], %s9196_s0 }
 0x14f   : > { %s11700_s3 = scalar_lea.vmem %s15224_s30, %s10460_s24 }
 0x150   : > { %v947_v1 = vld [vmem:[%s11700_s3 + $0x18] sm:$0xff]  ;;  %v946_v3 = vld [vmem:[%s11700_s3 + $0x10] sm:$0xff]  ;;  %v945_v5 = vld [vmem:[%s11700_s3 + $0x8] sm:$0xff] }
 0x151   : > { %s11705_s9 = scalar_lea.vmem %s15225_s13, %s9761_s25  ;;  %v951_v2 = vld [vmem:[%s11700_s3 + $0x38] sm:$0xff]  ;;  %997 = vmatprep.subr.mxu0 %v947_v1  ;;  %v950_v4 = vld [vmem:[%s11700_s3 + $0x30] sm:$0xff]  ;;  %v949_v6 = vld [vmem:[%s11700_s3 + $0x28] sm:$0xff]  ;;  %s15226_s25 = sld [smem:[#allocation142_spill]] }
 0x152   : > { %1074 = vmatprep.subr.mxu1 %v951_v2  ;;  %998 = vmatpush1.msra.mxu0 %v946_v3  ;;  %v944_v7 = vld [vmem:[%s11700_s3] sm:$0xff]  ;;  %v955_v10 = vld [vmem:[%s11700_s3 + $0x58] sm:$0xff]  ;;  %v954_v12 = vld [vmem:[%s11700_s3 + $0x50] sm:$0xff] }
 0x153   : > { %1075 = vmatpush1.msra.mxu1 %v950_v4  ;;  %v948_v8 = vld [vmem:[%s11700_s3 + $0x20] sm:$0xff]  ;;  %999 = vmatprep.subr.mxu0 %v945_v5  ;;  %v953_v14 = vld [vmem:[%s11700_s3 + $0x48] sm:$0xff]  ;;  %v1556_v3 = vld [vmem:[#allocation18 + $0x18] sm:$0xff] }
 0x154   : > { %1076 = vmatprep.subr.mxu1 %v949_v6  ;;  %1000 = vmatpush1.msra.mxu0 %v944_v7  ;;  %v952_v16 = vld [vmem:[%s11700_s3 + $0x40] sm:$0xff]  ;;  %s15227_s3 = sld [smem:[#allocation143_spill]]  ;;  %v1555_v4 = vld [vmem:[#allocation18 + $0x10] sm:$0xff]  ;;  %v1554_v5 = vld [vmem:[#allocation18 + $0x8] sm:$0xff] }
 0x155   : > { %1077 = vmatpush1.msra.mxu1 %v948_v8  ;;  %9202 = vmatmul.mubr.msk.f32.vlgmr.msra.gmra.mxu0 %vm962_vm0, %v956_v9  ;;  %v1553_v7 = vld [vmem:[#allocation18] sm:$0xff] }
 0x156   : > { %9204 = vmatmul.mubr.msk.f32.vlgmr.msra.gmra.mxu1 %vm962_vm0, %v956_v9  ;;  %1039 = vmatprep.mubr.f32.mxu0 %v15129_v0 }
 0x157   : > { %1116 = vmatprep.mubr.f32.mxu1 %v15129_v0  ;;  %1151 = vmatprep.subr.mxu0 %v955_v10  ;;  %v1208_v17 = vld [vmem:[%s15226_s25 + $0x40] sm:$0xff]  ;;  %v1209_v18 = vld [vmem:[%s15226_s25 + $0x48] sm:$0xff]  ;;  %v1210_v19 = vld [vmem:[%s15226_s25 + $0x50] sm:$0xff] }
 0x158   : > { %10451 = vmatprep.subr.mxu1 %v959_v11  ;;  %1152 = vmatpush1.msra.mxu0 %v954_v12  ;;  %v1211_v21 = vld [vmem:[%s15226_s25 + $0x58] sm:$0xff]  ;;  %v1200_v22 = vld [vmem:[%s15226_s25] sm:$0xff]  ;;  %v1201_v25 = vld [vmem:[%s15226_s25 + $0x8] sm:$0xff] }
 0x159   : > { %10453 = vmatpush3.msra.mxu1 %v959_v11  ;;  %9203 = vmatmul.mubr.msk.f32.gmra.mxu0 %vm962_vm0, %v957_v13  ;;  %v1212_v23 = vld [vmem:[%s15226_s25 + $0x60] sm:$0xff]  ;;  %v1213_v26 = vld [vmem:[%s15226_s25 + $0x68] sm:$0xff]  ;;  %v1214_v27 = vld [vmem:[%s15226_s25 + $0x70] sm:$0xff] }
 0x15a   : > { %9205 = vmatmul.mubr.msk.f32.gmra.mxu1 %vm962_vm0, %v957_v13  ;;  %1153 = vmatprep.subr.mxu0 %v953_v14  ;;  %v1202_v28 = vld [vmem:[%s15226_s25 + $0x10] sm:$0xff]  ;;  %v1215_v29 = vld [vmem:[%s15226_s25 + $0x78] sm:$0xff]  ;;  %v1216_v31 = vld [vmem:[%s15226_s25 + $0x80] sm:$0xff] }
 0x15b   : > { %10452 = vmatprep.subr.mxu1 %v958_v15  ;;  %1154 = vmatpush1.msra.mxu0 %v952_v16  ;;  %v1203_v30 = vld [vmem:[%s15226_s25 + $0x18] sm:$0xff]  ;;  %v1204_v32 = vld [vmem:[%s15226_s25 + $0x20] sm:$0xff]  ;;  %v1217_v33 = vld [vmem:[%s15226_s25 + $0x88] sm:$0xff] }
 0x15c   : > { %1187 = vmatprep.mubr.f32.mxu0 %v15129_v0  ;;  %10454 = vmatpush3.msra.mxu1 %v958_v15  ;;  %v1205_v34 = vld [vmem:[%s15226_s25 + $0x28] sm:$0xff]  ;;  %v1218_v35 = vld [vmem:[%s15226_s25 + $0x90] sm:$0xff]  ;;  %v1219_v37 = vld [vmem:[%s15226_s25 + $0x98] sm:$0xff] }
 0x15d   : > { %10051 = vmatprep.mubr.msk.f32.mxu1 %vm962_vm0, %v1208_v17  ;;  %9206 = vmatmul.mubr.msk.f32.vlgmr.msra.gmra.mxu0 %vm962_vm0, %v956_v9  ;;  %v1206_v36 = vld [vmem:[%s15226_s25 + $0x30] sm:$0xff]  ;;  %v1207_v38 = vld [vmem:[%s15226_s25 + $0x38] sm:$0xff]  ;;  %v1220_v39 = vld [vmem:[%s15226_s25 + $0xa0] sm:$0xff] }
 0x15e   : > { %10052 = vmatmul.mubr.msk.f32.vlgmr.msra.gmra.mxu1 %vm962_vm0, %v1209_v18  ;;  %1193 = vmatprep.mubr.f32.mxu0 %v15129_v0  ;;  %v1221_v40 = vld [vmem:[%s15226_s25 + $0xa8] sm:$0xff]  ;;  %v1222_v41 = vld [vmem:[%s15226_s25 + $0xb0] sm:$0xff]  ;;  %v1223_v42 = vld [vmem:[%s15226_s25 + $0xb8] sm:$0xff] }
 0x15f   : > { %10054 = vmatprep.mubr.msk.f32.mxu1 %vm962_vm0, %v1210_v19  ;;  %10035 = vmatprep.subr.mxu0 %v959_v11  ;;  %v1224_v43 = vld [vmem:[%s15226_s25 + $0xc0] sm:$0xff]  ;;  %v1225_v44 = vld [vmem:[%s15226_s25 + $0xc8] sm:$0xff]  ;;  %v1226_v45 = vld [vmem:[%s15226_s25 + $0xd0] sm:$0xff] }
 0x160   : > { %10087 = vmatprep.subr.mxu1 %v961_v20  ;;  %10036 = vmatpush3.msra.mxu0 %v959_v11  ;;  %v1227_v46 = vld [vmem:[%s15226_s25 + $0xd8] sm:$0xff]  ;;  %v1228_v47 = vld [vmem:[%s15226_s25 + $0xe0] sm:$0xff]  ;;  %v1229_v48 = vld [vmem:[%s15226_s25 + $0xe8] sm:$0xff] }
 0x161   : > { %10088 = vmatpush3.msra.mxu1 %v961_v20  ;;  %9207 = vmatmul.mubr.msk.f32.gmra.mxu0 %vm962_vm0, %v957_v13  ;;  %v1230_v49 = vld [vmem:[%s15226_s25 + $0xf0] sm:$0xff]  ;;  %v1231_v50 = vld [vmem:[%s15226_s25 + $0xf8] sm:$0xff]  ;;  %v1910_v51 = vld [vmem:[%s15227_s3] sm:$0xff] }
 0x162   : > { %10055 = vmatmul.mubr.msk.f32.gmra.mxu1 %vm962_vm0, %v1211_v21  ;;  %10037 = vmatprep.subr.mxu0 %v958_v15  ;;  %v1911_v52 = vld [vmem:[%s15227_s3 + $0x8] sm:$0xff]  ;;  %v1912_v53 = vld [vmem:[%s15227_s3 + $0x10] sm:$0xff]  ;;  %v1913_v54 = vld [vmem:[%s15227_s3 + $0x18] sm:$0xff] }
 0x163   : > { %10039 = vmatprep.mubr.msk.f32.mxu0 %vm962_vm0, %v1200_v22  ;;  %10038 = vmatpush3.msra.mxu0 %v958_v15  ;;  %v1914_v55 = vld [vmem:[%s15227_s3 + $0x20] sm:$0xff]  ;;  %v1915_v56 = vld [vmem:[%s15227_s3 + $0x28] sm:$0xff]  ;;  %v1916_v57 = vld [vmem:[%s15227_s3 + $0x30] sm:$0xff] }
 0x164   : > { %10057 = vmatprep.mubr.msk.f32.mxu1 %vm962_vm0, %v1212_v23  ;;  %10089 = vmatprep.subr.mxu1 %v960_v24  ;;  %v1917_v58 = vld [vmem:[%s15227_s3 + $0x38] sm:$0xff]  ;;  %v1918_v59 = vld [vmem:[%s15227_s3 + $0x40] sm:$0xff]  ;;  %v1919_v60 = vld [vmem:[%s15227_s3 + $0x48] sm:$0xff] }
 0x165   : > { %10040 = vmatmul.mubr.msk.f32.vlgmr.msra.gmra.mxu0 %vm962_vm0, %v1201_v25  ;;  %10090 = vmatpush3.msra.mxu1 %v960_v24  ;;  %v1920_v61 = vld [vmem:[%s15227_s3 + $0x50] sm:$0xff]  ;;  %v1921_v62 = vld [vmem:[%s15227_s3 + $0x58] sm:$0xff]  ;;  %v1922_v63 = vld [vmem:[%s15227_s3 + $0x60] sm:$0xff] }
 0x166   : > { %10058 = vmatmul.mubr.msk.f32.gmra.mxu1 %vm962_vm0, %v1213_v26  ;;  %10042 = vmatprep.mubr.msk.f32.mxu0 %vm962_vm0, %v1202_v28  ;;  %v1923_v1 = vld [vmem:[%s15227_s3 + $0x68] sm:$0xff]  ;;  %v1924_v2 = vld [vmem:[%s15227_s3 + $0x70] sm:$0xff]  ;;  %v1925_v6 = vld [vmem:[%s15227_s3 + $0x78] sm:$0xff] }
 0x167   : > { %10060 = vmatprep.mubr.msk.f32.mxu1 %vm962_vm0, %v1214_v27  ;;  %1681 = vmatprep.subr.mxu0 %v1556_v3  ;;  %v1926_v8 = vld [vmem:[%s15227_s3 + $0x80] sm:$0xff]  ;;  %v1927_v9 = vld [vmem:[%s15227_s3 + $0x88] sm:$0xff]  ;;  %v1928_v10 = vld [vmem:[%s15227_s3 + $0x90] sm:$0xff] }
 0x168   : > { %1682 = vmatpush1.msra.mxu0 %v1555_v4  ;;  %v1929_v11 = vld [vmem:[%s15227_s3 + $0x98] sm:$0xff]  ;;  %v1930_v12 = vld [vmem:[%s15227_s3 + $0xa0] sm:$0xff]  ;;  %v2265_v14 = vld [vmem:[#allocation19 + $0x10] sm:$0xff] }
 0x169   : > { %10043 = vmatmul.mubr.msk.f32.gmra.mxu0 %vm962_vm0, %v1203_v30  ;;  %1683 = vmatprep.subr.mxu0 %v1554_v5  ;;  %v2266_v13 = vld [vmem:[#allocation19 + $0x18] sm:$0xff]  ;;  %v1931_v15 = vld [vmem:[%s15227_s3 + $0xa8] sm:$0xff]  ;;  %v1932_v16 = vld [vmem:[%s15227_s3 + $0xb0] sm:$0xff] }
 0x16a   : > { %10061 = vmatmul.mubr.msk.f32.gmra.mxu1 %vm962_vm0, %v1215_v29  ;;  %10045 = vmatprep.mubr.msk.f32.mxu0 %vm962_vm0, %v1204_v32  ;;  %v1933_v17 = vld [vmem:[%s15227_s3 + $0xb8] sm:$0xff]  ;;  %v1934_v18 = vld [vmem:[%s15227_s3 + $0xc0] sm:$0xff]  ;;  %v1935_v19 = vld [vmem:[%s15227_s3 + $0xc8] sm:$0xff] }
 0x16b   : > { %10063 = vmatprep.mubr.msk.f32.mxu1 %vm962_vm0, %v1216_v31  ;;  %1684 = vmatpush1.msra.mxu0 %v1553_v7  ;;  %v1936_v20 = vld [vmem:[%s15227_s3 + $0xd0] sm:$0xff]  ;;  %v1937_v21 = vld [vmem:[%s15227_s3 + $0xd8] sm:$0xff]  ;;  %v1938_v22 = vld [vmem:[%s15227_s3 + $0xe0] sm:$0xff] }
 0x16c   : > { %2391 = vmatprep.subr.mxu1 %v2266_v13  ;;  %v1939_v23 = vld [vmem:[%s15227_s3 + $0xe8] sm:$0xff]  ;;  %v1940_v24 = vld [vmem:[%s15227_s3 + $0xf0] sm:$0xff]  ;;  %v1941_v25 = vld [vmem:[%s15227_s3 + $0xf8] sm:$0xff] }
 0x16d   : > { %10046 = vmatmul.mubr.msk.f32.gmra.mxu0 %vm962_vm0, %v1205_v34  ;;  %v2264_v26 = vld [vmem:[#allocation19 + $0x8] sm:$0xff]  ;;  %v2263_v27 = vld [vmem:[#allocation19] sm:$0xff] }
 0x16e   : > { %10064 = vmatmul.mubr.msk.f32.gmra.mxu1 %vm962_vm0, %v1217_v33  ;;  %10048 = vmatprep.mubr.msk.f32.mxu0 %vm962_vm0, %v1206_v36 }
 0x16f   : > { %10066 = vmatprep.mubr.msk.f32.mxu1 %vm962_vm0, %v1218_v35 }
 0x171   : > { %10049 = vmatmul.mubr.msk.f32.gmra.mxu0 %vm962_vm0, %v1207_v38 }
 0x172   : > { %10067 = vmatmul.mubr.msk.f32.gmra.mxu1 %vm962_vm0, %v1219_v37  ;;  %1717 = vmatprep.mubr.f32.mxu0 %v15129_v0 }
 0x173   : > { %10069 = vmatprep.mubr.msk.f32.mxu1 %vm962_vm0, %v1220_v39 }
 0x176   : > { %10070 = vmatmul.mubr.msk.f32.gmra.mxu1 %vm962_vm0, %v1221_v40 }
 0x177   : > { %10072 = vmatprep.mubr.msk.f32.mxu1 %vm962_vm0, %v1222_v41 }
 0x17a   : > { %10073 = vmatmul.mubr.msk.f32.gmra.mxu1 %vm962_vm0, %v1223_v42 }
 0x17b   : > { %10075 = vmatprep.mubr.msk.f32.mxu1 %vm962_vm0, %v1224_v43 }
 0x17e   : > { %10076 = vmatmul.mubr.msk.f32.gmra.mxu1 %vm962_vm0, %v1225_v44 }
 0x17f   : > { %10078 = vmatprep.mubr.msk.f32.mxu1 %vm962_vm0, %v1226_v45 }
 0x182   : > { %10079 = vmatmul.mubr.msk.f32.gmra.mxu1 %vm962_vm0, %v1227_v46 }
 0x183   : > { %10081 = vmatprep.mubr.msk.f32.mxu1 %vm962_vm0, %v1228_v47 }
 0x186   : > { %10082 = vmatmul.mubr.msk.f32.gmra.mxu1 %vm962_vm0, %v1229_v48 }
 0x187   : > { %10084 = vmatprep.mubr.msk.f32.mxu1 %vm962_vm0, %v1230_v49 }
 0x18a   : > { %10085 = vmatmul.mubr.msk.f32.gmra.mxu1 %vm962_vm0, %v1231_v50 }
 0x18b   : > { %10091 = vmatprep.mubr.msk.f32.mxu1 %vm962_vm0, %v1910_v51 }
 0x18e   : > { %10092 = vmatmul.mubr.msk.f32.vlgmr.msra.gmra.mxu1 %vm962_vm0, %v1911_v52 }
 0x18f   : > { %10094 = vmatprep.mubr.msk.f32.mxu1 %vm962_vm0, %v1912_v53  ;;  %2392 = vmatpush1.msra.mxu1 %v2265_v14 }
 0x190   : > { %2393 = vmatprep.subr.mxu1 %v2264_v26 }
 0x191   : > { %2394 = vmatpush1.msra.mxu1 %v2263_v27 }
 0x192   : > { %10095 = vmatmul.mubr.msk.f32.gmra.mxu1 %vm962_vm0, %v1913_v54 }
 0x193   : > { %10097 = vmatprep.mubr.msk.f32.mxu1 %vm962_vm0, %v1914_v55 }
 0x196   : > { %10098 = vmatmul.mubr.msk.f32.gmra.mxu1 %vm962_vm0, %v1915_v56 }
 0x197   : > { %10100 = vmatprep.mubr.msk.f32.mxu1 %vm962_vm0, %v1916_v57 }
 0x19a   : > { %10101 = vmatmul.mubr.msk.f32.gmra.mxu1 %vm962_vm0, %v1917_v58 }
 0x19b   : > { %10103 = vmatprep.mubr.msk.f32.mxu1 %vm962_vm0, %v1918_v59 }
 0x19e   : > { %10104 = vmatmul.mubr.msk.f32.gmra.mxu1 %vm962_vm0, %v1919_v60 }
 0x19f   : > { %10106 = vmatprep.mubr.msk.f32.mxu1 %vm962_vm0, %v1920_v61 }
 0x1a2   : > { %10107 = vmatmul.mubr.msk.f32.gmra.mxu1 %vm962_vm0, %v1921_v62 }
 0x1a3   : > { %10109 = vmatprep.mubr.msk.f32.mxu1 %vm962_vm0, %v1922_v63 }
 0x1a6   : > { %10110 = vmatmul.mubr.msk.f32.gmra.mxu1 %vm962_vm0, %v1923_v1 }
 0x1a7   : > { %10112 = vmatprep.mubr.msk.f32.mxu1 %vm962_vm0, %v1924_v2 }
 0x1aa   : > { %10113 = vmatmul.mubr.msk.f32.gmra.mxu1 %vm962_vm0, %v1925_v6 }
 0x1ab   : > { %10115 = vmatprep.mubr.msk.f32.mxu1 %vm962_vm0, %v1926_v8 }
 0x1ae   : > { %10116 = vmatmul.mubr.msk.f32.gmra.mxu1 %vm962_vm0, %v1927_v9 }
 0x1af   : > { %10118 = vmatprep.mubr.msk.f32.mxu1 %vm962_vm0, %v1928_v10 }
 0x1b2   : > { %10119 = vmatmul.mubr.msk.f32.gmra.mxu1 %vm962_vm0, %v1929_v11 }
 0x1b3   : > { %10121 = vmatprep.mubr.msk.f32.mxu1 %vm962_vm0, %v1930_v12 }
 0x1b6   : > { %10122 = vmatmul.mubr.msk.f32.gmra.mxu1 %vm962_vm0, %v1931_v15 }
 0x1b7   : > { %10124 = vmatprep.mubr.msk.f32.mxu1 %vm962_vm0, %v1932_v16 }
 0x1ba   : > { %10125 = vmatmul.mubr.msk.f32.gmra.mxu1 %vm962_vm0, %v1933_v17 }
 0x1bb   : > { %10127 = vmatprep.mubr.msk.f32.mxu1 %vm962_vm0, %v1934_v18 }
 0x1be   : > { %10128 = vmatmul.mubr.msk.f32.gmra.mxu1 %vm962_vm0, %v1935_v19 }
 0x1bf   : > { %10130 = vmatprep.mubr.msk.f32.mxu1 %vm962_vm0, %v1936_v20 }
 0x1c2   : > { %10131 = vmatmul.mubr.msk.f32.gmra.mxu1 %vm962_vm0, %v1937_v21 }
 0x1c3   : > { %10133 = vmatprep.mubr.msk.f32.mxu1 %vm962_vm0, %v1938_v22 }
 0x1c6   : > { %10134 = vmatmul.mubr.msk.f32.gmra.mxu1 %vm962_vm0, %v1939_v23 }
 0x1c7   : > { %10136 = vmatprep.mubr.msk.f32.mxu1 %vm962_vm0, %v1940_v24 }
 0x1ca   : > { %10137 = vmatmul.mubr.msk.f32.gmra.mxu1 %vm962_vm0, %v1941_v25 }
 0x1cb   : > { %2427 = vmatprep.mubr.f32.mxu1 %v15129_v0 }
 0x215   : > { %v11999_v28 = vpop.f32.mrf.mxu0 }
 0x216   : > { %15228 = vst [vmem:[#allocation47_spill] sm:$0xff] %v11999_v28  ;;  %v12001_v29 = vpop.f32.mrf.mxu1 }
 0x217   : > { %15229 = vst [vmem:[#allocation48_spill] sm:$0xff] %v12001_v29  ;;  %v12003_v30 = vpop.f32.mrf.mxu0 }
 0x218   : > { %v12005_v31 = vpop.f32.mrf.mxu1 }
 0x219   : > { %15230 = vst [vmem:[#allocation49_spill] sm:$0xff] %v12005_v31  ;;  %v12007_v32 = vpop.f32.mrf.mxu0 }
 0x21a   : > { %15231 = vst [vmem:[#allocation50_spill] sm:$0xff] %v12007_v32  ;;  %v12009_v33 = vpop.f32.mrf.mxu1 }
 0x21b   : > { %15232 = vst [vmem:[#allocation51_spill] sm:$0xff] %v12009_v33  ;;  %v12011_v34 = vpop.f32.mrf.mxu0 }
 0x21c   : > { %15233 = vst [vmem:[#allocation52_spill] sm:$0xff] %v12011_v34  ;;  %v12013_v35 = vpop.f32.mrf.mxu1 }
 0x21d   : > { %15234 = vst [vmem:[#allocation53_spill] sm:$0xff] %v12013_v35  ;;  %v12015_v36 = vpop.f32.mrf.mxu0 }
 0x21e   : > { %15235 = vst [vmem:[#allocation54_spill] sm:$0xff] %v12015_v36  ;;  %v10053_v37 = vpop.f32.mrf.mxu1 }
 0x21f   : > { %v12017_v38 = vpop.f32.mrf.mxu0 }
 0x220   : > { %15236 = vst [vmem:[#allocation55_spill] sm:$0xff] %v12017_v38  ;;  %v1434_v39 = vpop.f32.mrf.mxu1 }
 0x221   : > { %v12019_v40 = vpop.f32.mrf.mxu0 }
 0x222   : > { %15237 = vst [vmem:[#allocation56_spill] sm:$0xff] %v12019_v40  ;;  %v10056_v41 = vpop.f32.mrf.mxu1 }
 0x223   : > { %v12021_v42 = vpop.f32.mrf.mxu0 }
 0x224   : > { %15238 = vst [vmem:[#allocation57_spill] sm:$0xff] %v12021_v42  ;;  %v1444_v43 = vpop.f32.mrf.mxu1 }
 0x225   : > { %v10041_v44 = vpop.f32.mrf.mxu0 }
 0x226   : > { %v12023_v45 = vpop.f32.mrf.mxu1 }
 0x227   : > { %v1394_v46 = vpop.f32.mrf.mxu0 }
 0x228   : > { %v1454_v47 = vpop.f32.mrf.mxu1  ;;  %9240 = vmatmul.mubr.msk.f32.vlgmr.msra.gmra.mxu0 %vm962_vm0, %v1394_v46 }
 0x229   : > { %1723 = vmatprep.mubr.f32.mxu0 %v15129_v0  ;;  %v10044_v49 = vpop.f32.mrf.mxu0 }
 0x22a   : > { %v12026_v48 = vpop.f32.mrf.mxu1 }
 0x22b   : > { %v1404_v52 = vpop.f32.mrf.mxu0 }
 0x22c   : > { %v1464_v50 = vpop.f32.mrf.mxu1  ;;  %9241 = vmatmul.mubr.msk.f32.gmra.mxu0 %vm962_vm0, %v10041_v44 }
 0x22d   : > { %1729 = vmatprep.mubr.f32.mxu0 %v15129_v0  ;;  %v10047_v55 = vpop.f32.mrf.mxu0 }
 0x22e   : > { %v12030_v51 = vpop.f32.mrf.mxu1 }
 0x22f   : > { %v1414_v58 = vpop.f32.mrf.mxu0 }
 0x230   : > { %v12033_v53 = vpop.f32.mrf.mxu1  ;;  %9242 = vmatmul.mubr.msk.f32.gmra.mxu0 %vm962_vm0, %v1404_v52 }
 0x231   : > { %1735 = vmatprep.mubr.f32.mxu0 %v15129_v0  ;;  %v10050_v61 = vpop.f32.mrf.mxu0 }
 0x232   : > { %v12036_v54 = vpop.f32.mrf.mxu1 }
 0x233   : > { %v1424_v1 = vpop.f32.mrf.mxu0 }
 0x234   : > { %v12039_v56 = vpop.f32.mrf.mxu1  ;;  %9243 = vmatmul.mubr.msk.f32.gmra.mxu0 %vm962_vm0, %v10044_v49 }
 0x235   : > { %1741 = vmatprep.mubr.f32.mxu0 %v15129_v0 }
 0x236   : > { %v12042_v57 = vpop.f32.mrf.mxu1 }
 0x238   : > { %v12045_v59 = vpop.f32.mrf.mxu1  ;;  %9244 = vmatmul.mubr.msk.f32.gmra.mxu0 %vm962_vm0, %v1414_v58 }
 0x239   : > { %1747 = vmatprep.mubr.f32.mxu0 %v15129_v0 }
 0x23a   : > { %v12048_v60 = vpop.f32.mrf.mxu1 }
 0x23c   : > { %v12051_v62 = vpop.f32.mrf.mxu1  ;;  %9245 = vmatmul.mubr.msk.f32.gmra.mxu0 %vm962_vm0, %v10047_v55 }
 0x23d   : > { %1753 = vmatprep.mubr.f32.mxu0 %v15129_v0 }
 0x23e   : > { %v12054_v63 = vpop.f32.mrf.mxu1 }
 0x240   : > { %v12057_v2 = vpop.f32.mrf.mxu1  ;;  %9246 = vmatmul.mubr.msk.f32.gmra.mxu0 %vm962_vm0, %v1424_v1 }
 0x241   : > { %1759 = vmatprep.mubr.f32.mxu0 %v15129_v0 }
 0x242   : > { %v12060_v3 = vpop.f32.mrf.mxu1 }
 0x244   : > { %v12063_v4 = vpop.f32.mrf.mxu1  ;;  %9247 = vmatmul.mubr.msk.f32.gmra.mxu0 %vm962_vm0, %v10050_v61 }
 0x245   : > { %1765 = vmatprep.mubr.f32.mxu0 %v15129_v0 }
 0x246   : > { %v12066_v5 = vpop.f32.mrf.mxu1 }
 0x248   : > { %v12069_v6 = vpop.f32.mrf.mxu1  ;;  %9248 = vmatmul.mubr.msk.f32.gmra.mxu0 %vm962_vm0, %v1434_v39 }
 0x249   : > { %1771 = vmatprep.mubr.f32.mxu0 %v15129_v0 }
 0x24a   : > { %v12072_v7 = vpop.f32.mrf.mxu1 }
 0x24c   : > { %v12075_v8 = vpop.f32.mrf.mxu1  ;;  %9249 = vmatmul.mubr.msk.f32.gmra.mxu0 %vm962_vm0, %v10053_v37 }
 0x24d   : > { %1777 = vmatprep.mubr.f32.mxu0 %v15129_v0 }
 0x24e   : > { %v10093_v9 = vpop.f32.mrf.mxu1 }
 0x250   : > { %v2104_v10 = vpop.f32.mrf.mxu1  ;;  %9250 = vmatmul.mubr.msk.f32.gmra.mxu0 %vm962_vm0, %v1444_v43 }
 0x251   : > { %9304 = vmatmul.mubr.msk.f32.vlgmr.msra.gmra.mxu1 %vm962_vm0, %v2104_v10  ;;  %1783 = vmatprep.mubr.f32.mxu0 %v15129_v0 }
 0x252   : > { %2433 = vmatprep.mubr.f32.mxu1 %v15129_v0  ;;  %v10096_v11 = vpop.f32.mrf.mxu1 }
 0x254   : > { %9251 = vmatmul.mubr.msk.f32.gmra.mxu0 %vm962_vm0, %v10056_v41  ;;  %v2114_v12 = vpop.f32.mrf.mxu1 }
 0x255   : > { %9305 = vmatmul.mubr.msk.f32.gmra.mxu1 %vm962_vm0, %v10093_v9  ;;  %1789 = vmatprep.mubr.f32.mxu0 %v15129_v0 }
 0x256   : > { %2439 = vmatprep.mubr.f32.mxu1 %v15129_v0  ;;  %v10099_v13 = vpop.f32.mrf.mxu1 }
 0x258   : > { %9252 = vmatmul.mubr.msk.f32.gmra.mxu0 %vm962_vm0, %v1454_v47  ;;  %v2124_v14 = vpop.f32.mrf.mxu1 }
 0x259   : > { %9306 = vmatmul.mubr.msk.f32.gmra.mxu1 %vm962_vm0, %v2114_v12  ;;  %1795 = vmatprep.mubr.f32.mxu0 %v15129_v0 }
 0x25a   : > { %2445 = vmatprep.mubr.f32.mxu1 %v15129_v0  ;;  %v10102_v15 = vpop.f32.mrf.mxu1 }
 0x25c   : > { %9253 = vmatmul.mubr.msk.f32.gmra.mxu0 %vm962_vm0, %v12023_v45  ;;  %v2134_v16 = vpop.f32.mrf.mxu1 }
 0x25d   : > { %9307 = vmatmul.mubr.msk.f32.gmra.mxu1 %vm962_vm0, %v10096_v11  ;;  %1801 = vmatprep.mubr.f32.mxu0 %v15129_v0 }
 0x25e   : > { %2451 = vmatprep.mubr.f32.mxu1 %v15129_v0  ;;  %v10105_v17 = vpop.f32.mrf.mxu1 }
 0x260   : > { %9254 = vmatmul.mubr.msk.f32.gmra.mxu0 %vm962_vm0, %v1464_v50  ;;  %v2144_v18 = vpop.f32.mrf.mxu1 }
 0x261   : > { %9308 = vmatmul.mubr.msk.f32.gmra.mxu1 %vm962_vm0, %v2124_v14  ;;  %1807 = vmatprep.mubr.f32.mxu0 %v15129_v0 }
 0x262   : > { %2457 = vmatprep.mubr.f32.mxu1 %v15129_v0  ;;  %v10108_v19 = vpop.f32.mrf.mxu1 }
 0x264   : > { %9255 = vmatmul.mubr.msk.f32.gmra.mxu0 %vm962_vm0, %v12026_v48  ;;  %v2154_v20 = vpop.f32.mrf.mxu1 }
 0x265   : > { %9309 = vmatmul.mubr.msk.f32.gmra.mxu1 %vm962_vm0, %v10099_v13  ;;  %1813 = vmatprep.mubr.f32.mxu0 %v15129_v0 }
 0x266   : > { %2463 = vmatprep.mubr.f32.mxu1 %v15129_v0  ;;  %v10111_v21 = vpop.f32.mrf.mxu1 }
 0x268   : > { %9256 = vmatmul.mubr.msk.f32.gmra.mxu0 %vm962_vm0, %v12033_v53  ;;  %v2164_v22 = vpop.f32.mrf.mxu1 }
 0x269   : > { %9310 = vmatmul.mubr.msk.f32.gmra.mxu1 %vm962_vm0, %v2134_v16  ;;  %1819 = vmatprep.mubr.f32.mxu0 %v15129_v0 }
 0x26a   : > { %2469 = vmatprep.mubr.f32.mxu1 %v15129_v0  ;;  %v10114_v23 = vpop.f32.mrf.mxu1 }
 0x26c   : > { %9257 = vmatmul.mubr.msk.f32.gmra.mxu0 %vm962_vm0, %v12030_v51  ;;  %v2174_v24 = vpop.f32.mrf.mxu1 }
 0x26d   : > { %9311 = vmatmul.mubr.msk.f32.gmra.mxu1 %vm962_vm0, %v10102_v15  ;;  %1825 = vmatprep.mubr.f32.mxu0 %v15129_v0 }
 0x26e   : > { %2475 = vmatprep.mubr.f32.mxu1 %v15129_v0  ;;  %v10117_v25 = vpop.f32.mrf.mxu1 }
 0x270   : > { %9258 = vmatmul.mubr.msk.f32.gmra.mxu0 %vm962_vm0, %v12039_v56  ;;  %v2184_v26 = vpop.f32.mrf.mxu1 }
 0x271   : > { %9312 = vmatmul.mubr.msk.f32.gmra.mxu1 %vm962_vm0, %v2144_v18  ;;  %1831 = vmatprep.mubr.f32.mxu0 %v15129_v0 }
 0x272   : > { %2481 = vmatprep.mubr.f32.mxu1 %v15129_v0  ;;  %v10120_v27 = vpop.f32.mrf.mxu1 }
 0x274   : > { %9259 = vmatmul.mubr.msk.f32.gmra.mxu0 %vm962_vm0, %v12036_v54  ;;  %v2194_v37 = vpop.f32.mrf.mxu1 }
 0x275   : > { %9313 = vmatmul.mubr.msk.f32.gmra.mxu1 %vm962_vm0, %v10105_v17  ;;  %1837 = vmatprep.mubr.f32.mxu0 %v15129_v0 }
 0x276   : > { %2487 = vmatprep.mubr.f32.mxu1 %v15129_v0  ;;  %v10123_v39 = vpop.f32.mrf.mxu1 }
 0x278   : > { %9260 = vmatmul.mubr.msk.f32.gmra.mxu0 %vm962_vm0, %v12045_v59  ;;  %v2204_v41 = vpop.f32.mrf.mxu1 }
 0x279   : > { %9314 = vmatmul.mubr.msk.f32.gmra.mxu1 %vm962_vm0, %v2154_v20  ;;  %1843 = vmatprep.mubr.f32.mxu0 %v15129_v0 }
 0x27a   : > { %2493 = vmatprep.mubr.f32.mxu1 %v15129_v0  ;;  %v10126_v43 = vpop.f32.mrf.mxu1 }
 0x27c   : > { %9261 = vmatmul.mubr.msk.f32.gmra.mxu0 %vm962_vm0, %v12042_v57  ;;  %v2214_v44 = vpop.f32.mrf.mxu1 }
 0x27d   : > { %9315 = vmatmul.mubr.msk.f32.gmra.mxu1 %vm962_vm0, %v10108_v19  ;;  %1849 = vmatprep.mubr.f32.mxu0 %v15129_v0 }
 0x27e   : > { %2499 = vmatprep.mubr.f32.mxu1 %v15129_v0  ;;  %v10129_v45 = vpop.f32.mrf.mxu1 }
 0x280   : > { %9262 = vmatmul.mubr.msk.f32.gmra.mxu0 %vm962_vm0, %v12051_v62  ;;  %v2224_v46 = vpop.f32.mrf.mxu1 }
 0x281   : > { %9316 = vmatmul.mubr.msk.f32.gmra.mxu1 %vm962_vm0, %v2164_v22  ;;  %1855 = vmatprep.mubr.f32.mxu0 %v15129_v0 }
 0x282   : > { %2505 = vmatprep.mubr.f32.mxu1 %v15129_v0  ;;  %v10132_v47 = vpop.f32.mrf.mxu1 }
 0x284   : > { %9263 = vmatmul.mubr.msk.f32.gmra.mxu0 %vm962_vm0, %v12048_v60 }
 0x285   : > { %9317 = vmatmul.mubr.msk.f32.gmra.mxu1 %vm962_vm0, %v10111_v21  ;;  %1861 = vmatprep.mubr.f32.mxu0 %v15129_v0 }
 0x286   : > { %2511 = vmatprep.mubr.f32.mxu1 %v15129_v0 }
 0x288   : > { %9264 = vmatmul.mubr.msk.f32.gmra.mxu0 %vm962_vm0, %v12057_v2 }
 0x289   : > { %9318 = vmatmul.mubr.msk.f32.gmra.mxu1 %vm962_vm0, %v2174_v24  ;;  %1867 = vmatprep.mubr.f32.mxu0 %v15129_v0 }
 0x28a   : > { %2517 = vmatprep.mubr.f32.mxu1 %v15129_v0 }
 0x28c   : > { %9265 = vmatmul.mubr.msk.f32.gmra.mxu0 %vm962_vm0, %v12054_v63 }
 0x28d   : > { %9319 = vmatmul.mubr.msk.f32.gmra.mxu1 %vm962_vm0, %v10114_v23  ;;  %1873 = vmatprep.mubr.f32.mxu0 %v15129_v0 }
 0x28e   : > { %2523 = vmatprep.mubr.f32.mxu1 %v15129_v0 }
 0x290   : > { %9266 = vmatmul.mubr.msk.f32.gmra.mxu0 %vm962_vm0, %v12063_v4 }
 0x291   : > { %9320 = vmatmul.mubr.msk.f32.gmra.mxu1 %vm962_vm0, %v2184_v26  ;;  %1879 = vmatprep.mubr.f32.mxu0 %v15129_v0 }
 0x292   : > { %2529 = vmatprep.mubr.f32.mxu1 %v15129_v0 }
 0x294   : > { %9267 = vmatmul.mubr.msk.f32.gmra.mxu0 %vm962_vm0, %v12060_v3 }
 0x295   : > { %9321 = vmatmul.mubr.msk.f32.gmra.mxu1 %vm962_vm0, %v10117_v25  ;;  %1885 = vmatprep.mubr.f32.mxu0 %v15129_v0 }
 0x296   : > { %2535 = vmatprep.mubr.f32.mxu1 %v15129_v0 }
 0x298   : > { %9268 = vmatmul.mubr.msk.f32.gmra.mxu0 %vm962_vm0, %v12069_v6  ;;  %v2818_v6 = vld [vmem:[%s779_s26 + $0x8] sm:$0xff] }
 0x299   : > { %9322 = vmatmul.mubr.msk.f32.gmra.mxu1 %vm962_vm0, %v2194_v37  ;;  %1891 = vmatprep.mubr.f32.mxu0 %v15129_v0 }
 0x29a   : > { %2541 = vmatprep.mubr.f32.mxu1 %v15129_v0  ;;  %10191 = vmatprep.subr.mxu1 %v2818_v6 }
 0x29b   : > { %10192 = vmatpush3.msra.mxu1 %v2818_v6 }
 0x29c   : > { %9269 = vmatmul.mubr.msk.f32.gmra.mxu0 %vm962_vm0, %v12066_v5 }
 0x29d   : > { %9323 = vmatmul.mubr.msk.f32.gmra.mxu1 %vm962_vm0, %v10120_v27  ;;  %1897 = vmatprep.mubr.f32.mxu0 %v15129_v0 }
 0x29e   : > { %2547 = vmatprep.mubr.f32.mxu1 %v15129_v0 }
 0x2a0   : > { %9270 = vmatmul.mubr.msk.f32.gmra.mxu0 %vm962_vm0, %v12075_v8 }
 0x2a1   : > { %9324 = vmatmul.mubr.msk.f32.gmra.mxu1 %vm962_vm0, %v2204_v41  ;;  %1903 = vmatprep.mubr.f32.mxu0 %v15129_v0 }
 0x2a2   : > { %2553 = vmatprep.mubr.f32.mxu1 %v15129_v0 }
 0x2a4   : > { %9271 = vmatmul.mubr.msk.f32.gmra.mxu0 %vm962_vm0, %v12072_v7 }
 0x2a5   : > { %9325 = vmatmul.mubr.msk.f32.gmra.mxu1 %vm962_vm0, %v10123_v39  ;;  %2748 = vmatprep.mubr.f32.mxu0 %v12003_v30  ;;  %v2234_v30 = vpop.f32.mrf.mxu1 }
 0x2a6   : > { %2559 = vmatprep.mubr.f32.mxu1 %v15129_v0 }
 0x2a7   : > { %v10135_v48 = vpop.f32.mrf.mxu1 }
 0x2a9   : > { %9326 = vmatmul.mubr.msk.f32.gmra.mxu1 %vm962_vm0, %v2214_v44  ;;  %v2244_v49 = vpop.f32.mrf.mxu1 }
 0x2aa   : > { %2565 = vmatprep.mubr.f32.mxu1 %v15129_v0 }
 0x2ab   : > { %v10138_v50 = vpop.f32.mrf.mxu1 }
 0x2ad   : > { %9327 = vmatmul.mubr.msk.f32.gmra.mxu1 %vm962_vm0, %v10126_v43  ;;  %v2254_v51 = vpop.f32.mrf.mxu1 }
 0x2ae   : > { %2571 = vmatprep.mubr.f32.mxu1 %v15129_v0 }
 0x2b1   : > { %9328 = vmatmul.mubr.msk.f32.gmra.mxu1 %vm962_vm0, %v2224_v46 }
 0x2b2   : > { %2577 = vmatprep.mubr.f32.mxu1 %v15129_v0 }
 0x2b5   : > { %9329 = vmatmul.mubr.msk.f32.gmra.mxu1 %vm962_vm0, %v10129_v45 }
 0x2b6   : > { %2583 = vmatprep.mubr.f32.mxu1 %v15129_v0 }
 0x2b9   : > { %9330 = vmatmul.mubr.msk.f32.gmra.mxu1 %vm962_vm0, %v2234_v30 }
 0x2ba   : > { %2589 = vmatprep.mubr.f32.mxu1 %v15129_v0 }
 0x2bd   : > { %9331 = vmatmul.mubr.msk.f32.gmra.mxu1 %vm962_vm0, %v10132_v47 }
 0x2be   : > { %2595 = vmatprep.mubr.f32.mxu1 %v15129_v0 }
 0x2c1   : > { %9332 = vmatmul.mubr.msk.f32.gmra.mxu1 %vm962_vm0, %v2244_v49 }
 0x2c2   : > { %2601 = vmatprep.mubr.f32.mxu1 %v15129_v0 }
 0x2c5   : > { %9333 = vmatmul.mubr.msk.f32.gmra.mxu1 %vm962_vm0, %v10135_v48 }
 0x2c6   : > { %2607 = vmatprep.mubr.f32.mxu1 %v15129_v0 }
 0x2c9   : > { %9334 = vmatmul.mubr.msk.f32.gmra.mxu1 %vm962_vm0, %v2254_v51 }
 0x2ca   : > { %2613 = vmatprep.mubr.f32.mxu1 %v15129_v0 }
 0x2cd   : > { %9335 = vmatmul.mubr.msk.f32.gmra.mxu1 %vm962_vm0, %v10138_v50 }
 0x2e8   : > { %v1719_v52 = vpop.f32.mrf.mxu0 }
 0x2ea   : > { %v12204_v53 = vpop.f32.mrf.mxu0 }
 0x2eb   : > { %15239 = vst [vmem:[#allocation58_spill] sm:$0xff] %v12204_v53 }
 0x2ec   : > { %v1725_v54 = vpop.f32.mrf.mxu0 }
 0x2ee   : > { %v12206_v55 = vpop.f32.mrf.mxu0 }
 0x2ef   : > { %15240 = vst [vmem:[#allocation59_spill] sm:$0xff] %v12206_v55 }
 0x2f0   : > { %v1731_v56 = vpop.f32.mrf.mxu0 }
 0x2f2   : > { %v12208_v57 = vpop.f32.mrf.mxu0 }
 0x2f3   : > { %15241 = vst [vmem:[#allocation60_spill] sm:$0xff] %v12208_v57 }
 0x2f4   : > { %v1737_v58 = vpop.f32.mrf.mxu0 }
 0x2f6   : > { %v12210_v59 = vpop.f32.mrf.mxu0 }
 0x2f8   : > { %v1743_v60 = vpop.f32.mrf.mxu0 }
 0x2fa   : > { %v12212_v61 = vpop.f32.mrf.mxu0 }
 0x2fc   : > { %v12214_v62 = vpop.f32.mrf.mxu0 }
 0x2fe   : > { %v12216_v63 = vpop.f32.mrf.mxu0 }
 0x300   : > { %v12218_v1 = vpop.f32.mrf.mxu0 }
 0x302   : > { %v12220_v2 = vpop.f32.mrf.mxu0 }
 0x304   : > { %v12222_v3 = vpop.f32.mrf.mxu0 }
 0x306   : > { %v12224_v4 = vpop.f32.mrf.mxu0 }
 0x308   : > { %v12226_v5 = vpop.f32.mrf.mxu0 }
 0x30a   : > { %v12230_v7 = vpop.f32.mrf.mxu0 }
 0x30c   : > { %v12232_v8 = vpop.f32.mrf.mxu0 }
 0x30e   : > { %v12234_v9 = vpop.f32.mrf.mxu0 }
 0x310   : > { %v12236_v10 = vpop.f32.mrf.mxu0 }
 0x311   : > { %v2429_v11 = vpop.f32.mrf.mxu1 }
 0x312   : > { %v12238_v12 = vmul.f32 %v2429_v11, %v1719_v52  ;;  %v12240_v13 = vpop.f32.mrf.mxu0 }
 0x313   : > { %v12242_v14 = vpop.f32.mrf.mxu1 }
 0x314   : > { %15242 = vst [vmem:[#allocation61_spill] sm:$0xff] %v12238_v12  ;;  %15243 = vst [vmem:[#allocation62_spill] sm:$0xff] %v12242_v14  ;;  %v12244_v15 = vpop.f32.mrf.mxu0  ;;  %v2817_v14 = vld [vmem:[%s779_s26] sm:$0xff] }
 0x315   : > { %v2435_v16 = vpop.f32.mrf.mxu1  ;;  %10193 = vmatprep.subr.mxu1 %v2817_v14 }
 0x316   : > { %v12246_v17 = vmul.f32 %v2435_v16, %v1725_v54  ;;  %v12248_v18 = vpop.f32.mrf.mxu0  ;;  %10194 = vmatpush3.msra.mxu1 %v2817_v14 }
 0x317   : > { %v12250_v19 = vpop.f32.mrf.mxu1 }
 0x318   : > { %15244 = vst [vmem:[#allocation63_spill] sm:$0xff] %v12246_v17  ;;  %15245 = vst [vmem:[#allocation64_spill] sm:$0xff] %v12250_v19  ;;  %v12252_v20 = vpop.f32.mrf.mxu0 }
 0x319   : > { %v2441_v21 = vpop.f32.mrf.mxu1 }
 0x31a   : > { %v12254_v22 = vmul.f32 %v2441_v21, %v1731_v56  ;;  %v12256_v23 = vpop.f32.mrf.mxu0 }
 0x31b   : > { %v12258_v24 = vpop.f32.mrf.mxu1 }
 0x31c   : > { %15246 = vst [vmem:[#allocation65_spill] sm:$0xff] %v12254_v22  ;;  %15247 = vst [vmem:[#allocation66_spill] sm:$0xff] %v12258_v24  ;;  %v12260_v25 = vpop.f32.mrf.mxu0 }
 0x31d   : > { %v2447_v26 = vpop.f32.mrf.mxu1 }
 0x31e   : > { %v12262_v27 = vmul.f32 %v2447_v26, %v1737_v58  ;;  %v1799_v37 = vpop.f32.mrf.mxu0 }
 0x31f   : > { %v12264_v39 = vpop.f32.mrf.mxu1 }
 0x320   : > { %15248 = vst [vmem:[#allocation67_spill] sm:$0xff] %v12262_v27  ;;  %15249 = vst [vmem:[#allocation68_spill] sm:$0xff] %v12264_v39  ;;  %v1803_v41 = vpop.f32.mrf.mxu0 }
 0x321   : > { %v2453_v43 = vpop.f32.mrf.mxu1 }
 0x322   : > { %v12266_v44 = vmul.f32 %v2453_v43, %v1743_v60  ;;  %v1805_v45 = vpop.f32.mrf.mxu0 }
 0x323   : > { %v12268_v46 = vpop.f32.mrf.mxu1 }
 0x324   : > { %15250 = vst [vmem:[#allocation69_spill] sm:$0xff] %v12266_v44  ;;  %v1809_v47 = vpop.f32.mrf.mxu0 }
 0x325   : > { %v12270_v30 = vpop.f32.mrf.mxu1 }
 0x326   : > { %v1811_v48 = vpop.f32.mrf.mxu0 }
 0x327   : > { %v12272_v49 = vpop.f32.mrf.mxu1 }
 0x328   : > { %v1815_v50 = vpop.f32.mrf.mxu0 }
 0x329   : > { %v12274_v51 = vpop.f32.mrf.mxu1 }
 0x32a   : > { %v12276_v52 = vpop.f32.mrf.mxu0 }
 0x32b   : > { %15251 = vst [vmem:[#allocation70_spill] sm:$0xff] %v12276_v52  ;;  %v12278_v54 = vpop.f32.mrf.mxu1 }
 0x32c   : > { %v1821_v56 = vpop.f32.mrf.mxu0 }
 0x32d   : > { %v12280_v58 = vpop.f32.mrf.mxu1 }
 0x32e   : > { %v12282_v60 = vpop.f32.mrf.mxu0 }
 0x32f   : > { %15252 = vst [vmem:[#allocation71_spill] sm:$0xff] %v12282_v60  ;;  %v12284_v6 = vpop.f32.mrf.mxu1 }
 0x330   : > { %v1827_v11 = vpop.f32.mrf.mxu0 }
 0x331   : > { %v12286_v16 = vpop.f32.mrf.mxu1 }
 0x332   : > { %v12288_v21 = vpop.f32.mrf.mxu0 }
 0x333   : > { %15253 = vst [vmem:[#allocation72_spill] sm:$0xff] %v12288_v21  ;;  %v12290_v26 = vpop.f32.mrf.mxu1 }
 0x334   : > { %v12292_v43 = vpop.f32.mrf.mxu0 }
 0x335   : > { %v2483_v0 = vpop.f32.mrf.mxu1 }
 0x336   : > { %v12294_v40 = vpop.f32.mrf.mxu0 }
 0x337   : > { %15254 = vst [vmem:[#allocation73_spill] sm:$0xff] %v12294_v40  ;;  %v2485_v42 = vpop.f32.mrf.mxu1 }
 0x338   : > { %v12296_v36 = vpop.f32.mrf.mxu0 }
 0x339   : > { %v2489_v38 = vpop.f32.mrf.mxu1 }
 0x33a   : > { %v12298_v33 = vpop.f32.mrf.mxu0 }
 0x33b   : > { %15255 = vst [vmem:[#allocation74_spill] sm:$0xff] %v12298_v33  ;;  %v2491_v35 = vpop.f32.mrf.mxu1 }
 0x33c   : > { %v12300_v29 = vpop.f32.mrf.mxu0 }
 0x33d   : > { %15256 = vst [vmem:[#allocation75_spill] sm:$0xff] %v12300_v29  ;;  %v2495_v31 = vpop.f32.mrf.mxu1 }
 0x33e   : > { %v12302_v32 = vpop.f32.mrf.mxu0 }
 0x33f   : > { %15257 = vst [vmem:[#allocation76_spill] sm:$0xff] %v12302_v32  ;;  %v2497_v34 = vpop.f32.mrf.mxu1 }
 0x340   : > { %v12304_v52 = vpop.f32.mrf.mxu0 }
 0x341   : > { %v2501_v28 = vpop.f32.mrf.mxu1  ;;  %15258 = vst [vmem:[#allocation77_spill] sm:$0xff] %v12304_v52 }
 0x342   : > { %v12306_v40 = vpop.f32.mrf.mxu0 }
 0x343   : > { %v2503_v60 = vpop.f32.mrf.mxu1  ;;  %15259 = vst [vmem:[#allocation78_spill] sm:$0xff] %v12306_v40 }
 0x344   : > { %v12310_v53 = vpop.f32.mrf.mxu0 }
 0x345   : > { %v2507_v21 = vpop.f32.mrf.mxu1  ;;  %15260 = vst [vmem:[#allocation79_spill] sm:$0xff] %v12310_v53 }
 0x346   : > { %v12312_v22 = vpop.f32.mrf.mxu0  ;;  %v2646_v14 = vmul.f32 %v2507_v21, %v12260_v25  ;;  %v2639_v25 = vmul.f32 %v2485_v42, %v12234_v9  ;;  %v2635_v42 = vmul.f32 %v12284_v6, %v12224_v4  ;;  %v2633_v9 = vmul.f32 %v12278_v54, %v12220_v2  ;;  %v15266_v54 = vld [vmem:[#allocation59_spill] sm:$0xff]  ;;  %v15268_v6 = vld [vmem:[#allocation65_spill] sm:$0xff] }
 0x347   : > { %v2509_v12 = vpop.f32.mrf.mxu1  ;;  %v2632_v4 = vmul.f32 %v12274_v51, %v12218_v1  ;;  %v2630_v2 = vmul.f32 %v12270_v30, %v12214_v62  ;;  %v15262_v30 = vld [vmem:[#allocation69_spill] sm:$0xff] }
 0x348   : > { %v12316_v40 = vpop.f32.mrf.mxu0  ;;  %v2647_v53 = vmul.f32 %v2509_v12, %v1799_v37  ;;  %v2642_v12 = vmul.f32 %v2495_v31, %v12244_v15  ;;  %v2631_v37 = vmul.f32 %v12272_v49, %v12216_v63  ;;  %v3845_v63 = vld [vmem:[%s15227_s3 + $0x10] sm:$0xff]  ;;  %v15264_v49 = vld [vmem:[#allocation66_spill] sm:$0xff] }
 0x349   : > { %v2513_v17 = vpop.f32.mrf.mxu1 }
 0x34a   : > { %v2648_v57 = vmul.f32 %v2513_v17, %v1803_v41 }
 0x34b   : > { %v2515_v33 = vpop.f32.mrf.mxu1 }
 0x34c   : > { %v2649_v27 = vmul.f32 %v2515_v33, %v1805_v45  ;;  %v2644_v33 = vmul.f32 %v2501_v28, %v12252_v20 }
 0x34d   : > { %v2519_v29 = vpop.f32.mrf.mxu1 }
 0x34e   : > { %v2650_v55 = vmul.f32 %v2519_v29, %v1809_v47  ;;  %v15261_v47 = vld [vmem:[#allocation68_spill] sm:$0xff] }
 0x34f   : > { %v2521_v32 = vpop.f32.mrf.mxu1 }
 0x350   : > { %v2651_v19 = vmul.f32 %v2521_v32, %v1811_v48  ;;  %v2645_v32 = vmul.f32 %v2503_v60, %v12256_v23  ;;  %v2627_v48 = vmul.f32 %v15261_v47, %v12210_v59 }
 0x351   : > { %v2525_v52 = vpop.f32.mrf.mxu1 }
 0x352   : > { %v12314_v24 = vmul.f32 %v2525_v52, %v1815_v50  ;;  %2684 = vmatprep.subr.mxu0 %v2651_v19  ;;  %v12325_v19 = vpop.f32.mrf.mxu0  ;;  %v15265_v52 = vld [vmem:[#allocation67_spill] sm:$0xff] }
 0x353   : > { %v12318_v44 = vpop.f32.mrf.mxu1  ;;  %2685 = vmatpush1.msra.mxu0 %v2650_v55  ;;  %v2643_v55 = vmul.f32 %v2497_v34, %v12248_v18  ;;  %v2638_v34 = vmul.f32 %v2483_v0, %v12232_v8  ;;  %v3843_v0 = vld [vmem:[%s15227_s3] sm:$0xff] }
 0x354   : > { %2686 = vmatprep.subr.mxu0 %v2649_v27  ;;  %v12335_v28 = vpop.f32.mrf.mxu0  ;;  %10195 = vmatprep.mubr.msk.f32.mxu1 %vm962_vm0, %v3843_v0 }
 0x355   : > { %v2531_v39 = vpop.f32.mrf.mxu1  ;;  %2687 = vmatpush1.msra.mxu0 %v2648_v57  ;;  %v2641_v57 = vmul.f32 %v2491_v35, %v12240_v13  ;;  %v2637_v35 = vmul.f32 %v12290_v26, %v12230_v7  ;;  %v2634_v7 = vmul.f32 %v12280_v58, %v12222_v3  ;;  %v3847_v26 = vld [vmem:[%s15227_s3 + $0x20] sm:$0xff] }
 0x356   : > { %v12322_v29 = vmul.f32 %v2531_v39, %v1821_v56  ;;  %2688 = vmatprep.subr.mxu0 %v2647_v53  ;;  %v2640_v53 = vmul.f32 %v2489_v38, %v12236_v10  ;;  %v2636_v38 = vmul.f32 %v12286_v16, %v12226_v5  ;;  %v12348_v10 = vpop.f32.mrf.mxu0  ;;  %v3844_v5 = vld [vmem:[%s15227_s3 + $0x8] sm:$0xff]  ;;  %v2629_v39 = vmul.f32 %v12268_v46, %v12212_v61  ;;  %v3846_v61 = vld [vmem:[%s15227_s3 + $0x18] sm:$0xff] }
 0x357   : > { %v12327_v45 = vpop.f32.mrf.mxu1  ;;  %2689 = vmatpush1.msra.mxu0 %v2646_v14  ;;  %10196 = vmatmul.mubr.msk.f32.vlgmr.msra.gmra.mxu1 %vm962_vm0, %v3844_v5  ;;  %v15263_v46 = vld [vmem:[#allocation60_spill] sm:$0xff]  ;;  %v15270_v16 = vld [vmem:[#allocation62_spill] sm:$0xff] }
 0x358   : > { %2690 = vmatprep.subr.mxu0 %v2645_v32  ;;  %v12371_v27 = vpop.f32.mrf.mxu0  ;;  %10198 = vmatprep.mubr.msk.f32.mxu1 %vm962_vm0, %v3845_v63  ;;  %v2625_v50 = vmul.f32 %v15264_v49, %v15263_v46  ;;  %v15267_v56 = vld [vmem:[#allocation64_spill] sm:$0xff] }
 0x359   : > { %v2537_v17 = vpop.f32.mrf.mxu1  ;;  %2691 = vmatpush1.msra.mxu0 %v2644_v33  ;;  %v2623_v58 = vmul.f32 %v15267_v56, %v15266_v54  ;;  %v15271_v33 = vld [vmem:[#allocation63_spill] sm:$0xff] }
 0x35a   : > { %v12332_v23 = vmul.f32 %v2537_v17, %v1827_v11  ;;  %2692 = vmatprep.subr.mxu0 %v2643_v55  ;;  %v12383_v1 = vpop.f32.mrf.mxu0  ;;  %v15269_v11 = vld [vmem:[#allocation58_spill] sm:$0xff]  ;;  %v3849_v17 = vld [vmem:[%s15227_s3 + $0x30] sm:$0xff] }
 0x35b   : > { %v12337_v20 = vpop.f32.mrf.mxu1  ;;  %2693 = vmatpush1.msra.mxu0 %v2642_v12  ;;  %10199 = vmatmul.mubr.msk.f32.gmra.mxu1 %vm962_vm0, %v3846_v61  ;;  %v2621_v21 = vmul.f32 %v15270_v16, %v15269_v11  ;;  %v15272_v12 = vld [vmem:[#allocation61_spill] sm:$0xff]  ;;  %v3862_v11 = vld [vmem:[%s15227_s3 + $0x98] sm:$0xff] }
 0x35c   : > { %2694 = vmatprep.subr.mxu0 %v2641_v57  ;;  %v12402_v51 = vpop.f32.mrf.mxu0  ;;  %10201 = vmatprep.mubr.msk.f32.mxu1 %vm962_vm0, %v3847_v26  ;;  %v3850_v57 = vld [vmem:[%s15227_s3 + $0x38] sm:$0xff] }
 0x35d   : > { %v2543_v31 = vpop.f32.mrf.mxu1  ;;  %2695 = vmatpush1.msra.mxu0 %v2640_v53 }
 0x35e   : > { %v12344_v13 = vmul.f32 %v2543_v31, %v12292_v43  ;;  %2696 = vmatprep.subr.mxu0 %v2639_v25  ;;  %v3848_v43 = vld [vmem:[%s15227_s3 + $0x28] sm:$0xff]  ;;  %v12420_v14 = vpop.f32.mrf.mxu0  ;;  %v3851_v31 = vld [vmem:[%s15227_s3 + $0x40] sm:$0xff] }
 0x35f   : > { %v12350_v15 = vpop.f32.mrf.mxu1  ;;  %2697 = vmatpush1.msra.mxu0 %v2638_v34  ;;  %10202 = vmatmul.mubr.msk.f32.gmra.mxu1 %vm962_vm0, %v3848_v43  ;;  %v3863_v43 = vld [vmem:[%s15227_s3 + $0xa0] sm:$0xff] }
 0x360   : > { %2698 = vmatprep.subr.mxu0 %v2637_v35  ;;  %v12436_v53 = vpop.f32.mrf.mxu0  ;;  %10204 = vmatprep.mubr.msk.f32.mxu1 %vm962_vm0, %v3849_v17  ;;  %v3852_v35 = vld [vmem:[%s15227_s3 + $0x48] sm:$0xff] }
 0x361   : > { %v2549_v8 = vpop.f32.mrf.mxu1  ;;  %2699 = vmatpush1.msra.mxu0 %v2636_v38 }
 0x362   : > { %v12366_v18 = vmul.f32 %v2549_v8, %v12296_v36  ;;  %2700 = vmatprep.subr.mxu0 %v2635_v42  ;;  %v1889_v38 = vpop.f32.mrf.mxu0  ;;  %v3854_v8 = vld [vmem:[%s15227_s3 + $0x58] sm:$0xff] }
 0x363   : > { %v12373_v3 = vpop.f32.mrf.mxu1  ;;  %2701 = vmatpush1.msra.mxu0 %v2634_v7  ;;  %10205 = vmatmul.mubr.msk.f32.gmra.mxu1 %vm962_vm0, %v3850_v57  ;;  %v3853_v7 = vld [vmem:[%s15227_s3 + $0x50] sm:$0xff] }
 0x364   : > { %2702 = vmatprep.subr.mxu0 %v2633_v9  ;;  %10207 = vmatprep.mubr.msk.f32.mxu1 %vm962_vm0, %v3851_v31  ;;  %v1893_v5 = vpop.f32.mrf.mxu0 }
 0x365   : > { %v12379_v36 = vpop.f32.mrf.mxu1  ;;  %2703 = vmatpush1.msra.mxu0 %v2632_v4 }
 0x366   : > { %2704 = vmatprep.subr.mxu0 %v2631_v37  ;;  %v3855_v37 = vld [vmem:[%s15227_s3 + $0x60] sm:$0xff] }
 0x367   : > { %v12385_v41 = vpop.f32.mrf.mxu1  ;;  %2705 = vmatpush1.msra.mxu0 %v2630_v2  ;;  %10208 = vmatmul.mubr.msk.f32.gmra.mxu1 %vm962_vm0, %v3852_v35  ;;  %v3856_v2 = vld [vmem:[%s15227_s3 + $0x68] sm:$0xff] }
 0x368   : > { %2706 = vmatprep.subr.mxu0 %v2629_v39  ;;  %10210 = vmatprep.mubr.msk.f32.mxu1 %vm962_vm0, %v3853_v7  ;;  %v1895_v39 = vpop.f32.mrf.mxu0  ;;  %v3865_v7 = vld [vmem:[%s15227_s3 + $0xb0] sm:$0xff] }
 0x369   : > { %v12393_v62 = vpop.f32.mrf.mxu1  ;;  %2707 = vmatpush1.msra.mxu0 %v15262_v30  ;;  %v3858_v30 = vld [vmem:[%s15227_s3 + $0x78] sm:$0xff] }
 0x36a   : > { %2708 = vmatprep.subr.mxu0 %v2627_v48  ;;  %v3857_v48 = vld [vmem:[%s15227_s3 + $0x70] sm:$0xff]  ;;  %v1899_v61 = vpop.f32.mrf.mxu0 }
 0x36b   : > { %v12404_v59 = vpop.f32.mrf.mxu1  ;;  %2709 = vmatpush1.msra.mxu0 %v15265_v52  ;;  %10211 = vmatmul.mubr.msk.f32.gmra.mxu1 %vm962_vm0, %v3854_v8  ;;  %v3860_v52 = vld [vmem:[%s15227_s3 + $0x88] sm:$0xff]  ;;  %v3866_v8 = vld [vmem:[%s15227_s3 + $0xb8] sm:$0xff] }
 0x36c   : > { %2710 = vmatprep.subr.mxu0 %v2625_v50  ;;  %10213 = vmatprep.mubr.msk.f32.mxu1 %vm962_vm0, %v3855_v37  ;;  %v3859_v50 = vld [vmem:[%s15227_s3 + $0x80] sm:$0xff]  ;;  %v1901_v54 = vpop.f32.mrf.mxu0 }
 0x36d   : > { %v12409_v60 = vpop.f32.mrf.mxu1  ;;  %2711 = vmatpush1.msra.mxu0 %v15268_v6  ;;  %v3861_v6 = vld [vmem:[%s15227_s3 + $0x90] sm:$0xff] }
 0x36e   : > { %2712 = vmatprep.subr.mxu0 %v2623_v58  ;;  %v1905_v16 = vpop.f32.mrf.mxu0 }
 0x36f   : > { %v12422_v32 = vpop.f32.mrf.mxu1  ;;  %2713 = vmatpush1.msra.mxu0 %v15271_v33  ;;  %10214 = vmatmul.mubr.msk.f32.gmra.mxu1 %vm962_vm0, %v3856_v2  ;;  %v3864_v33 = vld [vmem:[%s15227_s3 + $0xa8] sm:$0xff] }
 0x370   : > { %2714 = vmatprep.subr.mxu0 %v2621_v21  ;;  %10216 = vmatprep.mubr.msk.f32.mxu1 %vm962_vm0, %v3857_v48 }
 0x371   : > { %v12427_v55 = vpop.f32.mrf.mxu1  ;;  %2715 = vmatpush1.msra.mxu0 %v15272_v12  ;;  %v1907_v12 = vpop.f32.mrf.mxu0 }
 0x373   : > { %v12438_v25 = vpop.f32.mrf.mxu1  ;;  %10217 = vmatmul.mubr.msk.f32.gmra.mxu1 %vm962_vm0, %v3858_v30 }
 0x374   : > { %10219 = vmatprep.mubr.msk.f32.mxu1 %vm962_vm0, %v3859_v50  ;;  %v3867_v50 = vld [vmem:[%s15227_s3 + $0xc0] sm:$0xff] }
 0x375   : > { %v12442_v34 = vpop.f32.mrf.mxu1 }
 0x377   : > { %v12450_v0 = vpop.f32.mrf.mxu1  ;;  %10220 = vmatmul.mubr.msk.f32.gmra.mxu1 %vm962_vm0, %v3860_v52  ;;  %v3868_v52 = vld [vmem:[%s15227_s3 + $0xc8] sm:$0xff] }
 0x378   : > { %10222 = vmatprep.mubr.msk.f32.mxu1 %vm962_vm0, %v3861_v6 }
 0x379   : > { %v12454_v42 = vpop.f32.mrf.mxu1 }
 0x37b   : > { %v12462_v9 = vpop.f32.mrf.mxu1  ;;  %10223 = vmatmul.mubr.msk.f32.gmra.mxu1 %vm962_vm0, %v3862_v11  ;;  %v15285_v11 = vld [vmem:[#allocation47_spill] sm:$0xff] }
 0x37c   : > { %10225 = vmatprep.mubr.msk.f32.mxu1 %vm962_vm0, %v3863_v43  ;;  %v15292_v43 = vld [vmem:[#allocation55_spill] sm:$0xff] }
 0x37d   : > { %v2591_v4 = vpop.f32.mrf.mxu1 }
 0x37f   : > { %v2593_v63 = vpop.f32.mrf.mxu1  ;;  %10226 = vmatmul.mubr.msk.f32.gmra.mxu1 %vm962_vm0, %v3864_v33  ;;  %v15293_v33 = vld [vmem:[#allocation54_spill] sm:$0xff] }
 0x380   : > { %10228 = vmatprep.mubr.msk.f32.mxu1 %vm962_vm0, %v3865_v7 }
 0x381   : > { %v2597_v47 = vpop.f32.mrf.mxu1 }
 0x383   : > { %v2599_v46 = vpop.f32.mrf.mxu1  ;;  %10229 = vmatmul.mubr.msk.f32.gmra.mxu1 %vm962_vm0, %v3866_v8  ;;  %v2814_v8 = vld [vmem:[%s761_s20 + $0x8] sm:$0xff] }
 0x384   : > { %v2677_v30 = vmul.f32 %v2599_v46, %v1889_v38  ;;  %10231 = vmatprep.mubr.msk.f32.mxu1 %vm962_vm0, %v3867_v50  ;;  %v2674_v38 = vmul.f32 %v2591_v4, %v12402_v51  ;;  %v3869_v46 = vld [vmem:[%s15227_s3 + $0xd0] sm:$0xff]  ;;  %v2671_v51 = vmul.f32 %v12450_v0, %v12348_v10  ;;  %v2668_v10 = vmul.f32 %v12427_v55, %v12316_v40 }
 0x385   : > { %v2603_v49 = vpop.f32.mrf.mxu1  ;;  %v3873_v40 = vld [vmem:[%s15227_s3 + $0xf0] sm:$0xff] }
 0x386   : > { %v2678_v48 = vmul.f32 %v2603_v49, %v1893_v5  ;;  %v2673_v5 = vmul.f32 %v12462_v9, %v12383_v1  ;;  %v2670_v1 = vmul.f32 %v12442_v34, %v12335_v28  ;;  %v2669_v9 = vmul.f32 %v12438_v25, %v12325_v19  ;;  %v15273_v19 = vld [vmem:[#allocation79_spill] sm:$0xff]  ;;  %v15274_v34 = vld [vmem:[#allocation78_spill] sm:$0xff] }
 0x387   : > { %v2605_v56 = vpop.f32.mrf.mxu1  ;;  %10232 = vmatmul.mubr.msk.f32.gmra.mxu1 %vm962_vm0, %v3868_v52  ;;  %v2667_v28 = vmul.f32 %v12422_v32, %v12312_v22  ;;  %v2666_v25 = vmul.f32 %v12409_v60, %v15273_v19  ;;  %v2665_v0 = vmul.f32 %v12404_v59, %v15274_v34  ;;  %v3874_v22 = vld [vmem:[%s15227_s3 + $0xf8] sm:$0xff]  ;;  %v15275_v32 = vld [vmem:[#allocation77_spill] sm:$0xff]  ;;  %v15276_v60 = vld [vmem:[#allocation76_spill] sm:$0xff] }
 0x388   : > { %v2679_v2 = vmul.f32 %v2605_v56, %v1895_v39  ;;  %v2675_v39 = vmul.f32 %v2593_v63, %v12420_v14  ;;  %v2672_v14 = vmul.f32 %v12454_v42, %v12371_v27  ;;  %10234 = vmatprep.mubr.msk.f32.mxu1 %vm962_vm0, %v3869_v46  ;;  %v3871_v27 = vld [vmem:[%s15227_s3 + $0xe0] sm:$0xff]  ;;  %v3872_v42 = vld [vmem:[%s15227_s3 + $0xe8] sm:$0xff]  ;;  %v2664_v55 = vmul.f32 %v12393_v62, %v15275_v32  ;;  %v15279_v49 = vld [vmem:[#allocation74_spill] sm:$0xff] }
 0x389   : > { %v2609_v58 = vpop.f32.mrf.mxu1  ;;  %v2663_v4 = vmul.f32 %v12385_v41, %v15276_v60  ;;  %v15277_v59 = vld [vmem:[#allocation75_spill] sm:$0xff]  ;;  %v15280_v62 = vld [vmem:[#allocation73_spill] sm:$0xff]  ;;  %v15281_v41 = vld [vmem:[#allocation72_spill] sm:$0xff] }
 0x38a   : > { %v2680_v37 = vmul.f32 %v2609_v58, %v1899_v61  ;;  %v2676_v61 = vmul.f32 %v2597_v47, %v12436_v53  ;;  %v3870_v53 = vld [vmem:[%s15227_s3 + $0xd8] sm:$0xff]  ;;  %v2662_v63 = vmul.f32 %v12379_v36, %v15277_v59  ;;  %v15278_v47 = vmov 0.0   ;;  %s9760_s3 = sshll.u32 %s11693_s22, 7  ;;  %v3133_v46 = vld [vmem:[%s15226_s25] sm:$0xff]  ;;  %v3143_v19 = vld [vmem:[%s15226_s25 + $0x50] sm:$0xff] }
 0x38b   : > { %v2611_v21 = vpop.f32.mrf.mxu1  ;;  %10235 = vmatmul.mubr.msk.f32.gmra.mxu1 %vm962_vm0, %v3870_v53  ;;  %v2659_v56 = vmul.f32 %v12350_v15, %v15280_v62  ;;  %v2657_v58 = vmul.f32 %v12337_v20, %v15281_v41  ;;  %s12586_s21 = scalar_lea.vmem %s15282_s4, %s9760_s3  ;;  %v15284_v20 = vld [vmem:[#allocation70_spill] sm:$0xff]  ;;  %v3134_v53 = vld [vmem:[%s15226_s25 + $0x8] sm:$0xff]  ;;  %v3145_v34 = vld [vmem:[%s15226_s25 + $0x60] sm:$0xff]  ;;  %s13208_s4 = sld [smem:[#allocation21 + %s13205_s18]] }
 0x38c   : > { %v2681_v35 = vmul.f32 %v2611_v21, %v1901_v54  ;;  %10237 = vmatprep.mubr.msk.f32.mxu1 %vm962_vm0, %v3871_v27  ;;  %v2661_v54 = vmul.f32 %v12373_v3, %v15279_v49  ;;  %v15283_v3 = vld [vmem:[#allocation71_spill] sm:$0xff]  ;;  %v2799_v36 = vld [vmem:[%s12586_s21 + $0x10] sm:$0xff]  ;;  %v2798_v6 = vld [vmem:[%s12586_s21 + $0x8] sm:$0xff] }
 0x38d   : > { %v2615_v26 = vpop.f32.mrf.mxu1  ;;  %v2655_v15 = vmul.f32 %v12327_v45, %v15283_v3  ;;  %v2797_v45 = vld [vmem:[%s12586_s21] sm:$0xff]  ;;  %v15290_v21 = vld [vmem:[#allocation53_spill] sm:$0xff]  ;;  %v2812_v50 = vld [vmem:[%s12586_s21 + $0x78] sm:$0xff] }
 0x38e   : > { %v2682_v31 = vmul.f32 %v2615_v26, %v1905_v16  ;;  %v15286_v16 = vld [vmem:[#allocation52_spill] sm:$0xff]  ;;  %v15291_v26 = vld [vmem:[#allocation51_spill] sm:$0xff]  ;;  %v2811_v52 = vld [vmem:[%s12586_s21 + $0x70] sm:$0xff] }
 0x38f   : > { %v2617_v17 = vpop.f32.mrf.mxu1  ;;  %10238 = vmatmul.mubr.msk.f32.gmra.mxu1 %vm962_vm0, %v3872_v42  ;;  %v2801_v7 = vld [vmem:[%s12586_s21 + $0x20] sm:$0xff]  ;;  %v3139_v27 = vld [vmem:[%s15226_s25 + $0x30] sm:$0xff]  ;;  %v3140_v42 = vld [vmem:[%s15226_s25 + $0x38] sm:$0xff] }
 0x390   : > { %v2683_v57 = vmul.f32 %v2617_v17, %v1907_v12  ;;  %10240 = vmatprep.mubr.msk.f32.mxu1 %vm962_vm0, %v3873_v40  ;;  %v15294_v12 = vld [vmem:[#allocation57_spill] sm:$0xff]  ;;  %v15295_v17 = vld [vmem:[#allocation56_spill] sm:$0xff]  ;;  %v3149_v32 = vld [vmem:[%s15226_s25 + $0x80] sm:$0xff] }
 0x391   : > { %v3147_v40 = vld [vmem:[%s15226_s25 + $0x70] sm:$0xff]  ;;  %v3153_v59 = vld [vmem:[%s15226_s25 + $0xa0] sm:$0xff]  ;;  %v4199_v49 = vld [vmem:[#allocation19 + $0x18] sm:$0xff]  ;;  %p9473_p8 = scmp.eq.s32.totalorder %s13208_s4, 0 }
 0x392   : > { %2716 = vmatprep.subr.mxu0 %v2683_v57  ;;  %v2813_v57 = vld [vmem:[%s761_s20] sm:$0xff]  ;;  %4324 = vmatprep.subr.mxu1 %v4199_v49 }
 0x393   : > { %2717 = vmatpush2.msra.mxu0 %v2682_v31  ;;  %10241 = vmatmul.mubr.msk.f32.gmra.mxu1 %vm962_vm0, %v3874_v22  ;;  %v2803_v31 = vld [vmem:[%s12586_s21 + $0x30] sm:$0xff]  ;;  %v3148_v22 = vld [vmem:[%s15226_s25 + $0x78] sm:$0xff]  ;;  %v3157_v3 = vld [vmem:[%s15226_s25 + $0xc0] sm:$0xff] }
 0x394   : > { %2718 = vmatprep.subr.mxu0 %v2681_v35  ;;  %4360 = vmatprep.mubr.f32.mxu1 %v15278_v47  ;;  %v2802_v35 = vld [vmem:[%s12586_s21 + $0x28] sm:$0xff]  ;;  %v3151_v60 = vld [vmem:[%s15226_s25 + $0x90] sm:$0xff] }
 0x395   : > { %2719 = vmatpush2.msra.mxu0 %v2680_v37  ;;  %v2808_v37 = vld [vmem:[%s12586_s21 + $0x58] sm:$0xff]  ;;  %v4198_v62 = vld [vmem:[#allocation19 + $0x10] sm:$0xff] }
 0x396   : > { %2720 = vmatprep.subr.mxu0 %v2679_v2  ;;  %v2807_v2 = vld [vmem:[%s12586_s21 + $0x50] sm:$0xff]  ;;  %4325 = vmatpush1.msra.mxu1 %v4198_v62 }
 0x397   : > { %2721 = vmatpush2.msra.mxu0 %v2678_v48  ;;  %v2806_v48 = vld [vmem:[%s12586_s21 + $0x48] sm:$0xff]  ;;  %v3155_v41 = vld [vmem:[%s15226_s25 + $0xb0] sm:$0xff] }
 0x398   : > { %2722 = vmatprep.subr.mxu0 %v2677_v30  ;;  %v2805_v30 = vld [vmem:[%s12586_s21 + $0x40] sm:$0xff] }
 0x399   : > { %2723 = vmatpush2.msra.mxu0 %v2676_v61  ;;  %v2810_v61 = vld [vmem:[%s12586_s21 + $0x68] sm:$0xff] }
 0x39a   : > { %2724 = vmatprep.subr.mxu0 %v2675_v39  ;;  %v2809_v39 = vld [vmem:[%s12586_s21 + $0x60] sm:$0xff] }
 0x39b   : > { %2725 = vmatpush2.msra.mxu0 %v2674_v38  ;;  %v2816_v38 = vld [vmem:[%s770_s28 + $0x8] sm:$0xff] }
 0x39c   : > { %2726 = vmatprep.subr.mxu0 %v2673_v5  ;;  %v2815_v5 = vld [vmem:[%s770_s28] sm:$0xff] }
 0x39d   : > { %2727 = vmatpush2.msra.mxu0 %v2672_v14  ;;  %v3135_v14 = vld [vmem:[%s15226_s25 + $0x10] sm:$0xff] }
 0x39e   : > { %2728 = vmatprep.subr.mxu0 %v2671_v51  ;;  %v3136_v51 = vld [vmem:[%s15226_s25 + $0x18] sm:$0xff] }
 0x39f   : > { %2729 = vmatpush2.msra.mxu0 %v2670_v1  ;;  %v3137_v1 = vld [vmem:[%s15226_s25 + $0x20] sm:$0xff] }
 0x3a0   : > { %2730 = vmatprep.subr.mxu0 %v2669_v9  ;;  %v3138_v9 = vld [vmem:[%s15226_s25 + $0x28] sm:$0xff] }
 0x3a1   : > { %2731 = vmatpush2.msra.mxu0 %v2668_v10  ;;  %v3141_v10 = vld [vmem:[%s15226_s25 + $0x40] sm:$0xff] }
 0x3a2   : > { %2732 = vmatprep.subr.mxu0 %v2667_v28  ;;  %v3142_v28 = vld [vmem:[%s15226_s25 + $0x48] sm:$0xff] }
 0x3a3   : > { %2733 = vmatpush2.msra.mxu0 %v2666_v25  ;;  %v3144_v25 = vld [vmem:[%s15226_s25 + $0x58] sm:$0xff] }
 0x3a4   : > { %2734 = vmatprep.subr.mxu0 %v2665_v0  ;;  %v3146_v0 = vld [vmem:[%s15226_s25 + $0x68] sm:$0xff] }
 0x3a5   : > { %2735 = vmatpush2.msra.mxu0 %v2664_v55  ;;  %v3150_v55 = vld [vmem:[%s15226_s25 + $0x88] sm:$0xff] }
 0x3a6   : > { %2736 = vmatprep.subr.mxu0 %v2663_v4  ;;  %v3152_v4 = vld [vmem:[%s15226_s25 + $0x98] sm:$0xff] }
 0x3a7   : > { %2737 = vmatpush2.msra.mxu0 %v2662_v63  ;;  %v3489_v63 = vld [vmem:[#allocation18 + $0x18] sm:$0xff] }
 0x3a8   : > { %2738 = vmatprep.subr.mxu0 %v2661_v54  ;;  %v3488_v54 = vld [vmem:[#allocation18 + $0x10] sm:$0xff] }
 0x3a9   : > { %2739 = vmatpush2.msra.mxu0 %v12366_v18  ;;  %v2653_v18 = vmul.f32 %v12318_v44, %v15284_v20  ;;  %v15287_v44 = vld [vmem:[#allocation50_spill] sm:$0xff]  ;;  %v3159_v20 = vld [vmem:[%s15226_s25 + $0xd0] sm:$0xff] }
 0x3aa   : > { %2740 = vmatprep.subr.mxu0 %v2659_v56  ;;  %v3154_v56 = vld [vmem:[%s15226_s25 + $0xa8] sm:$0xff] }
 0x3ab   : > { %2741 = vmatpush2.msra.mxu0 %v12344_v13  ;;  %v2800_v13 = vld [vmem:[%s12586_s21 + $0x18] sm:$0xff] }
 0x3ac   : > { %2742 = vmatprep.subr.mxu0 %v2657_v58  ;;  %v3156_v58 = vld [vmem:[%s15226_s25 + $0xb8] sm:$0xff] }
 0x3ad   : > { %2743 = vmatpush2.msra.mxu0 %v12332_v23  ;;  %v2804_v23 = vld [vmem:[%s12586_s21 + $0x38] sm:$0xff]  ;;  %s4752_s21 = sadd.s32 (!%p9473_p8), 2, %s13205_s18 }
 0x3ae   : > { %2744 = vmatprep.subr.mxu0 %v2655_v15  ;;  %v3158_v15 = vld [vmem:[%s15226_s25 + $0xc8] sm:$0xff]  ;;  %s4753_s20 = sld [smem:[#allocation22 + %s4752_s21]] (!%p9473_p8) }
 0x3af   : > { %2745 = vmatpush2.msra.mxu0 %v12322_v29  ;;  %v15288_v29 = vld [vmem:[#allocation49_spill] sm:$0xff] }
 0x3b0   : > { %2746 = vmatprep.subr.mxu0 %v2653_v18  ;;  %v3160_v18 = vld [vmem:[%s15226_s25 + $0xd8] sm:$0xff] }
 0x3b1   : > { %2747 = vmatpush2.msra.mxu0 %v12314_v24  ;;  %v15289_v24 = vld [vmem:[#allocation48_spill] sm:$0xff] }
 0x3b2   : > { %2749 = vmatmul.mubr.f32.vlgmr.msra.gmra.mxu0 %v15285_v11  ;;  %2853 = vmatprep.subr.mxu0 %v2800_v13  ;;  %v3161_v13 = vld [vmem:[%s15226_s25 + $0xe0] sm:$0xff] }
 0x3b3   : > { %2754 = vmatprep.mubr.f32.mxu0 %v15286_v16  ;;  %2854 = vmatpush1.msra.mxu0 %v2799_v36  ;;  %v3162_v36 = vld [vmem:[%s15226_s25 + $0xe8] sm:$0xff]  ;;  %v3164_v16 = vld [vmem:[%s15226_s25 + $0xf8] sm:$0xff] }
 0x3b4   : > { %2855 = vmatprep.subr.mxu0 %v2798_v6  ;;  %v3163_v6 = vld [vmem:[%s15226_s25 + $0xf0] sm:$0xff]  ;;  %s10459_s25 = smul.u32 96, %s11639_s2 }
 0x3b5   : > { %2856 = vmatpush1.msra.mxu0 %v2797_v45  ;;  %v4197_v45 = vld [vmem:[#allocation19 + $0x8] sm:$0xff] }
 0x3b6   : > { %2755 = vmatmul.mubr.f32.gmra.mxu0 %v15287_v44  ;;  %2930 = vmatprep.subr.mxu0 %v2804_v23  ;;  %v4196_v23 = vld [vmem:[#allocation19] sm:$0xff]  ;;  %s12816_s30 = scalar_lea.vmem [#allocation25], %s10459_s25 }
 0x3b7   : > { %2760 = vmatprep.mubr.f32.mxu0 %v15288_v29  ;;  %4326 = vmatprep.subr.mxu1 %v4197_v45 }
 0x3b8   : > { %4327 = vmatpush1.msra.mxu1 %v4196_v23 }
 0x3ba   : > { %2761 = vmatmul.mubr.f32.gmra.mxu0 %v15289_v24  ;;  %v3487_v24 = vld [vmem:[#allocation18 + $0x8] sm:$0xff] }
 0x3bb   : > { %2766 = vmatprep.mubr.f32.mxu0 %v15290_v21  ;;  %v3486_v21 = vld [vmem:[#allocation18] sm:$0xff] }
 0x3be   : > { %2767 = vmatmul.mubr.f32.gmra.mxu0 %v15291_v26 }
 0x3bf   : > { %2772 = vmatprep.mubr.f32.mxu0 %v15292_v43 }
 0x3c2   : > { %2773 = vmatmul.mubr.f32.gmra.mxu0 %v15293_v33 }
 0x3c3   : > { %2778 = vmatprep.mubr.f32.mxu0 %v15294_v12 }
 0x3c6   : > { %2779 = vmatmul.mubr.f32.gmra.mxu0 %v15295_v17 }
 0x3c7   : > { %2889 = vmatprep.mubr.f32.mxu0 %v15278_v47 }
 0x3ca   : > { %9336 = vmatmul.mubr.msk.f32.vlgmr.msra.gmra.mxu0 %vm962_vm0, %v2813_v57 }
 0x3cb   : > { %2895 = vmatprep.mubr.f32.mxu0 %v15278_v47  ;;  %2931 = vmatpush1.msra.mxu0 %v2803_v31 }
 0x3cc   : > { %2932 = vmatprep.subr.mxu0 %v2802_v35 }
 0x3cd   : > { %2933 = vmatpush1.msra.mxu0 %v2801_v7 }
 0x3ce   : > { %9337 = vmatmul.mubr.msk.f32.gmra.mxu0 %vm962_vm0, %v2814_v8  ;;  %3007 = vmatprep.subr.mxu0 %v2808_v37 }
 0x3cf   : > { %2966 = vmatprep.mubr.f32.mxu0 %v15278_v47 }
 0x3d2   : > { %9338 = vmatmul.mubr.msk.f32.vlgmr.msra.gmra.mxu0 %vm962_vm0, %v2813_v57 }
 0x3d3   : > { %2972 = vmatprep.mubr.f32.mxu0 %v15278_v47  ;;  %3008 = vmatpush1.msra.mxu0 %v2807_v2 }
 0x3d4   : > { %3009 = vmatprep.subr.mxu0 %v2806_v48 }
 0x3d5   : > { %3010 = vmatpush1.msra.mxu0 %v2805_v30 }
 0x3d6   : > { %9339 = vmatmul.mubr.msk.f32.gmra.mxu0 %vm962_vm0, %v2814_v8  ;;  %3084 = vmatprep.subr.mxu0 %v2812_v50 }
 0x3d7   : > { %3043 = vmatprep.mubr.f32.mxu0 %v15278_v47 }
 0x3da   : > { %9340 = vmatmul.mubr.msk.f32.vlgmr.msra.gmra.mxu0 %vm962_vm0, %v2813_v57 }
 0x3db   : > { %3049 = vmatprep.mubr.f32.mxu0 %v15278_v47  ;;  %3085 = vmatpush1.msra.mxu0 %v2811_v52 }
 0x3dc   : > { %3086 = vmatprep.subr.mxu0 %v2810_v61 }
 0x3dd   : > { %3087 = vmatpush1.msra.mxu0 %v2809_v39 }
 0x3de   : > { %9341 = vmatmul.mubr.msk.f32.gmra.mxu0 %vm962_vm0, %v2814_v8  ;;  %10139 = vmatprep.subr.mxu0 %v2816_v38 }
 0x3df   : > { %3120 = vmatprep.mubr.f32.mxu0 %v15278_v47 }
 0x3e2   : > { %9342 = vmatmul.mubr.msk.f32.vlgmr.msra.gmra.mxu0 %vm962_vm0, %v2813_v57 }
 0x3e3   : > { %3126 = vmatprep.mubr.f32.mxu0 %v15278_v47  ;;  %10140 = vmatpush3.msra.mxu0 %v2816_v38 }
 0x3e4   : > { %10141 = vmatprep.subr.mxu0 %v2815_v5 }
 0x3e5   : > { %10142 = vmatpush3.msra.mxu0 %v2815_v5 }
 0x3e6   : > { %9343 = vmatmul.mubr.msk.f32.gmra.mxu0 %vm962_vm0, %v2814_v8  ;;  %3614 = vmatprep.subr.mxu0 %v3489_v63 }
 0x3e7   : > { %10143 = vmatprep.mubr.msk.f32.mxu0 %vm962_vm0, %v3133_v46 }
 0x3ea   : > { %10144 = vmatmul.mubr.msk.f32.vlgmr.msra.gmra.mxu0 %vm962_vm0, %v3134_v53 }
 0x3eb   : > { %10146 = vmatprep.mubr.msk.f32.mxu0 %vm962_vm0, %v3135_v14  ;;  %3615 = vmatpush1.msra.mxu0 %v3488_v54 }
 0x3ec   : > { %3616 = vmatprep.subr.mxu0 %v3487_v24 }
 0x3ed   : > { %3617 = vmatpush1.msra.mxu0 %v3486_v21 }
 0x3ee   : > { %10147 = vmatmul.mubr.msk.f32.gmra.mxu0 %vm962_vm0, %v3136_v51 }
 0x3ef   : > { %10149 = vmatprep.mubr.msk.f32.mxu0 %vm962_vm0, %v3137_v1 }
 0x3f2   : > { %10150 = vmatmul.mubr.msk.f32.gmra.mxu0 %vm962_vm0, %v3138_v9 }
 0x3f3   : > { %10152 = vmatprep.mubr.msk.f32.mxu0 %vm962_vm0, %v3139_v27 }
 0x3f6   : > { %10153 = vmatmul.mubr.msk.f32.gmra.mxu0 %vm962_vm0, %v3140_v42 }
 0x3f7   : > { %10155 = vmatprep.mubr.msk.f32.mxu0 %vm962_vm0, %v3141_v10 }
 0x3fa   : > { %10156 = vmatmul.mubr.msk.f32.gmra.mxu0 %vm962_vm0, %v3142_v28 }
 0x3fb   : > { %10158 = vmatprep.mubr.msk.f32.mxu0 %vm962_vm0, %v3143_v19 }
 0x3fe   : > { %10159 = vmatmul.mubr.msk.f32.gmra.mxu0 %vm962_vm0, %v3144_v25 }
 0x3ff   : > { %10161 = vmatprep.mubr.msk.f32.mxu0 %vm962_vm0, %v3145_v34 }
 0x402   : > { %10162 = vmatmul.mubr.msk.f32.gmra.mxu0 %vm962_vm0, %v3146_v0 }
 0x403   : > { %10164 = vmatprep.mubr.msk.f32.mxu0 %vm962_vm0, %v3147_v40 }
 0x406   : > { %10165 = vmatmul.mubr.msk.f32.gmra.mxu0 %vm962_vm0, %v3148_v22 }
 0x407   : > { %10167 = vmatprep.mubr.msk.f32.mxu0 %vm962_vm0, %v3149_v32 }
 0x40a   : > { %10168 = vmatmul.mubr.msk.f32.gmra.mxu0 %vm962_vm0, %v3150_v55 }
 0x40b   : > { %10170 = vmatprep.mubr.msk.f32.mxu0 %vm962_vm0, %v3151_v60 }
 0x40e   : > { %10171 = vmatmul.mubr.msk.f32.gmra.mxu0 %vm962_vm0, %v3152_v4 }
 0x40f   : > { %10173 = vmatprep.mubr.msk.f32.mxu0 %vm962_vm0, %v3153_v59 }
 0x412   : > { %10174 = vmatmul.mubr.msk.f32.gmra.mxu0 %vm962_vm0, %v3154_v56 }
 0x413   : > { %10176 = vmatprep.mubr.msk.f32.mxu0 %vm962_vm0, %v3155_v41 }
 0x416   : > { %10177 = vmatmul.mubr.msk.f32.gmra.mxu0 %vm962_vm0, %v3156_v58 }
 0x417   : > { %10179 = vmatprep.mubr.msk.f32.mxu0 %vm962_vm0, %v3157_v3  ;;  %v10197_v11 = vpop.f32.mrf.mxu1 }
 0x419   : > { %v4037_v44 = vpop.f32.mrf.mxu1 }
 0x41a   : > { %10180 = vmatmul.mubr.msk.f32.gmra.mxu0 %vm962_vm0, %v3158_v15  ;;  %9440 = vmatmul.mubr.msk.f32.vlgmr.msra.gmra.mxu1 %vm962_vm0, %v4037_v44 }
 0x41b   : > { %10182 = vmatprep.mubr.msk.f32.mxu0 %vm962_vm0, %v3159_v20  ;;  %4366 = vmatprep.mubr.f32.mxu1 %v15278_v47  ;;  %v10200_v29 = vpop.f32.mrf.mxu1 }
 0x41d   : > { %v4047_v26 = vpop.f32.mrf.mxu1 }
 0x41e   : > { %10183 = vmatmul.mubr.msk.f32.gmra.mxu0 %vm962_vm0, %v3160_v18  ;;  %9441 = vmatmul.mubr.msk.f32.gmra.mxu1 %vm962_vm0, %v10197_v11 }
 0x41f   : > { %10185 = vmatprep.mubr.msk.f32.mxu0 %vm962_vm0, %v3161_v13  ;;  %4372 = vmatprep.mubr.f32.mxu1 %v15278_v47  ;;  %v10203_v43 = vpop.f32.mrf.mxu1 }
 0x421   : > { %v4057_v33 = vpop.f32.mrf.mxu1 }
 0x422   : > { %10186 = vmatmul.mubr.msk.f32.gmra.mxu0 %vm962_vm0, %v3162_v36  ;;  %9442 = vmatmul.mubr.msk.f32.gmra.mxu1 %vm962_vm0, %v4047_v26 }
 0x423   : > { %10188 = vmatprep.mubr.msk.f32.mxu0 %vm962_vm0, %v3163_v6  ;;  %4378 = vmatprep.mubr.f32.mxu1 %v15278_v47  ;;  %v10206_v12 = vpop.f32.mrf.mxu1 }
 0x425   : > { %v4067_v17 = vpop.f32.mrf.mxu1 }
 0x426   : > { %10189 = vmatmul.mubr.msk.f32.gmra.mxu0 %vm962_vm0, %v3164_v16  ;;  %9443 = vmatmul.mubr.msk.f32.gmra.mxu1 %vm962_vm0, %v10200_v29 }
 0x427   : > { %3650 = vmatprep.mubr.f32.mxu0 %v15278_v47  ;;  %4384 = vmatprep.mubr.f32.mxu1 %v15278_v47  ;;  %v10209_v57 = vpop.f32.mrf.mxu1 }
 0x429   : > { %v4077_v31 = vpop.f32.mrf.mxu1 }
 0x42a   : > { %9444 = vmatmul.mubr.msk.f32.gmra.mxu1 %vm962_vm0, %v4057_v33 }
 0x42b   : > { %4390 = vmatprep.mubr.f32.mxu1 %v15278_v47  ;;  %v10212_v35 = vpop.f32.mrf.mxu1 }
 0x42d   : > { %v4087_v7 = vpop.f32.mrf.mxu1 }
 0x42e   : > { %9445 = vmatmul.mubr.msk.f32.gmra.mxu1 %vm962_vm0, %v10203_v43 }
 0x42f   : > { %4396 = vmatprep.mubr.f32.mxu1 %v15278_v47  ;;  %v10215_v8 = vpop.f32.mrf.mxu1 }
 0x431   : > { %v4097_v37 = vpop.f32.mrf.mxu1 }
 0x432   : > { %9446 = vmatmul.mubr.msk.f32.gmra.mxu1 %vm962_vm0, %v4067_v17 }
 0x433   : > { %4402 = vmatprep.mubr.f32.mxu1 %v15278_v47  ;;  %v10218_v2 = vpop.f32.mrf.mxu1 }
 0x435   : > { %v4107_v48 = vpop.f32.mrf.mxu1 }
 0x436   : > { %9447 = vmatmul.mubr.msk.f32.gmra.mxu1 %vm962_vm0, %v10206_v12 }
 0x437   : > { %4408 = vmatprep.mubr.f32.mxu1 %v15278_v47  ;;  %v10221_v30 = vpop.f32.mrf.mxu1 }
 0x439   : > { %v4117_v50 = vpop.f32.mrf.mxu1 }
 0x43a   : > { %9448 = vmatmul.mubr.msk.f32.gmra.mxu1 %vm962_vm0, %v4077_v31 }
 0x43b   : > { %4414 = vmatprep.mubr.f32.mxu1 %v15278_v47  ;;  %v10224_v52 = vpop.f32.mrf.mxu1 }
 0x43d   : > { %v4127_v61 = vpop.f32.mrf.mxu1 }
 0x43e   : > { %9449 = vmatmul.mubr.msk.f32.gmra.mxu1 %vm962_vm0, %v10209_v57 }
 0x43f   : > { %4420 = vmatprep.mubr.f32.mxu1 %v15278_v47  ;;  %v10227_v39 = vpop.f32.mrf.mxu1 }
 0x441   : > { %v4137_v5 = vpop.f32.mrf.mxu1 }
 0x442   : > { %9450 = vmatmul.mubr.msk.f32.gmra.mxu1 %vm962_vm0, %v4087_v7 }
 0x443   : > { %4426 = vmatprep.mubr.f32.mxu1 %v15278_v47  ;;  %v10230_v51 = vpop.f32.mrf.mxu1 }
 0x445   : > { %v4147_v9 = vpop.f32.mrf.mxu1 }
 0x446   : > { %9451 = vmatmul.mubr.msk.f32.gmra.mxu1 %vm962_vm0, %v10212_v35 }
 0x447   : > { %4432 = vmatprep.mubr.f32.mxu1 %v15278_v47  ;;  %v10233_v28 = vpop.f32.mrf.mxu1 }
 0x449   : > { %v4157_v25 = vpop.f32.mrf.mxu1 }
 0x44a   : > { %9452 = vmatmul.mubr.msk.f32.gmra.mxu1 %vm962_vm0, %v4097_v37 }
 0x44b   : > { %4438 = vmatprep.mubr.f32.mxu1 %v15278_v47  ;;  %v10236_v22 = vpop.f32.mrf.mxu1 }
 0x44d   : > { %v4167_v55 = vpop.f32.mrf.mxu1 }
 0x44e   : > { %9453 = vmatmul.mubr.msk.f32.gmra.mxu1 %vm962_vm0, %v10215_v8 }
 0x44f   : > { %4444 = vmatprep.mubr.f32.mxu1 %v15278_v47  ;;  %v10239_v63 = vpop.f32.mrf.mxu1 }
 0x451   : > { %v4177_v54 = vpop.f32.mrf.mxu1 }
 0x452   : > { %9454 = vmatmul.mubr.msk.f32.gmra.mxu1 %vm962_vm0, %v4107_v48 }
 0x453   : > { %4450 = vmatprep.mubr.f32.mxu1 %v15278_v47  ;;  %v10242_v58 = vpop.f32.mrf.mxu1 }
 0x455   : > { %v4187_v15 = vpop.f32.mrf.mxu1 }
 0x456   : > { %9455 = vmatmul.mubr.msk.f32.gmra.mxu1 %vm962_vm0, %v10218_v2 }
 0x457   : > { %4456 = vmatprep.mubr.f32.mxu1 %v15278_v47 }
 0x45a   : > { %9456 = vmatmul.mubr.msk.f32.gmra.mxu1 %vm962_vm0, %v4117_v50 }
 0x45b   : > { %4462 = vmatprep.mubr.f32.mxu1 %v15278_v47 }
 0x45e   : > { %9457 = vmatmul.mubr.msk.f32.gmra.mxu1 %vm962_vm0, %v10221_v30 }
 0x45f   : > { %4468 = vmatprep.mubr.f32.mxu1 %v15278_v47 }
 0x462   : > { %9458 = vmatmul.mubr.msk.f32.gmra.mxu1 %vm962_vm0, %v4127_v61 }
 0x463   : > { %4474 = vmatprep.mubr.f32.mxu1 %v15278_v47 }
 0x466   : > { %9459 = vmatmul.mubr.msk.f32.gmra.mxu1 %vm962_vm0, %v10224_v52 }
 0x467   : > { %4480 = vmatprep.mubr.f32.mxu1 %v15278_v47 }
 0x46a   : > { %9460 = vmatmul.mubr.msk.f32.gmra.mxu1 %vm962_vm0, %v4137_v5 }
 0x46b   : > { %4486 = vmatprep.mubr.f32.mxu1 %v15278_v47 }
 0x46e   : > { %9461 = vmatmul.mubr.msk.f32.gmra.mxu1 %vm962_vm0, %v10227_v39 }
 0x46f   : > { %4492 = vmatprep.mubr.f32.mxu1 %v15278_v47 }
 0x472   : > { %v2750_v38 = vpop.f32.mrf.mxu0  ;;  %9462 = vmatmul.mubr.msk.f32.gmra.mxu1 %vm962_vm0, %v4147_v9 }
 0x473   : > { %2785 = vst [vmem:[%s12816_s30] sm:$0xff] %v2750_v38  ;;  %4498 = vmatprep.mubr.f32.mxu1 %v15278_v47 }
 0x474   : > { %v2752_v46 = vpop.f32.mrf.mxu0 }
 0x475   : > { %2786 = vst [vmem:[%s12816_s30 + $0x8] sm:$0xff] %v2752_v46 }
 0x476   : > { %v2756_v53 = vpop.f32.mrf.mxu0  ;;  %9463 = vmatmul.mubr.msk.f32.gmra.mxu1 %vm962_vm0, %v10230_v51 }
 0x477   : > { %2787 = vst [vmem:[%s12816_s30 + $0x10] sm:$0xff] %v2756_v53  ;;  %4504 = vmatprep.mubr.f32.mxu1 %v15278_v47 }
 0x478   : > { %v2758_v14 = vpop.f32.mrf.mxu0 }
 0x479   : > { %2788 = vst [vmem:[%s12816_s30 + $0x18] sm:$0xff] %v2758_v14 }
 0x47a   : > { %v2762_v1 = vpop.f32.mrf.mxu0  ;;  %9464 = vmatmul.mubr.msk.f32.gmra.mxu1 %vm962_vm0, %v4157_v25 }
 0x47b   : > { %2789 = vst [vmem:[%s12816_s30 + $0x20] sm:$0xff] %v2762_v1  ;;  %4510 = vmatprep.mubr.f32.mxu1 %v15278_v47 }
 0x47c   : > { %v2764_v27 = vpop.f32.mrf.mxu0 }
 0x47d   : > { %2790 = vst [vmem:[%s12816_s30 + $0x28] sm:$0xff] %v2764_v27 }
 0x47e   : > { %v2768_v42 = vpop.f32.mrf.mxu0  ;;  %9465 = vmatmul.mubr.msk.f32.gmra.mxu1 %vm962_vm0, %v10233_v28 }
 0x47f   : > { %2791 = vst [vmem:[%s12816_s30 + $0x30] sm:$0xff] %v2768_v42  ;;  %4516 = vmatprep.mubr.f32.mxu1 %v15278_v47 }
 0x480   : > { %v2770_v10 = vpop.f32.mrf.mxu0 }
 0x481   : > { %2792 = vst [vmem:[%s12816_s30 + $0x38] sm:$0xff] %v2770_v10 }
 0x482   : > { %v2774_v19 = vpop.f32.mrf.mxu0  ;;  %9466 = vmatmul.mubr.msk.f32.gmra.mxu1 %vm962_vm0, %v4167_v55 }
 0x483   : > { %2793 = vst [vmem:[%s12816_s30 + $0x40] sm:$0xff] %v2774_v19  ;;  %4522 = vmatprep.mubr.f32.mxu1 %v15278_v47 }
 0x484   : > { %v2776_v34 = vpop.f32.mrf.mxu0 }
 0x485   : > { %2794 = vst [vmem:[%s12816_s30 + $0x48] sm:$0xff] %v2776_v34 }
 0x486   : > { %v2780_v0 = vpop.f32.mrf.mxu0  ;;  %9467 = vmatmul.mubr.msk.f32.gmra.mxu1 %vm962_vm0, %v10236_v22 }
 0x487   : > { %2795 = vst [vmem:[%s12816_s30 + $0x50] sm:$0xff] %v2780_v0  ;;  %4528 = vmatprep.mubr.f32.mxu1 %v15278_v47 }
 0x488   : > { %v2782_v40 = vpop.f32.mrf.mxu0 }
 0x489   : > { %2796 = vst [vmem:[%s12816_s30 + $0x58] sm:$0xff] %v2782_v40 }
 0x48a   : > { %v12841_v32 = vpop.f32.mrf.mxu0  ;;  %9468 = vmatmul.mubr.msk.f32.gmra.mxu1 %vm962_vm0, %v4177_v54 }
 0x48b   : > { %15296 = vst [vmem:[#allocation68_spill] sm:$0xff] %v12841_v32  ;;  %4534 = vmatprep.mubr.f32.mxu1 %v15278_v47 }
 0x48c   : > { %v12844_v60 = vpop.f32.mrf.mxu0 }
 0x48e   : > { %v12847_v4 = vpop.f32.mrf.mxu0  ;;  %9469 = vmatmul.mubr.msk.f32.gmra.mxu1 %vm962_vm0, %v10239_v63 }
 0x48f   : > { %15297 = vst [vmem:[#allocation69_spill] sm:$0xff] %v12847_v4  ;;  %4540 = vmatprep.mubr.f32.mxu1 %v15278_v47 }
 0x490   : > { %v12850_v59 = vpop.f32.mrf.mxu0 }
 0x491   : > { %15298 = vst [vmem:[#allocation60_spill] sm:$0xff] %v12850_v59 }
 0x492   : > { %v12853_v49 = vpop.f32.mrf.mxu0  ;;  %9470 = vmatmul.mubr.msk.f32.gmra.mxu1 %vm962_vm0, %v4187_v15 }
 0x493   : > { %15299 = vst [vmem:[#allocation66_spill] sm:$0xff] %v12853_v49  ;;  %4546 = vmatprep.mubr.f32.mxu1 %v15278_v47 }
 0x494   : > { %v12856_v62 = vpop.f32.mrf.mxu0 }
 0x495   : > { %15300 = vst [vmem:[#allocation67_spill] sm:$0xff] %v12856_v62 }
 0x496   : > { %v12859_v56 = vpop.f32.mrf.mxu0  ;;  %9471 = vmatmul.mubr.msk.f32.gmra.mxu1 %vm962_vm0, %v10242_v58 }
 0x497   : > { %15301 = vst [vmem:[#allocation59_spill] sm:$0xff] %v12859_v56 }
 0x498   : > { %v12862_v41 = vpop.f32.mrf.mxu0 }
 0x499   : > { %15302 = vst [vmem:[#allocation64_spill] sm:$0xff] %v12862_v41 }
 0x49a   : > { %v12865_v3 = vpop.f32.mrf.mxu0 }
 0x49b   : > { %15303 = vst [vmem:[#allocation65_spill] sm:$0xff] %v12865_v3 }
 0x49c   : > { %v12868_v20 = vpop.f32.mrf.mxu0 }
 0x49d   : > { %15304 = vst [vmem:[#allocation58_spill] sm:$0xff] %v12868_v20 }
 0x49e   : > { %v12871_v18 = vpop.f32.mrf.mxu0 }
 0x49f   : > { %15305 = vst [vmem:[#allocation62_spill] sm:$0xff] %v12871_v18 }
 0x4a0   : > { %v12874_v13 = vpop.f32.mrf.mxu0 }
 0x4a1   : > { %15306 = vst [vmem:[#allocation63_spill] sm:$0xff] %v12874_v13 }
 0x4a2   : > { %v12877_v36 = vpop.f32.mrf.mxu0 }
 0x4a3   : > { %15307 = vst [vmem:[#allocation61_spill] sm:$0xff] %v12877_v36 }
 0x4a4   : > { %v12879_v6 = vpop.f32.mrf.mxu0 }
 0x4a5   : > { %15308 = vst [vmem:[#allocation79_spill] sm:$0xff] %v12879_v6 }
 0x4a6   : > { %v12881_v11 = vpop.f32.mrf.mxu0 }
 0x4a7   : > { %15309 = vst [vmem:[#allocation78_spill] sm:$0xff] %v12881_v11 }
 0x4a8   : > { %v12883_v45 = vpop.f32.mrf.mxu0 }
 0x4a9   : > { %15310 = vst [vmem:[#allocation77_spill] sm:$0xff] %v12883_v45 }
 0x4aa   : > { %v10145_v16 = vpop.f32.mrf.mxu0 }
 0x4ac   : > { %v3327_v23 = vpop.f32.mrf.mxu0 }
 0x4ad   : > { %9376 = vmatmul.mubr.msk.f32.vlgmr.msra.gmra.mxu0 %vm962_vm0, %v3327_v23 }
 0x4ae   : > { %3656 = vmatprep.mubr.f32.mxu0 %v15278_v47  ;;  %v10148_v44 = vpop.f32.mrf.mxu0 }
 0x4b0   : > { %v3337_v29 = vpop.f32.mrf.mxu0 }
 0x4b1   : > { %9377 = vmatmul.mubr.msk.f32.gmra.mxu0 %vm962_vm0, %v10145_v16 }
 0x4b2   : > { %3662 = vmatprep.mubr.f32.mxu0 %v15278_v47  ;;  %v10151_v24 = vpop.f32.mrf.mxu0 }
 0x4b4   : > { %v3347_v21 = vpop.f32.mrf.mxu0 }
 0x4b5   : > { %9378 = vmatmul.mubr.msk.f32.gmra.mxu0 %vm962_vm0, %v3337_v29 }
 0x4b6   : > { %3668 = vmatprep.mubr.f32.mxu0 %v15278_v47  ;;  %v10154_v26 = vpop.f32.mrf.mxu0 }
 0x4b8   : > { %v3357_v43 = vpop.f32.mrf.mxu0 }
 0x4b9   : > { %9379 = vmatmul.mubr.msk.f32.gmra.mxu0 %vm962_vm0, %v10148_v44 }
 0x4ba   : > { %3674 = vmatprep.mubr.f32.mxu0 %v15278_v47  ;;  %v10157_v33 = vpop.f32.mrf.mxu0 }
 0x4bc   : > { %v3367_v12 = vpop.f32.mrf.mxu0 }
 0x4bd   : > { %9380 = vmatmul.mubr.msk.f32.gmra.mxu0 %vm962_vm0, %v3347_v21 }
 0x4be   : > { %3680 = vmatprep.mubr.f32.mxu0 %v15278_v47  ;;  %v10160_v17 = vpop.f32.mrf.mxu0 }
 0x4c0   : > { %v3377_v57 = vpop.f32.mrf.mxu0 }
 0x4c1   : > { %9381 = vmatmul.mubr.msk.f32.gmra.mxu0 %vm962_vm0, %v10151_v24 }
 0x4c2   : > { %3686 = vmatprep.mubr.f32.mxu0 %v15278_v47  ;;  %v10163_v31 = vpop.f32.mrf.mxu0 }
 0x4c4   : > { %v3387_v35 = vpop.f32.mrf.mxu0 }
 0x4c5   : > { %9382 = vmatmul.mubr.msk.f32.gmra.mxu0 %vm962_vm0, %v3357_v43 }
 0x4c6   : > { %3692 = vmatprep.mubr.f32.mxu0 %v15278_v47  ;;  %v10166_v7 = vpop.f32.mrf.mxu0 }
 0x4c8   : > { %v3397_v8 = vpop.f32.mrf.mxu0 }
 0x4c9   : > { %9383 = vmatmul.mubr.msk.f32.gmra.mxu0 %vm962_vm0, %v10154_v26 }
 0x4ca   : > { %3698 = vmatprep.mubr.f32.mxu0 %v15278_v47  ;;  %v10169_v37 = vpop.f32.mrf.mxu0 }
 0x4cc   : > { %v3407_v2 = vpop.f32.mrf.mxu0 }
 0x4cd   : > { %9384 = vmatmul.mubr.msk.f32.gmra.mxu0 %vm962_vm0, %v3367_v12 }
 0x4ce   : > { %3704 = vmatprep.mubr.f32.mxu0 %v15278_v47  ;;  %v10172_v30 = vpop.f32.mrf.mxu0 }
 0x4d0   : > { %v3417_v52 = vpop.f32.mrf.mxu0 }
 0x4d1   : > { %9385 = vmatmul.mubr.msk.f32.gmra.mxu0 %vm962_vm0, %v10157_v33 }
 0x4d2   : > { %3710 = vmatprep.mubr.f32.mxu0 %v15278_v47  ;;  %v10175_v39 = vpop.f32.mrf.mxu0 }
 0x4d4   : > { %v3427_v5 = vpop.f32.mrf.mxu0 }
 0x4d5   : > { %9386 = vmatmul.mubr.msk.f32.gmra.mxu0 %vm962_vm0, %v3377_v57 }
 0x4d6   : > { %3716 = vmatprep.mubr.f32.mxu0 %v15278_v47  ;;  %v10178_v53 = vpop.f32.mrf.mxu0 }
 0x4d8   : > { %v3437_v51 = vpop.f32.mrf.mxu0 }
 0x4d9   : > { %9387 = vmatmul.mubr.msk.f32.gmra.mxu0 %vm962_vm0, %v10160_v17 }
 0x4da   : > { %3722 = vmatprep.mubr.f32.mxu0 %v15278_v47  ;;  %v12919_v48 = vpop.f32.mrf.mxu1  ;;  %v10181_v9 = vpop.f32.mrf.mxu0 }
 0x4db   : > { %15311 = vst [vmem:[#allocation76_spill] sm:$0xff] %v12919_v48 }
 0x4dc   : > { %v12923_v50 = vpop.f32.mrf.mxu1  ;;  %v3447_v42 = vpop.f32.mrf.mxu0 }
 0x4dd   : > { %9388 = vmatmul.mubr.msk.f32.gmra.mxu0 %vm962_vm0, %v3387_v35  ;;  %15312 = vst [vmem:[#allocation75_spill] sm:$0xff] %v12923_v50 }
 0x4de   : > { %3728 = vmatprep.mubr.f32.mxu0 %v15278_v47  ;;  %v12927_v61 = vpop.f32.mrf.mxu1  ;;  %v10184_v28 = vpop.f32.mrf.mxu0 }
 0x4df   : > { %15313 = vst [vmem:[#allocation74_spill] sm:$0xff] %v12927_v61 }
 0x4e0   : > { %v12931_v38 = vpop.f32.mrf.mxu1  ;;  %v3457_v25 = vpop.f32.mrf.mxu0 }
 0x4e1   : > { %9389 = vmatmul.mubr.msk.f32.gmra.mxu0 %vm962_vm0, %v10163_v31  ;;  %15314 = vst [vmem:[#allocation73_spill] sm:$0xff] %v12931_v38 }
 0x4e2   : > { %3734 = vmatprep.mubr.f32.mxu0 %v15278_v47  ;;  %v12935_v46 = vpop.f32.mrf.mxu1  ;;  %v10187_v0 = vpop.f32.mrf.mxu0 }
 0x4e3   : > { %15315 = vst [vmem:[#allocation72_spill] sm:$0xff] %v12935_v46 }
 0x4e4   : > { %v12939_v14 = vpop.f32.mrf.mxu1  ;;  %v3467_v22 = vpop.f32.mrf.mxu0 }
 0x4e5   : > { %9390 = vmatmul.mubr.msk.f32.gmra.mxu0 %vm962_vm0, %v3397_v8  ;;  %15316 = vst [vmem:[#allocation71_spill] sm:$0xff] %v12939_v14 }
 0x4e6   : > { %3740 = vmatprep.mubr.f32.mxu0 %v15278_v47  ;;  %v12943_v1 = vpop.f32.mrf.mxu1  ;;  %v10190_v63 = vpop.f32.mrf.mxu0 }
 0x4e8   : > { %v12947_v27 = vpop.f32.mrf.mxu1  ;;  %v3477_v58 = vpop.f32.mrf.mxu0 }
 0x4e9   : > { %9391 = vmatmul.mubr.msk.f32.gmra.mxu0 %vm962_vm0, %v10166_v7 }
 0x4ea   : > { %3746 = vmatprep.mubr.f32.mxu0 %v15278_v47  ;;  %v12951_v10 = vpop.f32.mrf.mxu1 }
 0x4ec   : > { %v12955_v19 = vpop.f32.mrf.mxu1 }
 0x4ed   : > { %9392 = vmatmul.mubr.msk.f32.gmra.mxu0 %vm962_vm0, %v3407_v2 }
 0x4ee   : > { %3752 = vmatprep.mubr.f32.mxu0 %v15278_v47  ;;  %v12959_v34 = vpop.f32.mrf.mxu1 }
 0x4f0   : > { %v12963_v40 = vpop.f32.mrf.mxu1 }
 0x4f1   : > { %9393 = vmatmul.mubr.msk.f32.gmra.mxu0 %vm962_vm0, %v10169_v37 }
 0x4f2   : > { %3758 = vmatprep.mubr.f32.mxu0 %v15278_v47  ;;  %v12967_v55 = vpop.f32.mrf.mxu1 }
 0x4f4   : > { %v12971_v54 = vpop.f32.mrf.mxu1 }
 0x4f5   : > { %9394 = vmatmul.mubr.msk.f32.gmra.mxu0 %vm962_vm0, %v3417_v52 }
 0x4f6   : > { %3764 = vmatprep.mubr.f32.mxu0 %v15278_v47  ;;  %v12975_v15 = vpop.f32.mrf.mxu1 }
 0x4f8   : > { %v12979_v16 = vpop.f32.mrf.mxu1 }
 0x4f9   : > { %9395 = vmatmul.mubr.msk.f32.gmra.mxu0 %vm962_vm0, %v10172_v30 }
 0x4fa   : > { %3770 = vmatprep.mubr.f32.mxu0 %v15278_v47  ;;  %v12981_v23 = vpop.f32.mrf.mxu1 }
 0x4fc   : > { %v12983_v44 = vpop.f32.mrf.mxu1 }
 0x4fd   : > { %9396 = vmatmul.mubr.msk.f32.gmra.mxu0 %vm962_vm0, %v3427_v5 }
 0x4fe   : > { %3776 = vmatprep.mubr.f32.mxu0 %v15278_v47  ;;  %v12985_v29 = vpop.f32.mrf.mxu1 }
 0x500   : > { %v12987_v24 = vpop.f32.mrf.mxu1 }
 0x501   : > { %9397 = vmatmul.mubr.msk.f32.gmra.mxu0 %vm962_vm0, %v10175_v39 }
 0x502   : > { %3782 = vmatprep.mubr.f32.mxu0 %v15278_v47  ;;  %v12989_v21 = vpop.f32.mrf.mxu1 }
 0x504   : > { %v12991_v26 = vpop.f32.mrf.mxu1 }
 0x505   : > { %9398 = vmatmul.mubr.msk.f32.gmra.mxu0 %vm962_vm0, %v3437_v51 }
 0x506   : > { %3788 = vmatprep.mubr.f32.mxu0 %v15278_v47 }
 0x509   : > { %9399 = vmatmul.mubr.msk.f32.gmra.mxu0 %vm962_vm0, %v10178_v53 }
 0x50a   : > { %3794 = vmatprep.mubr.f32.mxu0 %v15278_v47 }
 0x50d   : > { %9400 = vmatmul.mubr.msk.f32.gmra.mxu0 %vm962_vm0, %v3447_v42 }
 0x50e   : > { %3800 = vmatprep.mubr.f32.mxu0 %v15278_v47 }
 0x511   : > { %9401 = vmatmul.mubr.msk.f32.gmra.mxu0 %vm962_vm0, %v10181_v9 }
 0x512   : > { %3806 = vmatprep.mubr.f32.mxu0 %v15278_v47 }
 0x515   : > { %9402 = vmatmul.mubr.msk.f32.gmra.mxu0 %vm962_vm0, %v3457_v25 }
 0x516   : > { %3812 = vmatprep.mubr.f32.mxu0 %v15278_v47 }
 0x519   : > { %9403 = vmatmul.mubr.msk.f32.gmra.mxu0 %vm962_vm0, %v10184_v28 }
 0x51a   : > { %3818 = vmatprep.mubr.f32.mxu0 %v15278_v47 }
 0x51d   : > { %9404 = vmatmul.mubr.msk.f32.gmra.mxu0 %vm962_vm0, %v3467_v22 }
 0x51e   : > { %3824 = vmatprep.mubr.f32.mxu0 %v15278_v47 }
 0x521   : > { %9405 = vmatmul.mubr.msk.f32.gmra.mxu0 %vm962_vm0, %v10187_v0 }
 0x522   : > { %3830 = vmatprep.mubr.f32.mxu0 %v15278_v47 }
 0x525   : > { %9406 = vmatmul.mubr.msk.f32.gmra.mxu0 %vm962_vm0, %v3477_v58 }
 0x526   : > { %3836 = vmatprep.mubr.f32.mxu0 %v15278_v47  ;;  %v12993_v47 = vpop.f32.mrf.mxu1 }
 0x528   : > { %v12995_v43 = vpop.f32.mrf.mxu1 }
 0x529   : > { %9407 = vmatmul.mubr.msk.f32.gmra.mxu0 %vm962_vm0, %v10190_v63 }
 0x52a   : > { %4681 = vmatprep.mubr.f32.mxu0 %v12844_v60  ;;  %v12997_v33 = vpop.f32.mrf.mxu1 }
 0x52c   : > { %v12999_v60 = vpop.f32.mrf.mxu1 }
 0x52e   : > { %v13001_v12 = vpop.f32.mrf.mxu1 }
 0x530   : > { %v4442_v17 = vpop.f32.mrf.mxu1 }
 0x532   : > { %v4446_v57 = vpop.f32.mrf.mxu1 }
 0x534   : > { %v4448_v31 = vpop.f32.mrf.mxu1 }
 0x536   : > { %v4452_v35 = vpop.f32.mrf.mxu1 }
 0x538   : > { %v4454_v7 = vpop.f32.mrf.mxu1 }
 0x53a   : > { %v13007_v2 = vpop.f32.mrf.mxu1 }
 0x53b   : > { %15319 = vst [vmem:[#allocation52_spill] sm:$0xff] %v13007_v2 }
 0x53c   : > { %v13013_v39 = vpop.f32.mrf.mxu1 }
 0x53d   : > { %15322 = vst [vmem:[#allocation48_spill] sm:$0xff] %v13013_v39 }
 0x53e   : > { %v13019_v51 = vpop.f32.mrf.mxu1 }
 0x53f   : > { %15324 = vst [vmem:[#allocation51_spill] sm:$0xff] %v13019_v51 }
 0x540   : > { %v13025_v28 = vpop.f32.mrf.mxu1 }
 0x541   : > { %15325 = vst [vmem:[#allocation55_spill] sm:$0xff] %v13025_v28 }
 0x542   : > { %v13031_v22 = vpop.f32.mrf.mxu1 }
 0x543   : > { %15326 = vst [vmem:[#allocation54_spill] sm:$0xff] %v13031_v22 }
 0x544   : > { %v13037_v11 = vpop.f32.mrf.mxu1 }
 0x545   : > { %15327 = vst [vmem:[#allocation57_spill] sm:$0xff] %v13037_v11 }
 0x546   : > { %v13043_v6 = vpop.f32.mrf.mxu1 }
 0x547   : > { %15328 = vst [vmem:[#allocation56_spill] sm:$0xff] %v13043_v6 }
 0x548   : > { %v13049_v3 = vpop.f32.mrf.mxu1 }
 0x549   : > { %15329 = vst [vmem:[#allocation80_spill] sm:$0xff] %v13049_v3 }
 0x54a   : > { %v13051_v41 = vpop.f32.mrf.mxu1 }
 0x54b   : > { %15330 = vst [vmem:[#allocation81_spill] sm:$0xff] %v13051_v41 }
 0x54c   : > { %v13053_v4 = vpop.f32.mrf.mxu1 }
 0x54d   : > { %15331 = vst [vmem:[#allocation82_spill] sm:$0xff] %v13053_v4 }
 0x54e   : > { %v13055_v2 = vpop.f32.mrf.mxu1 }
 0x54f   : > { %15332 = vst [vmem:[#allocation83_spill] sm:$0xff] %v13055_v2 }
 0x550   : > { %v13057_v28 = vpop.f32.mrf.mxu1 }
 0x551   : > { %15333 = vst [vmem:[#allocation84_spill] sm:$0xff] %v13057_v28 }
 0x552   : > { %v13059_v6 = vpop.f32.mrf.mxu1 }
 0x553   : > { %15334 = vst [vmem:[#allocation85_spill] sm:$0xff] %v13059_v6 }
 0x56d   : > { %v13003_v8 = vpop.f32.mrf.mxu0 }
 0x56e   : > { %15317 = vst [vmem:[#allocation70_spill] sm:$0xff] %v13003_v8  ;;  %v13061_v8 = vpop.f32.mrf.mxu1 }
 0x56f   : > { %v13005_v37 = vpop.f32.mrf.mxu0  ;;  %15335 = vst [vmem:[#allocation86_spill] sm:$0xff] %v13061_v8 }
 0x570   : > { %15318 = vst [vmem:[#allocation47_spill] sm:$0xff] %v13005_v37  ;;  %v13063_v37 = vpop.f32.mrf.mxu1 }
 0x571   : > { %v13009_v30 = vpop.f32.mrf.mxu0  ;;  %15336 = vst [vmem:[#allocation87_spill] sm:$0xff] %v13063_v37 }
 0x572   : > { %15320 = vst [vmem:[#allocation50_spill] sm:$0xff] %v13009_v30  ;;  %v13065_v30 = vpop.f32.mrf.mxu1 }
 0x573   : > { %v13011_v52 = vpop.f32.mrf.mxu0 }
 0x574   : > { %15321 = vst [vmem:[#allocation49_spill] sm:$0xff] %v13011_v52 }
 0x575   : > { %v13015_v5 = vpop.f32.mrf.mxu0 }
 0x576   : > { %15323 = vst [vmem:[#allocation53_spill] sm:$0xff] %v13015_v5  ;;  %v13071_v5 = vpop.f32.mrf.mxu1 }
 0x577   : > { %v13017_v53 = vpop.f32.mrf.mxu0 }
 0x579   : > { %v13021_v9 = vpop.f32.mrf.mxu0 }
 0x57b   : > { %v13023_v42 = vpop.f32.mrf.mxu0 }
 0x57d   : > { %v13027_v25 = vpop.f32.mrf.mxu0 }
 0x57f   : > { %v13029_v0 = vpop.f32.mrf.mxu0 }
 0x581   : > { %v13033_v63 = vpop.f32.mrf.mxu0 }
 0x583   : > { %v13035_v58 = vpop.f32.mrf.mxu0 }
 0x585   : > { %v13039_v45 = vpop.f32.mrf.mxu0 }
 0x587   : > { %v13041_v36 = vpop.f32.mrf.mxu0 }
 0x589   : > { %v13045_v18 = vpop.f32.mrf.mxu0 }
 0x58b   : > { %v13047_v13 = vpop.f32.mrf.mxu0 }
 0x58d   : > { %v3700_v20 = vpop.f32.mrf.mxu0 }
 0x58f   : > { %v3702_v56 = vpop.f32.mrf.mxu0 }
 0x591   : > { %v3706_v49 = vpop.f32.mrf.mxu0 }
 0x593   : > { %v3708_v62 = vpop.f32.mrf.mxu0 }
 0x595   : > { %v3712_v59 = vpop.f32.mrf.mxu0 }
 0x597   : > { %v3714_v32 = vpop.f32.mrf.mxu0 }
 0x599   : > { %v3718_v39 = vpop.f32.mrf.mxu0 }
 0x59b   : > { %v3720_v51 = vpop.f32.mrf.mxu0 }
 0x59d   : > { %v3724_v22 = vpop.f32.mrf.mxu0 }
 0x59f   : > { %v3726_v11 = vpop.f32.mrf.mxu0 }
 0x5a1   : > { %v3730_v3 = vpop.f32.mrf.mxu0 }
 0x5a2   : > { %v4579_v37 = vmul.f32 %v13001_v12, %v3730_v3  ;;  %v4574_v3 = vmul.f32 %v12991_v26, %v3714_v32  ;;  %v4569_v32 = vmul.f32 %v12981_v23, %v3700_v20  ;;  %v4565_v20 = vmul.f32 %v12967_v55, %v13039_v45 }
 0x5a3   : > { %v3732_v48 = vpop.f32.mrf.mxu0  ;;  %v4561_v45 = vmul.f32 %v12951_v10, %v13027_v25  ;;  %v15338_v10 = vld [vmem:[#allocation53_spill] sm:$0xff] }
 0x5a4   : > { %v4580_v8 = vmul.f32 %v4442_v17, %v3732_v48  ;;  %v4575_v48 = vmul.f32 %v12993_v47, %v3718_v39  ;;  %v4570_v47 = vmul.f32 %v12983_v44, %v3702_v56  ;;  %v4566_v56 = vmul.f32 %v12971_v54, %v13041_v36 }
 0x5a5   : > { %v3736_v41 = vpop.f32.mrf.mxu0  ;;  %v4562_v36 = vmul.f32 %v12955_v19, %v13029_v0  ;;  %v15337_v19 = vld [vmem:[#allocation71_spill] sm:$0xff] }
 0x5a6   : > { %v4581_v46 = vmul.f32 %v4446_v57, %v3736_v41  ;;  %v13080_v41 = vpop.f32.mrf.mxu1 }
 0x5a7   : > { %v3738_v50 = vpop.f32.mrf.mxu0 }
 0x5a8   : > { %v4582_v28 = vmul.f32 %v4448_v31, %v3738_v50 }
 0x5a9   : > { %v3742_v4 = vpop.f32.mrf.mxu0 }
 0x5aa   : > { %v4583_v38 = vmul.f32 %v4452_v35, %v3742_v4  ;;  %v4577_v4 = vmul.f32 %v12997_v33, %v3724_v22  ;;  %v13090_v33 = vpop.f32.mrf.mxu1 }
 0x5ab   : > { %v3744_v61 = vpop.f32.mrf.mxu0 }
 0x5ac   : > { %v4584_v2 = vmul.f32 %v4454_v7, %v3744_v61  ;;  %v4578_v61 = vmul.f32 %v12999_v60, %v3726_v11  ;;  %v4573_v11 = vmul.f32 %v12989_v21, %v3712_v59  ;;  %v4572_v60 = vmul.f32 %v12987_v24, %v3708_v62  ;;  %v13100_v59 = vpop.f32.mrf.mxu1  ;;  %v15339_v24 = vld [vmem:[#allocation72_spill] sm:$0xff]  ;;  %v15340_v7 = vld [vmem:[#allocation49_spill] sm:$0xff] }
 0x5ad   : > { %v13067_v52 = vpop.f32.mrf.mxu0  ;;  %v4568_v21 = vmul.f32 %v12979_v16, %v13047_v13  ;;  %v4564_v13 = vmul.f32 %v12963_v40, %v13035_v58  ;;  %v4560_v40 = vmul.f32 %v12947_v27, %v13023_v42  ;;  %v4557_v57 = vmul.f32 %v15339_v24, %v15338_v10  ;;  %v15341_v27 = vld [vmem:[#allocation73_spill] sm:$0xff]  ;;  %v15346_v42 = vld [vmem:[#allocation70_spill] sm:$0xff] }
 0x5ae   : > { %4617 = vmatprep.subr.mxu0 %v4584_v2  ;;  %v13114_v44 = vpop.f32.mrf.mxu1 }
 0x5af   : > { %v13069_v6 = vpop.f32.mrf.mxu0  ;;  %4618 = vmatpush1.msra.mxu0 %v4583_v38  ;;  %v4576_v38 = vmul.f32 %v12995_v43, %v3720_v51  ;;  %v4571_v43 = vmul.f32 %v12985_v29, %v3706_v49  ;;  %v4567_v49 = vmul.f32 %v12975_v15, %v13045_v18  ;;  %v4563_v18 = vmul.f32 %v12959_v34, %v13033_v63  ;;  %v15344_v51 = vld [vmem:[#allocation47_spill] sm:$0xff] }
 0x5b0   : > { %4619 = vmatprep.subr.mxu0 %v4582_v28  ;;  %v13128_v54 = vpop.f32.mrf.mxu1  ;;  %v4559_v34 = vmul.f32 %v12943_v1, %v13021_v9  ;;  %v4558_v29 = vmul.f32 %v15337_v19, %v13017_v53  ;;  %v15343_v1 = vld [vmem:[#allocation74_spill] sm:$0xff]  ;;  %v15345_v53 = vld [vmem:[#allocation75_spill] sm:$0xff]  ;;  %v15347_v28 = vld [vmem:[#allocation76_spill] sm:$0xff] }
 0x5b1   : > { %v13074_v14 = vpop.f32.mrf.mxu0  ;;  %4620 = vmatpush1.msra.mxu0 %v4581_v46  ;;  %v4554_v9 = vmul.f32 %v15345_v53, %v15344_v51  ;;  %v4553_v25 = vmul.f32 %v15347_v28, %v15346_v42 }
 0x5b2   : > { %4621 = vmatprep.subr.mxu0 %v4580_v8  ;;  %v4524_v35 = vpop.f32.mrf.mxu1  ;;  %v4556_v8 = vmul.f32 %v15341_v27, %v15340_v7 }
 0x5b3   : > { %v13078_v50 = vpop.f32.mrf.mxu0  ;;  %4622 = vmatpush1.msra.mxu0 %v4579_v37  ;;  %v15342_v37 = vld [vmem:[#allocation50_spill] sm:$0xff] }
 0x5b4   : > { %4623 = vmatprep.subr.mxu0 %v4578_v61  ;;  %v4555_v2 = vmul.f32 %v15343_v1, %v15342_v37  ;;  %v4526_v22 = vpop.f32.mrf.mxu1 }
 0x5b5   : > { %v13084_v17 = vpop.f32.mrf.mxu0  ;;  %4624 = vmatpush1.msra.mxu0 %v4577_v4 }
 0x5b6   : > { %4625 = vmatprep.subr.mxu0 %v4576_v38  ;;  %v4530_v61 = vpop.f32.mrf.mxu1 }
 0x5b7   : > { %v13088_v46 = vpop.f32.mrf.mxu0  ;;  %4626 = vmatpush1.msra.mxu0 %v4575_v48 }
 0x5b8   : > { %4627 = vmatprep.subr.mxu0 %v4574_v3  ;;  %v4532_v48 = vpop.f32.mrf.mxu1 }
 0x5b9   : > { %v13094_v12 = vpop.f32.mrf.mxu0  ;;  %4628 = vmatpush1.msra.mxu0 %v4573_v11 }
 0x5ba   : > { %4629 = vmatprep.subr.mxu0 %v4572_v60  ;;  %v4536_v60 = vpop.f32.mrf.mxu1 }
 0x5bb   : > { %v13098_v26 = vpop.f32.mrf.mxu0  ;;  %4630 = vmatpush1.msra.mxu0 %v4571_v43 }
 0x5bc   : > { %4631 = vmatprep.subr.mxu0 %v4570_v47 }
 0x5bd   : > { %v13106_v62 = vpop.f32.mrf.mxu0  ;;  %4632 = vmatpush1.msra.mxu0 %v4569_v32  ;;  %v4538_v32 = vpop.f32.mrf.mxu1 }
 0x5be   : > { %4633 = vmatprep.subr.mxu0 %v4568_v21 }
 0x5bf   : > { %v13112_v23 = vpop.f32.mrf.mxu0  ;;  %4634 = vmatpush1.msra.mxu0 %v4567_v49  ;;  %v4542_v49 = vpop.f32.mrf.mxu1 }
 0x5c0   : > { %4635 = vmatprep.subr.mxu0 %v4566_v56 }
 0x5c1   : > { %v13120_v15 = vpop.f32.mrf.mxu0  ;;  %4636 = vmatpush1.msra.mxu0 %v4565_v20 }
 0x5c2   : > { %4637 = vmatprep.subr.mxu0 %v4564_v13  ;;  %v4544_v13 = vpop.f32.mrf.mxu1 }
 0x5c3   : > { %v13126_v55 = vpop.f32.mrf.mxu0  ;;  %4638 = vmatpush1.msra.mxu0 %v4563_v18 }
 0x5c4   : > { %4639 = vmatprep.subr.mxu0 %v4562_v36 }
 0x5c5   : > { %v13134_v16 = vpop.f32.mrf.mxu0  ;;  %4640 = vmatpush1.msra.mxu0 %v4561_v45  ;;  %v4548_v45 = vpop.f32.mrf.mxu1 }
 0x5c6   : > { %4641 = vmatprep.subr.mxu0 %v4560_v40 }
 0x5c7   : > { %v13140_v31 = vpop.f32.mrf.mxu0  ;;  %4642 = vmatpush1.msra.mxu0 %v4559_v34  ;;  %v4550_v19 = vpop.f32.mrf.mxu1 }
 0x5c8   : > { %4643 = vmatprep.subr.mxu0 %v4558_v29 }
 0x5c9   : > { %v13146_v39 = vpop.f32.mrf.mxu0  ;;  %4644 = vmatpush1.msra.mxu0 %v4557_v57 }
 0x5ca   : > { %4645 = vmatprep.subr.mxu0 %v4556_v8 }
 0x5cb   : > { %v3792_v0 = vpop.f32.mrf.mxu0  ;;  %4646 = vmatpush1.msra.mxu0 %v4555_v2 }
 0x5cc   : > { %4647 = vmatprep.subr.mxu0 %v4554_v9 }
 0x5cd   : > { %v3796_v63 = vpop.f32.mrf.mxu0  ;;  %4648 = vmatpush1.msra.mxu0 %v4553_v25 }
 0x5cf   : > { %v3798_v58 = vpop.f32.mrf.mxu0 }
 0x5d0   : > { %v4602_v25 = vmul.f32 %v13080_v41, %v3798_v58  ;;  %v15351_v41 = vld [vmem:[#allocation84_spill] sm:$0xff] }
 0x5d1   : > { %v3802_v4 = vpop.f32.mrf.mxu0  ;;  %v4596_v58 = vmul.f32 %v15351_v41, %v13126_v55 }
 0x5d2   : > { %v4603_v28 = vmul.f32 %v13090_v33, %v3802_v4  ;;  %v15350_v33 = vld [vmem:[#allocation85_spill] sm:$0xff] }
 0x5d3   : > { %v3804_v38 = vpop.f32.mrf.mxu0  ;;  %v4597_v4 = vmul.f32 %v15350_v33, %v13134_v16 }
 0x5d4   : > { %v4604_v42 = vmul.f32 %v13100_v59, %v3804_v38  ;;  %v15355_v38 = vld [vmem:[#allocation80_spill] sm:$0xff] }
 0x5d5   : > { %v3808_v3 = vpop.f32.mrf.mxu0  ;;  %v4592_v16 = vmul.f32 %v15355_v38, %v13098_v26 }
 0x5d6   : > { %v4605_v9 = vmul.f32 %v13114_v44, %v3808_v3  ;;  %v15349_v44 = vld [vmem:[#allocation86_spill] sm:$0xff]  ;;  %v15357_v3 = vld [vmem:[#allocation57_spill] sm:$0xff] }
 0x5d7   : > { %v3810_v11 = vpop.f32.mrf.mxu0  ;;  %v4598_v59 = vmul.f32 %v15349_v44, %v13140_v31 }
 0x5d8   : > { %v4606_v53 = vmul.f32 %v13128_v54, %v3810_v11  ;;  %v15348_v54 = vld [vmem:[#allocation87_spill] sm:$0xff]  ;;  %v15358_v11 = vld [vmem:[#allocation54_spill] sm:$0xff] }
 0x5d9   : > { %v3814_v43 = vpop.f32.mrf.mxu0 }
 0x5da   : > { %v4607_v51 = vmul.f32 %v4524_v35, %v3814_v43  ;;  %v4600_v35 = vmul.f32 %v13065_v30, %v3792_v0  ;;  %v15353_v0 = vld [vmem:[#allocation82_spill] sm:$0xff]  ;;  %v15360_v43 = vld [vmem:[#allocation51_spill] sm:$0xff] }
 0x5db   : > { %v3816_v47 = vpop.f32.mrf.mxu0  ;;  %v4587_v26 = vmul.f32 %v15360_v43, %v13074_v14  ;;  %v15367_v14 = vld [vmem:[#allocation66_spill] sm:$0xff] }
 0x5dc   : > { %v4608_v2 = vmul.f32 %v4526_v22, %v3816_v47  ;;  %v4601_v22 = vmul.f32 %v13071_v5, %v3796_v63  ;;  %v15352_v5 = vld [vmem:[#allocation83_spill] sm:$0xff]  ;;  %v15354_v63 = vld [vmem:[#allocation81_spill] sm:$0xff]  ;;  %v15361_v47 = vld [vmem:[#allocation48_spill] sm:$0xff] }
 0x5dd   : > { %v3820_v21 = vpop.f32.mrf.mxu0  ;;  %v4595_v30 = vmul.f32 %v15352_v5, %v13120_v15  ;;  %v4593_v31 = vmul.f32 %v15354_v63, %v13106_v62  ;;  %v4590_v15 = vmul.f32 %v15357_v3, %v13088_v46 }
 0x5de   : > { %v4609_v1 = vmul.f32 %v4530_v61, %v3820_v21  ;;  %v4599_v61 = vmul.f32 %v15348_v54, %v13146_v39  ;;  %v4594_v39 = vmul.f32 %v15353_v0, %v13112_v23  ;;  %v4589_v23 = vmul.f32 %v15358_v11, %v13084_v17  ;;  %v15363_v17 = vld [vmem:[#allocation68_spill] sm:$0xff] }
 0x5df   : > { %v3822_v56 = vpop.f32.mrf.mxu0  ;;  %v15364_v21 = vld [vmem:[#allocation60_spill] sm:$0xff] }
 0x5e0   : > { %v4610_v37 = vmul.f32 %v4532_v48, %v3822_v56  ;;  %v15356_v48 = vld [vmem:[#allocation56_spill] sm:$0xff] }
 0x5e1   : > { %v3826_v20 = vpop.f32.mrf.mxu0  ;;  %v4591_v55 = vmul.f32 %v15356_v48, %v13094_v12  ;;  %v4586_v12 = vmul.f32 %v15361_v47, %v13069_v6  ;;  %v15368_v56 = vld [vmem:[#allocation64_spill] sm:$0xff]  ;;  %v15369_v6 = vld [vmem:[#allocation59_spill] sm:$0xff] }
 0x5e2   : > { %v4611_v8 = vmul.f32 %v4536_v60, %v3826_v20  ;;  %v15359_v60 = vld [vmem:[#allocation55_spill] sm:$0xff]  ;;  %v15370_v20 = vld [vmem:[#allocation58_spill] sm:$0xff] }
 0x5e3   : > { %v3828_v18 = vpop.f32.mrf.mxu0  ;;  %v4588_v62 = vmul.f32 %v15359_v60, %v13078_v50  ;;  %v15365_v50 = vld [vmem:[#allocation69_spill] sm:$0xff] }
 0x5e4   : > { %v4612_v27 = vmul.f32 %v4538_v32, %v3828_v18  ;;  %v15362_v32 = vld [vmem:[#allocation52_spill] sm:$0xff]  ;;  %v15373_v18 = vld [vmem:[#allocation62_spill] sm:$0xff] }
 0x5e5   : > { %v3832_v36 = vpop.f32.mrf.mxu0  ;;  %v4585_v46 = vmul.f32 %v15362_v32, %v13067_v52  ;;  %v15371_v52 = vld [vmem:[#allocation65_spill] sm:$0xff] }
 0x5e6   : > { %v4613_v7 = vmul.f32 %v4542_v49, %v3832_v36  ;;  %v15366_v49 = vld [vmem:[#allocation67_spill] sm:$0xff] }
 0x5e7   : > { %v3834_v40 = vpop.f32.mrf.mxu0  ;;  %v15374_v36 = vld [vmem:[#allocation79_spill] sm:$0xff] }
 0x5e8   : > { %v4614_v57 = vmul.f32 %v4544_v13, %v3834_v40  ;;  %v15372_v13 = vld [vmem:[#allocation63_spill] sm:$0xff]  ;;  %v15376_v40 = vld [vmem:[#allocation77_spill] sm:$0xff] }
 0x5e9   : > { %v3838_v34 = vpop.f32.mrf.mxu0 }
 0x5ea   : > { %v4615_v24 = vmul.f32 %v4548_v45, %v3838_v34  ;;  %v15375_v45 = vld [vmem:[#allocation61_spill] sm:$0xff]  ;;  %v15377_v34 = vld [vmem:[#allocation78_spill] sm:$0xff] }
 0x5eb   : > { %v3840_v29 = vpop.f32.mrf.mxu0 }
 0x5ec   : > { %v4616_v10 = vmul.f32 %v4550_v19, %v3840_v29 }
 0x5ee   : > { %4649 = vmatprep.subr.mxu0 %v4616_v10 }
 0x5ef   : > { %4650 = vmatpush2.msra.mxu0 %v4615_v24 }
 0x5f0   : > { %4651 = vmatprep.subr.mxu0 %v4614_v57 }
 0x5f1   : > { %4652 = vmatpush2.msra.mxu0 %v4613_v7 }
 0x5f2   : > { %4653 = vmatprep.subr.mxu0 %v4612_v27 }
 0x5f3   : > { %4654 = vmatpush2.msra.mxu0 %v4611_v8 }
 0x5f4   : > { %4655 = vmatprep.subr.mxu0 %v4610_v37 }
 0x5f5   : > { %4656 = vmatpush2.msra.mxu0 %v4609_v1 }
 0x5f6   : > { %4657 = vmatprep.subr.mxu0 %v4608_v2 }
 0x5f7   : > { %4658 = vmatpush2.msra.mxu0 %v4607_v51 }
 0x5f8   : > { %4659 = vmatprep.subr.mxu0 %v4606_v53 }
 0x5f9   : > { %4660 = vmatpush2.msra.mxu0 %v4605_v9 }
 0x5fa   : > { %4661 = vmatprep.subr.mxu0 %v4604_v42 }
 0x5fb   : > { %4662 = vmatpush2.msra.mxu0 %v4603_v28 }
 0x5fc   : > { %4663 = vmatprep.subr.mxu0 %v4602_v25 }
 0x5fd   : > { %4664 = vmatpush2.msra.mxu0 %v4601_v22 }
 0x5fe   : > { %4665 = vmatprep.subr.mxu0 %v4600_v35 }
 0x5ff   : > { %4666 = vmatpush2.msra.mxu0 %v4599_v61 }
 0x600   : > { %4667 = vmatprep.subr.mxu0 %v4598_v59 }
 0x601   : > { %4668 = vmatpush2.msra.mxu0 %v4597_v4 }
 0x602   : > { %4669 = vmatprep.subr.mxu0 %v4596_v58 }
 0x603   : > { %4670 = vmatpush2.msra.mxu0 %v4595_v30 }
 0x604   : > { %4671 = vmatprep.subr.mxu0 %v4594_v39 }
 0x605   : > { %4672 = vmatpush2.msra.mxu0 %v4593_v31 }
 0x606   : > { %4673 = vmatprep.subr.mxu0 %v4592_v16 }
 0x607   : > { %4674 = vmatpush2.msra.mxu0 %v4591_v55 }
 0x608   : > { %4675 = vmatprep.subr.mxu0 %v4590_v15 }
 0x609   : > { %4676 = vmatpush2.msra.mxu0 %v4589_v23 }
 0x60a   : > { %4677 = vmatprep.subr.mxu0 %v4588_v62 }
 0x60b   : > { %4678 = vmatpush2.msra.mxu0 %v4587_v26 }
 0x60c   : > { %4679 = vmatprep.subr.mxu0 %v4586_v12 }
 0x60d   : > { %4680 = vmatpush2.msra.mxu0 %v4585_v46 }
 0x60e   : > { %4682 = vmatmul.mubr.f32.vlgmr.msra.gmra.mxu0 %v15363_v17 }
 0x60f   : > { %4687 = vmatprep.mubr.f32.mxu0 %v15364_v21 }
 0x612   : > { %4688 = vmatmul.mubr.f32.gmra.mxu0 %v15365_v50 }
 0x613   : > { %4693 = vmatprep.mubr.f32.mxu0 %v15366_v49 }
 0x616   : > { %4694 = vmatmul.mubr.f32.gmra.mxu0 %v15367_v14 }
 0x617   : > { %4699 = vmatprep.mubr.f32.mxu0 %v15368_v56 }
 0x61a   : > { %4700 = vmatmul.mubr.f32.gmra.mxu0 %v15369_v6 }
 0x61b   : > { %4705 = vmatprep.mubr.f32.mxu0 %v15370_v20 }
 0x61e   : > { %4706 = vmatmul.mubr.f32.gmra.mxu0 %v15371_v52 }
 0x61f   : > { %4711 = vmatprep.mubr.f32.mxu0 %v15372_v13 }
 0x622   : > { %4712 = vmatmul.mubr.f32.gmra.mxu0 %v15373_v18 }
 0x623   : > { %4717 = vmatprep.mubr.f32.mxu0 %v15374_v36 }
 0x626   : > { %4718 = vmatmul.mubr.f32.gmra.mxu0 %v15375_v45 }
 0x627   : > { %4723 = vmatprep.mubr.f32.mxu0 %v15376_v40 }
 0x62a   : > { %4724 = vmatmul.mubr.f32.gmra.mxu0 %v15377_v34 }
 0x6ce   : > { %v4683_v19 = vpop.f32.mrf.mxu0 }
 0x6cf   : > { %4730 = vst [vmem:[#allocation2 + $0x30] sm:$0xff] %v4683_v19 }
 0x6d0   : > { %v4685_v29 = vpop.f32.mrf.mxu0 }
 0x6d1   : > { %4731 = vst [vmem:[#allocation2] sm:$0xff] %v4685_v29 }
 0x6d2   : > { %v4689_v10 = vpop.f32.mrf.mxu0 }
 0x6d3   : > { %4732 = vst [vmem:[#allocation2 + $0x58] sm:$0xff] %v4689_v10 }
 0x6d4   : > { %v4691_v24 = vpop.f32.mrf.mxu0 }
 0x6d5   : > { %4733 = vst [vmem:[#allocation2 + $0x18] sm:$0xff] %v4691_v24 }
 0x6d6   : > { %v4695_v57 = vpop.f32.mrf.mxu0 }
 0x6d7   : > { %4734 = vst [vmem:[#allocation2 + $0x50] sm:$0xff] %v4695_v57 }
 0x6d8   : > { %v4697_v7 = vpop.f32.mrf.mxu0 }
 0x6d9   : > { %4735 = vst [vmem:[#allocation2 + $0x68] sm:$0xff] %v4697_v7 }
 0x6da   : > { %v4701_v27 = vpop.f32.mrf.mxu0 }
 0x6db   : > { %4736 = vst [vmem:[#allocation2 + $0x8] sm:$0xff] %v4701_v27 }
 0x6dc   : > { %v4703_v8 = vpop.f32.mrf.mxu0 }
 0x6dd   : > { %4737 = vst [vmem:[#allocation2 + $0x48] sm:$0xff] %v4703_v8 }
 0x6de   : > { %v4707_v37 = vpop.f32.mrf.mxu0 }
 0x6df   : > { %4738 = vst [vmem:[#allocation2 + $0x40] sm:$0xff] %v4707_v37 }
 0x6e0   : > { %v4709_v1 = vpop.f32.mrf.mxu0 }
 0x6e1   : > { %4739 = vst [vmem:[#allocation2 + $0x20] sm:$0xff] %v4709_v1 }
 0x6e2   : > { %v4713_v2 = vpop.f32.mrf.mxu0 }
 0x6e3   : > { %4740 = vst [vmem:[#allocation2 + $0x10] sm:$0xff] %v4713_v2 }
 0x6e4   : > { %v4715_v51 = vpop.f32.mrf.mxu0 }
 0x6e5   : > { %4741 = vst [vmem:[#allocation2 + $0x38] sm:$0xff] %v4715_v51 }
 0x6e6   : > { %v4719_v53 = vpop.f32.mrf.mxu0 }
 0x6e7   : > { %4742 = vst [vmem:[#allocation2 + $0x60] sm:$0xff] %v4719_v53 }
 0x6e8   : > { %v4721_v9 = vpop.f32.mrf.mxu0 }
 0x6e9   : > { %4743 = vst [vmem:[#allocation2 + $0x70] sm:$0xff] %v4721_v9  ;;  %4751 = sbr.rel (%p9473_p8) target bundleno = 1791 (0x6ff), region = 140 }
 0x6ea   : > { %v4725_v42 = vpop.f32.mrf.mxu0 }
 0x6eb   : > { %4744 = vst [vmem:[#allocation2 + $0x78] sm:$0xff] %v4725_v42 }
 0x6ec   : > { %v4727_v28 = vpop.f32.mrf.mxu0 }
 0x6ed   : > { %4745 = vst [vmem:[#allocation2 + $0x28] sm:$0xff] %v4727_v28 }
 0x6ee   : > { %v4770_v25 = vld [vmem:[%s11705_s9] sm:$0xff]  ;;  %v4771_v22 = vld [vmem:[%s11705_s9 + $0x8] sm:$0xff]  ;;  %v4772_v35 = vld [vmem:[%s11705_s9 + $0x10] sm:$0xff]  ;;  %v4794_v55 = vstv %s4753_s20 }
 0x6ef   : > { %v4773_v54 = vld [vmem:[%s11705_s9 + $0x18] sm:$0xff]  ;;  %v4778_v61 = vunpack.c.l.bf16 %v4770_v25  ;;  %v4779_v44 = vunpack.c.h.bf16 %v4770_v25  ;;  %v4780_v59 = vunpack.c.l.bf16 %v4771_v22  ;;  %v4781_v33 = vunpack.c.h.bf16 %v4771_v22  ;;  %v4774_v4 = vld [vmem:[%s11705_s9 + $0x20] sm:$0xff]  ;;  %v4775_v0 = vld [vmem:[%s11705_s9 + $0x28] sm:$0xff] }
 0x6f0   : > { %v4782_v41 = vunpack.c.l.bf16 %v4772_v35  ;;  %v4783_v58 = vunpack.c.h.bf16 %v4772_v35  ;;  %v4784_v5 = vunpack.c.l.bf16 %v4773_v54  ;;  %v4785_v30 = vunpack.c.h.bf16 %v4773_v54  ;;  %v4754_v39 = vld [vmem:[#allocation2 + $0x30] sm:$0xff]  ;;  %v4755_v63 = vld [vmem:[#allocation2] sm:$0xff]  ;;  %v4756_v3 = vld [vmem:[#allocation2 + $0x58] sm:$0xff] }
 0x6f1   : > { %v4786_v31 = vunpack.c.l.bf16 %v4774_v4  ;;  %v4787_v38 = vunpack.c.h.bf16 %v4774_v4  ;;  %v4788_v16 = vunpack.c.l.bf16 %v4775_v0  ;;  %v4776_v48 = vld [vmem:[%s11705_s9 + $0x30] sm:$0xff]  ;;  %v4757_v15 = vld [vmem:[#allocation2 + $0x18] sm:$0xff]  ;;  %v4789_v23 = vunpack.c.h.bf16 %v4775_v0  ;;  %v4759_v32 = vld [vmem:[#allocation2 + $0x68] sm:$0xff] }
 0x6f2   : > { %v4758_v11 = vld [vmem:[#allocation2 + $0x50] sm:$0xff]  ;;  %v4790_v60 = vunpack.c.l.bf16 %v4776_v48  ;;  %v4791_v62 = vunpack.c.h.bf16 %v4776_v48  ;;  %v4795_v43 = vmul.f32 %v4794_v55, %v4778_v61  ;;  %v4796_v26 = vmul.f32 %v4794_v55, %v4779_v44  ;;  %v4760_v46 = vld [vmem:[#allocation2 + $0x8] sm:$0xff]  ;;  %v4762_v13 = vld [vmem:[#allocation2 + $0x40] sm:$0xff] }
 0x6f3   : > { %v4797_v47 = vmul.f32 %v4794_v55, %v4780_v59  ;;  %v4798_v12 = vmul.f32 %v4794_v55, %v4781_v33  ;;  %v4761_v17 = vld [vmem:[#allocation2 + $0x48] sm:$0xff]  ;;  %v4799_v21 = vmul.f32 %v4794_v55, %v4782_v41  ;;  %v4800_v50 = vmul.f32 %v4794_v55, %v4783_v58  ;;  %v4777_v18 = vld [vmem:[%s11705_s9 + $0x38] sm:$0xff]  ;;  %v4763_v19 = vld [vmem:[#allocation2 + $0x20] sm:$0xff] }
 0x6f4   : > { %v4801_v49 = vmul.f32 %v4794_v55, %v4784_v5  ;;  %v4802_v14 = vmul.f32 %v4794_v55, %v4785_v30  ;;  %v4811_v56 = vadd.f32 %v4795_v43, %v4754_v39  ;;  %v4812_v6 = vadd.f32 %v4796_v26, %v4755_v63  ;;  %v4764_v29 = vld [vmem:[#allocation2 + $0x10] sm:$0xff]  ;;  %v4765_v10 = vld [vmem:[#allocation2 + $0x38] sm:$0xff]  ;;  %v4766_v8 = vld [vmem:[#allocation2 + $0x60] sm:$0xff] }
 0x6f5   : > { %v4813_v20 = vadd.f32 %v4797_v47, %v4756_v3  ;;  %v4814_v52 = vadd.f32 %v4798_v12, %v4757_v15  ;;  %v4815_v36 = vadd.f32 %v4799_v21, %v4758_v11  ;;  %v4816_v45 = vadd.f32 %v4800_v50, %v4759_v32  ;;  %v4767_v37 = vld [vmem:[#allocation2 + $0x70] sm:$0xff]  ;;  %v4768_v22 = vld [vmem:[#allocation2 + $0x78] sm:$0xff]  ;;  %v4769_v35 = vld [vmem:[#allocation2 + $0x28] sm:$0xff] }
 0x6f6   : > { %v4817_v40 = vadd.f32 %v4801_v49, %v4760_v46  ;;  %v4818_v34 = vadd.f32 %v4802_v14, %v4761_v17  ;;  %4827 = vst [vmem:[#allocation2 + $0x30] sm:$0xff] %v4811_v56  ;;  %4828 = vst [vmem:[#allocation2] sm:$0xff] %v4812_v6  ;;  %v4803_v24 = vmul.f32 %v4794_v55, %v4786_v31  ;;  %v4792_v51 = vunpack.c.l.bf16 %v4777_v18 }
 0x6f7   : > { %4829 = vst [vmem:[#allocation2 + $0x58] sm:$0xff] %v4813_v20  ;;  %4830 = vst [vmem:[#allocation2 + $0x18] sm:$0xff] %v4814_v52  ;;  %v4804_v57 = vmul.f32 %v4794_v55, %v4787_v38  ;;  %v4805_v7 = vmul.f32 %v4794_v55, %v4788_v16  ;;  %v4806_v27 = vmul.f32 %v4794_v55, %v4789_v23  ;;  %v4793_v53 = vunpack.c.h.bf16 %v4777_v18 }
 0x6f8   : > { %4831 = vst [vmem:[#allocation2 + $0x50] sm:$0xff] %v4815_v36  ;;  %4832 = vst [vmem:[#allocation2 + $0x68] sm:$0xff] %v4816_v45  ;;  %v4807_v1 = vmul.f32 %v4794_v55, %v4790_v60  ;;  %v4808_v2 = vmul.f32 %v4794_v55, %v4791_v62  ;;  %v4819_v9 = vadd.f32 %v4803_v24, %v4762_v13 }
 0x6f9   : > { %4833 = vst [vmem:[#allocation2 + $0x8] sm:$0xff] %v4817_v40  ;;  %4834 = vst [vmem:[#allocation2 + $0x48] sm:$0xff] %v4818_v34  ;;  %v4820_v42 = vadd.f32 %v4804_v57, %v4763_v19  ;;  %v4821_v28 = vadd.f32 %v4805_v7, %v4764_v29  ;;  %v4822_v25 = vadd.f32 %v4806_v27, %v4765_v10 }
 0x6fa   : > { %v4823_v54 = vadd.f32 %v4807_v1, %v4766_v8  ;;  %v4824_v61 = vadd.f32 %v4808_v2, %v4767_v37  ;;  %v4809_v44 = vmul.f32 %v4794_v55, %v4792_v51  ;;  %v4810_v59 = vmul.f32 %v4794_v55, %v4793_v53  ;;  %4835 = vst [vmem:[#allocation2 + $0x40] sm:$0xff] %v4819_v9 }
 0x6fb   : > { %4836 = vst [vmem:[#allocation2 + $0x20] sm:$0xff] %v4820_v42  ;;  %4837 = vst [vmem:[#allocation2 + $0x10] sm:$0xff] %v4821_v28 }
 0x6fc   : > { %4838 = vst [vmem:[#allocation2 + $0x38] sm:$0xff] %v4822_v25  ;;  %4839 = vst [vmem:[#allocation2 + $0x60] sm:$0xff] %v4823_v54  ;;  %v4825_v33 = vadd.f32 %v4809_v44, %v4768_v22  ;;  %v4826_v4 = vadd.f32 %v4810_v59, %v4769_v35 }
 0x6fd   : > { %4840 = vst [vmem:[#allocation2 + $0x70] sm:$0xff] %v4824_v61 }
 0x6fe   : > { %4841 = vst [vmem:[#allocation2 + $0x78] sm:$0xff] %v4825_v33  ;;  %4842 = vst [vmem:[#allocation2 + $0x28] sm:$0xff] %v4826_v4 }
 0x6ff PF: > { %s4843_s0 = sadd.s32 1, %s13205_s18 }
 0x700   : > { %s4844_s9 = sld [smem:[#allocation21 + %s4843_s0]] }
 0x706   : > { %p9474_p11 = scmp.eq.s32.totalorder %s4844_s9, 0 }
 0x708   : > { %4848 = sbr.rel (%p9474_p11) target bundleno = 3662 (0xe4e), region = 144 }
 0x70d   : > { %v4857_v41 = vld [vmem:[#allocation2 + $0x18] sm:$0xff]  ;;  %v4855_v5 = vld [vmem:[#allocation2] sm:$0xff]  ;;  %v4854_v30 = vld [vmem:[#allocation2 + $0x30] sm:$0xff]  ;;  %v15131_v0 = vmov 0.0   ;;  %s15378_s27 = sld [smem:[#allocation142_spill]] }
 0x70e   : > { %v4856_v58 = vld [vmem:[#allocation2 + $0x58] sm:$0xff]  ;;  %4904 = vmatprep.subr.mxu0 %v4857_v41  ;;  %4940 = vmatprep.mubr.f32.mxu0 %v15131_v0  ;;  %v13228_v39 = vld [vmem:[#allocation15] sm:$0xff]  ;;  %v4864_v31 = vld [vmem:[#allocation2 + $0x10] sm:$0xff]  ;;  %s15386_s23 = sld [smem:[#allocation143_spill]] }
 0x70f   : > { %4905 = vmatpush1.msra.mxu0 %v4856_v58  ;;  %v4865_v63 = vld [vmem:[#allocation2 + $0x38] sm:$0xff]  ;;  %5017 = vmatprep.mubr.f32.mxu1 %v15131_v0  ;;  %v4863_v38 = vld [vmem:[#allocation2 + $0x20] sm:$0xff]  ;;  %v13234_v48 = vld [vmem:[#allocation15 + $0x8] sm:$0xff] }
 0x710   : > { %4906 = vmatprep.subr.mxu0 %v4855_v5  ;;  %v4862_v16 = vld [vmem:[#allocation2 + $0x40] sm:$0xff]  ;;  %v13244_v55 = vld [vmem:[#allocation18 + $0x18] sm:$0xff]  ;;  %v13261_v23 = vld [vmem:[#allocation18 + $0x10] sm:$0xff] }
 0x711   : > { %4907 = vmatpush1.msra.mxu0 %v4854_v30  ;;  %v4861_v7 = vld [vmem:[#allocation2 + $0x48] sm:$0xff]  ;;  %v4858_v37 = vld [vmem:[#allocation2 + $0x50] sm:$0xff]  ;;  %v4868_v51 = vld [vmem:[#allocation2 + $0x78] sm:$0xff] }
 0x712   : > { %9475 = vmatmul.mubr.msk.f32.vlgmr.msra.gmra.mxu0 %vm962_vm0, %v13228_v39  ;;  %5058 = vmatprep.subr.mxu0 %v4865_v63  ;;  %v4860_v27 = vld [vmem:[#allocation2 + $0x8] sm:$0xff]  ;;  %v4867_v53 = vld [vmem:[#allocation2 + $0x70] sm:$0xff]  ;;  %v4866_v42 = vld [vmem:[#allocation2 + $0x60] sm:$0xff] }
 0x713   : > { %4946 = vmatprep.mubr.f32.mxu0 %v15131_v0  ;;  %5059 = vmatpush1.msra.mxu0 %v4864_v31  ;;  %v5184_v3 = vld [vmem:[%s15378_s27] sm:$0xff]  ;;  %v5185_v15 = vld [vmem:[%s15378_s27 + $0x8] sm:$0xff]  ;;  %v5186_v11 = vld [vmem:[%s15378_s27 + $0x10] sm:$0xff] }
 0x714   : > { %5060 = vmatprep.subr.mxu0 %v4863_v38  ;;  %v5187_v60 = vld [vmem:[%s15378_s27 + $0x18] sm:$0xff]  ;;  %v5188_v62 = vld [vmem:[%s15378_s27 + $0x20] sm:$0xff]  ;;  %v5189_v43 = vld [vmem:[%s15378_s27 + $0x28] sm:$0xff]  ;;  %4981 = vmatprep.subr.mxu1 %v4861_v7 }
 0x715   : > { %5061 = vmatpush1.msra.mxu0 %v4862_v16  ;;  %v5190_v26 = vld [vmem:[%s15378_s27 + $0x30] sm:$0xff]  ;;  %v5191_v47 = vld [vmem:[%s15378_s27 + $0x38] sm:$0xff]  ;;  %v5192_v12 = vld [vmem:[%s15378_s27 + $0x40] sm:$0xff]  ;;  %4982 = vmatpush1.msra.mxu1 %v4860_v27 }
 0x716   : > { %9476 = vmatmul.mubr.msk.f32.gmra.mxu0 %vm962_vm0, %v13234_v48  ;;  %10243 = vmatprep.subr.mxu0 %v13234_v48  ;;  %v5193_v32 = vld [vmem:[%s15378_s27 + $0x48] sm:$0xff]  ;;  %v5194_v46 = vld [vmem:[%s15378_s27 + $0x50] sm:$0xff]  ;;  %v5195_v17 = vld [vmem:[%s15378_s27 + $0x58] sm:$0xff] }
 0x717   : > { %5094 = vmatprep.mubr.f32.mxu0 %v15131_v0  ;;  %v5196_v21 = vld [vmem:[%s15378_s27 + $0x60] sm:$0xff]  ;;  %v5197_v50 = vld [vmem:[%s15378_s27 + $0x68] sm:$0xff]  ;;  %v5198_v49 = vld [vmem:[%s15378_s27 + $0x70] sm:$0xff] }
 0x718   : > { %v5199_v14 = vld [vmem:[%s15378_s27 + $0x78] sm:$0xff]  ;;  %v5200_v56 = vld [vmem:[%s15378_s27 + $0x80] sm:$0xff]  ;;  %v5201_v6 = vld [vmem:[%s15378_s27 + $0x88] sm:$0xff] }
 0x719   : > { %v5202_v20 = vld [vmem:[%s15378_s27 + $0x90] sm:$0xff]  ;;  %v5203_v52 = vld [vmem:[%s15378_s27 + $0x98] sm:$0xff]  ;;  %v5204_v13 = vld [vmem:[%s15378_s27 + $0xa0] sm:$0xff] }
 0x71a   : > { %9479 = vmatmul.mubr.msk.f32.vlgmr.msra.gmra.mxu0 %vm962_vm0, %v13228_v39  ;;  %v5205_v18 = vld [vmem:[%s15378_s27 + $0xa8] sm:$0xff]  ;;  %v5206_v36 = vld [vmem:[%s15378_s27 + $0xb0] sm:$0xff]  ;;  %v5207_v45 = vld [vmem:[%s15378_s27 + $0xb8] sm:$0xff] }
 0x71b   : > { %5100 = vmatprep.mubr.f32.mxu0 %v15131_v0  ;;  %10244 = vmatpush3.msra.mxu0 %v13234_v48  ;;  %v5208_v40 = vld [vmem:[%s15378_s27 + $0xc0] sm:$0xff]  ;;  %v5209_v34 = vld [vmem:[%s15378_s27 + $0xc8] sm:$0xff]  ;;  %v5210_v19 = vld [vmem:[%s15378_s27 + $0xd0] sm:$0xff] }
 0x71c   : > { %10245 = vmatprep.subr.mxu0 %v13228_v39  ;;  %v5211_v29 = vld [vmem:[%s15378_s27 + $0xd8] sm:$0xff]  ;;  %v5212_v10 = vld [vmem:[%s15378_s27 + $0xe0] sm:$0xff]  ;;  %v5213_v24 = vld [vmem:[%s15378_s27 + $0xe8] sm:$0xff] }
 0x71d   : > { %10246 = vmatpush3.msra.mxu0 %v13228_v39  ;;  %v5214_v57 = vld [vmem:[%s15378_s27 + $0xf0] sm:$0xff]  ;;  %v4859_v8 = vld [vmem:[#allocation2 + $0x68] sm:$0xff]  ;;  %v5215_v1 = vld [vmem:[%s15378_s27 + $0xf8] sm:$0xff] }
 0x71e   : > { %9480 = vmatmul.mubr.msk.f32.gmra.mxu0 %vm962_vm0, %v13234_v48  ;;  %5665 = vmatprep.subr.mxu0 %v13244_v55  ;;  %v4869_v2 = vld [vmem:[#allocation2 + $0x28] sm:$0xff]  ;;  %v13392_v28 = vld [vmem:[#allocation18] sm:$0xff]  ;;  %v6250_v5 = vld [vmem:[#allocation19 + $0x18] sm:$0xff] }
 0x71f   : > { %10247 = vmatprep.mubr.msk.f32.mxu0 %vm962_vm0, %v5184_v3  ;;  %4983 = vmatprep.subr.mxu1 %v4859_v8  ;;  %v13388_v9 = vld [vmem:[#allocation18 + $0x8] sm:$0xff]  ;;  %v5896_v3 = vld [vmem:[%s15386_s23 + $0x10] sm:$0xff]  ;;  %v5917_v8 = vld [vmem:[%s15386_s23 + $0xb8] sm:$0xff] }
 0x720   : > { %4984 = vmatpush1.msra.mxu1 %v4858_v37  ;;  %v5916_v7 = vld [vmem:[%s15386_s23 + $0xb0] sm:$0xff]  ;;  %v5918_v37 = vld [vmem:[%s15386_s23 + $0xc0] sm:$0xff] }
 0x721   : > { %9477 = vmatmul.mubr.msk.f32.vlgmr.msra.gmra.mxu1 %vm962_vm0, %v13228_v39  ;;  %5135 = vmatprep.subr.mxu1 %v4869_v2  ;;  %v5919_v2 = vld [vmem:[%s15386_s23 + $0xc8] sm:$0xff] }
 0x722   : > { %10248 = vmatmul.mubr.msk.f32.vlgmr.msra.gmra.mxu0 %vm962_vm0, %v5185_v15  ;;  %5023 = vmatprep.mubr.f32.mxu1 %v15131_v0  ;;  %v6249_v15 = vld [vmem:[#allocation19 + $0x10] sm:$0xff] }
 0x723   : > { %10250 = vmatprep.mubr.msk.f32.mxu0 %vm962_vm0, %v5186_v11  ;;  %5666 = vmatpush1.msra.mxu0 %v13261_v23 }
 0x724   : > { %5136 = vmatpush1.msra.mxu1 %v4868_v51  ;;  %5667 = vmatprep.subr.mxu0 %v13388_v9  ;;  %v5920_v51 = vld [vmem:[%s15386_s23 + $0xd0] sm:$0xff] }
 0x725   : > { %9478 = vmatmul.mubr.msk.f32.gmra.mxu1 %vm962_vm0, %v13234_v48  ;;  %5137 = vmatprep.subr.mxu1 %v4867_v53 }
 0x726   : > { %10251 = vmatmul.mubr.msk.f32.gmra.mxu0 %vm962_vm0, %v5187_v60  ;;  %5171 = vmatprep.mubr.f32.mxu1 %v15131_v0  ;;  %v5897_v60 = vld [vmem:[%s15386_s23 + $0x18] sm:$0xff] }
 0x727   : > { %10253 = vmatprep.mubr.msk.f32.mxu0 %vm962_vm0, %v5188_v62  ;;  %5138 = vmatpush1.msra.mxu1 %v4866_v42  ;;  %v5898_v62 = vld [vmem:[%s15386_s23 + $0x20] sm:$0xff]  ;;  %v5921_v42 = vld [vmem:[%s15386_s23 + $0xd8] sm:$0xff] }
 0x728   : > { %5668 = vmatpush1.msra.mxu0 %v13392_v28  ;;  %10455 = vmatprep.subr.mxu1 %v13244_v55 }
 0x729   : > { %9481 = vmatmul.mubr.msk.f32.vlgmr.msra.gmra.mxu1 %vm962_vm0, %v13228_v39  ;;  %10295 = vmatprep.subr.mxu0 %v13234_v48 }
 0x72a   : > { %10254 = vmatmul.mubr.msk.f32.gmra.mxu0 %vm962_vm0, %v5189_v43  ;;  %5177 = vmatprep.mubr.f32.mxu1 %v15131_v0 }
 0x72b   : > { %10256 = vmatprep.mubr.msk.f32.mxu0 %vm962_vm0, %v5190_v26  ;;  %10457 = vmatpush1.msra.mxu1 %v13261_v23  ;;  %v5899_v26 = vld [vmem:[%s15386_s23 + $0x28] sm:$0xff] }
 0x72c   : > { %10456 = vmatprep.subr.mxu1 %v13388_v9 }
 0x72d   : > { %10458 = vmatpush1.msra.mxu1 %v13392_v28 }
 0x72e   : > { %10257 = vmatmul.mubr.msk.f32.gmra.mxu0 %vm962_vm0, %v5191_v47  ;;  %9482 = vmatmul.mubr.msk.f32.gmra.mxu1 %vm962_vm0, %v13234_v48  ;;  %v5900_v47 = vld [vmem:[%s15386_s23 + $0x30] sm:$0xff] }
 0x72f   : > { %10259 = vmatprep.mubr.msk.f32.mxu0 %vm962_vm0, %v5192_v12  ;;  %5725 = vmatprep.mubr.f32.mxu1 %v15131_v0 }
 0x732   : > { %10260 = vmatmul.mubr.msk.f32.gmra.mxu0 %vm962_vm0, %v5193_v32  ;;  %v5901_v32 = vld [vmem:[%s15386_s23 + $0x38] sm:$0xff] }
 0x733   : > { %10262 = vmatprep.mubr.msk.f32.mxu0 %vm962_vm0, %v5194_v46  ;;  %v5902_v46 = vld [vmem:[%s15386_s23 + $0x40] sm:$0xff] }
 0x736   : > { %10263 = vmatmul.mubr.msk.f32.gmra.mxu0 %vm962_vm0, %v5195_v17 }
 0x737   : > { %10265 = vmatprep.mubr.msk.f32.mxu0 %vm962_vm0, %v5196_v21  ;;  %v5903_v21 = vld [vmem:[%s15386_s23 + $0x48] sm:$0xff] }
 0x73a   : > { %10266 = vmatmul.mubr.msk.f32.gmra.mxu0 %vm962_vm0, %v5197_v50  ;;  %v5904_v50 = vld [vmem:[%s15386_s23 + $0x50] sm:$0xff] }
 0x73b   : > { %10268 = vmatprep.mubr.msk.f32.mxu0 %vm962_vm0, %v5198_v49 }
 0x73e   : > { %10269 = vmatmul.mubr.msk.f32.gmra.mxu0 %vm962_vm0, %v5199_v14  ;;  %v5905_v14 = vld [vmem:[%s15386_s23 + $0x58] sm:$0xff] }
 0x73f   : > { %10271 = vmatprep.mubr.msk.f32.mxu0 %vm962_vm0, %v5200_v56  ;;  %v5906_v56 = vld [vmem:[%s15386_s23 + $0x60] sm:$0xff] }
 0x742   : > { %10272 = vmatmul.mubr.msk.f32.gmra.mxu0 %vm962_vm0, %v5201_v6 }
 0x743   : > { %10274 = vmatprep.mubr.msk.f32.mxu0 %vm962_vm0, %v5202_v20  ;;  %v5907_v20 = vld [vmem:[%s15386_s23 + $0x68] sm:$0xff] }
 0x746   : > { %10275 = vmatmul.mubr.msk.f32.gmra.mxu0 %vm962_vm0, %v5203_v52  ;;  %v5908_v52 = vld [vmem:[%s15386_s23 + $0x70] sm:$0xff] }
 0x747   : > { %10277 = vmatprep.mubr.msk.f32.mxu0 %vm962_vm0, %v5204_v13 }
 0x74a   : > { %10278 = vmatmul.mubr.msk.f32.gmra.mxu0 %vm962_vm0, %v5205_v18  ;;  %v5909_v18 = vld [vmem:[%s15386_s23 + $0x78] sm:$0xff] }
 0x74b   : > { %10280 = vmatprep.mubr.msk.f32.mxu0 %vm962_vm0, %v5206_v36  ;;  %v5910_v36 = vld [vmem:[%s15386_s23 + $0x80] sm:$0xff] }
 0x74e   : > { %10281 = vmatmul.mubr.msk.f32.gmra.mxu0 %vm962_vm0, %v5207_v45 }
 0x74f   : > { %10283 = vmatprep.mubr.msk.f32.mxu0 %vm962_vm0, %v5208_v40  ;;  %v5911_v40 = vld [vmem:[%s15386_s23 + $0x88] sm:$0xff] }
 0x752   : > { %10284 = vmatmul.mubr.msk.f32.gmra.mxu0 %vm962_vm0, %v5209_v34  ;;  %v5912_v34 = vld [vmem:[%s15386_s23 + $0x90] sm:$0xff] }
 0x753   : > { %10286 = vmatprep.mubr.msk.f32.mxu0 %vm962_vm0, %v5210_v19 }
 0x756   : > { %10287 = vmatmul.mubr.msk.f32.gmra.mxu0 %vm962_vm0, %v5211_v29  ;;  %v5913_v29 = vld [vmem:[%s15386_s23 + $0x98] sm:$0xff] }
 0x757   : > { %10289 = vmatprep.mubr.msk.f32.mxu0 %vm962_vm0, %v5212_v10  ;;  %v5914_v10 = vld [vmem:[%s15386_s23 + $0xa0] sm:$0xff] }
 0x75a   : > { %10290 = vmatmul.mubr.msk.f32.gmra.mxu0 %vm962_vm0, %v5213_v24 }
 0x75b   : > { %10292 = vmatprep.mubr.msk.f32.mxu0 %vm962_vm0, %v5214_v57  ;;  %v5915_v57 = vld [vmem:[%s15386_s23 + $0xa8] sm:$0xff] }
 0x75e   : > { %10293 = vmatmul.mubr.msk.f32.gmra.mxu0 %vm962_vm0, %v5215_v1 }
 0x75f   : > { %5701 = vmatprep.mubr.f32.mxu0 %v15131_v0 }
 0x7d2   : > { %v13406_v25 = vpop.f32.mrf.mxu0 }
 0x7d3   : > { %15379 = vst [vmem:[#allocation88_spill] sm:$0xff] %v13406_v25 }
 0x7d4   : > { %v13408_v22 = vpop.f32.mrf.mxu0 }
 0x7d6   : > { %v13410_v35 = vpop.f32.mrf.mxu0 }
 0x7d7   : > { %15380 = vst [vmem:[#allocation89_spill] sm:$0xff] %v13410_v35 }
 0x7d8   : > { %v13412_v54 = vpop.f32.mrf.mxu0 }
 0x7d9   : > { %15381 = vst [vmem:[#allocation90_spill] sm:$0xff] %v13412_v54 }
 0x7da   : > { %v13414_v61 = vpop.f32.mrf.mxu0 }
 0x7db   : > { %15382 = vst [vmem:[#allocation91_spill] sm:$0xff] %v13414_v61 }
 0x7dc   : > { %v13416_v44 = vpop.f32.mrf.mxu0 }
 0x7dd   : > { %15383 = vst [vmem:[#allocation92_spill] sm:$0xff] %v13416_v44 }
 0x7de   : > { %v13418_v59 = vpop.f32.mrf.mxu0 }
 0x7df   : > { %15384 = vst [vmem:[#allocation93_spill] sm:$0xff] %v13418_v59 }
 0x7e0   : > { %v13420_v33 = vpop.f32.mrf.mxu0 }
 0x7e1   : > { %15385 = vst [vmem:[#allocation94_spill] sm:$0xff] %v13420_v33 }
 0x7e2   : > { %v10249_v4 = vpop.f32.mrf.mxu0 }
 0x7e4   : > { %v5378_v41 = vpop.f32.mrf.mxu0 }
 0x7e5   : > { %9515 = vmatmul.mubr.msk.f32.vlgmr.msra.gmra.mxu0 %vm962_vm0, %v5378_v41 }
 0x7e6   : > { %v10252_v58 = vpop.f32.mrf.mxu0  ;;  %5707 = vmatprep.mubr.f32.mxu0 %v15131_v0  ;;  %10296 = vmatpush3.msra.mxu0 %v13234_v48  ;;  %v5895_v48 = vld [vmem:[%s15386_s23 + $0x8] sm:$0xff] }
 0x7e7   : > { %10297 = vmatprep.subr.mxu0 %v13228_v39 }
 0x7e8   : > { %v5388_v30 = vpop.f32.mrf.mxu0  ;;  %10298 = vmatpush3.msra.mxu0 %v13228_v39  ;;  %v5894_v39 = vld [vmem:[%s15386_s23] sm:$0xff] }
 0x7e9   : > { %9516 = vmatmul.mubr.msk.f32.gmra.mxu0 %vm962_vm0, %v10249_v4  ;;  %6375 = vmatprep.subr.mxu0 %v6250_v5  ;;  %v5922_v4 = vld [vmem:[%s15386_s23 + $0xe0] sm:$0xff]  ;;  %v5924_v5 = vld [vmem:[%s15386_s23 + $0xf0] sm:$0xff] }
 0x7ea   : > { %v10255_v63 = vpop.f32.mrf.mxu0  ;;  %5713 = vmatprep.mubr.f32.mxu0 %v15131_v0 }
 0x7ec   : > { %v5398_v31 = vpop.f32.mrf.mxu0 }
 0x7ed   : > { %9517 = vmatmul.mubr.msk.f32.gmra.mxu0 %vm962_vm0, %v5388_v30  ;;  %9519 = vmatmul.mubr.msk.f32.vlgmr.msra.gmra.mxu1 %vm962_vm0, %v5398_v31 }
 0x7ee   : > { %5719 = vmatprep.mubr.f32.mxu0 %v15131_v0  ;;  %5731 = vmatprep.mubr.f32.mxu1 %v15131_v0  ;;  %v10258_v38 = vpop.f32.mrf.mxu0 }
 0x7f0   : > { %v5408_v16 = vpop.f32.mrf.mxu0 }
 0x7f1   : > { %9518 = vmatmul.mubr.msk.f32.gmra.mxu0 %vm962_vm0, %v10252_v58  ;;  %9520 = vmatmul.mubr.msk.f32.gmra.mxu1 %vm962_vm0, %v10255_v63  ;;  %v5923_v58 = vld [vmem:[%s15386_s23 + $0xe8] sm:$0xff]  ;;  %v5925_v63 = vld [vmem:[%s15386_s23 + $0xf8] sm:$0xff] }
 0x7f2   : > { %5737 = vmatprep.mubr.f32.mxu1 %v15131_v0  ;;  %10299 = vmatprep.mubr.msk.f32.mxu0 %vm962_vm0, %v5894_v39  ;;  %v10261_v11 = vpop.f32.mrf.mxu0 }
 0x7f4   : > { %v5418_v43 = vpop.f32.mrf.mxu0 }
 0x7f5   : > { %9521 = vmatmul.mubr.msk.f32.gmra.mxu1 %vm962_vm0, %v5408_v16  ;;  %10300 = vmatmul.mubr.msk.f32.vlgmr.msra.gmra.mxu0 %vm962_vm0, %v5895_v48  ;;  %v13602_v16 = vld [vmem:[#allocation19] sm:$0xff] }
 0x7f6   : > { %5743 = vmatprep.mubr.f32.mxu1 %v15131_v0  ;;  %10302 = vmatprep.mubr.msk.f32.mxu0 %vm962_vm0, %v5896_v3  ;;  %v10264_v12 = vpop.f32.mrf.mxu0  ;;  %15388 = vst [vmem:[#allocation96_spill] sm:$0xff] %v13602_v16 }
 0x7f7   : > { %6376 = vmatpush1.msra.mxu0 %v6249_v15 }
 0x7f8   : > { %v5428_v17 = vpop.f32.mrf.mxu0 }
 0x7f9   : > { %9522 = vmatmul.mubr.msk.f32.gmra.mxu1 %vm962_vm0, %v10258_v38  ;;  %10303 = vmatmul.mubr.msk.f32.gmra.mxu0 %vm962_vm0, %v5897_v60  ;;  %v13598_v38 = vld [vmem:[#allocation19 + $0x8] sm:$0xff] }
 0x7fa   : > { %5749 = vmatprep.mubr.f32.mxu1 %v15131_v0  ;;  %10305 = vmatprep.mubr.msk.f32.mxu0 %vm962_vm0, %v5898_v62  ;;  %v10267_v49 = vpop.f32.mrf.mxu0  ;;  %15387 = vst [vmem:[#allocation95_spill] sm:$0xff] %v13598_v38 }
 0x7fb   : > { %6377 = vmatprep.subr.mxu0 %v13598_v38 }
 0x7fc   : > { %v5438_v6 = vpop.f32.mrf.mxu0  ;;  %6378 = vmatpush1.msra.mxu0 %v13602_v16 }
 0x7fd   : > { %9523 = vmatmul.mubr.msk.f32.gmra.mxu1 %vm962_vm0, %v5418_v43  ;;  %10306 = vmatmul.mubr.msk.f32.gmra.mxu0 %vm962_vm0, %v5899_v26 }
 0x7fe   : > { %5755 = vmatprep.mubr.f32.mxu1 %v15131_v0  ;;  %10308 = vmatprep.mubr.msk.f32.mxu0 %vm962_vm0, %v5900_v47  ;;  %v10270_v13 = vpop.f32.mrf.mxu0 }
 0x7ff   : > { %7444 = vmatprep.subr.mxu0 %v13244_v55 }
 0x800   : > { %v5448_v45 = vpop.f32.mrf.mxu0 }
 0x801   : > { %9524 = vmatmul.mubr.msk.f32.gmra.mxu1 %vm962_vm0, %v10261_v11  ;;  %10309 = vmatmul.mubr.msk.f32.gmra.mxu0 %vm962_vm0, %v5901_v32 }
 0x802   : > { %5761 = vmatprep.mubr.f32.mxu1 %v15131_v0  ;;  %10311 = vmatprep.mubr.msk.f32.mxu0 %vm962_vm0, %v5902_v46  ;;  %v10273_v19 = vpop.f32.mrf.mxu0 }
 0x804   : > { %v5458_v24 = vpop.f32.mrf.mxu0 }
 0x805   : > { %9525 = vmatmul.mubr.msk.f32.gmra.mxu1 %vm962_vm0, %v5428_v17  ;;  %10312 = vmatmul.mubr.msk.f32.gmra.mxu0 %vm962_vm0, %v5903_v21 }
 0x806   : > { %5767 = vmatprep.mubr.f32.mxu1 %v15131_v0  ;;  %10314 = vmatprep.mubr.msk.f32.mxu0 %vm962_vm0, %v5904_v50  ;;  %v10276_v27 = vpop.f32.mrf.mxu0 }
 0x808   : > { %v5468_v1 = vpop.f32.mrf.mxu0 }
 0x809   : > { %9526 = vmatmul.mubr.msk.f32.gmra.mxu1 %vm962_vm0, %v10264_v12  ;;  %10315 = vmatmul.mubr.msk.f32.gmra.mxu0 %vm962_vm0, %v5905_v14 }
 0x80a   : > { %5773 = vmatprep.mubr.f32.mxu1 %v15131_v0  ;;  %10317 = vmatprep.mubr.msk.f32.mxu0 %vm962_vm0, %v5906_v56  ;;  %v10279_v53 = vpop.f32.mrf.mxu0 }
 0x80c   : > { %v5478_v41 = vpop.f32.mrf.mxu0 }
 0x80d   : > { %9527 = vmatmul.mubr.msk.f32.gmra.mxu1 %vm962_vm0, %v5438_v6  ;;  %10318 = vmatmul.mubr.msk.f32.gmra.mxu0 %vm962_vm0, %v5907_v20 }
 0x80e   : > { %5779 = vmatprep.mubr.f32.mxu1 %v15131_v0  ;;  %10320 = vmatprep.mubr.msk.f32.mxu0 %vm962_vm0, %v5908_v52  ;;  %v10282_v30 = vpop.f32.mrf.mxu0 }
 0x810   : > { %v5488_v31 = vpop.f32.mrf.mxu0 }
 0x811   : > { %9528 = vmatmul.mubr.msk.f32.gmra.mxu1 %vm962_vm0, %v10267_v49  ;;  %10321 = vmatmul.mubr.msk.f32.gmra.mxu0 %vm962_vm0, %v5909_v18 }
 0x812   : > { %5785 = vmatprep.mubr.f32.mxu1 %v15131_v0  ;;  %10323 = vmatprep.mubr.msk.f32.mxu0 %vm962_vm0, %v5910_v36  ;;  %v10285_v39 = vpop.f32.mrf.mxu0 }
 0x814   : > { %v5498_v48 = vpop.f32.mrf.mxu0 }
 0x815   : > { %9529 = vmatmul.mubr.msk.f32.gmra.mxu1 %vm962_vm0, %v5448_v45  ;;  %10324 = vmatmul.mubr.msk.f32.gmra.mxu0 %vm962_vm0, %v5911_v40 }
 0x816   : > { %5791 = vmatprep.mubr.f32.mxu1 %v15131_v0  ;;  %10326 = vmatprep.mubr.msk.f32.mxu0 %vm962_vm0, %v5912_v34  ;;  %v10288_v3 = vpop.f32.mrf.mxu0 }
 0x818   : > { %v5508_v15 = vpop.f32.mrf.mxu0 }
 0x819   : > { %9530 = vmatmul.mubr.msk.f32.gmra.mxu1 %vm962_vm0, %v10270_v13  ;;  %10327 = vmatmul.mubr.msk.f32.gmra.mxu0 %vm962_vm0, %v5913_v29  ;;  %v13677_v29 = vpop.f32.mrf.mxu1 }
 0x81a   : > { %5797 = vmatprep.mubr.f32.mxu1 %v15131_v0  ;;  %10329 = vmatprep.mubr.msk.f32.mxu0 %vm962_vm0, %v5914_v10  ;;  %v10291_v55 = vpop.f32.mrf.mxu0  ;;  %15394 = vst [vmem:[#allocation102_spill] sm:$0xff] %v13677_v29 }
 0x81c   : > { %v5518_v11 = vpop.f32.mrf.mxu0 }
 0x81d   : > { %9531 = vmatmul.mubr.msk.f32.gmra.mxu1 %vm962_vm0, %v5458_v24  ;;  %10330 = vmatmul.mubr.msk.f32.gmra.mxu0 %vm962_vm0, %v5915_v57  ;;  %v13681_v24 = vpop.f32.mrf.mxu1 }
 0x81e   : > { %5803 = vmatprep.mubr.f32.mxu1 %v15131_v0  ;;  %10332 = vmatprep.mubr.msk.f32.mxu0 %vm962_vm0, %v5916_v7  ;;  %v10294_v60 = vpop.f32.mrf.mxu0  ;;  %15395 = vst [vmem:[#allocation103_spill] sm:$0xff] %v13681_v24 }
 0x81f   : > { %v13685_v7 = vpop.f32.mrf.mxu1 }
 0x820   : > { %v5528_v62 = vpop.f32.mrf.mxu0  ;;  %15396 = vst [vmem:[#allocation104_spill] sm:$0xff] %v13685_v7 }
 0x821   : > { %9532 = vmatmul.mubr.msk.f32.gmra.mxu1 %vm962_vm0, %v10273_v19  ;;  %10333 = vmatmul.mubr.msk.f32.gmra.mxu0 %vm962_vm0, %v5917_v8  ;;  %v13689_v8 = vpop.f32.mrf.mxu1 }
 0x822   : > { %5809 = vmatprep.mubr.f32.mxu1 %v15131_v0  ;;  %10335 = vmatprep.mubr.msk.f32.mxu0 %vm962_vm0, %v5918_v37  ;;  %15397 = vst [vmem:[#allocation105_spill] sm:$0xff] %v13689_v8 }
 0x825   : > { %9533 = vmatmul.mubr.msk.f32.gmra.mxu1 %vm962_vm0, %v5468_v1  ;;  %10336 = vmatmul.mubr.msk.f32.gmra.mxu0 %vm962_vm0, %v5919_v2  ;;  %v13693_v1 = vpop.f32.mrf.mxu1 }
 0x826   : > { %5815 = vmatprep.mubr.f32.mxu1 %v15131_v0  ;;  %10338 = vmatprep.mubr.msk.f32.mxu0 %vm962_vm0, %v5920_v51  ;;  %15398 = vst [vmem:[#allocation106_spill] sm:$0xff] %v13693_v1 }
 0x827   : > { %v13697_v51 = vpop.f32.mrf.mxu1 }
 0x828   : > { %15399 = vst [vmem:[#allocation107_spill] sm:$0xff] %v13697_v51 }
 0x829   : > { %9534 = vmatmul.mubr.msk.f32.gmra.mxu1 %vm962_vm0, %v10276_v27  ;;  %10339 = vmatmul.mubr.msk.f32.gmra.mxu0 %vm962_vm0, %v5921_v42  ;;  %v13701_v42 = vpop.f32.mrf.mxu1 }
 0x82a   : > { %5821 = vmatprep.mubr.f32.mxu1 %v15131_v0  ;;  %10341 = vmatprep.mubr.msk.f32.mxu0 %vm962_vm0, %v5922_v4  ;;  %15400 = vst [vmem:[#allocation108_spill] sm:$0xff] %v13701_v42 }
 0x82d   : > { %9535 = vmatmul.mubr.msk.f32.gmra.mxu1 %vm962_vm0, %v5478_v41  ;;  %10342 = vmatmul.mubr.msk.f32.gmra.mxu0 %vm962_vm0, %v5923_v58  ;;  %v13705_v41 = vpop.f32.mrf.mxu1 }
 0x82e   : > { %5827 = vmatprep.mubr.f32.mxu1 %v15131_v0  ;;  %10344 = vmatprep.mubr.msk.f32.mxu0 %vm962_vm0, %v5924_v5  ;;  %15401 = vst [vmem:[#allocation109_spill] sm:$0xff] %v13705_v41 }
 0x831   : > { %9536 = vmatmul.mubr.msk.f32.gmra.mxu1 %vm962_vm0, %v10279_v53  ;;  %10345 = vmatmul.mubr.msk.f32.gmra.mxu0 %vm962_vm0, %v5925_v63 }
 0x832   : > { %5833 = vmatprep.mubr.f32.mxu1 %v15131_v0  ;;  %6411 = vmatprep.mubr.f32.mxu0 %v15131_v0 }
 0x835   : > { %9537 = vmatmul.mubr.msk.f32.gmra.mxu1 %vm962_vm0, %v5488_v31 }
 0x836   : > { %5839 = vmatprep.mubr.f32.mxu1 %v15131_v0 }
 0x839   : > { %9538 = vmatmul.mubr.msk.f32.gmra.mxu1 %vm962_vm0, %v10282_v30 }
 0x83a   : > { %5845 = vmatprep.mubr.f32.mxu1 %v15131_v0 }
 0x83d   : > { %9539 = vmatmul.mubr.msk.f32.gmra.mxu1 %vm962_vm0, %v5498_v48 }
 0x83e   : > { %5851 = vmatprep.mubr.f32.mxu1 %v15131_v0 }
 0x841   : > { %9540 = vmatmul.mubr.msk.f32.gmra.mxu1 %vm962_vm0, %v10285_v39 }
 0x842   : > { %5857 = vmatprep.mubr.f32.mxu1 %v15131_v0 }
 0x845   : > { %9541 = vmatmul.mubr.msk.f32.gmra.mxu1 %vm962_vm0, %v5508_v15 }
 0x846   : > { %5863 = vmatprep.mubr.f32.mxu1 %v15131_v0 }
 0x849   : > { %9542 = vmatmul.mubr.msk.f32.gmra.mxu1 %vm962_vm0, %v10288_v3 }
 0x84a   : > { %5869 = vmatprep.mubr.f32.mxu1 %v15131_v0 }
 0x84d   : > { %9543 = vmatmul.mubr.msk.f32.gmra.mxu1 %vm962_vm0, %v5518_v11 }
 0x84e   : > { %5875 = vmatprep.mubr.f32.mxu1 %v15131_v0 }
 0x851   : > { %9544 = vmatmul.mubr.msk.f32.gmra.mxu1 %vm962_vm0, %v10291_v55 }
 0x852   : > { %5881 = vmatprep.mubr.f32.mxu1 %v15131_v0 }
 0x855   : > { %9545 = vmatmul.mubr.msk.f32.gmra.mxu1 %vm962_vm0, %v5528_v62 }
 0x856   : > { %5887 = vmatprep.mubr.f32.mxu1 %v15131_v0 }
 0x859   : > { %9546 = vmatmul.mubr.msk.f32.gmra.mxu1 %vm962_vm0, %v10294_v60 }
 0x85a   : > { %6732 = vmatprep.mubr.f32.mxu1 %v13408_v22 }
 0x8a5   : > { %v13624_v43 = vpop.f32.mrf.mxu0 }
 0x8a6   : > { %15389 = vst [vmem:[#allocation97_spill] sm:$0xff] %v13624_v43 }
 0x8a7   : > { %v13626_v26 = vpop.f32.mrf.mxu0 }
 0x8a8   : > { %15390 = vst [vmem:[#allocation98_spill] sm:$0xff] %v13626_v26 }
 0x8a9   : > { %v13628_v47 = vpop.f32.mrf.mxu0 }
 0x8aa   : > { %15391 = vst [vmem:[#allocation99_spill] sm:$0xff] %v13628_v47 }
 0x8ab   : > { %v13630_v12 = vpop.f32.mrf.mxu0 }
 0x8ac   : > { %15392 = vst [vmem:[#allocation100_spill] sm:$0xff] %v13630_v12 }
 0x8ad   : > { %v13632_v32 = vpop.f32.mrf.mxu0  ;;  %v13709_v5 = vpop.f32.mrf.mxu1 }
 0x8ae   : > { %15393 = vst [vmem:[#allocation101_spill] sm:$0xff] %v13632_v32 }
 0x8af   : > { %v13634_v46 = vpop.f32.mrf.mxu0  ;;  %v13713_v63 = vpop.f32.mrf.mxu1 }
 0x8b1   : > { %v13636_v17 = vpop.f32.mrf.mxu0  ;;  %v13717_v39 = vpop.f32.mrf.mxu1 }
 0x8b3   : > { %v13638_v21 = vpop.f32.mrf.mxu0  ;;  %v13721_v3 = vpop.f32.mrf.mxu1 }
 0x8b5   : > { %v10301_v50 = vpop.f32.mrf.mxu0  ;;  %v13725_v55 = vpop.f32.mrf.mxu1 }
 0x8b7   : > { %v6088_v49 = vpop.f32.mrf.mxu0  ;;  %v13729_v60 = vpop.f32.mrf.mxu1 }
 0x8b8   : > { %9579 = vmatmul.mubr.msk.f32.vlgmr.msra.gmra.mxu0 %vm962_vm0, %v6088_v49 }
 0x8b9   : > { %6417 = vmatprep.mubr.f32.mxu0 %v15131_v0  ;;  %7445 = vmatpush1.msra.mxu0 %v13261_v23  ;;  %v10304_v22 = vpop.f32.mrf.mxu0 }
 0x8ba   : > { %7446 = vmatprep.subr.mxu0 %v13388_v9 }
 0x8bb   : > { %7447 = vmatpush1.msra.mxu0 %v13392_v28  ;;  %v6098_v14 = vpop.f32.mrf.mxu0 }
 0x8bc   : > { %9580 = vmatmul.mubr.msk.f32.gmra.mxu0 %vm962_vm0, %v10301_v50  ;;  %v13733_v50 = vpop.f32.mrf.mxu1 }
 0x8bd   : > { %6423 = vmatprep.mubr.f32.mxu0 %v15131_v0  ;;  %v10307_v56 = vpop.f32.mrf.mxu0 }
 0x8be   : > { %v13737_v49 = vpop.f32.mrf.mxu1 }
 0x8bf   : > { %v6108_v23 = vpop.f32.mrf.mxu0 }
 0x8c0   : > { %9581 = vmatmul.mubr.msk.f32.gmra.mxu0 %vm962_vm0, %v6098_v14 }
 0x8c1   : > { %6429 = vmatprep.mubr.f32.mxu0 %v15131_v0  ;;  %v10310_v9 = vpop.f32.mrf.mxu0 }
 0x8c3   : > { %v6118_v28 = vpop.f32.mrf.mxu0 }
 0x8c4   : > { %9582 = vmatmul.mubr.msk.f32.gmra.mxu0 %vm962_vm0, %v10304_v22  ;;  %v13739_v22 = vpop.f32.mrf.mxu1 }
 0x8c5   : > { %6435 = vmatprep.mubr.f32.mxu0 %v15131_v0  ;;  %v10313_v6 = vpop.f32.mrf.mxu0 }
 0x8c6   : > { %v13741_v14 = vpop.f32.mrf.mxu1 }
 0x8c7   : > { %v6128_v20 = vpop.f32.mrf.mxu0 }
 0x8c8   : > { %9583 = vmatmul.mubr.msk.f32.gmra.mxu0 %vm962_vm0, %v6108_v23 }
 0x8c9   : > { %6441 = vmatprep.mubr.f32.mxu0 %v15131_v0  ;;  %v10316_v52 = vpop.f32.mrf.mxu0 }
 0x8cb   : > { %v6138_v13 = vpop.f32.mrf.mxu0 }
 0x8cc   : > { %9584 = vmatmul.mubr.msk.f32.gmra.mxu0 %vm962_vm0, %v10307_v56  ;;  %v13743_v56 = vpop.f32.mrf.mxu1 }
 0x8cd   : > { %6447 = vmatprep.mubr.f32.mxu0 %v15131_v0  ;;  %v10319_v18 = vpop.f32.mrf.mxu0 }
 0x8ce   : > { %v13745_v23 = vpop.f32.mrf.mxu1 }
 0x8cf   : > { %v6148_v36 = vpop.f32.mrf.mxu0 }
 0x8d0   : > { %9585 = vmatmul.mubr.msk.f32.gmra.mxu0 %vm962_vm0, %v6118_v28 }
 0x8d1   : > { %6453 = vmatprep.mubr.f32.mxu0 %v15131_v0  ;;  %v10322_v45 = vpop.f32.mrf.mxu0 }
 0x8d3   : > { %v6158_v40 = vpop.f32.mrf.mxu0 }
 0x8d4   : > { %9586 = vmatmul.mubr.msk.f32.gmra.mxu0 %vm962_vm0, %v10310_v9  ;;  %v13747_v9 = vpop.f32.mrf.mxu1 }
 0x8d5   : > { %6459 = vmatprep.mubr.f32.mxu0 %v15131_v0  ;;  %v10325_v34 = vpop.f32.mrf.mxu0 }
 0x8d6   : > { %v13749_v28 = vpop.f32.mrf.mxu1 }
 0x8d7   : > { %v6168_v19 = vpop.f32.mrf.mxu0 }
 0x8d8   : > { %9587 = vmatmul.mubr.msk.f32.gmra.mxu0 %vm962_vm0, %v6128_v20 }
 0x8d9   : > { %6465 = vmatprep.mubr.f32.mxu0 %v15131_v0  ;;  %v10328_v10 = vpop.f32.mrf.mxu0 }
 0x8db   : > { %v6178_v57 = vpop.f32.mrf.mxu0 }
 0x8dc   : > { %9588 = vmatmul.mubr.msk.f32.gmra.mxu0 %vm962_vm0, %v10313_v6  ;;  %v13751_v6 = vpop.f32.mrf.mxu1 }
 0x8dd   : > { %6471 = vmatprep.mubr.f32.mxu0 %v15131_v0  ;;  %v10331_v27 = vpop.f32.mrf.mxu0 }
 0x8de   : > { %v13753_v20 = vpop.f32.mrf.mxu1 }
 0x8df   : > { %v6188_v37 = vpop.f32.mrf.mxu0 }
 0x8e0   : > { %9589 = vmatmul.mubr.msk.f32.gmra.mxu0 %vm962_vm0, %v6138_v13 }
 0x8e1   : > { %6477 = vmatprep.mubr.f32.mxu0 %v15131_v0  ;;  %v10334_v2 = vpop.f32.mrf.mxu0 }
 0x8e3   : > { %v6198_v53 = vpop.f32.mrf.mxu0 }
 0x8e4   : > { %9590 = vmatmul.mubr.msk.f32.gmra.mxu0 %vm962_vm0, %v10316_v52  ;;  %v13755_v52 = vpop.f32.mrf.mxu1 }
 0x8e5   : > { %6483 = vmatprep.mubr.f32.mxu0 %v15131_v0  ;;  %v10337_v4 = vpop.f32.mrf.mxu0 }
 0x8e6   : > { %v13757_v13 = vpop.f32.mrf.mxu1 }
 0x8e7   : > { %v6208_v58 = vpop.f32.mrf.mxu0 }
 0x8e8   : > { %9591 = vmatmul.mubr.msk.f32.gmra.mxu0 %vm962_vm0, %v6148_v36 }
 0x8e9   : > { %6489 = vmatprep.mubr.f32.mxu0 %v15131_v0  ;;  %v10340_v30 = vpop.f32.mrf.mxu0 }
 0x8eb   : > { %v6218_v31 = vpop.f32.mrf.mxu0 }
 0x8ec   : > { %9592 = vmatmul.mubr.msk.f32.gmra.mxu0 %vm962_vm0, %v10319_v18  ;;  %v13759_v18 = vpop.f32.mrf.mxu1 }
 0x8ed   : > { %6495 = vmatprep.mubr.f32.mxu0 %v15131_v0  ;;  %v10343_v48 = vpop.f32.mrf.mxu0 }
 0x8ee   : > { %v5783_v36 = vpop.f32.mrf.mxu1 }
 0x8ef   : > { %v6228_v15 = vpop.f32.mrf.mxu0 }
 0x8f0   : > { %9593 = vmatmul.mubr.msk.f32.gmra.mxu0 %vm962_vm0, %v6158_v40 }
 0x8f1   : > { %6501 = vmatprep.mubr.f32.mxu0 %v15131_v0  ;;  %v10346_v11 = vpop.f32.mrf.mxu0 }
 0x8f3   : > { %v6238_v62 = vpop.f32.mrf.mxu0 }
 0x8f4   : > { %9594 = vmatmul.mubr.msk.f32.gmra.mxu0 %vm962_vm0, %v10322_v45  ;;  %v5787_v45 = vpop.f32.mrf.mxu1 }
 0x8f5   : > { %6507 = vmatprep.mubr.f32.mxu0 %v15131_v0 }
 0x8f6   : > { %v5789_v40 = vpop.f32.mrf.mxu1 }
 0x8f8   : > { %9595 = vmatmul.mubr.msk.f32.gmra.mxu0 %vm962_vm0, %v6168_v19 }
 0x8f9   : > { %6513 = vmatprep.mubr.f32.mxu0 %v15131_v0 }
 0x8fc   : > { %9596 = vmatmul.mubr.msk.f32.gmra.mxu0 %vm962_vm0, %v10325_v34  ;;  %v5793_v34 = vpop.f32.mrf.mxu1 }
 0x8fd   : > { %6519 = vmatprep.mubr.f32.mxu0 %v15131_v0 }
 0x8fe   : > { %v5795_v19 = vpop.f32.mrf.mxu1 }
 0x900   : > { %9597 = vmatmul.mubr.msk.f32.gmra.mxu0 %vm962_vm0, %v6178_v57  ;;  %v13763_v57 = vpop.f32.mrf.mxu1 }
 0x901   : > { %6525 = vmatprep.mubr.f32.mxu0 %v15131_v0  ;;  %15403 = vst [vmem:[#allocation111_spill] sm:$0xff] %v13763_v57 }
 0x904   : > { %9598 = vmatmul.mubr.msk.f32.gmra.mxu0 %vm962_vm0, %v10328_v10 }
 0x905   : > { %6531 = vmatprep.mubr.f32.mxu0 %v15131_v0 }
 0x908   : > { %9599 = vmatmul.mubr.msk.f32.gmra.mxu0 %vm962_vm0, %v6188_v37 }
 0x909   : > { %6537 = vmatprep.mubr.f32.mxu0 %v15131_v0 }
 0x90c   : > { %9600 = vmatmul.mubr.msk.f32.gmra.mxu0 %vm962_vm0, %v10331_v27 }
 0x90d   : > { %6543 = vmatprep.mubr.f32.mxu0 %v15131_v0 }
 0x910   : > { %9601 = vmatmul.mubr.msk.f32.gmra.mxu0 %vm962_vm0, %v6198_v53 }
 0x911   : > { %6549 = vmatprep.mubr.f32.mxu0 %v15131_v0 }
 0x914   : > { %9602 = vmatmul.mubr.msk.f32.gmra.mxu0 %vm962_vm0, %v10334_v2  ;;  %v13769_v2 = vpop.f32.mrf.mxu1 }
 0x915   : > { %6555 = vmatprep.mubr.f32.mxu0 %v15131_v0  ;;  %15406 = vst [vmem:[#allocation114_spill] sm:$0xff] %v13769_v2 }
 0x918   : > { %9603 = vmatmul.mubr.msk.f32.gmra.mxu0 %vm962_vm0, %v6208_v58  ;;  %v13775_v58 = vpop.f32.mrf.mxu1 }
 0x919   : > { %6561 = vmatprep.mubr.f32.mxu0 %v15131_v0  ;;  %15409 = vst [vmem:[#allocation117_spill] sm:$0xff] %v13775_v58 }
 0x91c   : > { %9604 = vmatmul.mubr.msk.f32.gmra.mxu0 %vm962_vm0, %v10337_v4 }
 0x91d   : > { %6567 = vmatprep.mubr.f32.mxu0 %v15131_v0 }
 0x920   : > { %9605 = vmatmul.mubr.msk.f32.gmra.mxu0 %vm962_vm0, %v6218_v31 }
 0x921   : > { %6573 = vmatprep.mubr.f32.mxu0 %v15131_v0 }
 0x924   : > { %9606 = vmatmul.mubr.msk.f32.gmra.mxu0 %vm962_vm0, %v10340_v30 }
 0x925   : > { %6579 = vmatprep.mubr.f32.mxu0 %v15131_v0 }
 0x928   : > { %9607 = vmatmul.mubr.msk.f32.gmra.mxu0 %vm962_vm0, %v6228_v15 }
 0x929   : > { %6585 = vmatprep.mubr.f32.mxu0 %v15131_v0 }
 0x92c   : > { %9608 = vmatmul.mubr.msk.f32.gmra.mxu0 %vm962_vm0, %v10343_v48  ;;  %v13781_v48 = vpop.f32.mrf.mxu1 }
 0x92d   : > { %6591 = vmatprep.mubr.f32.mxu0 %v15131_v0  ;;  %15411 = vst [vmem:[#allocation119_spill] sm:$0xff] %v13781_v48 }
 0x930   : > { %9609 = vmatmul.mubr.msk.f32.gmra.mxu0 %vm962_vm0, %v6238_v62  ;;  %v13787_v62 = vpop.f32.mrf.mxu1 }
 0x931   : > { %6597 = vmatprep.mubr.f32.mxu0 %v15131_v0  ;;  %15412 = vst [vmem:[#allocation120_spill] sm:$0xff] %v13787_v62 }
 0x932   : > { %v13793_v38 = vpop.f32.mrf.mxu1 }
 0x933   : > { %15413 = vst [vmem:[#allocation121_spill] sm:$0xff] %v13793_v38 }
 0x934   : > { %9610 = vmatmul.mubr.msk.f32.gmra.mxu0 %vm962_vm0, %v10346_v11  ;;  %v13799_v1 = vpop.f32.mrf.mxu1 }
 0x935   : > { %7480 = vmatprep.mubr.f32.mxu0 %v15131_v0  ;;  %15414 = vst [vmem:[#allocation122_spill] sm:$0xff] %v13799_v1 }
 0x936   : > { %v13805_v33 = vpop.f32.mrf.mxu1 }
 0x937   : > { %15415 = vst [vmem:[#allocation123_spill] sm:$0xff] %v13805_v33 }
 0x938   : > { %v13811_v7 = vpop.f32.mrf.mxu1 }
 0x939   : > { %15416 = vst [vmem:[#allocation124_spill] sm:$0xff] %v13811_v7 }
 0x93a   : > { %v13813_v24 = vpop.f32.mrf.mxu1 }
 0x93b   : > { %15417 = vst [vmem:[#allocation125_spill] sm:$0xff] %v13813_v24 }
 0x93c   : > { %v13815_v25 = vpop.f32.mrf.mxu1 }
 0x93d   : > { %15418 = vst [vmem:[#allocation126_spill] sm:$0xff] %v13815_v25 }
 0x93e   : > { %v13817_v58 = vpop.f32.mrf.mxu1 }
 0x93f   : > { %15419 = vst [vmem:[#allocation127_spill] sm:$0xff] %v13817_v58 }
 0x940   : > { %v13819_v38 = vpop.f32.mrf.mxu1 }
 0x941   : > { %15420 = vst [vmem:[#allocation128_spill] sm:$0xff] %v13819_v38 }
 0x978   : > { %v13761_v10 = vpop.f32.mrf.mxu0 }
 0x979   : > { %15402 = vst [vmem:[#allocation110_spill] sm:$0xff] %v13761_v10  ;;  %v13821_v10 = vpop.f32.mrf.mxu1 }
 0x97a   : > { %v13765_v27 = vpop.f32.mrf.mxu0  ;;  %15421 = vst [vmem:[#allocation129_spill] sm:$0xff] %v13821_v10 }
 0x97b   : > { %15404 = vst [vmem:[#allocation112_spill] sm:$0xff] %v13765_v27  ;;  %v13823_v27 = vpop.f32.mrf.mxu1 }
 0x97c   : > { %v13767_v37 = vpop.f32.mrf.mxu0  ;;  %15422 = vst [vmem:[#allocation130_spill] sm:$0xff] %v13823_v27 }
 0x97d   : > { %15405 = vst [vmem:[#allocation113_spill] sm:$0xff] %v13767_v37  ;;  %v13825_v37 = vpop.f32.mrf.mxu1 }
 0x97e   : > { %v13771_v53 = vpop.f32.mrf.mxu0 }
 0x97f   : > { %15407 = vst [vmem:[#allocation115_spill] sm:$0xff] %v13771_v53  ;;  %v13829_v38 = vpop.f32.mrf.mxu1 }
 0x980   : > { %v13773_v4 = vpop.f32.mrf.mxu0 }
 0x981   : > { %15408 = vst [vmem:[#allocation116_spill] sm:$0xff] %v13773_v4 }
 0x982   : > { %v13777_v30 = vpop.f32.mrf.mxu0 }
 0x983   : > { %15410 = vst [vmem:[#allocation118_spill] sm:$0xff] %v13777_v30 }
 0x984   : > { %v13779_v31 = vpop.f32.mrf.mxu0 }
 0x986   : > { %v13783_v15 = vpop.f32.mrf.mxu0 }
 0x988   : > { %v13785_v11 = vpop.f32.mrf.mxu0 }
 0x98a   : > { %v13789_v0 = vpop.f32.mrf.mxu0 }
 0x98c   : > { %v13791_v16 = vpop.f32.mrf.mxu0 }
 0x98e   : > { %v13795_v42 = vpop.f32.mrf.mxu0 }
 0x990   : > { %v13797_v41 = vpop.f32.mrf.mxu0 }
 0x992   : > { %v13801_v51 = vpop.f32.mrf.mxu0 }
 0x994   : > { %v13803_v59 = vpop.f32.mrf.mxu0 }
 0x996   : > { %v13807_v61 = vpop.f32.mrf.mxu0 }
 0x998   : > { %v13809_v44 = vpop.f32.mrf.mxu0 }
 0x99a   : > { %v6463_v8 = vpop.f32.mrf.mxu0 }
 0x99c   : > { %v6467_v29 = vpop.f32.mrf.mxu0 }
 0x99e   : > { %v6469_v35 = vpop.f32.mrf.mxu0 }
 0x9a0   : > { %v6473_v54 = vpop.f32.mrf.mxu0 }
 0x9a2   : > { %v6475_v57 = vpop.f32.mrf.mxu0 }
 0x9a4   : > { %v6479_v2 = vpop.f32.mrf.mxu0 }
 0x9a6   : > { %v6481_v48 = vpop.f32.mrf.mxu0 }
 0x9a8   : > { %v6485_v62 = vpop.f32.mrf.mxu0 }
 0x9aa   : > { %v6487_v1 = vpop.f32.mrf.mxu0 }
 0x9ac   : > { %v6491_v33 = vpop.f32.mrf.mxu0 }
 0x9ad   : > { %v6630_v27 = vmul.f32 %v6491_v33, %v13759_v18  ;;  %v6625_v33 = vmul.f32 %v6475_v57, %v13749_v28 }
 0x9ae   : > { %v6493_v7 = vpop.f32.mrf.mxu0 }
 0x9af   : > { %v6631_v10 = vmul.f32 %v6493_v7, %v5783_v36 }
 0x9b0   : > { %v6497_v43 = vpop.f32.mrf.mxu0 }
 0x9b1   : > { %v6632_v4 = vmul.f32 %v6497_v43, %v5787_v45  ;;  %v6627_v43 = vmul.f32 %v6481_v48, %v13753_v20  ;;  %v6622_v20 = vmul.f32 %v6467_v29, %v13743_v56  ;;  %v6620_v45 = vmul.f32 %v13809_v44, %v13739_v22 }
 0x9b2   : > { %v6499_v24 = vpop.f32.mrf.mxu0  ;;  %v6618_v29 = vmul.f32 %v13803_v59, %v13733_v50  ;;  %v6616_v44 = vmul.f32 %v13797_v41, %v13725_v55  ;;  %v6614_v59 = vmul.f32 %v13791_v16, %v13717_v39  ;;  %v6612_v41 = vmul.f32 %v13785_v11, %v13709_v5  ;;  %v15425_v5 = vld [vmem:[#allocation116_spill] sm:$0xff] }
 0x9b3   : > { %v6633_v12 = vmul.f32 %v6499_v24, %v5789_v40  ;;  %v6610_v16 = vmul.f32 %v13779_v31, %v13636_v17  ;;  %v15426_v40 = vld [vmem:[#allocation100_spill] sm:$0xff]  ;;  %v15429_v17 = vld [vmem:[#allocation113_spill] sm:$0xff]  ;;  %v15433_v31 = vld [vmem:[#allocation110_spill] sm:$0xff] }
 0x9b4   : > { %v6503_v26 = vpop.f32.mrf.mxu0 }
 0x9b5   : > { %v6634_v53 = vmul.f32 %v6503_v26, %v5793_v34  ;;  %v13837_v26 = vpop.f32.mrf.mxu1 }
 0x9b6   : > { %v6505_v25 = vpop.f32.mrf.mxu0 }
 0x9b7   : > { %v6635_v47 = vmul.f32 %v6505_v25, %v5795_v19  ;;  %v6629_v25 = vmul.f32 %v6487_v1, %v13757_v13  ;;  %v13847_v1 = vpop.f32.mrf.mxu1  ;;  %v6624_v13 = vmul.f32 %v6473_v54, %v13747_v9  ;;  %v15428_v19 = vld [vmem:[#allocation99_spill] sm:$0xff] }
 0x9b8   : > { %v13827_v58 = vpop.f32.mrf.mxu0 }
 0x9b9   : > { %6668 = vmatprep.subr.mxu1 %v6635_v47  ;;  %v6628_v47 = vmul.f32 %v6485_v62, %v13755_v52  ;;  %v6623_v52 = vmul.f32 %v6469_v35, %v13745_v23  ;;  %v13857_v28 = vpop.f32.mrf.mxu1  ;;  %v6619_v35 = vmul.f32 %v13807_v61, %v13737_v49  ;;  %v6615_v61 = vmul.f32 %v13795_v42, %v13721_v3  ;;  %v15424_v49 = vld [vmem:[#allocation101_spill] sm:$0xff] }
 0x9ba   : > { %v13831_v32 = vpop.f32.mrf.mxu0  ;;  %6669 = vmatpush1.msra.mxu1 %v6634_v53  ;;  %v6611_v42 = vmul.f32 %v13783_v15, %v13638_v21  ;;  %v6608_v23 = vmul.f32 %v15425_v5, %v15424_v49  ;;  %v15427_v21 = vld [vmem:[#allocation115_spill] sm:$0xff] }
 0x9bb   : > { %6670 = vmatprep.subr.mxu1 %v6633_v12  ;;  %v6626_v12 = vmul.f32 %v6479_v2, %v13751_v6  ;;  %v6621_v6 = vmul.f32 %v6463_v8, %v13741_v14  ;;  %v6617_v8 = vmul.f32 %v13801_v51, %v13729_v60  ;;  %v13871_v14 = vpop.f32.mrf.mxu1  ;;  %v6613_v51 = vmul.f32 %v13789_v0, %v13713_v63  ;;  %v15423_v0 = vld [vmem:[#allocation118_spill] sm:$0xff] }
 0x9bc   : > { %v13834_v30 = vpop.f32.mrf.mxu0  ;;  %6671 = vmatpush1.msra.mxu1 %v6632_v4  ;;  %v6609_v63 = vmul.f32 %v15423_v0, %v13634_v46  ;;  %v6607_v34 = vmul.f32 %v15427_v21, %v15426_v40  ;;  %v15431_v46 = vld [vmem:[#allocation112_spill] sm:$0xff]  ;;  %v15432_v4 = vld [vmem:[#allocation97_spill] sm:$0xff] }
 0x9bd   : > { %6672 = vmatprep.subr.mxu1 %v6631_v10  ;;  %v13885_v60 = vpop.f32.mrf.mxu1  ;;  %v6606_v10 = vmul.f32 %v15429_v17, %v15428_v19  ;;  %v6604_v48 = vmul.f32 %v15433_v31, %v15432_v4 }
 0x9be   : > { %v13840_v24 = vpop.f32.mrf.mxu0  ;;  %6673 = vmatpush1.msra.mxu1 %v6630_v27  ;;  %v15430_v27 = vld [vmem:[#allocation98_spill] sm:$0xff] }
 0x9bf   : > { %6674 = vmatprep.subr.mxu1 %v6629_v25  ;;  %v5865_v3 = vpop.f32.mrf.mxu1  ;;  %v6605_v2 = vmul.f32 %v15431_v46, %v15430_v27 }
 0x9c0   : > { %v13844_v7 = vpop.f32.mrf.mxu0  ;;  %6675 = vmatpush1.msra.mxu1 %v6628_v47 }
 0x9c1   : > { %6676 = vmatprep.subr.mxu1 %v6627_v43  ;;  %v5867_v53 = vpop.f32.mrf.mxu1 }
 0x9c2   : > { %v13850_v18 = vpop.f32.mrf.mxu0  ;;  %6677 = vmatpush1.msra.mxu1 %v6626_v12 }
 0x9c3   : > { %6678 = vmatprep.subr.mxu1 %v6625_v33  ;;  %v5871_v62 = vpop.f32.mrf.mxu1 }
 0x9c4   : > { %v13854_v36 = vpop.f32.mrf.mxu0  ;;  %6679 = vmatpush1.msra.mxu1 %v6624_v13 }
 0x9c5   : > { %6680 = vmatprep.subr.mxu1 %v6623_v52  ;;  %v5873_v43 = vpop.f32.mrf.mxu1 }
 0x9c6   : > { %v13861_v54 = vpop.f32.mrf.mxu0  ;;  %6681 = vmatpush1.msra.mxu1 %v6622_v20 }
 0x9c7   : > { %6682 = vmatprep.subr.mxu1 %v6621_v6  ;;  %v5877_v13 = vpop.f32.mrf.mxu1 }
 0x9c8   : > { %v13867_v56 = vpop.f32.mrf.mxu0  ;;  %6683 = vmatpush1.msra.mxu1 %v6620_v45 }
 0x9c9   : > { %6684 = vmatprep.subr.mxu1 %v6619_v35  ;;  %v5879_v6 = vpop.f32.mrf.mxu1 }
 0x9ca   : > { %v13875_v22 = vpop.f32.mrf.mxu0  ;;  %6685 = vmatpush1.msra.mxu1 %v6618_v29 }
 0x9cb   : > { %6686 = vmatprep.subr.mxu1 %v6617_v8  ;;  %v5883_v29 = vpop.f32.mrf.mxu1 }
 0x9cc   : > { %v13881_v50 = vpop.f32.mrf.mxu0  ;;  %6687 = vmatpush1.msra.mxu1 %v6616_v44 }
 0x9cd   : > { %6688 = vmatprep.subr.mxu1 %v6615_v61  ;;  %v5885_v61 = vpop.f32.mrf.mxu1 }
 0x9ce   : > { %v13889_v55 = vpop.f32.mrf.mxu0  ;;  %6689 = vmatpush1.msra.mxu1 %v6614_v59 }
 0x9cf   : > { %6690 = vmatprep.subr.mxu1 %v6613_v51 }
 0x9d0   : > { %v13895_v39 = vpop.f32.mrf.mxu0  ;;  %6691 = vmatpush1.msra.mxu1 %v6612_v41  ;;  %v5889_v41 = vpop.f32.mrf.mxu1 }
 0x9d1   : > { %6692 = vmatprep.subr.mxu1 %v6611_v42 }
 0x9d2   : > { %v13901_v9 = vpop.f32.mrf.mxu0  ;;  %6693 = vmatpush1.msra.mxu1 %v6610_v16  ;;  %v5891_v0 = vpop.f32.mrf.mxu1 }
 0x9d3   : > { %6694 = vmatprep.subr.mxu1 %v6609_v63 }
 0x9d4   : > { %v13907_v57 = vpop.f32.mrf.mxu0  ;;  %6695 = vmatpush1.msra.mxu1 %v6608_v23 }
 0x9d5   : > { %6696 = vmatprep.subr.mxu1 %v6607_v34 }
 0x9d6   : > { %v6553_v15 = vpop.f32.mrf.mxu0  ;;  %6697 = vmatpush1.msra.mxu1 %v6606_v10 }
 0x9d7   : > { %6698 = vmatprep.subr.mxu1 %v6605_v2 }
 0x9d8   : > { %v6557_v11 = vpop.f32.mrf.mxu0  ;;  %6699 = vmatpush1.msra.mxu1 %v6604_v48 }
 0x9da   : > { %v6559_v25 = vpop.f32.mrf.mxu0 }
 0x9db   : > { %v6653_v48 = vmul.f32 %v6559_v25, %v13837_v26  ;;  %v15437_v26 = vld [vmem:[#allocation127_spill] sm:$0xff] }
 0x9dc   : > { %v6563_v47 = vpop.f32.mrf.mxu0  ;;  %v6647_v25 = vmul.f32 %v13889_v55, %v15437_v26  ;;  %v10617_v26 = vld [vmem:[%s15378_s27 + $0x28] sm:$0xff] }
 0x9dd   : > { %v6654_v31 = vmul.f32 %v6563_v47, %v13847_v1  ;;  %v15441_v47 = vld [vmem:[#allocation123_spill] sm:$0xff] }
 0x9de   : > { %v6565_v12 = vpop.f32.mrf.mxu0 }
 0x9df   : > { %v6655_v4 = vmul.f32 %v6565_v12, %v13857_v28  ;;  %v15442_v12 = vld [vmem:[#allocation122_spill] sm:$0xff] }
 0x9e0   : > { %v6569_v33 = vpop.f32.mrf.mxu0  ;;  %v6642_v55 = vmul.f32 %v13854_v36, %v15442_v12  ;;  %v10627_v12 = vld [vmem:[%s15378_s27 + $0x78] sm:$0xff] }
 0x9e1   : > { %v6656_v2 = vmul.f32 %v6569_v33, %v13871_v14  ;;  %v15435_v14 = vld [vmem:[#allocation129_spill] sm:$0xff] }
 0x9e2   : > { %v6571_v52 = vpop.f32.mrf.mxu0  ;;  %v6649_v28 = vmul.f32 %v13901_v9, %v15435_v14  ;;  %v15443_v33 = vld [vmem:[#allocation121_spill] sm:$0xff] }
 0x9e3   : > { %v6657_v46 = vmul.f32 %v6571_v52, %v13885_v60  ;;  %v15434_v60 = vld [vmem:[#allocation130_spill] sm:$0xff]  ;;  %v15445_v52 = vld [vmem:[#allocation119_spill] sm:$0xff]  ;;  %v10613_v14 = vld [vmem:[%s15378_s27 + $0x10] sm:$0xff] }
 0x9e4   : > { %v6575_v20 = vpop.f32.mrf.mxu0 }
 0x9e5   : > { %v6658_v27 = vmul.f32 %v6575_v20, %v5865_v3  ;;  %v6651_v3 = vmul.f32 %v6553_v15, %v13825_v37  ;;  %v15439_v15 = vld [vmem:[#allocation125_spill] sm:$0xff] }
 0x9e6   : > { %v6577_v45 = vpop.f32.mrf.mxu0  ;;  %v15446_v20 = vld [vmem:[#allocation117_spill] sm:$0xff] }
 0x9e7   : > { %v6659_v10 = vmul.f32 %v6577_v45, %v5867_v53  ;;  %v6652_v53 = vmul.f32 %v6557_v11, %v13829_v38  ;;  %v15438_v38 = vld [vmem:[#allocation126_spill] sm:$0xff]  ;;  %v15440_v11 = vld [vmem:[#allocation124_spill] sm:$0xff]  ;;  %v15448_v45 = vld [vmem:[#allocation111_spill] sm:$0xff] }
 0x9e8   : > { %v6581_v35 = vpop.f32.mrf.mxu0  ;;  %v6646_v37 = vmul.f32 %v13881_v50, %v15438_v38  ;;  %v6644_v9 = vmul.f32 %v13867_v56, %v15440_v11  ;;  %v6641_v50 = vmul.f32 %v13850_v18, %v15443_v33  ;;  %v6639_v56 = vmul.f32 %v13840_v24, %v15445_v52  ;;  %v15451_v24 = vld [vmem:[#allocation89_spill] sm:$0xff]  ;;  %v10619_v38 = vld [vmem:[%s15378_s27 + $0x38] sm:$0xff]  ;;  %v10629_v33 = vld [vmem:[%s15378_s27 + $0x88] sm:$0xff] }
 0x9e9   : > { %v6660_v17 = vmul.f32 %v6581_v35, %v5871_v62  ;;  %v6650_v62 = vmul.f32 %v13907_v57, %v15434_v60  ;;  %v6645_v57 = vmul.f32 %v13875_v22, %v15439_v15  ;;  %v6636_v18 = vmul.f32 %v13827_v58, %v15448_v45  ;;  %v15450_v35 = vld [vmem:[#allocation90_spill] sm:$0xff]  ;;  %v15457_v58 = vld [vmem:[#allocation91_spill] sm:$0xff]  ;;  %v10621_v15 = vld [vmem:[%s15378_s27 + $0x48] sm:$0xff] }
 0x9ea   : > { %v6583_v8 = vpop.f32.mrf.mxu0  ;;  %v10611_v60 = vld [vmem:[%s15378_s27] sm:$0xff]  ;;  %v10623_v11 = vld [vmem:[%s15378_s27 + $0x58] sm:$0xff]  ;;  %v10633_v52 = vld [vmem:[%s15378_s27 + $0xa8] sm:$0xff] }
 0x9eb   : > { %v6661_v19 = vmul.f32 %v6583_v8, %v5873_v43  ;;  %v15436_v43 = vld [vmem:[#allocation128_spill] sm:$0xff]  ;;  %v15454_v8 = vld [vmem:[#allocation105_spill] sm:$0xff]  ;;  %v10639_v45 = vld [vmem:[%s15378_s27 + $0xd8] sm:$0xff] }
 0x9ec   : > { %v6587_v44 = vpop.f32.mrf.mxu0  ;;  %v6648_v1 = vmul.f32 %v13895_v39, %v15436_v43  ;;  %v6643_v39 = vmul.f32 %v13861_v54, %v15441_v47  ;;  %v6638_v54 = vmul.f32 %v13834_v30, %v15446_v20  ;;  %v15453_v30 = vld [vmem:[#allocation102_spill] sm:$0xff]  ;;  %v10625_v47 = vld [vmem:[%s15378_s27 + $0x68] sm:$0xff] }
 0x9ed   : > { %v6662_v34 = vmul.f32 %v6587_v44, %v5877_v13  ;;  %v15444_v13 = vld [vmem:[#allocation120_spill] sm:$0xff]  ;;  %v10615_v43 = vld [vmem:[#allocation19 + $0x18] sm:$0xff] }
 0x9ee   : > { %v6589_v59 = vpop.f32.mrf.mxu0  ;;  %v6640_v22 = vmul.f32 %v13844_v7, %v15444_v13  ;;  %v15449_v7 = vld [vmem:[#allocation88_spill] sm:$0xff]  ;;  %v10631_v13 = vld [vmem:[%s15378_s27 + $0x98] sm:$0xff] }
 0x9ef   : > { %v6663_v21 = vmul.f32 %v6589_v59, %v5879_v6  ;;  %v15447_v6 = vld [vmem:[#allocation114_spill] sm:$0xff]  ;;  %v15456_v44 = vld [vmem:[#allocation92_spill] sm:$0xff]  ;;  %v15459_v59 = vld [vmem:[#allocation93_spill] sm:$0xff] }
 0x9f0   : > { %v6593_v51 = vpop.f32.mrf.mxu0  ;;  %v6637_v36 = vmul.f32 %v13831_v32, %v15447_v6  ;;  %v15455_v32 = vld [vmem:[#allocation104_spill] sm:$0xff]  ;;  %v10635_v20 = vld [vmem:[%s15378_s27 + $0xb8] sm:$0xff] }
 0x9f1   : > { %v6664_v40 = vmul.f32 %v6593_v51, %v5883_v29  ;;  %v15452_v29 = vld [vmem:[#allocation103_spill] sm:$0xff]  ;;  %v10637_v6 = vld [vmem:[%s15378_s27 + $0xc8] sm:$0xff] }
 0x9f2   : > { %v6595_v42 = vpop.f32.mrf.mxu0  ;;  %v15460_v51 = vld [vmem:[#allocation107_spill] sm:$0xff] }
 0x9f3   : > { %v6665_v23 = vmul.f32 %v6595_v42, %v5885_v61  ;;  %v15458_v61 = vld [vmem:[#allocation94_spill] sm:$0xff]  ;;  %v15462_v42 = vld [vmem:[#allocation109_spill] sm:$0xff] }
 0x9f4   : > { %v6599_v16 = vpop.f32.mrf.mxu0 }
 0x9f5   : > { %v6666_v5 = vmul.f32 %v6599_v16, %v5889_v41  ;;  %v15461_v41 = vld [vmem:[#allocation106_spill] sm:$0xff]  ;;  %v15463_v16 = vld [vmem:[#allocation108_spill] sm:$0xff] }
 0x9f6   : > { %v6601_v63 = vpop.f32.mrf.mxu0 }
 0x9f7   : > { %v6667_v49 = vmul.f32 %v6601_v63, %v5891_v0  ;;  %v15464_v0 = vmov 0.0  }
 0x9f9   : > { %6700 = vmatprep.subr.mxu1 %v6667_v49 }
 0x9fa   : > { %6701 = vmatpush2.msra.mxu1 %v6666_v5 }
 0x9fb   : > { %6702 = vmatprep.subr.mxu1 %v6665_v23 }
 0x9fc   : > { %6703 = vmatpush2.msra.mxu1 %v6664_v40 }
 0x9fd   : > { %6704 = vmatprep.subr.mxu1 %v6663_v21  ;;  %v4852_v21 = vld [vmem:[#allocation16] sm:$0xff] }
 0x9fe   : > { %6705 = vmatpush2.msra.mxu1 %v6662_v34 }
 0x9ff   : > { %6706 = vmatprep.subr.mxu1 %v6661_v19 }
 0xa00   : > { %6707 = vmatpush2.msra.mxu1 %v6660_v17  ;;  %v4853_v17 = vld [vmem:[#allocation16 + $0x8] sm:$0xff] }
 0xa01   : > { %6708 = vmatprep.subr.mxu1 %v6659_v10 }
 0xa02   : > { %6709 = vmatpush2.msra.mxu1 %v6658_v27 }
 0xa03   : > { %6710 = vmatprep.subr.mxu1 %v6657_v46 }
 0xa04   : > { %6711 = vmatpush2.msra.mxu1 %v6656_v2 }
 0xa05   : > { %6712 = vmatprep.subr.mxu1 %v6655_v4 }
 0xa06   : > { %6713 = vmatpush2.msra.mxu1 %v6654_v31 }
 0xa07   : > { %6714 = vmatprep.subr.mxu1 %v6653_v48 }
 0xa08   : > { %6715 = vmatpush2.msra.mxu1 %v6652_v53 }
 0xa09   : > { %6716 = vmatprep.subr.mxu1 %v6651_v3 }
 0xa0a   : > { %6717 = vmatpush2.msra.mxu1 %v6650_v62  ;;  %v10612_v62 = vld [vmem:[%s15378_s27 + $0x8] sm:$0xff] }
 0xa0b   : > { %6718 = vmatprep.subr.mxu1 %v6649_v28  ;;  %v10614_v28 = vld [vmem:[%s15378_s27 + $0x18] sm:$0xff] }
 0xa0c   : > { %6719 = vmatpush2.msra.mxu1 %v6648_v1  ;;  %v10616_v1 = vld [vmem:[%s15378_s27 + $0x20] sm:$0xff] }
 0xa0d   : > { %6720 = vmatprep.subr.mxu1 %v6647_v25  ;;  %v10618_v25 = vld [vmem:[%s15378_s27 + $0x30] sm:$0xff] }
 0xa0e   : > { %6721 = vmatpush2.msra.mxu1 %v6646_v37  ;;  %v10620_v37 = vld [vmem:[%s15378_s27 + $0x40] sm:$0xff] }
 0xa0f   : > { %6722 = vmatprep.subr.mxu1 %v6645_v57  ;;  %v10622_v57 = vld [vmem:[%s15378_s27 + $0x50] sm:$0xff] }
 0xa10   : > { %6723 = vmatpush2.msra.mxu1 %v6644_v9  ;;  %v10624_v9 = vld [vmem:[%s15378_s27 + $0x60] sm:$0xff] }
 0xa11   : > { %6724 = vmatprep.subr.mxu1 %v6643_v39  ;;  %v10626_v39 = vld [vmem:[%s15378_s27 + $0x70] sm:$0xff] }
 0xa12   : > { %6725 = vmatpush2.msra.mxu1 %v6642_v55  ;;  %v10628_v55 = vld [vmem:[%s15378_s27 + $0x80] sm:$0xff] }
 0xa13   : > { %6726 = vmatprep.subr.mxu1 %v6641_v50  ;;  %v10630_v50 = vld [vmem:[%s15378_s27 + $0x90] sm:$0xff] }
 0xa14   : > { %6727 = vmatpush2.msra.mxu1 %v6640_v22  ;;  %v10632_v22 = vld [vmem:[%s15378_s27 + $0xa0] sm:$0xff] }
 0xa15   : > { %6728 = vmatprep.subr.mxu1 %v6639_v56  ;;  %v10634_v56 = vld [vmem:[%s15378_s27 + $0xb0] sm:$0xff] }
 0xa16   : > { %6729 = vmatpush2.msra.mxu1 %v6638_v54  ;;  %v10636_v54 = vld [vmem:[%s15378_s27 + $0xc0] sm:$0xff] }
 0xa17   : > { %6730 = vmatprep.subr.mxu1 %v6637_v36  ;;  %v10638_v36 = vld [vmem:[%s15378_s27 + $0xd0] sm:$0xff] }
 0xa18   : > { %6731 = vmatpush2.msra.mxu1 %v6636_v18  ;;  %v10640_v18 = vld [vmem:[%s15378_s27 + $0xe0] sm:$0xff] }
 0xa19   : > { %6733 = vmatmul.mubr.f32.vlgmr.msra.gmra.mxu1 %v15449_v7  ;;  %v10641_v7 = vld [vmem:[%s15378_s27 + $0xe8] sm:$0xff] }
 0xa1a   : > { %6738 = vmatprep.mubr.f32.mxu1 %v15450_v35  ;;  %v10642_v35 = vld [vmem:[%s15378_s27 + $0xf0] sm:$0xff] }
 0xa1d   : > { %6739 = vmatmul.mubr.f32.gmra.mxu1 %v15451_v24  ;;  %v10643_v24 = vld [vmem:[%s15378_s27 + $0xf8] sm:$0xff] }
 0xa1e   : > { %6744 = vmatprep.mubr.f32.mxu1 %v15452_v29  ;;  %v10644_v29 = vld [vmem:[%s15386_s23] sm:$0xff] }
 0xa21   : > { %6745 = vmatmul.mubr.f32.gmra.mxu1 %v15453_v30  ;;  %v10645_v30 = vld [vmem:[%s15386_s23 + $0x8] sm:$0xff] }
 0xa22   : > { %6750 = vmatprep.mubr.f32.mxu1 %v15454_v8  ;;  %v10646_v8 = vld [vmem:[%s15386_s23 + $0x10] sm:$0xff] }
 0xa25   : > { %6751 = vmatmul.mubr.f32.gmra.mxu1 %v15455_v32  ;;  %v10647_v32 = vld [vmem:[#allocation19 + $0x10] sm:$0xff] }
 0xa26   : > { %6756 = vmatprep.mubr.f32.mxu1 %v15456_v44  ;;  %v15481_v44 = vld [vmem:[#allocation95_spill] sm:$0xff] }
 0xa29   : > { %6757 = vmatmul.mubr.f32.gmra.mxu1 %v15457_v58  ;;  %v15482_v58 = vld [vmem:[#allocation96_spill] sm:$0xff] }
 0xa2a   : > { %6762 = vmatprep.mubr.f32.mxu1 %v15458_v61  ;;  %v10648_v61 = vld [vmem:[%s15386_s23 + $0x18] sm:$0xff] }
 0xa2d   : > { %6763 = vmatmul.mubr.f32.gmra.mxu1 %v15459_v59  ;;  %v10649_v59 = vld [vmem:[%s15386_s23 + $0x20] sm:$0xff] }
 0xa2e   : > { %6768 = vmatprep.mubr.f32.mxu1 %v15460_v51  ;;  %v10650_v51 = vld [vmem:[%s15386_s23 + $0x28] sm:$0xff] }
 0xa31   : > { %6769 = vmatmul.mubr.f32.gmra.mxu1 %v15461_v41  ;;  %v10651_v41 = vld [vmem:[%s15386_s23 + $0x30] sm:$0xff] }
 0xa32   : > { %6774 = vmatprep.mubr.f32.mxu1 %v15462_v42  ;;  %v10652_v42 = vld [vmem:[%s15386_s23 + $0x38] sm:$0xff] }
 0xa35   : > { %6775 = vmatmul.mubr.f32.gmra.mxu1 %v15463_v16  ;;  %v10653_v16 = vld [vmem:[%s15386_s23 + $0x40] sm:$0xff] }
 0xa36   : > { %6851 = vmatprep.mubr.f32.mxu1 %v15464_v0 }
 0xad9   : > { %v13966_v63 = vpop.f32.mrf.mxu1 }
 0xada   : > { %15465 = vst [vmem:[#allocation118_spill] sm:$0xff] %v13966_v63 }
 0xadb   : > { %v13968_v49 = vpop.f32.mrf.mxu1 }
 0xadc   : > { %15466 = vst [vmem:[#allocation101_spill] sm:$0xff] %v13968_v49 }
 0xadd   : > { %v13970_v5 = vpop.f32.mrf.mxu1 }
 0xade   : > { %15467 = vst [vmem:[#allocation116_spill] sm:$0xff] %v13970_v5 }
 0xadf   : > { %v13972_v23 = vpop.f32.mrf.mxu1 }
 0xae0   : > { %15468 = vst [vmem:[#allocation100_spill] sm:$0xff] %v13972_v23  ;;  %6815 = vmatprep.subr.mxu1 %v13972_v23 }
 0xae1   : > { %v13975_v40 = vpop.f32.mrf.mxu1  ;;  %6816 = vmatpush1.msra.mxu1 %v13970_v5 }
 0xae2   : > { %15469 = vst [vmem:[#allocation115_spill] sm:$0xff] %v13975_v40  ;;  %6817 = vmatprep.subr.mxu1 %v13968_v49 }
 0xae3   : > { %v13979_v34 = vpop.f32.mrf.mxu1  ;;  %6818 = vmatpush1.msra.mxu1 %v13966_v63 }
 0xae4   : > { %15470 = vst [vmem:[#allocation99_spill] sm:$0xff] %v13979_v34  ;;  %9611 = vmatmul.mubr.msk.f32.vlgmr.msra.gmra.mxu1 %vm962_vm0, %v4852_v21 }
 0xae5   : > { %v13983_v19 = vpop.f32.mrf.mxu1  ;;  %6857 = vmatprep.mubr.f32.mxu1 %v15464_v0 }
 0xae6   : > { %15471 = vst [vmem:[#allocation113_spill] sm:$0xff] %v13983_v19 }
 0xae7   : > { %v13986_v10 = vpop.f32.mrf.mxu1 }
 0xae8   : > { %15472 = vst [vmem:[#allocation98_spill] sm:$0xff] %v13986_v10  ;;  %9612 = vmatmul.mubr.msk.f32.gmra.mxu1 %vm962_vm0, %v4853_v17  ;;  %6892 = vmatprep.subr.mxu1 %v13986_v10 }
 0xae9   : > { %v13990_v27 = vpop.f32.mrf.mxu1  ;;  %6893 = vmatpush1.msra.mxu1 %v13983_v19  ;;  %6928 = vmatprep.mubr.f32.mxu1 %v15464_v0 }
 0xaea   : > { %15473 = vst [vmem:[#allocation112_spill] sm:$0xff] %v13990_v27  ;;  %6894 = vmatprep.subr.mxu1 %v13979_v34 }
 0xaeb   : > { %v13995_v46 = vpop.f32.mrf.mxu1  ;;  %6895 = vmatpush1.msra.mxu1 %v13975_v40 }
 0xaec   : > { %15474 = vst [vmem:[#allocation97_spill] sm:$0xff] %v13995_v46  ;;  %9613 = vmatmul.mubr.msk.f32.vlgmr.msra.gmra.mxu1 %vm962_vm0, %v4852_v21 }
 0xaed   : > { %v13999_v2 = vpop.f32.mrf.mxu1  ;;  %6934 = vmatprep.mubr.f32.mxu1 %v15464_v0 }
 0xaee   : > { %15475 = vst [vmem:[#allocation110_spill] sm:$0xff] %v13999_v2 }
 0xaef   : > { %v14002_v4 = vpop.f32.mrf.mxu1 }
 0xaf0   : > { %15476 = vst [vmem:[#allocation130_spill] sm:$0xff] %v14002_v4  ;;  %9614 = vmatmul.mubr.msk.f32.gmra.mxu1 %vm962_vm0, %v4853_v17  ;;  %6969 = vmatprep.subr.mxu1 %v14002_v4 }
 0xaf1   : > { %v14006_v31 = vpop.f32.mrf.mxu1  ;;  %6970 = vmatpush1.msra.mxu1 %v13999_v2  ;;  %7005 = vmatprep.mubr.f32.mxu1 %v15464_v0 }
 0xaf2   : > { %15477 = vst [vmem:[#allocation129_spill] sm:$0xff] %v14006_v31  ;;  %6971 = vmatprep.subr.mxu1 %v13995_v46 }
 0xaf3   : > { %v14011_v48 = vpop.f32.mrf.mxu1  ;;  %6972 = vmatpush1.msra.mxu1 %v13990_v27 }
 0xaf4   : > { %15478 = vst [vmem:[#allocation128_spill] sm:$0xff] %v14011_v48  ;;  %9615 = vmatmul.mubr.msk.f32.vlgmr.msra.gmra.mxu1 %vm962_vm0, %v4852_v21 }
 0xaf5   : > { %v14015_v53 = vpop.f32.mrf.mxu1  ;;  %7011 = vmatprep.mubr.f32.mxu1 %v15464_v0 }
 0xaf6   : > { %15479 = vst [vmem:[#allocation127_spill] sm:$0xff] %v14015_v53 }
 0xaf7   : > { %v14018_v3 = vpop.f32.mrf.mxu1 }
 0xaf8   : > { %15480 = vst [vmem:[#allocation126_spill] sm:$0xff] %v14018_v3  ;;  %9616 = vmatmul.mubr.msk.f32.gmra.mxu1 %vm962_vm0, %v4853_v17  ;;  %7046 = vmatprep.subr.mxu1 %v14018_v3 }
 0xaf9   : > { %7047 = vmatpush1.msra.mxu1 %v14015_v53  ;;  %7082 = vmatprep.mubr.f32.mxu1 %v15464_v0 }
 0xafa   : > { %7048 = vmatprep.subr.mxu1 %v14011_v48 }
 0xafb   : > { %7049 = vmatpush1.msra.mxu1 %v14006_v31 }
 0xafc   : > { %9617 = vmatmul.mubr.msk.f32.vlgmr.msra.gmra.mxu1 %vm962_vm0, %v4852_v21  ;;  %10347 = vmatprep.subr.mxu1 %v4853_v17 }
 0xafd   : > { %7088 = vmatprep.mubr.f32.mxu1 %v15464_v0  ;;  %10348 = vmatpush3.msra.mxu1 %v4853_v17 }
 0xafe   : > { %10349 = vmatprep.subr.mxu1 %v4852_v21 }
 0xaff   : > { %10350 = vmatpush3.msra.mxu1 %v4852_v21 }
 0xb00   : > { %9618 = vmatmul.mubr.msk.f32.gmra.mxu1 %vm962_vm0, %v4853_v17  ;;  %10399 = vmatprep.subr.mxu1 %v4853_v17 }
 0xb01   : > { %10351 = vmatprep.mubr.msk.f32.mxu1 %vm962_vm0, %v10611_v60  ;;  %v10656_v60 = vld [vmem:[%s15386_s23 + $0x58] sm:$0xff] }
 0xb04   : > { %10352 = vmatmul.mubr.msk.f32.vlgmr.msra.gmra.mxu1 %vm962_vm0, %v10612_v62  ;;  %v10657_v62 = vld [vmem:[%s15386_s23 + $0x60] sm:$0xff] }
 0xb05   : > { %10354 = vmatprep.mubr.msk.f32.mxu1 %vm962_vm0, %v10613_v14  ;;  %10400 = vmatpush3.msra.mxu1 %v4853_v17  ;;  %v10655_v17 = vld [vmem:[%s15386_s23 + $0x50] sm:$0xff]  ;;  %v10658_v14 = vld [vmem:[%s15386_s23 + $0x68] sm:$0xff] }
 0xb06   : > { %10401 = vmatprep.subr.mxu1 %v4852_v21 }
 0xb07   : > { %10402 = vmatpush3.msra.mxu1 %v4852_v21  ;;  %v10654_v21 = vld [vmem:[%s15386_s23 + $0x48] sm:$0xff] }
 0xb08   : > { %10355 = vmatmul.mubr.msk.f32.gmra.mxu1 %vm962_vm0, %v10614_v28  ;;  %8022 = vmatprep.subr.mxu1 %v10615_v43  ;;  %v10659_v28 = vld [vmem:[%s15386_s23 + $0x70] sm:$0xff]  ;;  %v10660_v43 = vld [vmem:[%s15386_s23 + $0x78] sm:$0xff] }
 0xb09   : > { %10357 = vmatprep.mubr.msk.f32.mxu1 %vm962_vm0, %v10616_v1  ;;  %v10661_v1 = vld [vmem:[%s15386_s23 + $0x80] sm:$0xff] }
 0xb0c   : > { %10358 = vmatmul.mubr.msk.f32.gmra.mxu1 %vm962_vm0, %v10617_v26  ;;  %v10662_v26 = vld [vmem:[%s15386_s23 + $0x88] sm:$0xff] }
 0xb0d   : > { %10360 = vmatprep.mubr.msk.f32.mxu1 %vm962_vm0, %v10618_v25  ;;  %v10663_v25 = vld [vmem:[%s15386_s23 + $0x90] sm:$0xff] }
 0xb10   : > { %10361 = vmatmul.mubr.msk.f32.gmra.mxu1 %vm962_vm0, %v10619_v38  ;;  %v10664_v38 = vld [vmem:[%s15386_s23 + $0x98] sm:$0xff] }
 0xb11   : > { %10363 = vmatprep.mubr.msk.f32.mxu1 %vm962_vm0, %v10620_v37  ;;  %v10665_v37 = vld [vmem:[%s15386_s23 + $0xa0] sm:$0xff] }
 0xb14   : > { %10364 = vmatmul.mubr.msk.f32.gmra.mxu1 %vm962_vm0, %v10621_v15  ;;  %v10666_v15 = vld [vmem:[%s15386_s23 + $0xa8] sm:$0xff] }
 0xb15   : > { %10366 = vmatprep.mubr.msk.f32.mxu1 %vm962_vm0, %v10622_v57  ;;  %v10667_v57 = vld [vmem:[%s15386_s23 + $0xb0] sm:$0xff] }
 0xb18   : > { %10367 = vmatmul.mubr.msk.f32.gmra.mxu1 %vm962_vm0, %v10623_v11  ;;  %v10668_v11 = vld [vmem:[%s15386_s23 + $0xb8] sm:$0xff] }
 0xb19   : > { %10369 = vmatprep.mubr.msk.f32.mxu1 %vm962_vm0, %v10624_v9  ;;  %v10669_v9 = vld [vmem:[%s15386_s23 + $0xc0] sm:$0xff] }
 0xb1c   : > { %10370 = vmatmul.mubr.msk.f32.gmra.mxu1 %vm962_vm0, %v10625_v47  ;;  %v10670_v47 = vld [vmem:[%s15386_s23 + $0xc8] sm:$0xff] }
 0xb1d   : > { %10372 = vmatprep.mubr.msk.f32.mxu1 %vm962_vm0, %v10626_v39  ;;  %v10671_v39 = vld [vmem:[%s15386_s23 + $0xd0] sm:$0xff] }
 0xb20   : > { %10373 = vmatmul.mubr.msk.f32.gmra.mxu1 %vm962_vm0, %v10627_v12  ;;  %v10672_v12 = vld [vmem:[%s15386_s23 + $0xd8] sm:$0xff] }
 0xb21   : > { %10375 = vmatprep.mubr.msk.f32.mxu1 %vm962_vm0, %v10628_v55  ;;  %v10673_v55 = vld [vmem:[%s15386_s23 + $0xe0] sm:$0xff] }
 0xb24   : > { %10376 = vmatmul.mubr.msk.f32.gmra.mxu1 %vm962_vm0, %v10629_v33  ;;  %v10674_v33 = vld [vmem:[%s15386_s23 + $0xe8] sm:$0xff] }
 0xb25   : > { %10378 = vmatprep.mubr.msk.f32.mxu1 %vm962_vm0, %v10630_v50  ;;  %v10675_v50 = vld [vmem:[%s15386_s23 + $0xf0] sm:$0xff] }
 0xb28   : > { %10379 = vmatmul.mubr.msk.f32.gmra.mxu1 %vm962_vm0, %v10631_v13  ;;  %v10676_v13 = vld [vmem:[%s15386_s23 + $0xf8] sm:$0xff]  ;;  %s4849_s23 = sld [smem:[#allocation22 + %s4843_s0]] }
 0xb29   : > { %10381 = vmatprep.mubr.msk.f32.mxu1 %vm962_vm0, %v10632_v22 }
 0xb2c   : > { %10382 = vmatmul.mubr.msk.f32.gmra.mxu1 %vm962_vm0, %v10633_v52 }
 0xb2d   : > { %10384 = vmatprep.mubr.msk.f32.mxu1 %vm962_vm0, %v10634_v56 }
 0xb30   : > { %10385 = vmatmul.mubr.msk.f32.gmra.mxu1 %vm962_vm0, %v10635_v20 }
 0xb31   : > { %10387 = vmatprep.mubr.msk.f32.mxu1 %vm962_vm0, %v10636_v54 }
 0xb34   : > { %10388 = vmatmul.mubr.msk.f32.gmra.mxu1 %vm962_vm0, %v10637_v6 }
 0xb35   : > { %10390 = vmatprep.mubr.msk.f32.mxu1 %vm962_vm0, %v10638_v36 }
 0xb38   : > { %10391 = vmatmul.mubr.msk.f32.gmra.mxu1 %vm962_vm0, %v10639_v45 }
 0xb39   : > { %10393 = vmatprep.mubr.msk.f32.mxu1 %vm962_vm0, %v10640_v18 }
 0xb3c   : > { %10394 = vmatmul.mubr.msk.f32.gmra.mxu1 %vm962_vm0, %v10641_v7 }
 0xb3d   : > { %10396 = vmatprep.mubr.msk.f32.mxu1 %vm962_vm0, %v10642_v35 }
 0xb40   : > { %10397 = vmatmul.mubr.msk.f32.gmra.mxu1 %vm962_vm0, %v10643_v24 }
 0xb41   : > { %10403 = vmatprep.mubr.msk.f32.mxu1 %vm962_vm0, %v10644_v29 }
 0xb44   : > { %10404 = vmatmul.mubr.msk.f32.vlgmr.msra.gmra.mxu1 %vm962_vm0, %v10645_v30 }
 0xb45   : > { %10406 = vmatprep.mubr.msk.f32.mxu1 %vm962_vm0, %v10646_v8  ;;  %8023 = vmatpush1.msra.mxu1 %v10647_v32 }
 0xb46   : > { %8024 = vmatprep.subr.mxu1 %v15481_v44 }
 0xb47   : > { %8025 = vmatpush1.msra.mxu1 %v15482_v58 }
 0xb48   : > { %10407 = vmatmul.mubr.msk.f32.gmra.mxu1 %vm962_vm0, %v10648_v61 }
 0xb49   : > { %10409 = vmatprep.mubr.msk.f32.mxu1 %vm962_vm0, %v10649_v59 }
 0xb4c   : > { %10410 = vmatmul.mubr.msk.f32.gmra.mxu1 %vm962_vm0, %v10650_v51 }
 0xb4d   : > { %10412 = vmatprep.mubr.msk.f32.mxu1 %vm962_vm0, %v10651_v41 }
 0xb50   : > { %10413 = vmatmul.mubr.msk.f32.gmra.mxu1 %vm962_vm0, %v10652_v42 }
 0xb51   : > { %10415 = vmatprep.mubr.msk.f32.mxu1 %vm962_vm0, %v10653_v16 }
 0xb54   : > { %10416 = vmatmul.mubr.msk.f32.gmra.mxu1 %vm962_vm0, %v10654_v21 }
 0xb55   : > { %10418 = vmatprep.mubr.msk.f32.mxu1 %vm962_vm0, %v10655_v17 }
 0xb58   : > { %10419 = vmatmul.mubr.msk.f32.gmra.mxu1 %vm962_vm0, %v10656_v60 }
 0xb59   : > { %10421 = vmatprep.mubr.msk.f32.mxu1 %vm962_vm0, %v10657_v62 }
 0xb5c   : > { %10422 = vmatmul.mubr.msk.f32.gmra.mxu1 %vm962_vm0, %v10658_v14 }
 0xb5d   : > { %10424 = vmatprep.mubr.msk.f32.mxu1 %vm962_vm0, %v10659_v28 }
 0xb60   : > { %10425 = vmatmul.mubr.msk.f32.gmra.mxu1 %vm962_vm0, %v10660_v43 }
 0xb61   : > { %10427 = vmatprep.mubr.msk.f32.mxu1 %vm962_vm0, %v10661_v1 }
 0xb64   : > { %10428 = vmatmul.mubr.msk.f32.gmra.mxu1 %vm962_vm0, %v10662_v26 }
 0xb65   : > { %10430 = vmatprep.mubr.msk.f32.mxu1 %vm962_vm0, %v10663_v25 }
 0xb68   : > { %10431 = vmatmul.mubr.msk.f32.gmra.mxu1 %vm962_vm0, %v10664_v38 }
 0xb69   : > { %10433 = vmatprep.mubr.msk.f32.mxu1 %vm962_vm0, %v10665_v37 }
 0xb6c   : > { %10434 = vmatmul.mubr.msk.f32.gmra.mxu1 %vm962_vm0, %v10666_v15 }
 0xb6d   : > { %10436 = vmatprep.mubr.msk.f32.mxu1 %vm962_vm0, %v10667_v57 }
 0xb70   : > { %10437 = vmatmul.mubr.msk.f32.gmra.mxu1 %vm962_vm0, %v10668_v11 }
 0xb71   : > { %10439 = vmatprep.mubr.msk.f32.mxu1 %vm962_vm0, %v10669_v9 }
 0xb74   : > { %10440 = vmatmul.mubr.msk.f32.gmra.mxu1 %vm962_vm0, %v10670_v47 }
 0xb75   : > { %10442 = vmatprep.mubr.msk.f32.mxu1 %vm962_vm0, %v10671_v39 }
 0xb78   : > { %10443 = vmatmul.mubr.msk.f32.gmra.mxu1 %vm962_vm0, %v10672_v12 }
 0xb79   : > { %10445 = vmatprep.mubr.msk.f32.mxu1 %vm962_vm0, %v10673_v55 }
 0xb7c   : > { %10446 = vmatmul.mubr.msk.f32.gmra.mxu1 %vm962_vm0, %v10674_v33 }
 0xb7d   : > { %10448 = vmatprep.mubr.msk.f32.mxu1 %vm962_vm0, %v10675_v50 }
 0xb80   : > { %10449 = vmatmul.mubr.msk.f32.gmra.mxu1 %vm962_vm0, %v10676_v13 }
 0xb81   : > { %8058 = vmatprep.mubr.f32.mxu1 %v15464_v0 }
 0xba4   : > { %v14288_v22 = vpop.f32.mrf.mxu1 }
 0xba5   : > { %15483 = vst [vmem:[#allocation125_spill] sm:$0xff] %v14288_v22 }
 0xba6   : > { %v14290_v52 = vpop.f32.mrf.mxu1 }
 0xba8   : > { %v14292_v56 = vpop.f32.mrf.mxu1 }
 0xba9   : > { %15484 = vst [vmem:[#allocation124_spill] sm:$0xff] %v14292_v56 }
 0xbaa   : > { %v14294_v20 = vpop.f32.mrf.mxu1 }
 0xbab   : > { %15485 = vst [vmem:[#allocation123_spill] sm:$0xff] %v14294_v20 }
 0xbac   : > { %v14296_v54 = vpop.f32.mrf.mxu1 }
 0xbad   : > { %15486 = vst [vmem:[#allocation122_spill] sm:$0xff] %v14296_v54 }
 0xbae   : > { %v14298_v6 = vpop.f32.mrf.mxu1 }
 0xbaf   : > { %15487 = vst [vmem:[#allocation121_spill] sm:$0xff] %v14298_v6 }
 0xbb0   : > { %v14300_v36 = vpop.f32.mrf.mxu1 }
 0xbb1   : > { %15488 = vst [vmem:[#allocation120_spill] sm:$0xff] %v14300_v36 }
 0xbb2   : > { %v14302_v45 = vpop.f32.mrf.mxu1 }
 0xbb3   : > { %15489 = vst [vmem:[#allocation119_spill] sm:$0xff] %v14302_v45 }
 0xbb4   : > { %v14304_v18 = vpop.f32.mrf.mxu1 }
 0xbb5   : > { %15490 = vst [vmem:[#allocation117_spill] sm:$0xff] %v14304_v18 }
 0xbb6   : > { %v14306_v7 = vpop.f32.mrf.mxu1 }
 0xbb7   : > { %15491 = vst [vmem:[#allocation114_spill] sm:$0xff] %v14306_v7 }
 0xbb8   : > { %v14308_v35 = vpop.f32.mrf.mxu1 }
 0xbb9   : > { %15492 = vst [vmem:[#allocation111_spill] sm:$0xff] %v14308_v35 }
 0xbba   : > { %v14310_v24 = vpop.f32.mrf.mxu1 }
 0xbbb   : > { %15493 = vst [vmem:[#allocation88_spill] sm:$0xff] %v14310_v24 }
 0xbbc   : > { %v14312_v29 = vpop.f32.mrf.mxu1 }
 0xbbd   : > { %15494 = vst [vmem:[#allocation90_spill] sm:$0xff] %v14312_v29 }
 0xbbe   : > { %v14314_v30 = vpop.f32.mrf.mxu1 }
 0xbbf   : > { %15495 = vst [vmem:[#allocation89_spill] sm:$0xff] %v14314_v30 }
 0xbc0   : > { %v14316_v8 = vpop.f32.mrf.mxu1 }
 0xbc1   : > { %15496 = vst [vmem:[#allocation103_spill] sm:$0xff] %v14316_v8 }
 0xbc2   : > { %v14318_v32 = vpop.f32.mrf.mxu1 }
 0xbc3   : > { %15497 = vst [vmem:[#allocation102_spill] sm:$0xff] %v14318_v32 }
 0xbc4   : > { %v10353_v44 = vpop.f32.mrf.mxu1 }
 0xbc6   : > { %v7161_v58 = vpop.f32.mrf.mxu1 }
 0xbc7   : > { %9651 = vmatmul.mubr.msk.f32.vlgmr.msra.gmra.mxu0 %vm962_vm0, %v7161_v58 }
 0xbc8   : > { %v10356_v61 = vpop.f32.mrf.mxu1  ;;  %7486 = vmatprep.mubr.f32.mxu0 %v15464_v0 }
 0xbca   : > { %v7171_v59 = vpop.f32.mrf.mxu1 }
 0xbcb   : > { %9652 = vmatmul.mubr.msk.f32.gmra.mxu0 %vm962_vm0, %v10353_v44 }
 0xbcc   : > { %v10359_v51 = vpop.f32.mrf.mxu1  ;;  %7492 = vmatprep.mubr.f32.mxu0 %v15464_v0 }
 0xbce   : > { %v7181_v41 = vpop.f32.mrf.mxu1 }
 0xbcf   : > { %9653 = vmatmul.mubr.msk.f32.gmra.mxu0 %vm962_vm0, %v7171_v59 }
 0xbd0   : > { %v10362_v42 = vpop.f32.mrf.mxu1  ;;  %7498 = vmatprep.mubr.f32.mxu0 %v15464_v0 }
 0xbd2   : > { %v7191_v16 = vpop.f32.mrf.mxu1 }
 0xbd3   : > { %9654 = vmatmul.mubr.msk.f32.gmra.mxu0 %vm962_vm0, %v10356_v61 }
 0xbd4   : > { %v10365_v21 = vpop.f32.mrf.mxu1  ;;  %7504 = vmatprep.mubr.f32.mxu0 %v15464_v0 }
 0xbd6   : > { %v7201_v17 = vpop.f32.mrf.mxu1 }
 0xbd7   : > { %9655 = vmatmul.mubr.msk.f32.gmra.mxu0 %vm962_vm0, %v7181_v41 }
 0xbd8   : > { %v10368_v60 = vpop.f32.mrf.mxu1  ;;  %7510 = vmatprep.mubr.f32.mxu0 %v15464_v0 }
 0xbda   : > { %v7211_v62 = vpop.f32.mrf.mxu1 }
 0xbdb   : > { %9656 = vmatmul.mubr.msk.f32.gmra.mxu0 %vm962_vm0, %v10359_v51 }
 0xbdc   : > { %v10371_v14 = vpop.f32.mrf.mxu1  ;;  %7516 = vmatprep.mubr.f32.mxu0 %v15464_v0 }
 0xbde   : > { %v7221_v28 = vpop.f32.mrf.mxu1 }
 0xbdf   : > { %9657 = vmatmul.mubr.msk.f32.gmra.mxu0 %vm962_vm0, %v7191_v16 }
 0xbe0   : > { %v10374_v43 = vpop.f32.mrf.mxu1  ;;  %7522 = vmatprep.mubr.f32.mxu0 %v15464_v0 }
 0xbe2   : > { %v7231_v1 = vpop.f32.mrf.mxu1 }
 0xbe3   : > { %9658 = vmatmul.mubr.msk.f32.gmra.mxu0 %vm962_vm0, %v10362_v42 }
 0xbe4   : > { %v10377_v26 = vpop.f32.mrf.mxu1  ;;  %7528 = vmatprep.mubr.f32.mxu0 %v15464_v0 }
 0xbe6   : > { %v7241_v25 = vpop.f32.mrf.mxu1 }
 0xbe7   : > { %9659 = vmatmul.mubr.msk.f32.gmra.mxu0 %vm962_vm0, %v7201_v17 }
 0xbe8   : > { %v10380_v38 = vpop.f32.mrf.mxu1  ;;  %7534 = vmatprep.mubr.f32.mxu0 %v15464_v0 }
 0xbea   : > { %v7251_v37 = vpop.f32.mrf.mxu1 }
 0xbeb   : > { %9660 = vmatmul.mubr.msk.f32.gmra.mxu0 %vm962_vm0, %v10365_v21 }
 0xbec   : > { %v10383_v15 = vpop.f32.mrf.mxu1  ;;  %7540 = vmatprep.mubr.f32.mxu0 %v15464_v0 }
 0xbee   : > { %v7261_v57 = vpop.f32.mrf.mxu1 }
 0xbef   : > { %9661 = vmatmul.mubr.msk.f32.gmra.mxu0 %vm962_vm0, %v7211_v62 }
 0xbf0   : > { %v10386_v11 = vpop.f32.mrf.mxu1  ;;  %7546 = vmatprep.mubr.f32.mxu0 %v15464_v0 }
 0xbf2   : > { %v7271_v9 = vpop.f32.mrf.mxu1 }
 0xbf3   : > { %9662 = vmatmul.mubr.msk.f32.gmra.mxu0 %vm962_vm0, %v10368_v60 }
 0xbf4   : > { %v14343_v47 = vpop.f32.mrf.mxu1  ;;  %7552 = vmatprep.mubr.f32.mxu0 %v15464_v0 }
 0xbf6   : > { %v7281_v39 = vpop.f32.mrf.mxu1 }
 0xbf7   : > { %9663 = vmatmul.mubr.msk.f32.gmra.mxu0 %vm962_vm0, %v7221_v28 }
 0xbf8   : > { %v14347_v12 = vpop.f32.mrf.mxu1  ;;  %7558 = vmatprep.mubr.f32.mxu0 %v15464_v0 }
 0xbfa   : > { %v14350_v55 = vpop.f32.mrf.mxu1 }
 0xbfb   : > { %9664 = vmatmul.mubr.msk.f32.gmra.mxu0 %vm962_vm0, %v10371_v14 }
 0xbfc   : > { %v14353_v33 = vpop.f32.mrf.mxu1  ;;  %7564 = vmatprep.mubr.f32.mxu0 %v15464_v0 }
 0xbfe   : > { %v14356_v50 = vpop.f32.mrf.mxu1 }
 0xbff   : > { %9665 = vmatmul.mubr.msk.f32.gmra.mxu0 %vm962_vm0, %v7231_v1 }
 0xc00   : > { %v14359_v13 = vpop.f32.mrf.mxu1  ;;  %7570 = vmatprep.mubr.f32.mxu0 %v15464_v0 }
 0xc02   : > { %v14362_v44 = vpop.f32.mrf.mxu1 }
 0xc03   : > { %9666 = vmatmul.mubr.msk.f32.gmra.mxu0 %vm962_vm0, %v10374_v43 }
 0xc04   : > { %v10405_v58 = vpop.f32.mrf.mxu1  ;;  %7576 = vmatprep.mubr.f32.mxu0 %v15464_v0 }
 0xc06   : > { %v7739_v61 = vpop.f32.mrf.mxu1 }
 0xc07   : > { %9667 = vmatmul.mubr.msk.f32.gmra.mxu0 %vm962_vm0, %v7241_v25  ;;  %9715 = vmatmul.mubr.msk.f32.vlgmr.msra.gmra.mxu1 %vm962_vm0, %v7739_v61 }
 0xc08   : > { %7582 = vmatprep.mubr.f32.mxu0 %v15464_v0  ;;  %8064 = vmatprep.mubr.f32.mxu1 %v15464_v0  ;;  %v10408_v59 = vpop.f32.mrf.mxu1 }
 0xc0a   : > { %v7749_v51 = vpop.f32.mrf.mxu1 }
 0xc0b   : > { %9668 = vmatmul.mubr.msk.f32.gmra.mxu0 %vm962_vm0, %v10377_v26  ;;  %9716 = vmatmul.mubr.msk.f32.gmra.mxu1 %vm962_vm0, %v10405_v58 }
 0xc0c   : > { %7588 = vmatprep.mubr.f32.mxu0 %v15464_v0  ;;  %8070 = vmatprep.mubr.f32.mxu1 %v15464_v0  ;;  %v10411_v41 = vpop.f32.mrf.mxu1 }
 0xc0e   : > { %v7759_v42 = vpop.f32.mrf.mxu1 }
 0xc0f   : > { %9669 = vmatmul.mubr.msk.f32.gmra.mxu0 %vm962_vm0, %v7251_v37  ;;  %9717 = vmatmul.mubr.msk.f32.gmra.mxu1 %vm962_vm0, %v7749_v51 }
 0xc10   : > { %7594 = vmatprep.mubr.f32.mxu0 %v15464_v0  ;;  %8076 = vmatprep.mubr.f32.mxu1 %v15464_v0  ;;  %v10414_v16 = vpop.f32.mrf.mxu1 }
 0xc12   : > { %v7769_v21 = vpop.f32.mrf.mxu1 }
 0xc13   : > { %9670 = vmatmul.mubr.msk.f32.gmra.mxu0 %vm962_vm0, %v10380_v38  ;;  %9718 = vmatmul.mubr.msk.f32.gmra.mxu1 %vm962_vm0, %v10408_v59 }
 0xc14   : > { %7600 = vmatprep.mubr.f32.mxu0 %v15464_v0  ;;  %8082 = vmatprep.mubr.f32.mxu1 %v15464_v0  ;;  %v10417_v17 = vpop.f32.mrf.mxu1 }
 0xc16   : > { %v7779_v60 = vpop.f32.mrf.mxu1 }
 0xc17   : > { %9671 = vmatmul.mubr.msk.f32.gmra.mxu0 %vm962_vm0, %v7261_v57  ;;  %9719 = vmatmul.mubr.msk.f32.gmra.mxu1 %vm962_vm0, %v7759_v42 }
 0xc18   : > { %7606 = vmatprep.mubr.f32.mxu0 %v15464_v0  ;;  %8088 = vmatprep.mubr.f32.mxu1 %v15464_v0  ;;  %v10420_v62 = vpop.f32.mrf.mxu1 }
 0xc1a   : > { %v7789_v14 = vpop.f32.mrf.mxu1 }
 0xc1b   : > { %9672 = vmatmul.mubr.msk.f32.gmra.mxu0 %vm962_vm0, %v10383_v15  ;;  %9720 = vmatmul.mubr.msk.f32.gmra.mxu1 %vm962_vm0, %v10411_v41 }
 0xc1c   : > { %7612 = vmatprep.mubr.f32.mxu0 %v15464_v0  ;;  %8094 = vmatprep.mubr.f32.mxu1 %v15464_v0  ;;  %v10423_v28 = vpop.f32.mrf.mxu1 }
 0xc1e   : > { %v7799_v43 = vpop.f32.mrf.mxu1 }
 0xc1f   : > { %9673 = vmatmul.mubr.msk.f32.gmra.mxu0 %vm962_vm0, %v7271_v9  ;;  %9721 = vmatmul.mubr.msk.f32.gmra.mxu1 %vm962_vm0, %v7769_v21 }
 0xc20   : > { %7618 = vmatprep.mubr.f32.mxu0 %v15464_v0  ;;  %8100 = vmatprep.mubr.f32.mxu1 %v15464_v0  ;;  %v10426_v1 = vpop.f32.mrf.mxu1 }
 0xc22   : > { %v7809_v26 = vpop.f32.mrf.mxu1 }
 0xc23   : > { %9674 = vmatmul.mubr.msk.f32.gmra.mxu0 %vm962_vm0, %v10386_v11  ;;  %9722 = vmatmul.mubr.msk.f32.gmra.mxu1 %vm962_vm0, %v10414_v16 }
 0xc24   : > { %7624 = vmatprep.mubr.f32.mxu0 %v15464_v0  ;;  %8106 = vmatprep.mubr.f32.mxu1 %v15464_v0  ;;  %v10429_v25 = vpop.f32.mrf.mxu1 }
 0xc26   : > { %v7819_v38 = vpop.f32.mrf.mxu1 }
 0xc27   : > { %9675 = vmatmul.mubr.msk.f32.gmra.mxu0 %vm962_vm0, %v7281_v39  ;;  %9723 = vmatmul.mubr.msk.f32.gmra.mxu1 %vm962_vm0, %v7779_v60 }
 0xc28   : > { %7630 = vmatprep.mubr.f32.mxu0 %v15464_v0  ;;  %8112 = vmatprep.mubr.f32.mxu1 %v15464_v0  ;;  %v10432_v37 = vpop.f32.mrf.mxu1 }
 0xc2a   : > { %v7829_v15 = vpop.f32.mrf.mxu1 }
 0xc2b   : > { %9676 = vmatmul.mubr.msk.f32.gmra.mxu0 %vm962_vm0, %v14343_v47  ;;  %9724 = vmatmul.mubr.msk.f32.gmra.mxu1 %vm962_vm0, %v10417_v17 }
 0xc2c   : > { %7636 = vmatprep.mubr.f32.mxu0 %v15464_v0  ;;  %8118 = vmatprep.mubr.f32.mxu1 %v15464_v0  ;;  %v10435_v57 = vpop.f32.mrf.mxu1 }
 0xc2f   : > { %9677 = vmatmul.mubr.msk.f32.gmra.mxu0 %vm962_vm0, %v14350_v55  ;;  %9725 = vmatmul.mubr.msk.f32.gmra.mxu1 %vm962_vm0, %v7789_v14 }
 0xc30   : > { %7642 = vmatprep.mubr.f32.mxu0 %v15464_v0  ;;  %8124 = vmatprep.mubr.f32.mxu1 %v15464_v0 }
 0xc33   : > { %9678 = vmatmul.mubr.msk.f32.gmra.mxu0 %vm962_vm0, %v14347_v12  ;;  %9726 = vmatmul.mubr.msk.f32.gmra.mxu1 %vm962_vm0, %v10420_v62 }
 0xc34   : > { %7648 = vmatprep.mubr.f32.mxu0 %v15464_v0  ;;  %8130 = vmatprep.mubr.f32.mxu1 %v15464_v0 }
 0xc37   : > { %9679 = vmatmul.mubr.msk.f32.gmra.mxu0 %vm962_vm0, %v14356_v50  ;;  %9727 = vmatmul.mubr.msk.f32.gmra.mxu1 %vm962_vm0, %v7799_v43 }
 0xc38   : > { %7654 = vmatprep.mubr.f32.mxu0 %v15464_v0  ;;  %8136 = vmatprep.mubr.f32.mxu1 %v15464_v0 }
 0xc3b   : > { %9680 = vmatmul.mubr.msk.f32.gmra.mxu0 %vm962_vm0, %v14353_v33  ;;  %9728 = vmatmul.mubr.msk.f32.gmra.mxu1 %vm962_vm0, %v10423_v28 }
 0xc3c   : > { %7660 = vmatprep.mubr.f32.mxu0 %v15464_v0  ;;  %8142 = vmatprep.mubr.f32.mxu1 %v15464_v0 }
 0xc3f   : > { %9681 = vmatmul.mubr.msk.f32.gmra.mxu0 %vm962_vm0, %v14362_v44  ;;  %9729 = vmatmul.mubr.msk.f32.gmra.mxu1 %vm962_vm0, %v7809_v26 }
 0xc40   : > { %7666 = vmatprep.mubr.f32.mxu0 %v15464_v0  ;;  %8148 = vmatprep.mubr.f32.mxu1 %v15464_v0 }
 0xc43   : > { %9682 = vmatmul.mubr.msk.f32.gmra.mxu0 %vm962_vm0, %v14359_v13  ;;  %9730 = vmatmul.mubr.msk.f32.gmra.mxu1 %vm962_vm0, %v10426_v1 }
 0xc44   : > { %8379 = vmatprep.mubr.f32.mxu0 %v14290_v52  ;;  %8154 = vmatprep.mubr.f32.mxu1 %v15464_v0  ;;  %v7839_v52 = vpop.f32.mrf.mxu1 }
 0xc46   : > { %v10438_v11 = vpop.f32.mrf.mxu1 }
 0xc47   : > { %9731 = vmatmul.mubr.msk.f32.gmra.mxu1 %vm962_vm0, %v7819_v38 }
 0xc48   : > { %8160 = vmatprep.mubr.f32.mxu1 %v15464_v0  ;;  %v7849_v9 = vpop.f32.mrf.mxu1 }
 0xc4a   : > { %v10441_v47 = vpop.f32.mrf.mxu1 }
 0xc4b   : > { %9732 = vmatmul.mubr.msk.f32.gmra.mxu1 %vm962_vm0, %v10429_v25 }
 0xc4c   : > { %8166 = vmatprep.mubr.f32.mxu1 %v15464_v0  ;;  %v7859_v39 = vpop.f32.mrf.mxu1 }
 0xc4e   : > { %v10444_v12 = vpop.f32.mrf.mxu1 }
 0xc4f   : > { %9733 = vmatmul.mubr.msk.f32.gmra.mxu1 %vm962_vm0, %v7829_v15 }
 0xc50   : > { %8172 = vmatprep.mubr.f32.mxu1 %v15464_v0  ;;  %v7869_v55 = vpop.f32.mrf.mxu1 }
 0xc52   : > { %v10447_v33 = vpop.f32.mrf.mxu1 }
 0xc53   : > { %9734 = vmatmul.mubr.msk.f32.gmra.mxu1 %vm962_vm0, %v10432_v37 }
 0xc54   : > { %8178 = vmatprep.mubr.f32.mxu1 %v15464_v0  ;;  %v7879_v50 = vpop.f32.mrf.mxu1 }
 0xc56   : > { %v10450_v13 = vpop.f32.mrf.mxu1 }
 0xc57   : > { %9735 = vmatmul.mubr.msk.f32.gmra.mxu1 %vm962_vm0, %v7839_v52 }
 0xc58   : > { %8184 = vmatprep.mubr.f32.mxu1 %v15464_v0  ;;  %v7889_v44 = vpop.f32.mrf.mxu1 }
 0xc5b   : > { %9736 = vmatmul.mubr.msk.f32.gmra.mxu1 %vm962_vm0, %v10435_v57 }
 0xc5c   : > { %8190 = vmatprep.mubr.f32.mxu1 %v15464_v0 }
 0xc5f   : > { %9737 = vmatmul.mubr.msk.f32.gmra.mxu1 %vm962_vm0, %v7849_v9 }
 0xc60   : > { %8196 = vmatprep.mubr.f32.mxu1 %v15464_v0 }
 0xc63   : > { %9738 = vmatmul.mubr.msk.f32.gmra.mxu1 %vm962_vm0, %v10438_v11 }
 0xc64   : > { %8202 = vmatprep.mubr.f32.mxu1 %v15464_v0 }
 0xc67   : > { %9739 = vmatmul.mubr.msk.f32.gmra.mxu1 %vm962_vm0, %v7859_v39 }
 0xc68   : > { %8208 = vmatprep.mubr.f32.mxu1 %v15464_v0 }
 0xc6b   : > { %9740 = vmatmul.mubr.msk.f32.gmra.mxu1 %vm962_vm0, %v10441_v47 }
 0xc6c   : > { %8214 = vmatprep.mubr.f32.mxu1 %v15464_v0 }
 0xc6f   : > { %9741 = vmatmul.mubr.msk.f32.gmra.mxu1 %vm962_vm0, %v7869_v55 }
 0xc70   : > { %8220 = vmatprep.mubr.f32.mxu1 %v15464_v0 }
 0xc73   : > { %9742 = vmatmul.mubr.msk.f32.gmra.mxu1 %vm962_vm0, %v10444_v12 }
 0xc74   : > { %8226 = vmatprep.mubr.f32.mxu1 %v15464_v0 }
 0xc77   : > { %9743 = vmatmul.mubr.msk.f32.gmra.mxu1 %vm962_vm0, %v7879_v50 }
 0xc78   : > { %8232 = vmatprep.mubr.f32.mxu1 %v15464_v0 }
 0xc7b   : > { %9744 = vmatmul.mubr.msk.f32.gmra.mxu1 %vm962_vm0, %v10447_v33 }
 0xc7c   : > { %8238 = vmatprep.mubr.f32.mxu1 %v15464_v0 }
 0xc7f   : > { %9745 = vmatmul.mubr.msk.f32.gmra.mxu1 %vm962_vm0, %v7889_v44 }
 0xc80   : > { %8244 = vmatprep.mubr.f32.mxu1 %v15464_v0 }
 0xc83   : > { %9746 = vmatmul.mubr.msk.f32.gmra.mxu1 %vm962_vm0, %v10450_v13 }
 0xc87   : > { %v7482_v58 = vpop.f32.mrf.mxu0 }
 0xc89   : > { %v7484_v61 = vpop.f32.mrf.mxu0 }
 0xc8b   : > { %v7488_v59 = vpop.f32.mrf.mxu0 }
 0xc8d   : > { %v7490_v51 = vpop.f32.mrf.mxu0 }
 0xc8f   : > { %v7494_v41 = vpop.f32.mrf.mxu0 }
 0xc91   : > { %v7496_v42 = vpop.f32.mrf.mxu0 }
 0xc93   : > { %v7500_v16 = vpop.f32.mrf.mxu0 }
 0xc95   : > { %v7502_v21 = vpop.f32.mrf.mxu0 }
 0xc97   : > { %v7506_v17 = vpop.f32.mrf.mxu0 }
 0xc99   : > { %v7508_v60 = vpop.f32.mrf.mxu0 }
 0xc9b   : > { %v14468_v62 = vpop.f32.mrf.mxu0 }
 0xc9d   : > { %v14470_v14 = vpop.f32.mrf.mxu0 }
 0xc9f   : > { %v14472_v28 = vpop.f32.mrf.mxu0 }
 0xca1   : > { %v14474_v43 = vpop.f32.mrf.mxu0 }
 0xca3   : > { %v14476_v0 = vpop.f32.mrf.mxu0 }
 0xca5   : > { %v14478_v1 = vpop.f32.mrf.mxu0 }
 0xca7   : > { %v14480_v26 = vpop.f32.mrf.mxu0 }
 0xca9   : > { %v14482_v25 = vpop.f32.mrf.mxu0 }
 0xcab   : > { %v14484_v38 = vpop.f32.mrf.mxu0 }
 0xcad   : > { %v14486_v37 = vpop.f32.mrf.mxu0 }
 0xcaf   : > { %v14488_v15 = vpop.f32.mrf.mxu0 }
 0xcb1   : > { %v14490_v57 = vpop.f32.mrf.mxu0 }
 0xcb3   : > { %v14492_v52 = vpop.f32.mrf.mxu0 }
 0xcb5   : > { %v14494_v11 = vpop.f32.mrf.mxu0 }
 0xcb7   : > { %v14496_v9 = vpop.f32.mrf.mxu0 }
 0xcb9   : > { %v14498_v47 = vpop.f32.mrf.mxu0 }
 0xcbb   : > { %v14500_v39 = vpop.f32.mrf.mxu0 }
 0xcbd   : > { %v14502_v12 = vpop.f32.mrf.mxu0 }
 0xcbf   : > { %v14504_v55 = vpop.f32.mrf.mxu0 }
 0xcc1   : > { %v14506_v33 = vpop.f32.mrf.mxu0 }
 0xcc3   : > { %v7572_v50 = vpop.f32.mrf.mxu0 }
 0xcc5   : > { %v7574_v13 = vpop.f32.mrf.mxu0 }
 0xcc7   : > { %v8060_v44 = vpop.f32.mrf.mxu1  ;;  %v7578_v53 = vpop.f32.mrf.mxu0 }
 0xcc8   : > { %v14508_v3 = vmul.f32 %v8060_v44, %v7482_v58 }
 0xcc9   : > { %v8062_v48 = vpop.f32.mrf.mxu1  ;;  %v7580_v46 = vpop.f32.mrf.mxu0 }
 0xcca   : > { %15498 = vst [vmem:[#allocation105_spill] sm:$0xff] %v14508_v3  ;;  %v14510_v31 = vmul.f32 %v8062_v48, %v7484_v61 }
 0xccb   : > { %v8066_v4 = vpop.f32.mrf.mxu1  ;;  %v14518_v40 = vpop.f32.mrf.mxu0 }
 0xccc   : > { %15499 = vst [vmem:[#allocation104_spill] sm:$0xff] %v14510_v31  ;;  %v14512_v2 = vmul.f32 %v8066_v4, %v7488_v59 }
 0xccd   : > { %v8068_v27 = vpop.f32.mrf.mxu1  ;;  %v14524_v48 = vpop.f32.mrf.mxu0 }
 0xcce   : > { %15500 = vst [vmem:[#allocation92_spill] sm:$0xff] %v14512_v2  ;;  %v14514_v10 = vmul.f32 %v8068_v27, %v7490_v51 }
 0xccf   : > { %v8072_v19 = vpop.f32.mrf.mxu1  ;;  %v14530_v27 = vpop.f32.mrf.mxu0 }
 0xcd0   : > { %15501 = vst [vmem:[#allocation91_spill] sm:$0xff] %v14514_v10  ;;  %v14516_v34 = vmul.f32 %v8072_v19, %v7494_v41 }
 0xcd1   : > { %v8074_v23 = vpop.f32.mrf.mxu1 }
 0xcd2   : > { %15502 = vst [vmem:[#allocation94_spill] sm:$0xff] %v14516_v34  ;;  %v14520_v5 = vmul.f32 %v8074_v23, %v7496_v42  ;;  %v14536_v23 = vpop.f32.mrf.mxu0 }
 0xcd3   : > { %v8078_v58 = vpop.f32.mrf.mxu1 }
 0xcd4   : > { %15503 = vst [vmem:[#allocation93_spill] sm:$0xff] %v14520_v5  ;;  %v14522_v44 = vmul.f32 %v8078_v58, %v7500_v16  ;;  %v14542_v58 = vpop.f32.mrf.mxu0 }
 0xcd5   : > { %v8080_v61 = vpop.f32.mrf.mxu1 }
 0xcd6   : > { %15504 = vst [vmem:[#allocation107_spill] sm:$0xff] %v14522_v44  ;;  %v14526_v4 = vmul.f32 %v8080_v61, %v7502_v21 }
 0xcd7   : > { %v8084_v59 = vpop.f32.mrf.mxu1 }
 0xcd8   : > { %15505 = vst [vmem:[#allocation106_spill] sm:$0xff] %v14526_v4  ;;  %v14528_v49 = vmul.f32 %v8084_v59, %v7506_v17  ;;  %v14548_v17 = vpop.f32.mrf.mxu0 }
 0xcd9   : > { %v8086_v19 = vpop.f32.mrf.mxu1 }
 0xcda   : > { %15506 = vst [vmem:[#allocation109_spill] sm:$0xff] %v14528_v49  ;;  %v14532_v51 = vmul.f32 %v8086_v19, %v7508_v60  ;;  %v14554_v19 = vpop.f32.mrf.mxu0 }
 0xcdb   : > { %v14534_v41 = vpop.f32.mrf.mxu1 }
 0xcdc   : > { %15507 = vst [vmem:[#allocation108_spill] sm:$0xff] %v14532_v51  ;;  %15508 = vst [vmem:[#allocation95_spill] sm:$0xff] %v14534_v41  ;;  %v14558_v32 = vpop.f32.mrf.mxu0 }
 0xcdd   : > { %v14538_v42 = vpop.f32.mrf.mxu1 }
 0xcde   : > { %v14560_v35 = vpop.f32.mrf.mxu0 }
 0xcdf   : > { %v14540_v16 = vpop.f32.mrf.mxu1  ;;  %15509 = vst [vmem:[#allocation96_spill] sm:$0xff] %v14560_v35 }
 0xce0   : > { %v14562_v7 = vpop.f32.mrf.mxu0 }
 0xce1   : > { %v14544_v21 = vpop.f32.mrf.mxu1  ;;  %15510 = vst [vmem:[#allocation131_spill] sm:$0xff] %v14562_v7 }
 0xce2   : > { %v14564_v54 = vpop.f32.mrf.mxu0 }
 0xce3   : > { %v14546_v61 = vpop.f32.mrf.mxu1  ;;  %15511 = vst [vmem:[#allocation132_spill] sm:$0xff] %v14564_v54 }
 0xce4   : > { %v14566_v20 = vpop.f32.mrf.mxu0 }
 0xce5   : > { %v14550_v59 = vpop.f32.mrf.mxu1  ;;  %15512 = vst [vmem:[#allocation133_spill] sm:$0xff] %v14566_v20 }
 0xce6   : > { %v14568_v31 = vpop.f32.mrf.mxu0 }
 0xce7   : > { %v14552_v60 = vpop.f32.mrf.mxu1  ;;  %15513 = vst [vmem:[#allocation134_spill] sm:$0xff] %v14568_v31 }
 0xce8   : > { %v14570_v34 = vpop.f32.mrf.mxu0 }
 0xce9   : > { %v14556_v63 = vpop.f32.mrf.mxu1 }
 0xcea   : > { %v14575_v54 = vpop.f32.mrf.mxu0 }
 0xceb   : > { %v8114_v8 = vpop.f32.mrf.mxu1 }
 0xced   : > { %v8116_v29 = vpop.f32.mrf.mxu1 }
 0xcef   : > { %v8120_v30 = vpop.f32.mrf.mxu1 }
 0xcf1   : > { %v8122_v24 = vpop.f32.mrf.mxu1 }
 0xcf3   : > { %v8126_v18 = vpop.f32.mrf.mxu1 }
 0xcf5   : > { %v8128_v36 = vpop.f32.mrf.mxu1 }
 0xcf7   : > { %v8132_v45 = vpop.f32.mrf.mxu1 }
 0xcf9   : > { %v8134_v6 = vpop.f32.mrf.mxu1 }
 0xcfb   : > { %v8138_v56 = vpop.f32.mrf.mxu1 }
 0xcfd   : > { %v8140_v22 = vpop.f32.mrf.mxu1 }
 0xcfe   : > { %v8278_v31 = vmul.f32 %v8140_v22, %v14502_v12  ;;  %v8262_v12 = vmul.f32 %v14538_v42, %v14470_v14  ;;  %v15516_v14 = vld [vmem:[#allocation109_spill] sm:$0xff]  ;;  %v15521_v42 = vld [vmem:[#allocation91_spill] sm:$0xff] }
 0xcff   : > { %v8144_v3 = vpop.f32.mrf.mxu1 }
 0xd00   : > { %v8279_v20 = vmul.f32 %v8144_v3, %v14504_v55  ;;  %v8275_v3 = vmul.f32 %v8132_v45, %v14496_v9  ;;  %v8271_v45 = vmul.f32 %v8120_v30, %v14488_v15  ;;  %v8267_v30 = vmul.f32 %v14552_v60, %v14480_v26 }
 0xd01   : > { %v8146_v2 = vpop.f32.mrf.mxu1 }
 0xd02   : > { %v8280_v4 = vmul.f32 %v8146_v2, %v14506_v33  ;;  %v8276_v2 = vmul.f32 %v8134_v6, %v14498_v47  ;;  %v8263_v47 = vmul.f32 %v14540_v16, %v14472_v28 }
 0xd03   : > { %v8150_v10 = vpop.f32.mrf.mxu1 }
 0xd04   : > { %v8281_v44 = vmul.f32 %v8150_v10, %v7572_v50 }
 0xd05   : > { %v8152_v35 = vpop.f32.mrf.mxu1 }
 0xd06   : > { %v8282_v5 = vmul.f32 %v8152_v35, %v7574_v13  ;;  %v8277_v35 = vmul.f32 %v8138_v56, %v14500_v39  ;;  %v8273_v56 = vmul.f32 %v8126_v18, %v14492_v52  ;;  %v8269_v18 = vmul.f32 %v8114_v8, %v14484_v38  ;;  %v15515_v13 = vld [vmem:[#allocation108_spill] sm:$0xff] }
 0xd07   : > { %v8156_v7 = vpop.f32.mrf.mxu1  ;;  %v8264_v38 = vmul.f32 %v14544_v21, %v14474_v43  ;;  %v15514_v43 = vld [vmem:[#allocation95_spill] sm:$0xff]  ;;  %v15522_v21 = vld [vmem:[#allocation92_spill] sm:$0xff] }
 0xd08   : > { %v14573_v49 = vmul.f32 %v8156_v7, %v7578_v53  ;;  %8315 = vmatprep.subr.mxu0 %v8282_v5  ;;  %v14586_v5 = vpop.f32.mrf.mxu0  ;;  %v8261_v55 = vmul.f32 %v15514_v43, %v14468_v62  ;;  %v15518_v62 = vld [vmem:[#allocation107_spill] sm:$0xff] }
 0xd09   : > { %v8158_v51 = vpop.f32.mrf.mxu1  ;;  %8316 = vmatpush1.msra.mxu0 %v8281_v44 }
 0xd0a   : > { %v14579_v41 = vmul.f32 %v8158_v51, %v7580_v46  ;;  %8317 = vmatprep.subr.mxu0 %v8280_v4  ;;  %v8274_v46 = vmul.f32 %v8128_v36, %v14494_v11  ;;  %v14598_v6 = vpop.f32.mrf.mxu0  ;;  %v8270_v36 = vmul.f32 %v8116_v29, %v14486_v37  ;;  %v8266_v37 = vmul.f32 %v14550_v59, %v14478_v1  ;;  %v15524_v59 = vld [vmem:[#allocation105_spill] sm:$0xff] }
 0xd0b   : > { %v8162_v10 = vpop.f32.mrf.mxu1  ;;  %8318 = vmatpush1.msra.mxu0 %v8279_v20 }
 0xd0c   : > { %v14584_v53 = vmul.f32 %v8162_v10, %v14518_v40  ;;  %8319 = vmatprep.subr.mxu0 %v8278_v31  ;;  %v8272_v40 = vmul.f32 %v8122_v24, %v14490_v57  ;;  %v8268_v24 = vmul.f32 %v14556_v63, %v14482_v25  ;;  %v14613_v15 = vpop.f32.mrf.mxu0  ;;  %v8265_v63 = vmul.f32 %v14546_v61, %v14476_v0  ;;  %v15523_v61 = vld [vmem:[#allocation104_spill] sm:$0xff] }
 0xd0d   : > { %v8164_v7 = vpop.f32.mrf.mxu1  ;;  %8320 = vmatpush1.msra.mxu0 %v8277_v35 }
 0xd0e   : > { %v14591_v22 = vmul.f32 %v8164_v7, %v14524_v48  ;;  %8321 = vmatprep.subr.mxu0 %v8276_v2  ;;  %v14629_v1 = vpop.f32.mrf.mxu0 }
 0xd0f   : > { %v8168_v20 = vpop.f32.mrf.mxu1  ;;  %8322 = vmatpush1.msra.mxu0 %v8275_v3 }
 0xd10   : > { %v14596_v31 = vmul.f32 %v8168_v20, %v14530_v27  ;;  %8323 = vmatprep.subr.mxu0 %v8274_v46  ;;  %v7640_v50 = vpop.f32.mrf.mxu0  ;;  %v15519_v27 = vld [vmem:[#allocation93_spill] sm:$0xff] }
 0xd11   : > { %v8170_v9 = vpop.f32.mrf.mxu1  ;;  %8324 = vmatpush1.msra.mxu0 %v8273_v56 }
 0xd12   : > { %v14603_v11 = vmul.f32 %v8170_v9, %v14536_v23  ;;  %8325 = vmatprep.subr.mxu0 %v8272_v40  ;;  %v7644_v48 = vpop.f32.mrf.mxu0  ;;  %v15520_v23 = vld [vmem:[#allocation94_spill] sm:$0xff] }
 0xd13   : > { %v8174_v52 = vpop.f32.mrf.mxu1  ;;  %8326 = vmatpush1.msra.mxu0 %v8271_v45 }
 0xd14   : > { %v14609_v57 = vmul.f32 %v8174_v52, %v14542_v58  ;;  %8327 = vmatprep.subr.mxu0 %v8270_v36  ;;  %v7646_v16 = vpop.f32.mrf.mxu0 }
 0xd15   : > { %v8176_v29 = vpop.f32.mrf.mxu1  ;;  %8328 = vmatpush1.msra.mxu0 %v8269_v18 }
 0xd16   : > { %v14618_v8 = vmul.f32 %v8176_v29, %v14548_v17  ;;  %8329 = vmatprep.subr.mxu0 %v8268_v24  ;;  %v7650_v60 = vpop.f32.mrf.mxu0 }
 0xd17   : > { %v8180_v25 = vpop.f32.mrf.mxu1  ;;  %8330 = vmatpush1.msra.mxu0 %v8267_v30 }
 0xd18   : > { %v14625_v26 = vmul.f32 %v8180_v25, %v14554_v19  ;;  %8331 = vmatprep.subr.mxu0 %v8266_v37  ;;  %v7652_v10 = vpop.f32.mrf.mxu0 }
 0xd19   : > { %v8182_v39 = vpop.f32.mrf.mxu1  ;;  %8332 = vmatpush1.msra.mxu0 %v8265_v63 }
 0xd1a   : > { %v14634_v0 = vmul.f32 %v8182_v39, %v14558_v32  ;;  %8333 = vmatprep.subr.mxu0 %v8264_v38  ;;  %v15517_v32 = vld [vmem:[#allocation106_spill] sm:$0xff]  ;;  %v7656_v7 = vpop.f32.mrf.mxu0 }
 0xd1b   : > { %v14638_v33 = vpop.f32.mrf.mxu1  ;;  %8334 = vmatpush1.msra.mxu0 %v8263_v47 }
 0xd1c   : > { %8335 = vmatprep.subr.mxu0 %v8262_v12  ;;  %v7658_v20 = vpop.f32.mrf.mxu0 }
 0xd1d   : > { %v14640_v28 = vpop.f32.mrf.mxu1  ;;  %8336 = vmatpush1.msra.mxu0 %v8261_v55 }
 0xd1e   : > { %8337 = vmatprep.subr.mxu0 %v15515_v13  ;;  %v7662_v9 = vpop.f32.mrf.mxu0 }
 0xd1f   : > { %v14643_v44 = vpop.f32.mrf.mxu1  ;;  %8338 = vmatpush1.msra.mxu0 %v15516_v14 }
 0xd20   : > { %8339 = vmatprep.subr.mxu0 %v15517_v32  ;;  %v7664_v52 = vpop.f32.mrf.mxu0 }
 0xd21   : > { %v14647_v4 = vpop.f32.mrf.mxu1  ;;  %8340 = vmatpush1.msra.mxu0 %v15518_v62 }
 0xd22   : > { %8341 = vmatprep.subr.mxu0 %v15519_v27  ;;  %v7668_v29 = vpop.f32.mrf.mxu0 }
 0xd23   : > { %v14651_v51 = vpop.f32.mrf.mxu1  ;;  %8342 = vmatpush1.msra.mxu0 %v15520_v23 }
 0xd24   : > { %8343 = vmatprep.subr.mxu0 %v15521_v42  ;;  %v7670_v25 = vpop.f32.mrf.mxu0 }
 0xd25   : > { %v8200_v58 = vpop.f32.mrf.mxu1  ;;  %8344 = vmatpush1.msra.mxu0 %v15522_v21 }
 0xd26   : > { %8345 = vmatprep.subr.mxu0 %v15523_v61 }
 0xd27   : > { %v8204_v17 = vpop.f32.mrf.mxu1  ;;  %8346 = vmatpush1.msra.mxu0 %v15524_v59 }
 0xd29   : > { %v8206_v19 = vpop.f32.mrf.mxu1 }
 0xd2a   : > { %v8300_v59 = vmul.f32 %v8206_v19, %v14586_v5  ;;  %v15528_v5 = vld [vmem:[#allocation131_spill] sm:$0xff] }
 0xd2b   : > { %v8210_v35 = vpop.f32.mrf.mxu1  ;;  %v8294_v19 = vmul.f32 %v14640_v28, %v15528_v5  ;;  %v15541_v28 = vld [vmem:[#allocation89_spill] sm:$0xff] }
 0xd2c   : > { %v8301_v61 = vmul.f32 %v8210_v35, %v14598_v6  ;;  %v15545_v35 = vld [vmem:[#allocation118_spill] sm:$0xff] }
 0xd2d   : > { %v8212_v2 = vpop.f32.mrf.mxu1 }
 0xd2e   : > { %v8302_v21 = vmul.f32 %v8212_v2, %v14613_v15 }
 0xd2f   : > { %v8216_v3 = vpop.f32.mrf.mxu1 }
 0xd30   : > { %v8303_v42 = vmul.f32 %v8216_v3, %v14629_v1  ;;  %v15526_v1 = vld [vmem:[#allocation133_spill] sm:$0xff] }
 0xd31   : > { %v8218_v46 = vpop.f32.mrf.mxu1  ;;  %v8296_v15 = vmul.f32 %v14647_v4, %v15526_v1  ;;  %v15543_v4 = vld [vmem:[#allocation102_spill] sm:$0xff]  ;;  %v15553_v1 = vld [vmem:[#allocation112_spill] sm:$0xff] }
 0xd32   : > { %v8304_v23 = vmul.f32 %v8218_v46, %v7640_v50  ;;  %v15525_v50 = vld [vmem:[#allocation134_spill] sm:$0xff]  ;;  %v15546_v46 = vld [vmem:[#allocation101_spill] sm:$0xff] }
 0xd33   : > { %v8222_v56 = vpop.f32.mrf.mxu1 }
 0xd34   : > { %v8305_v27 = vmul.f32 %v8222_v56, %v7644_v48  ;;  %v8298_v48 = vmul.f32 %v8200_v58, %v14570_v34 }
 0xd35   : > { %v8224_v40 = vpop.f32.mrf.mxu1 }
 0xd36   : > { %v8306_v62 = vmul.f32 %v8224_v40, %v7646_v16  ;;  %v8297_v16 = vmul.f32 %v14651_v51, %v15525_v50  ;;  %v15544_v51 = vld [vmem:[#allocation103_spill] sm:$0xff] }
 0xd37   : > { %v8228_v45 = vpop.f32.mrf.mxu1 }
 0xd38   : > { %v8307_v32 = vmul.f32 %v8228_v45, %v7650_v60  ;;  %v8299_v60 = vmul.f32 %v8204_v17, %v14575_v54  ;;  %v15529_v54 = vld [vmem:[#allocation96_spill] sm:$0xff]  ;;  %v14701_v17 = vstv %s4849_s23 }
 0xd39   : > { %v8230_v36 = vpop.f32.mrf.mxu1  ;;  %v8293_v34 = vmul.f32 %v14638_v33, %v15529_v54  ;;  %v15530_v33 = vld [vmem:[#allocation125_spill] sm:$0xff] }
 0xd3a   : > { %v8308_v14 = vmul.f32 %v8230_v36, %v7652_v10  ;;  %v15527_v10 = vld [vmem:[#allocation132_spill] sm:$0xff] }
 0xd3b   : > { %v8234_v18 = vpop.f32.mrf.mxu1  ;;  %v8295_v6 = vmul.f32 %v14643_v44, %v15527_v10  ;;  %v15542_v44 = vld [vmem:[#allocation90_spill] sm:$0xff] }
 0xd3c   : > { %v8309_v13 = vmul.f32 %v8234_v18, %v7656_v7 }
 0xd3d   : > { %v8236_v24 = vpop.f32.mrf.mxu1 }
 0xd3e   : > { %v8310_v55 = vmul.f32 %v8236_v24, %v7658_v20 }
 0xd3f   : > { %v8240_v30 = vpop.f32.mrf.mxu1 }
 0xd40   : > { %v8311_v43 = vmul.f32 %v8240_v30, %v7662_v9  ;;  %v15547_v9 = vld [vmem:[#allocation116_spill] sm:$0xff] }
 0xd41   : > { %v8242_v37 = vpop.f32.mrf.mxu1  ;;  %v15548_v30 = vld [vmem:[#allocation100_spill] sm:$0xff] }
 0xd42   : > { %v8312_v12 = vmul.f32 %v8242_v37, %v7664_v52 }
 0xd43   : > { %v8246_v63 = vpop.f32.mrf.mxu1 }
 0xd44   : > { %v8313_v39 = vmul.f32 %v8246_v63, %v7668_v29 }
 0xd45   : > { %v8248_v38 = vpop.f32.mrf.mxu1 }
 0xd46   : > { %v8314_v47 = vmul.f32 %v8248_v38, %v7670_v25  ;;  %v15549_v38 = vld [vmem:[#allocation115_spill] sm:$0xff] }
 0xd48   : > { %8347 = vmatprep.subr.mxu0 %v8314_v47 }
 0xd49   : > { %8348 = vmatpush2.msra.mxu0 %v8313_v39 }
 0xd4a   : > { %8349 = vmatprep.subr.mxu0 %v8312_v12 }
 0xd4b   : > { %8350 = vmatpush2.msra.mxu0 %v8311_v43 }
 0xd4c   : > { %8351 = vmatprep.subr.mxu0 %v8310_v55  ;;  %v15550_v55 = vld [vmem:[#allocation99_spill] sm:$0xff] }
 0xd4d   : > { %8352 = vmatpush2.msra.mxu0 %v8309_v13 }
 0xd4e   : > { %8353 = vmatprep.subr.mxu0 %v8308_v14 }
 0xd4f   : > { %8354 = vmatpush2.msra.mxu0 %v8307_v32 }
 0xd50   : > { %8355 = vmatprep.subr.mxu0 %v8306_v62 }
 0xd51   : > { %8356 = vmatpush2.msra.mxu0 %v8305_v27  ;;  %v15551_v27 = vld [vmem:[#allocation113_spill] sm:$0xff] }
 0xd52   : > { %8357 = vmatprep.subr.mxu0 %v8304_v23 }
 0xd53   : > { %8358 = vmatpush2.msra.mxu0 %v8303_v42 }
 0xd54   : > { %8359 = vmatprep.subr.mxu0 %v8302_v21 }
 0xd55   : > { %8360 = vmatpush2.msra.mxu0 %v8301_v61 }
 0xd56   : > { %8361 = vmatprep.subr.mxu0 %v8300_v59  ;;  %v15552_v59 = vld [vmem:[#allocation98_spill] sm:$0xff] }
 0xd57   : > { %8362 = vmatpush2.msra.mxu0 %v8299_v60 }
 0xd58   : > { %8363 = vmatprep.subr.mxu0 %v8298_v48 }
 0xd59   : > { %8364 = vmatpush2.msra.mxu0 %v8297_v16 }
 0xd5a   : > { %8365 = vmatprep.subr.mxu0 %v8296_v15 }
 0xd5b   : > { %8366 = vmatpush2.msra.mxu0 %v8295_v6 }
 0xd5c   : > { %8367 = vmatprep.subr.mxu0 %v8294_v19  ;;  %v15554_v19 = vld [vmem:[#allocation97_spill] sm:$0xff] }
 0xd5d   : > { %8368 = vmatpush2.msra.mxu0 %v8293_v34 }
 0xd5e   : > { %8369 = vmatprep.subr.mxu0 %v14634_v0  ;;  %v15540_v0 = vld [vmem:[#allocation111_spill] sm:$0xff] }
 0xd5f   : > { %8370 = vmatpush2.msra.mxu0 %v14625_v26  ;;  %v15531_v26 = vld [vmem:[#allocation123_spill] sm:$0xff] }
 0xd60   : > { %8371 = vmatprep.subr.mxu0 %v14618_v8  ;;  %v15532_v8 = vld [vmem:[#allocation124_spill] sm:$0xff] }
 0xd61   : > { %8372 = vmatpush2.msra.mxu0 %v14609_v57  ;;  %v15533_v57 = vld [vmem:[#allocation121_spill] sm:$0xff] }
 0xd62   : > { %8373 = vmatprep.subr.mxu0 %v14603_v11  ;;  %v15534_v11 = vld [vmem:[#allocation122_spill] sm:$0xff] }
 0xd63   : > { %8374 = vmatpush2.msra.mxu0 %v14596_v31  ;;  %v15535_v31 = vld [vmem:[#allocation119_spill] sm:$0xff] }
 0xd64   : > { %8375 = vmatprep.subr.mxu0 %v14591_v22  ;;  %v15536_v22 = vld [vmem:[#allocation120_spill] sm:$0xff] }
 0xd65   : > { %8376 = vmatpush2.msra.mxu0 %v14584_v53  ;;  %v15537_v53 = vld [vmem:[#allocation114_spill] sm:$0xff] }
 0xd66   : > { %8377 = vmatprep.subr.mxu0 %v14579_v41  ;;  %v15538_v41 = vld [vmem:[#allocation117_spill] sm:$0xff] }
 0xd67   : > { %8378 = vmatpush2.msra.mxu0 %v14573_v49  ;;  %v15539_v49 = vld [vmem:[#allocation88_spill] sm:$0xff] }
 0xd68   : > { %8380 = vmatmul.mubr.f32.vlgmr.msra.gmra.mxu0 %v15530_v33 }
 0xd69   : > { %8385 = vmatprep.mubr.f32.mxu0 %v15531_v26 }
 0xd6c   : > { %8386 = vmatmul.mubr.f32.gmra.mxu0 %v15532_v8  ;;  %v15555_v8 = vld [vmem:[#allocation110_spill] sm:$0xff] }
 0xd6d   : > { %8391 = vmatprep.mubr.f32.mxu0 %v15533_v57 }
 0xd70   : > { %8392 = vmatmul.mubr.f32.gmra.mxu0 %v15534_v11 }
 0xd71   : > { %8397 = vmatprep.mubr.f32.mxu0 %v15535_v31 }
 0xd74   : > { %8398 = vmatmul.mubr.f32.gmra.mxu0 %v15536_v22 }
 0xd75   : > { %8403 = vmatprep.mubr.f32.mxu0 %v15537_v53  ;;  %v15556_v53 = vld [vmem:[#allocation130_spill] sm:$0xff] }
 0xd78   : > { %8404 = vmatmul.mubr.f32.gmra.mxu0 %v15538_v41 }
 0xd79   : > { %8409 = vmatprep.mubr.f32.mxu0 %v15539_v49 }
 0xd7c   : > { %8410 = vmatmul.mubr.f32.gmra.mxu0 %v15540_v0 }
 0xd7d   : > { %8415 = vmatprep.mubr.f32.mxu0 %v15541_v28 }
 0xd80   : > { %8416 = vmatmul.mubr.f32.gmra.mxu0 %v15542_v44  ;;  %v15557_v44 = vld [vmem:[#allocation129_spill] sm:$0xff] }
 0xd81   : > { %8421 = vmatprep.mubr.f32.mxu0 %v15543_v4 }
 0xd84   : > { %8422 = vmatmul.mubr.f32.gmra.mxu0 %v15544_v51 }
 0xe28   : > { %v8381_v58 = vpop.f32.mrf.mxu0 }
 0xe29   : > { %v8428_v2 = vsub.f32 %v15545_v35, %v8381_v58 }
 0xe2a   : > { %v8383_v3 = vpop.f32.mrf.mxu0 }
 0xe2b   : > { %v8445_v7 = vmul.f32 %v14701_v17, %v8428_v2  ;;  %v8429_v56 = vsub.f32 %v15546_v46, %v8383_v3  ;;  %v15558_v2 = vld [vmem:[#allocation128_spill] sm:$0xff] }
 0xe2c   : > { %v8387_v20 = vpop.f32.mrf.mxu0 }
 0xe2d   : > { %v8461_v40 = vadd.f32 %v8445_v7, %v15545_v35  ;;  %v8446_v45 = vmul.f32 %v14701_v17, %v8429_v56  ;;  %v8430_v36 = vsub.f32 %v15547_v9, %v8387_v20  ;;  %v15559_v20 = vld [vmem:[#allocation127_spill] sm:$0xff] }
 0xe2e   : > { %v8389_v18 = vpop.f32.mrf.mxu0 }
 0xe2f   : > { %8477 = vst [vmem:[#allocation2 + $0x30] sm:$0xff] %v8461_v40  ;;  %v8462_v52 = vadd.f32 %v8446_v45, %v15546_v46  ;;  %v8447_v24 = vmul.f32 %v14701_v17, %v8430_v36  ;;  %v8431_v29 = vsub.f32 %v15548_v30, %v8389_v18  ;;  %v15560_v18 = vld [vmem:[#allocation126_spill] sm:$0xff] }
 0xe30   : > { %v8393_v37 = vpop.f32.mrf.mxu0 }
 0xe31   : > { %8478 = vst [vmem:[#allocation2] sm:$0xff] %v8462_v52  ;;  %v8463_v63 = vadd.f32 %v8447_v24, %v15547_v9  ;;  %v8448_v25 = vmul.f32 %v14701_v17, %v8431_v29  ;;  %v8432_v47 = vsub.f32 %v15549_v38, %v8393_v37 }
 0xe32   : > { %v8395_v39 = vpop.f32.mrf.mxu0 }
 0xe33   : > { %8479 = vst [vmem:[#allocation2 + $0x58] sm:$0xff] %v8463_v63  ;;  %v8464_v12 = vadd.f32 %v8448_v25, %v15548_v30  ;;  %v8449_v43 = vmul.f32 %v14701_v17, %v8432_v47  ;;  %v8433_v13 = vsub.f32 %v15550_v55, %v8395_v39 }
 0xe34   : > { %v8399_v14 = vpop.f32.mrf.mxu0 }
 0xe35   : > { %8480 = vst [vmem:[#allocation2 + $0x18] sm:$0xff] %v8464_v12  ;;  %v8465_v32 = vadd.f32 %v8449_v43, %v15549_v38  ;;  %v8450_v62 = vmul.f32 %v14701_v17, %v8433_v13  ;;  %v8434_v23 = vsub.f32 %v15551_v27, %v8399_v14 }
 0xe36   : > { %v8401_v42 = vpop.f32.mrf.mxu0 }
 0xe37   : > { %8481 = vst [vmem:[#allocation2 + $0x50] sm:$0xff] %v8465_v32  ;;  %v8466_v21 = vadd.f32 %v8450_v62, %v15550_v55  ;;  %v8451_v61 = vmul.f32 %v14701_v17, %v8434_v23  ;;  %v8435_v60 = vsub.f32 %v15552_v59, %v8401_v42 }
 0xe38   : > { %v8405_v48 = vpop.f32.mrf.mxu0 }
 0xe39   : > { %8482 = vst [vmem:[#allocation2 + $0x68] sm:$0xff] %v8466_v21  ;;  %v8467_v50 = vadd.f32 %v8451_v61, %v15551_v27  ;;  %v8452_v16 = vmul.f32 %v14701_v17, %v8435_v60  ;;  %v8436_v15 = vsub.f32 %v15553_v1, %v8405_v48 }
 0xe3a   : > { %v8407_v10 = vpop.f32.mrf.mxu0 }
 0xe3b   : > { %8483 = vst [vmem:[#allocation2 + $0x8] sm:$0xff] %v8467_v50  ;;  %v8468_v6 = vadd.f32 %v8452_v16, %v15552_v59  ;;  %v8453_v5 = vmul.f32 %v14701_v17, %v8436_v15  ;;  %v8437_v54 = vsub.f32 %v15554_v19, %v8407_v10 }
 0xe3c   : > { %v8411_v34 = vpop.f32.mrf.mxu0 }
 0xe3d   : > { %8484 = vst [vmem:[#allocation2 + $0x48] sm:$0xff] %v8468_v6  ;;  %v8469_v33 = vadd.f32 %v8453_v5, %v15553_v1  ;;  %v8454_v26 = vmul.f32 %v14701_v17, %v8437_v54  ;;  %v8438_v57 = vsub.f32 %v15555_v8, %v8411_v34 }
 0xe3e   : > { %v8413_v11 = vpop.f32.mrf.mxu0 }
 0xe3f   : > { %8485 = vst [vmem:[#allocation2 + $0x40] sm:$0xff] %v8469_v33  ;;  %v8470_v31 = vadd.f32 %v8454_v26, %v15554_v19  ;;  %v8455_v22 = vmul.f32 %v14701_v17, %v8438_v57  ;;  %v8439_v41 = vsub.f32 %v15556_v53, %v8413_v11 }
 0xe40   : > { %v8417_v49 = vpop.f32.mrf.mxu0 }
 0xe41   : > { %8486 = vst [vmem:[#allocation2 + $0x20] sm:$0xff] %v8470_v31  ;;  %v8471_v0 = vadd.f32 %v8455_v22, %v15555_v8  ;;  %v8456_v28 = vmul.f32 %v14701_v17, %v8439_v41  ;;  %v8440_v4 = vsub.f32 %v15557_v44, %v8417_v49 }
 0xe42   : > { %v8419_v51 = vpop.f32.mrf.mxu0 }
 0xe43   : > { %8487 = vst [vmem:[#allocation2 + $0x10] sm:$0xff] %v8471_v0  ;;  %v8472_v58 = vadd.f32 %v8456_v28, %v15556_v53  ;;  %v8457_v35 = vmul.f32 %v14701_v17, %v8440_v4  ;;  %v8441_v3 = vsub.f32 %v15558_v2, %v8419_v51 }
 0xe44   : > { %v8423_v7 = vpop.f32.mrf.mxu0 }
 0xe45   : > { %8488 = vst [vmem:[#allocation2 + $0x38] sm:$0xff] %v8472_v58  ;;  %v8473_v46 = vadd.f32 %v8457_v35, %v15557_v44  ;;  %v8458_v56 = vmul.f32 %v14701_v17, %v8441_v3  ;;  %v8442_v40 = vsub.f32 %v15559_v20, %v8423_v7 }
 0xe46   : > { %v8425_v45 = vpop.f32.mrf.mxu0 }
 0xe47   : > { %8489 = vst [vmem:[#allocation2 + $0x60] sm:$0xff] %v8473_v46  ;;  %v8474_v9 = vadd.f32 %v8458_v56, %v15558_v2  ;;  %v8459_v36 = vmul.f32 %v14701_v17, %v8442_v40  ;;  %v8443_v52 = vsub.f32 %v15560_v18, %v8425_v45 }
 0xe49   : > { %8490 = vst [vmem:[#allocation2 + $0x70] sm:$0xff] %v8474_v9  ;;  %v8475_v24 = vadd.f32 %v8459_v36, %v15559_v20  ;;  %v8460_v30 = vmul.f32 %v14701_v17, %v8443_v52 }
 0xe4b   : > { %8491 = vst [vmem:[#allocation2 + $0x78] sm:$0xff] %v8475_v24  ;;  %v8476_v29 = vadd.f32 %v8460_v30, %v15560_v18 }
 0xe4d   : > { %8492 = vst [vmem:[#allocation2 + $0x28] sm:$0xff] %v8476_v29 }
 0xe4e PF: > { %s8493_s0 = sadd.s32 2, %s13205_s18 }
 0xe4f   : > { %s8494_s19 = sld [smem:[#allocation21 + %s8493_s0]] }
 0xe55   : > { %p9747_p12 = scmp.eq.s32.totalorder %s8494_s19, 0 }
 0xe56   : > { %s8499_s20 = sld [smem:[#allocation22 + %s13205_s18]] (!%p9747_p12) }
 0xe57   : > { %8498 = sbr.rel (%p9747_p12) target bundleno = 3972 (0xf84), region = 148 }
 0xe5c   : > { %v14752_v37 = vld [vmem:[#allocation2 + $0x30] sm:$0xff]  ;;  %v14754_v63 = vld [vmem:[#allocation2] sm:$0xff]  ;;  %v14756_v25 = vld [vmem:[#allocation2 + $0x58] sm:$0xff] }
 0xe5d   : > { %v14758_v38 = vld [vmem:[#allocation2 + $0x18] sm:$0xff]  ;;  %v14760_v47 = vld [vmem:[#allocation2 + $0x50] sm:$0xff]  ;;  %v14762_v17 = vld [vmem:[#allocation2 + $0x68] sm:$0xff] }
 0xe5e   : > { %v14764_v39 = vld [vmem:[#allocation2 + $0x8] sm:$0xff]  ;;  %v14768_v43 = vld [vmem:[#allocation2 + $0x40] sm:$0xff]  ;;  %v8516_v55 = vmin.f32 %v14752_v37, %v14760_v47  ;;  %v8517_v13 = vmin.f32 %v14754_v63, %v14762_v17  ;;  %v8540_v14 = vmax.f32 %v14752_v37, %v14760_v47  ;;  %v8541_v32 = vmax.f32 %v14754_v63, %v14762_v17  ;;  %v14780_v27 = vld [vmem:[#allocation2 + $0x10] sm:$0xff] }
 0xe5f   : > { %v14766_v12 = vld [vmem:[#allocation2 + $0x48] sm:$0xff]  ;;  %v14778_v62 = vld [vmem:[#allocation2 + $0x20] sm:$0xff]  ;;  %v14782_v23 = vld [vmem:[#allocation2 + $0x38] sm:$0xff]  ;;  %v8518_v42 = vmin.f32 %v14756_v25, %v14764_v39  ;;  %v8542_v61 = vmax.f32 %v14756_v25, %v14764_v39 }
 0xe60   : > { %v8519_v21 = vmin.f32 %v14758_v38, %v14766_v12  ;;  %v8543_v59 = vmax.f32 %v14758_v38, %v14766_v12  ;;  %v14792_v60 = vld [vmem:[#allocation2 + $0x60] sm:$0xff]  ;;  %v14794_v48 = vld [vmem:[#allocation2 + $0x70] sm:$0xff]  ;;  %v14796_v50 = vld [vmem:[#allocation2 + $0x78] sm:$0xff]  ;;  %v8520_v16 = vmin.f32 %v8516_v55, %v14768_v43  ;;  %v8521_v1 = vmin.f32 %v8517_v13, %v14778_v62 }
 0xe61   : > { %v8544_v15 = vmax.f32 %v8540_v14, %v14768_v43  ;;  %v8545_v10 = vmax.f32 %v8541_v32, %v14778_v62  ;;  %v14802_v6 = vld [vmem:[#allocation2 + $0x28] sm:$0xff]  ;;  %v8522_v5 = vmin.f32 %v8518_v42, %v14780_v27  ;;  %v8546_v54 = vmax.f32 %v8542_v61, %v14780_v27 }
 0xe62   : > { %v8523_v19 = vmin.f32 %v8519_v21, %v14782_v23  ;;  %v8547_v34 = vmax.f32 %v8543_v59, %v14782_v23  ;;  %v8524_v33 = vmin.f32 %v8520_v16, %v14792_v60  ;;  %v8525_v26 = vmin.f32 %v8521_v1, %v14794_v48 }
 0xe63   : > { %v8548_v8 = vmax.f32 %v8544_v15, %v14792_v60  ;;  %v8549_v57 = vmax.f32 %v8545_v10, %v14794_v48  ;;  %v8526_v11 = vmin.f32 %v8522_v5, %v14796_v50  ;;  %v8550_v22 = vmax.f32 %v8546_v54, %v14796_v50 }
 0xe64   : > { %v8527_v31 = vmin.f32 %v8523_v19, %v14802_v6  ;;  %v8551_v53 = vmax.f32 %v8547_v34, %v14802_v6  ;;  %v8528_v41 = vmin.f32 %v8524_v33, %v8525_v26 }
 0xe65   : > { %v8552_v0 = vmax.f32 %v8548_v8, %v8549_v57 }
 0xe66   : > { %v8529_v49 = vmin.f32 %v8526_v11, %v8527_v31  ;;  %v8553_v28 = vmax.f32 %v8550_v22, %v8551_v53 }
 0xe68   : > { %v8530_v44 = vmin.f32 %v8528_v41, %v8529_v49  ;;  %v8554_v4 = vmax.f32 %v8552_v0, %v8553_v28 }
 0xe6a   : > { %8531 = vmin.xlane.f32.xlu0 %v8530_v44 }
 0xe6e   : > { %8555 = vmax.xlane.f32.xlu0 %v8554_v4 }
 0xef3   : > { %v8532_v51 = vpop.xlane.xlu0 %8531 }
 0xef4   : > { %v8533_v58 = vrot.slane %v8532_v51, 4 }
 0xef6   : > { %v8534_v35 = vmin.f32 %v8532_v51, %v8533_v58 }
 0xef7   : > { %v8556_v2 = vpop.xlane.xlu0 %8555 }
 0xef8   : > { %v8535_v3 = vrot.slane %v8534_v35, 2  ;;  %v8557_v7 = vrot.slane %v8556_v2, 4 }
 0xefa   : > { %v8558_v46 = vmax.f32 %v8556_v2, %v8557_v7  ;;  %v8536_v56 = vmin.f32 %v8534_v35, %v8535_v3  ;;  %v14902_v35 = vstv %s8499_s20 }
 0xefc   : > { %v8559_v20 = vrot.slane %v8558_v46, 2  ;;  %v8537_v40 = vrot.slane %v8536_v56, 1 }
 0xefe   : > { %v8560_v45 = vmax.f32 %v8558_v46, %v8559_v20  ;;  %v8538_v9 = vmin.f32 %v8536_v56, %v8537_v40 }
 0xf00   : > { %10461 = vpush %v8538_v9  ;;  %v8561_v36 = vrot.slane %v8560_v45, 1 }
 0xf02   : > { %v8562_v18 = vmax.f32 %v8560_v45, %v8561_v36 }
 0xf04   : > { %10463 = vpush %v8562_v18 }
 0xf31   : > { %s10462_s3 = spop %10461 }
 0xf32   : > { %v14819_v24 = vstv %s10462_s3 }
 0xf33   : > { %v8566_v29 = vsub.f32 %v14752_v37, %v14819_v24  ;;  %v8567_v55 = vsub.f32 %v14754_v63, %v14819_v24  ;;  %v8568_v13 = vsub.f32 %v14756_v25, %v14819_v24  ;;  %v8569_v14 = vsub.f32 %v14758_v38, %v14819_v24 }
 0xf34   : > { %v8570_v32 = vsub.f32 %v14760_v47, %v14819_v24  ;;  %v8571_v37 = vsub.f32 %v14762_v17, %v14819_v24  ;;  %v8572_v63 = vsub.f32 %v14764_v39, %v14819_v24  ;;  %v8573_v38 = vsub.f32 %v14766_v12, %v14819_v24 }
 0xf35   : > { %s10464_s25 = spop %10463  ;;  %v8574_v47 = vsub.f32 %v14768_v43, %v14819_v24  ;;  %v8575_v39 = vsub.f32 %v14778_v62, %v14819_v24  ;;  %v8576_v43 = vsub.f32 %v14780_v27, %v14819_v24  ;;  %v8577_v34 = vsub.f32 %v14782_v23, %v14819_v24 }
 0xf36   : > { %s14816_s4 = ssub.f32 %s10464_s25, %s10462_s3  ;;  %v8578_v26 = vsub.f32 %v14792_v60, %v14819_v24  ;;  %v8579_v57 = vsub.f32 %v14794_v48, %v14819_v24  ;;  %v8580_v31 = vsub.f32 %v14796_v50, %v14819_v24  ;;  %v8581_v53 = vsub.f32 %v14802_v6, %v14819_v24 }
 0xf38   : > { %s8582_s21 = sadd.f32 1e-07, %s14816_s4 }
 0xf3a   : > { %v8583_v52 = vstv %s8582_s21 }
 0xf3b   : > { %10677 = vrcp.f32 %v8583_v52 }
 0xf48   : > { %v10678_v30 = vpop.eup %10677 }
 0xf49   : > { %v14831_v42 = vmul.f32 %v10678_v30, %v8566_v29  ;;  %v14833_v21 = vmul.f32 %v10678_v30, %v8567_v55  ;;  %v14835_v61 = vmul.f32 %v10678_v30, %v8568_v13  ;;  %v14839_v59 = vmul.f32 %v10678_v30, %v8569_v14 }
 0xf4a   : > { %v14843_v25 = vmul.f32 %v10678_v30, %v8570_v32  ;;  %v14849_v16 = vmul.f32 %v10678_v30, %v8571_v37  ;;  %v14851_v1 = vmul.f32 %v10678_v30, %v8572_v63  ;;  %v14858_v5 = vmul.f32 %v10678_v30, %v8573_v38 }
 0xf4b   : > { %v8617_v15 = vmax.f32 %v14831_v42, 1e-30  ;;  %v8618_v17 = vmax.f32 %v14833_v21, 1e-30  ;;  %v8619_v10 = vmax.f32 %v14835_v61, 1e-30  ;;  %v14863_v19 = vmul.f32 %v10678_v30, %v8574_v47 }
 0xf4c   : > { %v8620_v12 = vmax.f32 %v14839_v59, 1e-30  ;;  %v8621_v54 = vmax.f32 %v14843_v25, 1e-30  ;;  %v14868_v33 = vmul.f32 %v10678_v30, %v8575_v39  ;;  %v8622_v62 = vmax.f32 %v14849_v16, 1e-30 }
 0xf4d   : > { %10679 = vlog2.f32 %v8617_v15  ;;  %v14873_v8 = vmul.f32 %v10678_v30, %v8576_v43  ;;  %v8623_v27 = vmax.f32 %v14851_v1, 1e-30  ;;  %v14878_v11 = vmul.f32 %v10678_v30, %v8577_v34 }
 0xf4e   : > { %10681 = vlog2.f32 %v8618_v17  ;;  %v8624_v23 = vmax.f32 %v14858_v5, 1e-30  ;;  %v14883_v22 = vmul.f32 %v10678_v30, %v8578_v26  ;;  %v8625_v60 = vmax.f32 %v14863_v19, 1e-30 }
 0xf4f   : > { %10683 = vlog2.f32 %v8619_v10  ;;  %v14889_v41 = vmul.f32 %v10678_v30, %v8579_v57  ;;  %v8626_v48 = vmax.f32 %v14868_v33, 1e-30  ;;  %v14892_v49 = vmul.f32 %v10678_v30, %v8580_v31 }
 0xf50   : > { %10685 = vlog2.f32 %v8620_v12  ;;  %v8627_v0 = vmax.f32 %v14873_v8, 1e-30  ;;  %v14895_v50 = vmul.f32 %v10678_v30, %v8581_v53  ;;  %v8628_v28 = vmax.f32 %v14878_v11, 1e-30 }
 0xf51   : > { %10687 = vlog2.f32 %v8621_v54  ;;  %v8629_v44 = vmax.f32 %v14883_v22, 1e-30  ;;  %v8630_v6 = vmax.f32 %v14889_v41, 1e-30  ;;  %v8631_v4 = vmax.f32 %v14892_v49, 1e-30 }
 0xf52   : > { %10689 = vlog2.f32 %v8622_v62  ;;  %v8632_v51 = vmax.f32 %v14895_v50, 1e-30  ;;  %vm8601_vm1 = vcmp.gt.f32.partialorder %v14831_v42, 0.0  ;;  %vm8602_vm2 = vcmp.gt.f32.partialorder %v14833_v21, 0.0 }
 0xf53   : > { %10691 = vlog2.f32 %v8623_v27  ;;  %vm8603_vm3 = vcmp.gt.f32.partialorder %v14835_v61, 0.0  ;;  %vm8604_vm4 = vcmp.gt.f32.partialorder %v14839_v59, 0.0  ;;  %vm8605_vm5 = vcmp.gt.f32.partialorder %v14843_v25, 0.0 }
 0xf54   : > { %10693 = vlog2.f32 %v8624_v23  ;;  %vm8606_vm6 = vcmp.gt.f32.partialorder %v14849_v16, 0.0  ;;  %vm8607_vm7 = vcmp.gt.f32.partialorder %v14851_v1, 0.0  ;;  %vm8608_vm8 = vcmp.gt.f32.partialorder %v14858_v5, 0.0 }
 0xf55   : > { %10695 = vlog2.f32 %v8625_v60  ;;  %vm8609_vm9 = vcmp.gt.f32.partialorder %v14863_v19, 0.0  ;;  %vm8610_vm10 = vcmp.gt.f32.partialorder %v14868_v33, 0.0  ;;  %vm8611_vm11 = vcmp.gt.f32.partialorder %v14873_v8, 0.0 }
 0xf56   : > { %10697 = vlog2.f32 %v8626_v48  ;;  %vm8612_vm12 = vcmp.gt.f32.partialorder %v14878_v11, 0.0  ;;  %vm8613_vm13 = vcmp.gt.f32.partialorder %v14883_v22, 0.0  ;;  %vm8614_vm14 = vcmp.gt.f32.partialorder %v14889_v41, 0.0 }
 0xf57   : > { %10699 = vlog2.f32 %v8627_v0  ;;  %vm8615_vm15 = vcmp.gt.f32.partialorder %v14892_v49, 0.0  ;;  %vm8616_vm0 = vcmp.gt.f32.partialorder %v14895_v50, 0.0 }
 0xf58   : > { %10701 = vlog2.f32 %v8628_v28 }
 0xf59   : > { %10703 = vlog2.f32 %v8629_v44 }
 0xf5a   : > { %v10680_v58 = vpop.eup %10679  ;;  %10705 = vlog2.f32 %v8630_v6 }
 0xf5b   : > { %v10682_v2 = vpop.eup %10681  ;;  %v8634_v3 = vmul.f32 0.6931472, %v10680_v58  ;;  %10707 = vlog2.f32 %v8631_v4 }
 0xf5c   : > { %v10684_v7 = vpop.eup %10683  ;;  %v8636_v46 = vmul.f32 0.6931472, %v10682_v2  ;;  %10709 = vlog2.f32 %v8632_v51 }
 0xf5d   : > { %v10686_v56 = vpop.eup %10685  ;;  %v8638_v20 = vmul.f32 0.6931472, %v10684_v7  ;;  %v8666_v40 = vmul.f32 %v14902_v35, %v8634_v3 }
 0xf5e   : > { %v10688_v45 = vpop.eup %10687  ;;  %v8640_v9 = vmul.f32 0.6931472, %v10686_v56  ;;  %v8667_v36 = vmul.f32 %v14902_v35, %v8636_v46 }
 0xf5f   : > { %v10690_v18 = vpop.eup %10689  ;;  %v8642_v52 = vmul.f32 0.6931472, %v10688_v45  ;;  %v8668_v30 = vmul.f32 %v14902_v35, %v8638_v20  ;;  %v8682_v29 = vmul.f32 1.442695, %v8666_v40 }
 0xf60   : > { %v10692_v55 = vpop.eup %10691  ;;  %v8644_v13 = vmul.f32 0.6931472, %v10690_v18  ;;  %v8669_v14 = vmul.f32 %v14902_v35, %v8640_v9  ;;  %v8684_v32 = vmul.f32 1.442695, %v8667_v36 }
 0xf61   : > { %v10694_v37 = vpop.eup %10693  ;;  %v8646_v63 = vmul.f32 0.6931472, %v10692_v55  ;;  %v8670_v38 = vmul.f32 %v14902_v35, %v8642_v52  ;;  %10711 = vpow2.f32 %v8682_v29  ;;  %v8686_v47 = vmul.f32 1.442695, %v8668_v30 }
 0xf62   : > { %v10696_v15 = vpop.eup %10695  ;;  %v8648_v17 = vmul.f32 0.6931472, %v10694_v37  ;;  %v8671_v10 = vmul.f32 %v14902_v35, %v8644_v13  ;;  %10713 = vpow2.f32 %v8684_v32  ;;  %v8688_v39 = vmul.f32 1.442695, %v8669_v14 }
 0xf63   : > { %v10698_v12 = vpop.eup %10697  ;;  %v8650_v43 = vmul.f32 0.6931472, %v10696_v15  ;;  %v8672_v54 = vmul.f32 %v14902_v35, %v8646_v63  ;;  %10715 = vpow2.f32 %v8686_v47  ;;  %v8690_v34 = vmul.f32 1.442695, %v8670_v38 }
 0xf64   : > { %v10700_v62 = vpop.eup %10699  ;;  %v8652_v26 = vmul.f32 0.6931472, %v10698_v12  ;;  %v8673_v27 = vmul.f32 %v14902_v35, %v8648_v17  ;;  %10717 = vpow2.f32 %v8688_v39  ;;  %v8692_v57 = vmul.f32 1.442695, %v8671_v10 }
 0xf65   : > { %v10702_v23 = vpop.eup %10701  ;;  %v8654_v31 = vmul.f32 0.6931472, %v10700_v62  ;;  %v8674_v60 = vmul.f32 %v14902_v35, %v8650_v43  ;;  %10719 = vpow2.f32 %v8690_v34  ;;  %v8694_v53 = vmul.f32 1.442695, %v8672_v54 }
 0xf66   : > { %v10704_v48 = vpop.eup %10703  ;;  %v8656_v0 = vmul.f32 0.6931472, %v10702_v23  ;;  %v8675_v28 = vmul.f32 %v14902_v35, %v8652_v26  ;;  %10721 = vpow2.f32 %v8692_v57  ;;  %v8696_v44 = vmul.f32 1.442695, %v8673_v27 }
 0xf67   : > { %v10706_v6 = vpop.eup %10705  ;;  %v8658_v4 = vmul.f32 0.6931472, %v10704_v48  ;;  %v8676_v51 = vmul.f32 %v14902_v35, %v8654_v31  ;;  %10723 = vpow2.f32 %v8694_v53  ;;  %v8698_v58 = vmul.f32 1.442695, %v8674_v60 }
 0xf68   : > { %v10708_v2 = vpop.eup %10707  ;;  %v8660_v3 = vmul.f32 0.6931472, %v10706_v6  ;;  %v8677_v7 = vmul.f32 %v14902_v35, %v8656_v0  ;;  %10725 = vpow2.f32 %v8696_v44  ;;  %v8700_v46 = vmul.f32 1.442695, %v8675_v28 }
 0xf69   : > { %v10710_v56 = vpop.eup %10709  ;;  %v8662_v20 = vmul.f32 0.6931472, %v10708_v2  ;;  %v8678_v40 = vmul.f32 %v14902_v35, %v8658_v4  ;;  %10727 = vpow2.f32 %v8698_v58  ;;  %v8702_v45 = vmul.f32 1.442695, %v8676_v51 }
 0xf6a   : > { %v8664_v9 = vmul.f32 0.6931472, %v10710_v56  ;;  %v8679_v36 = vmul.f32 %v14902_v35, %v8660_v3  ;;  %10729 = vpow2.f32 %v8700_v46  ;;  %v8704_v18 = vmul.f32 1.442695, %v8677_v7 }
 0xf6b   : > { %v8680_v52 = vmul.f32 %v14902_v35, %v8662_v20  ;;  %10731 = vpow2.f32 %v8702_v45  ;;  %v8706_v30 = vmul.f32 1.442695, %v8678_v40  ;;  %v14923_v38 = vstv %s14816_s4 }
 0xf6c   : > { %v8681_v29 = vmul.f32 %v14902_v35, %v8664_v9  ;;  %10733 = vpow2.f32 %v8704_v18  ;;  %v8708_v55 = vmul.f32 1.442695, %v8679_v36 }
 0xf6d   : > { %10735 = vpow2.f32 %v8706_v30  ;;  %v8710_v13 = vmul.f32 1.442695, %v8680_v52 }
 0xf6e   : > { %v10712_v14 = vpop.eup %10711  ;;  %10737 = vpow2.f32 %v8708_v55  ;;  %v8712_v32 = vmul.f32 1.442695, %v8681_v29 }
 0xf6f   : > { %v10714_v37 = vpop.eup %10713  ;;  %10739 = vpow2.f32 %v8710_v13  ;;  %v8714_v63 = vsel %vm8601_vm1, %v10712_v14, 0.0 }
 0xf70   : > { %v10716_v47 = vpop.eup %10715  ;;  %10741 = vpow2.f32 %v8712_v32  ;;  %v8715_v35 = vsel %vm8602_vm2, %v10714_v37, 0.0  ;;  %v8731_v15 = vmul.f32 %v14923_v38, %v8714_v63 }
 0xf71   : > { %v10718_v17 = vpop.eup %10717  ;;  %v8716_v42 = vsel %vm8603_vm3, %v10716_v47, 0.0  ;;  %v8732_v10 = vmul.f32 %v14923_v38, %v8715_v35 }
 0xf72   : > { %v10720_v39 = vpop.eup %10719  ;;  %v8717_v21 = vsel %vm8604_vm4, %v10718_v17, 0.0  ;;  %v8733_v12 = vmul.f32 %v14923_v38, %v8716_v42  ;;  %v8747_v43 = vadd.f32 %v8731_v15, %v14819_v24 }
 0xf73   : > { %v10722_v54 = vpop.eup %10721  ;;  %v8718_v61 = vsel %vm8605_vm5, %v10720_v39, 0.0  ;;  %v8734_v34 = vmul.f32 %v14923_v38, %v8717_v21  ;;  %v8748_v62 = vadd.f32 %v8732_v10, %v14819_v24 }
 0xf74   : > { %v10724_v59 = vpop.eup %10723  ;;  %v8719_v26 = vsel %vm8606_vm6, %v10722_v54, 0.0  ;;  %v8735_v27 = vmul.f32 %v14923_v38, %v8718_v61  ;;  %v8749_v25 = vadd.f32 %v8733_v12, %v14819_v24  ;;  %8763 = vst [vmem:[#allocation2 + $0x30] sm:$0xff] %v8747_v43 }
 0xf75   : > { %v10726_v57 = vpop.eup %10725  ;;  %v8720_v23 = vsel %vm8607_vm7, %v10724_v59, 0.0  ;;  %v8736_v16 = vmul.f32 %v14923_v38, %v8719_v26  ;;  %v8750_v31 = vadd.f32 %v8734_v34, %v14819_v24  ;;  %8764 = vst [vmem:[#allocation2] sm:$0xff] %v8748_v62 }
 0xf76   : > { %v10728_v60 = vpop.eup %10727  ;;  %v8721_v53 = vsel %vm8608_vm8, %v10726_v57, 0.0  ;;  %v8737_v1 = vmul.f32 %v14923_v38, %v8720_v23  ;;  %v8751_v48 = vadd.f32 %v8735_v27, %v14819_v24  ;;  %8765 = vst [vmem:[#allocation2 + $0x58] sm:$0xff] %v8749_v25 }
 0xf77   : > { %v10730_v0 = vpop.eup %10729  ;;  %v8722_v28 = vsel %vm8609_vm9, %v10728_v60, 0.0  ;;  %v8738_v5 = vmul.f32 %v14923_v38, %v8721_v53  ;;  %v8752_v44 = vadd.f32 %v8736_v16, %v14819_v24  ;;  %8766 = vst [vmem:[#allocation2 + $0x18] sm:$0xff] %v8750_v31 }
 0xf78   : > { %v10732_v6 = vpop.eup %10731  ;;  %v8723_v4 = vsel %vm8610_vm10, %v10730_v0, 0.0  ;;  %v8739_v19 = vmul.f32 %v14923_v38, %v8722_v28  ;;  %v8753_v51 = vadd.f32 %v8737_v1, %v14819_v24  ;;  %8767 = vst [vmem:[#allocation2 + $0x50] sm:$0xff] %v8751_v48 }
 0xf79   : > { %v10734_v58 = vpop.eup %10733  ;;  %v8724_v2 = vsel %vm8611_vm11, %v10732_v6, 0.0  ;;  %v8740_v33 = vmul.f32 %v14923_v38, %v8723_v4  ;;  %v8754_v3 = vadd.f32 %v8738_v5, %v14819_v24  ;;  %8768 = vst [vmem:[#allocation2 + $0x68] sm:$0xff] %v8752_v44 }
 0xf7a   : > { %v10736_v7 = vpop.eup %10735  ;;  %v8725_v46 = vsel %vm8612_vm12, %v10734_v58, 0.0  ;;  %v8741_v8 = vmul.f32 %v14923_v38, %v8724_v2  ;;  %v8755_v56 = vadd.f32 %v8739_v19, %v14819_v24  ;;  %8769 = vst [vmem:[#allocation2 + $0x8] sm:$0xff] %v8753_v51 }
 0xf7b   : > { %v10738_v20 = vpop.eup %10737  ;;  %v8726_v40 = vsel %vm8613_vm13, %v10736_v7, 0.0  ;;  %v8742_v11 = vmul.f32 %v14923_v38, %v8725_v46  ;;  %v8756_v45 = vadd.f32 %v8740_v33, %v14819_v24  ;;  %8770 = vst [vmem:[#allocation2 + $0x48] sm:$0xff] %v8754_v3 }
 0xf7c   : > { %v10740_v9 = vpop.eup %10739  ;;  %v8727_v36 = vsel %vm8614_vm14, %v10738_v20, 0.0  ;;  %v8743_v22 = vmul.f32 %v14923_v38, %v8726_v40  ;;  %v8757_v18 = vadd.f32 %v8741_v8, %v14819_v24  ;;  %8771 = vst [vmem:[#allocation2 + $0x40] sm:$0xff] %v8755_v56 }
 0xf7d   : > { %v10742_v52 = vpop.eup %10741  ;;  %v8728_v30 = vsel %vm8615_vm15, %v10740_v9, 0.0  ;;  %v8744_v41 = vmul.f32 %v14923_v38, %v8727_v36  ;;  %v8758_v29 = vadd.f32 %v8742_v11, %v14819_v24  ;;  %8772 = vst [vmem:[#allocation2 + $0x20] sm:$0xff] %v8756_v45 }
 0xf7e   : > { %v8729_v55 = vsel %vm8616_vm0, %v10742_v52, 0.0  ;;  %v8745_v13 = vmul.f32 %v14923_v38, %v8728_v30  ;;  %v8759_v49 = vadd.f32 %v8743_v22, %v14819_v24  ;;  %8773 = vst [vmem:[#allocation2 + $0x10] sm:$0xff] %v8757_v18 }
 0xf7f   : > { %v8746_v14 = vmul.f32 %v14923_v38, %v8729_v55  ;;  %v8760_v32 = vadd.f32 %v8744_v41, %v14819_v24  ;;  %8774 = vst [vmem:[#allocation2 + $0x38] sm:$0xff] %v8758_v29 }
 0xf80   : > { %v8761_v37 = vadd.f32 %v8745_v13, %v14819_v24  ;;  %8775 = vst [vmem:[#allocation2 + $0x60] sm:$0xff] %v8759_v49 }
 0xf81   : > { %v8762_v50 = vadd.f32 %v8746_v14, %v14819_v24  ;;  %8776 = vst [vmem:[#allocation2 + $0x70] sm:$0xff] %v8760_v32 }
 0xf82   : > { %8777 = vst [vmem:[#allocation2 + $0x78] sm:$0xff] %v8761_v37 }
 0xf83   : > { %8778 = vst [vmem:[#allocation2 + $0x28] sm:$0xff] %v8762_v50 }
 0xf84 PF: > { %v8779_v63 = vld [vmem:[#allocation2 + $0x30] sm:$0xff]  ;;  %s15561_s18 = sld [smem:[#allocation41_spill]]  ;;  %v8780_v38 = vld [vmem:[#allocation2] sm:$0xff]  ;;  %v8781_v47 = vld [vmem:[#allocation2 + $0x58] sm:$0xff]  ;;  %s8830_s9 = sshll.u32 %s13212_s11, 4  ;;  %s14984_s9 = int_to_ptr.vmem [resolvable:$true] %s8830_s9 }
 0xf85   : > { %8795 = vst [vmem:[%s13212_s11] sm:$0xff] %v8779_v63  ;;  %8796 = vst [vmem:[%s13212_s11 + $0x8] sm:$0xff] %v8780_v38  ;;  %v8782_v24 = vld [vmem:[#allocation2 + $0x18] sm:$0xff]  ;;  %v8783_v35 = vld [vmem:[#allocation2 + $0x50] sm:$0xff]  ;;  %s15562_s28 = sld [smem:[#allocation144_spill]]  ;;  %s8846_s10 = sshll.u32 %s12816_s30, 4  ;;  %s14997_s10 = int_to_ptr.vmem [resolvable:$true] %s8846_s10 }
 0xf86   : > { %8797 = vst [vmem:[%s13212_s11 + $0x10] sm:$0xff] %v8781_v47  ;;  %v8784_v15 = vld [vmem:[#allocation2 + $0x68] sm:$0xff]  ;;  %8798 = vst [vmem:[%s13212_s11 + $0x18] sm:$0xff] %v8782_v24  ;;  %v8787_v10 = vld [vmem:[#allocation2 + $0x40] sm:$0xff]  ;;  %s15564_s26 = sld [smem:[#allocation45_spill]]  ;;  %s8812_s25 = scalar_lea.sflag [#allocation5], %s11639_s2 }
 0xf87   : > { %8799 = vst [vmem:[%s13212_s11 + $0x20] sm:$0xff] %v8783_v35  ;;  %8800 = vst [vmem:[%s13212_s11 + $0x28] sm:$0xff] %v8784_v15  ;;  %v8785_v17 = vld [vmem:[#allocation2 + $0x8] sm:$0xff]  ;;  %v8788_v39 = vld [vmem:[#allocation2 + $0x20] sm:$0xff]  ;;  %s15565_s19 = sld [smem:[#allocation145_spill]]  ;;  %s11045_s4 = scalar_lea.vmem %s14984_s9, 2048 }
 0xf88   : > { %v8786_v42 = vld [vmem:[#allocation2 + $0x48] sm:$0xff]  ;;  %8801 = vst [vmem:[%s13212_s11 + $0x30] sm:$0xff] %v8785_v17  ;;  %8803 = vst [vmem:[%s13212_s11 + $0x40] sm:$0xff] %v8787_v10  ;;  %v8789_v21 = vld [vmem:[#allocation2 + $0x10] sm:$0xff]  ;;  %p11046_p2 = scmp.ne.s32.totalorder %s14984_s9, %s11045_s4  ;;  %s11191_s30 = smov [#allocation24]  }
 0xf89   : > { %8802 = vst [vmem:[%s13212_s11 + $0x38] sm:$0xff] %v8786_v42  ;;  %v8790_v12 = vld [vmem:[#allocation2 + $0x38] sm:$0xff]  ;;  %8804 = vst [vmem:[%s13212_s11 + $0x48] sm:$0xff] %v8788_v39  ;;  %v8791_v43 = vld [vmem:[#allocation2 + $0x60] sm:$0xff]  ;;  %s11049_s21 = sshll.u32 %s11191_s30, 4  ;;  %s11050_s21 = int_to_ptr.vmem [resolvable:$false] %s11049_s21 }
 0xf8a   : > { %s9762_s27 = sshll.u32 %s15561_s18, 11  ;;  %8805 = vst [vmem:[%s13212_s11 + $0x50] sm:$0xff] %v8789_v21  ;;  %8806 = vst [vmem:[%s13212_s11 + $0x58] sm:$0xff] %v8790_v12  ;;  %v8792_v54 = vld [vmem:[#allocation2 + $0x70] sm:$0xff]  ;;  %v8793_v61 = vld [vmem:[#allocation2 + $0x78] sm:$0xff]  ;;  %s10465_s17 = smul.u32 1536, %s15561_s18 }
 0xf8b   : > { %s15563_s24 = smov %s15562_s28  ;;  %s14982_s1 = scalar_lea.hbm %s15562_s28, %s9762_s27  ;;  %8807 = vst [vmem:[%s13212_s11 + $0x60] sm:$0xff] %v8791_v43  ;;  %8808 = vst [vmem:[%s13212_s11 + $0x68] sm:$0xff] %v8792_v54  ;;  %v8794_v34 = vld [vmem:[#allocation2 + $0x28] sm:$0xff] }
 0xf8c   : > { %8809 = vst [vmem:[%s13212_s11 + $0x70] sm:$0xff] %v8793_v61  ;;  %8810 = vst [vmem:[%s13212_s11 + $0x78] sm:$0xff] %v8794_v34  ;;  %p15566_p0 = scmp.ne.s32.totalorder %s15564_s26, 0  ;;  %s11051_s20 = scalar_lea.vmem %s11050_s21, 4096 }
 0xf8d   : > { %s15003_s3 = scalar_lea.hbm %s15565_s19, %s10465_s17  ;;  %p11052_p13 = scmp.lt.s32.totalorder %s14984_s9, %s11050_s21 }
 0xf8e   : > { %p11047_p9 = pnand %p11046_p2, %p15566_p0  ;;  %p11053_p7 = scmp.lt.s32.totalorder %s11051_s20, %s11045_s4 }
 0xf90   : > { %p11048_p10 = pneg %p11047_p9  ;;  %p11054_p5 = por %p11053_p7, %p11052_p13 }
 0xf92   : > { %p11055_p3 = pnand %p11054_p5, %p11048_p10 }
 0xf94   : > { %11058 = shalt.err (!%p11055_p3)
}
 0xf95   : > { %s11059_s11 = scalar_lea.hbm %s14982_s1, 2048  ;;  %s11063_s22 = scalar_lea.hbm %s15563_s24, 4096 }
 0xf96   : > { %p11060_p1 = scmp.ne.s32.totalorder %s14982_s1, %s11059_s11  ;;  %p11064_p8 = scmp.lt.s32.totalorder %s14982_s1, %s15563_s24 }
 0xf97   : > { %p11065_p11 = scmp.lt.s32.totalorder %s11063_s22, %s11059_s11 }
 0xf98   : > { %p11061_p4 = pnand %p11060_p1, %p15566_p0 }
 0xf99   : > { %p11066_p12 = por %p11065_p11, %p11064_p8 }
 0xf9a   : > { %p11062_p6 = pneg %p11061_p4 }
 0xf9c   : > { %p11067_p2 = pnand %p11066_p12, %p11062_p6 }
 0xf9e   : > { %11070 = shalt.err (!%p11067_p2)
}
 0xf9f   : > { %s11192_s17 = smov 256   ;;  %s11193_s23 = smov 16  }
 0xfa0   : > { %10502 = dma.vmem_to_hbm [thread:$0]  (%p15566_p0), %s14984_s9, 2048, %s14982_s1, %s8812_s25, %s11192_s17, %s11192_s17, %s11193_s23  }
 0xfa1   : > { %s8817_s0 = scalar_lea.sflag [#allocation26], %s11639_s2  ;;  %s11071_s4 = scalar_lea.vmem %s14997_s10, 1536 }
 0xfa2   : > { %p11072_p9 = scmp.ne.s32.totalorder %s14997_s10, %s11071_s4  ;;  %s11194_s30 = smov [#allocation25]  }
 0xfa3   : > { %s11075_s21 = sshll.u32 %s11194_s30, 4  ;;  %s11076_s21 = int_to_ptr.vmem [resolvable:$false] %s11075_s21 }
 0xfa4   : > { %p11073_p10 = pnand %p11072_p9, %p15566_p0  ;;  %s11077_s20 = scalar_lea.vmem %s11076_s21, 3072 }
 0xfa5   : > { %p11078_p7 = scmp.lt.s32.totalorder %s14997_s10, %s11076_s21  ;;  %p11079_p5 = scmp.lt.s32.totalorder %s11077_s20, %s11071_s4 }
 0xfa6   : > { %p11074_p13 = pneg %p11073_p10 }
 0xfa7   : > { %p11080_p3 = por %p11079_p5, %p11078_p7 }
 0xfa9   : > { %p11081_p1 = pnand %p11080_p3, %p11074_p13 }
 0xfab   : > { %11084 = shalt.err (!%p11081_p1)
}
 0xfac   : > { %s11085_s9 = scalar_lea.hbm %s15003_s3, 1536  ;;  %s11089_s25 = scalar_lea.hbm %s15565_s19, 3072 }
 0xfad   : > { %p11086_p4 = scmp.ne.s32.totalorder %s15003_s3, %s11085_s9  ;;  %p11090_p11 = scmp.lt.s32.totalorder %s15003_s3, %s15565_s19 }
 0xfae   : > { %p11091_p12 = scmp.lt.s32.totalorder %s11089_s25, %s11085_s9 }
 0xfaf   : > { %p11087_p6 = pnand %p11086_p4, %p15566_p0 }
 0xfb0   : > { %p11092_p2 = por %p11091_p12, %p11090_p11 }
 0xfb1   : > { %p11088_p8 = pneg %p11087_p6 }
 0xfb3   : > { %p11093_p9 = pnand %p11092_p2, %p11088_p8 }
 0xfb5   : > { %11096 = shalt.err (!%p11093_p9)
}
 0xfb6   : > { %10503 = dma.vmem_to_hbm [thread:$0]  (%p15566_p0), %s14997_s10, 1536, %s15003_s3, %s8817_s0, %s11192_s17, %s11192_s17, %s11193_s23  }
 0xfb7 PF: > { %s15567_s27 = sld [smem:[#allocation38_spill]] }
 0xfb8   : > { %s15568_s22 = sld [smem:[#allocation43_spill]] }
 0xfb9   : > { %s15569_s13 = sld [smem:[#allocation40_spill]] }
 0xfbd   : > { %s8861_s28 = sand.u32 1, %s15567_s27  }
 0xfbe   : > { %p15570_p10 = scmp.ne.s32.totalorder %s15568_s22, 0  ;;  %s8862_s4 = scalar_lea.sflag [#allocation5], %s8861_s28 }
 0xfbf   : > { %p15571_p13 = scmp.ge.s32.totalorder %s15569_s13, 2 }
 0xfc1   : > { %p10545_p7 = pnand %p15571_p13, %p15570_p10 }
 0xfc3   : > { %p10546_p5 = pneg %p10545_p7 }
 0xfc5   : > { %11150 = dma.done.wait (%p10546_p5), %s8862_s4, 2048  }
 0xfc6   : > { %11152 = vsyncadd (%p10546_p5), %s8862_s4, 4294965248  ;;  %s8871_s30 = scalar_lea.sflag [#allocation26], %s8861_s28 }
 0xfc7   : > { %11154 = dma.done.wait (%p10546_p5), %s8871_s30, 1536  }
 0xfc8   : > { %11156 = vsyncadd (%p10546_p5), %s8871_s30, 4294965760  ;;  %s15572_s30 = sld [smem:[#allocation44_spill]]  ;;  %s15575_s28 = smov %s11167_s29 }
 0xfc9   : > { %s15573_s27 = sld [smem:[#allocation39_spill]] }
 0xfca   : > { %s15574_s26 = sld [smem:[#allocation46_spill]] }
 0xfce   : > { %p48_p0 = scmp.ge.s32.totalorder %s15572_s30, 4  }
 0xfd0   : > { %s15576_s29 = smov %s15574_s26  ;;  %50 = sbr.rel (!%p48_p0) target bundleno = 29 (0x1d), region = 257 }
 0xfd5   :  { %8876 = vsyncpa [#allocation4], 1 }
 0xfd6   :  { %8878 = vsyncpa [#allocation4 + $0x1], 1 }
 0xfd7   :  { %8879 = vsyncpa [#allocation8], 1 }
 0xfd8   :  { %8881 = vsyncpa [#allocation8 + $0x1], 1 }
 0xfd9   :  { %8882 = vsyncpa [#allocation11], 1 }
 0xfda   :  { %8884 = vsyncpa [#allocation11 + $0x1], 1 }
 0xfdb   :  { %8885 = vsyncpa [#allocation14], 1 }
 0xfdc   :  { %8887 = vsyncpa [#allocation14 + $0x1], 1 }
 0xfdd   :  { %8888 = vsyncpa [#allocation17], 1 }
 0xfde   :  { %8889 = vsyncpa [#allocation20], 1 }
 0xfdf   :  { %8890 = vsyncpa [#allocation5], 1 }
 0xfe0   :  { %8892 = vsyncpa [#allocation5 + $0x1], 1 }
 0xfe1   :  { %8893 = vsyncpa [#allocation26], 1 }
 0xfe2   :  { %8895 = vsyncpa [#allocation26 + $0x1], 1 }
 0xfe3   :  { %8896 = vsyncpa [#allocation6], 1 }
 0xfe4   :  { %8898 = vsyncpa [#allocation6 + $0x1], 1 }
 0xfe5   :  { %8899 = vsyncpa [#allocation23], 1 }

</bundles_post_ra>
